<compile_context>
chip_gen: v7x
topology: tpu7x:2x2x1
jax: 0.10.0
libtpu: 0.0.40
codegen_flags: <defaults>
</compile_context>

<pallas_src>
import jax
import jax.numpy as jnp
from jax import lax
from jax.experimental import pallas as pl
from jax.experimental.pallas import tpu as pltpu


ENC_SIZE = 256   # self.encsize
REC_SIZE = 256   # self.recsize


def _sigmoid(x):
    # exact sigmoid via a single tanh EUP push
    return 0.5 * (jnp.tanh(0.5 * x) + 1.0)


def _rollout_kernel(obsg_ref, aidx_ref, h0_ref, c0_ref,
                    w_enc_ref, b_enc_ref,
                    w_ih_e_ref, w_ih_a_ref, w_hh_ref, b_lstm_ref,
                    h_out_ref, c_out_ref,
                    h_scr, c_scr):
    t = pl.program_id(1)                  # time-chunk index (innermost axis)

    TT = h_out_ref.shape[0]               # timesteps per chunk
    WB = h_out_ref.shape[1]               # batch rows per chunk
    H = REC_SIZE
    G4 = w_hh_ref.shape[1]                # 4*H
    size_act = w_ih_a_ref.shape[0]

    # Load the initial recurrent state into VMEM scratch at the first time chunk
    # of each batch chunk.
    @pl.when(t == 0)
    def _():
        h_scr[...] = h0_ref[...]
        c_scr[...] = c0_ref[...]

    def step(tt, carry):
        h, c = carry                       # (WB, H) f32

        # encoder: Linear(2*obs_dim -> 256) + ReLU; obs|goal pre-concatenated
        # and pre-cast to bf16 in the wrapper.  bf16 MXU, f32 accumulation.
        xg = obsg_ref[tt]                  # (WB, 2*obs_dim) bf16
        e = jnp.dot(xg, w_enc_ref[...],
                    preferred_element_type=jnp.float32) + b_enc_ref[...]
        e = jnp.maximum(e, 0.0)

        # action contribution: row-gather of w_ih_a by index, realized as a
        # select-sum over the small static action vocabulary (VPU, no MXU push,
        # no one-hot stream).  Mathematically == onehot(a) @ w_ih_a.
        idx = aidx_ref[tt]                 # (WB, 1) int32
        a_contrib = jnp.zeros((WB, G4), jnp.float32)
        for k in range(size_act):
            sel = jnp.where(idx == k, 1.0, 0.0)                       # (WB, 1)
            a_contrib = a_contrib + sel * w_ih_a_ref[k:k + 1, :].astype(
                jnp.float32)                                          # (1, 4H)

        # LSTMCell gates on cat([e, a]) with weight_ih split into encoder /
        # action parts (identical math to the torch.cat).
        gates = (jnp.dot(e.astype(jnp.bfloat16), w_ih_e_ref[...],
                         preferred_element_type=jnp.float32)
                 + jnp.dot(h.astype(jnp.bfloat16), w_hh_ref[...],
                           preferred_element_type=jnp.float32)
                 + a_contrib + b_lstm_ref[...])

        # gate layout is [i | f | o | g] (reordered in make_params): one big
        # sigmoid + one tanh instead of four separate activations.
        ifo = _sigmoid(gates[:, :3 * H])
        g_g = jnp.tanh(gates[:, 3 * H:])
        i_g = ifo[:, 0 * H:1 * H]
        f_g = ifo[:, 1 * H:2 * H]
        o_g = ifo[:, 2 * H:3 * H]

        c_new = f_g * c + i_g * g_g        # f32 cell-state update
        h_new = o_g * jnp.tanh(c_new)

        # per-step outputs, like repeated calls to forward()
        h_out_ref[tt] = h_new
        c_out_ref[tt] = c_new
        return h_new, c_new

    h_fin, c_fin = lax.fori_loop(0, TT, step, (h_scr[...], c_scr[...]),
                                 unroll=True)
    # carry the recurrent state to the next time chunk
    h_scr[...] = h_fin
    c_scr[...] = c_fin


def actor_critic_rollout(obs, goals, act_idx, h0, c0, params, *, tt=None, wb=None):
    """Fused T-step rollout of ActorCritic.forward.

    obs, goals: (T, W, obs_dim) f32; act_idx: (T, W) int32 (previous action ids)
    h0, c0:     (W, REC_SIZE)   f32
    Returns h_all, c_all: (T, W, REC_SIZE) f32, where (h_all[t], c_all[t]) equals
    the t-th sequential call of the PyTorch forward().
    """
    T, W, obs_dim = obs.shape
    TT = T if tt is None else tt
    WB = W if wb is None else wb
    assert T % TT == 0 and W % WB == 0, "T/W must be divisible by TT/WB"
    D2 = 2 * obs_dim

    # fold the torch.cat([x, g], dim=1) into the wrapper; stream bf16
    obs_goal = jnp.concatenate(
        [obs.astype(jnp.float32), goals.astype(jnp.float32)], axis=-1
    ).astype(jnp.bfloat16)                              # (T, W, 2*obs_dim)
    aidx = act_idx.astype(jnp.int32).reshape(T, W, 1)   # (T, W, 1)

    def stream(shape):                 # per-chunk activation tile
        return pl.BlockSpec(shape, lambda b, t: (t, b, 0))

    def resident(shape):               # weight / bias: fetched once, stays in VMEM
        return pl.BlockSpec(shape, lambda b, t: (0, 0))

    grid_spec = pltpu.PrefetchScalarGridSpec(
        num_scalar_prefetch=0,
        grid=(W // WB, T // TT),                     # (parallel batch, serial time)
        in_specs=[
            stream((TT, WB, D2)),                    # obs|goal       (bf16)
            stream((TT, WB, 1)),                     # action indices (int32)
            pl.BlockSpec((WB, REC_SIZE), lambda b, t: (b, 0)),   # h0
            pl.BlockSpec((WB, REC_SIZE), lambda b, t: (b, 0)),   # c0
            resident((D2, ENC_SIZE)),                # w_enc   (bf16)
            resident((1, ENC_SIZE)),                 # b_enc   (f32)
            resident((ENC_SIZE, 4 * REC_SIZE)),      # w_ih_e  (bf16)
            resident((params["w_ih_a"].shape[0], 4 * REC_SIZE)),  # w_ih_a (bf16)
            resident((REC_SIZE, 4 * REC_SIZE)),      # w_hh    (bf16)
            resident((1, 4 * REC_SIZE)),             # b_lstm  (f32)
        ],
        out_specs=(
            pl.BlockSpec((TT, WB, REC_SIZE), lambda b, t: (t, b, 0)),  # h per step
            pl.BlockSpec((TT, WB, REC_SIZE), lambda b, t: (t, b, 0)),  # c per step
        ),
        scratch_shapes=[
            pltpu.VMEM((WB, REC_SIZE), jnp.float32),   # carried h
            pltpu.VMEM((WB, REC_SIZE), jnp.float32),   # carried c
        ],
    )

    out_shape = (jax.ShapeDtypeStruct((T, W, REC_SIZE), jnp.float32),
                 jax.ShapeDtypeStruct((T, W, REC_SIZE), jnp.float32))

    h_all, c_all = pl.pallas_call(
        _rollout_kernel,
        out_shape=out_shape,
        grid_spec=grid_spec,
        compiler_params=pltpu.CompilerParams(
            dimension_semantics=("parallel", "arbitrary")),  # batch || , time serial
    )(obs_goal, aidx, h0, c0,
      params["w_enc"], params["b_enc"],
      params["w_ih_e"], params["w_ih_a"], params["w_hh"], params["b_lstm"])
    return h_all, c_all


def _reorder_gates(w):
    """PyTorch gate order [i|f|g|o] -> kernel order [i|f|o|g] along last dim."""
    H = REC_SIZE
    i, f, g, o = w[..., :H], w[..., H:2 * H], w[..., 2 * H:3 * H], w[..., 3 * H:]
    return jnp.concatenate([i, f, o, g], axis=-1)


def make_params(key, obs_dim, size_act):
    """PyTorch-style uniform(-1/sqrt(fan), 1/sqrt(fan)) init; weights in bf16,
    gate columns reordered to [i|f|o|g]."""
    csize = obs_dim * 2
    ks = jax.random.split(key, 6)

    def unif(k, shape, fan_in):
        bound = 1.0 / jnp.sqrt(jnp.float32(fan_in))
        return jax.random.uniform(k, shape, jnp.float32, -bound, bound)

    # encoder: Linear(csize, 256); stored transposed (in, out)
    w_enc = unif(ks[0], (csize, ENC_SIZE), csize)
    b_enc = unif(ks[1], (1, ENC_SIZE), csize)

    # LSTMCell(ENC_SIZE + size_act, REC_SIZE); weight_ih stored transposed and
    # split into encoder rows / action rows (equivalent to the torch.cat)
    lstm_in = ENC_SIZE + size_act
    w_ih = unif(ks[2], (lstm_in, 4 * REC_SIZE), REC_SIZE)
    w_hh = unif(ks[3], (REC_SIZE, 4 * REC_SIZE), REC_SIZE)
    b_ih = unif(ks[4], (1, 4 * REC_SIZE), REC_SIZE)
    b_hh = unif(ks[5], (1, 4 * REC_SIZE), REC_SIZE)

    bf16 = jnp.bfloat16
    return {
        "w_enc": w_enc.astype(bf16),
        "b_enc": b_enc,
        "w_ih_e": _reorder_gates(w_ih[:ENC_SIZE, :]).astype(bf16),
        "w_ih_a": _reorder_gates(w_ih[ENC_SIZE:, :]).astype(bf16),
        "w_hh": _reorder_gates(w_hh).astype(bf16),
        "b_lstm": _reorder_gates(b_ih + b_hh),
    }


def _reference_rollout(obs, goals, act_idx, h0, c0, p):
    """Pure-JAX reference of the same math (same bf16 weights, same gate layout)."""
    xg_all = jnp.concatenate([obs, goals], axis=-1).astype(jnp.bfloat16)
    w_a_f32 = p["w_ih_a"].astype(jnp.float32)

    def step(carry, inp):
        h, c = carry
        xg, idx = inp
        e = jnp.dot(xg, p["w_enc"], preferred_element_type=jnp.float32) + p["b_enc"]
        e = jnp.maximum(e, 0.0)
        a_contrib = jnp.take(w_a_f32, idx, axis=0)          # (W, 4H)
        gates = (jnp.dot(e.astype(jnp.bfloat16), p["w_ih_e"],
                         preferred_element_type=jnp.float32)
                 + jnp.dot(h.astype(jnp.bfloat16), p["w_hh"],
                           preferred_element_type=jnp.float32)
                 + a_contrib + p["b_lstm"])
        H = REC_SIZE
        i = jax.nn.sigmoid(gates[:, :H])
        f = jax.nn.sigmoid(gates[:, H:2 * H])
        o = jax.nn.sigmoid(gates[:, 2 * H:3 * H])
        g = jnp.tanh(gates[:, 3 * H:])
        c_new = f * c + i * g
        h_new = o * jnp.tanh(c_new)
        return (h_new, c_new), (h_new, c_new)

    _, (h_all, c_all) = lax.scan(step, (h0, c0), (xg_all, act_idx))
    return h_all, c_all


if __name__ == "__main__":
    key = jax.random.PRNGKey(0)
    T = 8          # rollout length
    TT = 4         # timesteps per grid step (chunked recurrence)
    W = 16         # batch / rollout width (16 fills the bf16 (16,128) sublane pack)
    WB = 16        # batch rows per (parallel) batch chunk
    obs_dim = 32   # obs_space.shape[0]
    size_act = 8   # act_space.n

    k_obs, k_goal, k_act, k_param = jax.random.split(key, 4)
    obs = jax.random.normal(k_obs, (T, W, obs_dim), jnp.float32)
    goals = jax.random.normal(k_goal, (T, W, obs_dim), jnp.float32)
    act_idx = jax.random.randint(k_act, (T, W), 0, size_act, jnp.int32)
    # self.rec(batch_size) returns uninitialized state; use zeros deterministically
    h0 = jnp.zeros((W, REC_SIZE), jnp.float32)
    c0 = jnp.zeros((W, REC_SIZE), jnp.float32)

    params = make_params(k_param, obs_dim, size_act)

    h_all, c_all = actor_critic_rollout(obs, goals, act_idx, h0, c0, params,
                                        tt=TT, wb=WB)
    jax.block_until_ready((h_all, c_all))

    h_ref, c_ref = _reference_rollout(obs, goals, act_idx, h0, c0, params)
    assert jnp.allclose(h_all, h_ref, atol=2e-2), "h mismatch vs reference"
    assert jnp.allclose(c_all, c_ref, atol=2e-2), "c mismatch vs reference"

    # TODO(synk): actor/critic/diagnostic heads, categorical sampling and the
    # Adam training step live outside forward() and are intentionally omitted.
    print("KERNEL_OK")
</pallas_src>

<mosaic_0001>
module attributes {stable_mosaic.version = 11 : i64} {
  func.func @_rollout_kernel(%arg0: i32, %arg1: i32, %arg2: memref<4x16x64xbf16, #tpu.memory_space<vmem>>, %arg3: memref<4x16x1xi32, #tpu.memory_space<vmem>>, %arg4: memref<16x256xf32, #tpu.memory_space<vmem>>, %arg5: memref<16x256xf32, #tpu.memory_space<vmem>>, %arg6: memref<64x256xbf16, #tpu.memory_space<vmem>>, %arg7: memref<1x256xf32, #tpu.memory_space<vmem>>, %arg8: memref<256x1024xbf16, #tpu.memory_space<vmem>>, %arg9: memref<8x1024xbf16, #tpu.memory_space<vmem>>, %arg10: memref<256x1024xbf16, #tpu.memory_space<vmem>>, %arg11: memref<1x1024xf32, #tpu.memory_space<vmem>>, %arg12: memref<4x16x256xf32, #tpu.memory_space<vmem>>, %arg13: memref<4x16x256xf32, #tpu.memory_space<vmem>>, %arg14: memref<16x256xf32, #tpu.memory_space<vmem>>, %arg15: memref<16x256xf32, #tpu.memory_space<vmem>>) attributes {dimension_semantics = [#tpu.dimension_semantics<parallel>, #tpu.dimension_semantics<arbitrary>], iteration_bounds = array<i64: 1, 2>, scalar_prefetch = 0 : i64, scratch_operands = 2 : i64, tpu.core_type = #tpu.core_type<tc>, window_params = [{transform_indices = @transform_0, window_bounds = array<i64: 4, 16, 64>}, {transform_indices = @transform_1, window_bounds = array<i64: 4, 16, 1>}, {transform_indices = @transform_2, window_bounds = array<i64: 16, 256>}, {transform_indices = @transform_3, window_bounds = array<i64: 16, 256>}, {pipeline_mode = #tpu.pipeline_mode<synchronous>, transform_indices = @transform_4, window_bounds = array<i64: 64, 256>}, {pipeline_mode = #tpu.pipeline_mode<synchronous>, transform_indices = @transform_5, window_bounds = array<i64: 1, 256>}, {pipeline_mode = #tpu.pipeline_mode<synchronous>, transform_indices = @transform_6, window_bounds = array<i64: 256, 1024>}, {pipeline_mode = #tpu.pipeline_mode<synchronous>, transform_indices = @transform_7, window_bounds = array<i64: 8, 1024>}, {pipeline_mode = #tpu.pipeline_mode<synchronous>, transform_indices = @transform_8, window_bounds = array<i64: 256, 1024>}, {pipeline_mode = #tpu.pipeline_mode<synchronous>, transform_indices = @transform_9, window_bounds = array<i64: 1, 1024>}, {transform_indices = @transform_10, window_bounds = array<i64: 4, 16, 256>}, {transform_indices = @transform_11, window_bounds = array<i64: 4, 16, 256>}]} {
    %c0_i32 = arith.constant 0 : i32
    %0 = arith.cmpi eq, %arg1, %c0_i32 : i32
    %1 = arith.extui %0 : i1 to i32
    %c0_i32_0 = arith.constant 0 : i32
    %2 = arith.cmpi ne, %1, %c0_i32_0 : i32
    scf.if %2 {
      %c0_262 = arith.constant 0 : index
      %c0_263 = arith.constant 0 : index
      %563 = vector.load %arg4[%c0_262, %c0_263] : memref<16x256xf32, #tpu.memory_space<vmem>>, vector<16x256xf32>
      %c0_264 = arith.constant 0 : index
      %c0_265 = arith.constant 0 : index
      %564 = vector.load %arg14[%c0_264, %c0_265] : memref<16x256xf32, #tpu.memory_space<vmem>>, vector<16x256xf32>
      tpu.vector_store %arg14[%c0_264, %c0_265], %563 {strides = array<i32>} : memref<16x256xf32, #tpu.memory_space<vmem>>, vector<16x256xf32>,
      %c0_266 = arith.constant 0 : index
      %c0_267 = arith.constant 0 : index
      %565 = vector.load %arg5[%c0_266, %c0_267] : memref<16x256xf32, #tpu.memory_space<vmem>>, vector<16x256xf32>
      %c0_268 = arith.constant 0 : index
      %c0_269 = arith.constant 0 : index
      %566 = vector.load %arg15[%c0_268, %c0_269] : memref<16x256xf32, #tpu.memory_space<vmem>>, vector<16x256xf32>
      tpu.vector_store %arg15[%c0_268, %c0_269], %565 {strides = array<i32>} : memref<16x256xf32, #tpu.memory_space<vmem>>, vector<16x256xf32>,
    } else {
    }
    %c0 = arith.constant 0 : index
    %c0_1 = arith.constant 0 : index
    %3 = vector.load %arg14[%c0, %c0_1] : memref<16x256xf32, #tpu.memory_space<vmem>>, vector<16x256xf32>
    %c0_2 = arith.constant 0 : index
    %c0_3 = arith.constant 0 : index
    %4 = vector.load %arg15[%c0_2, %c0_3] : memref<16x256xf32, #tpu.memory_space<vmem>>, vector<16x256xf32>
    %c0_i32_4 = arith.constant 0 : i32
    %5 = arith.index_cast %c0_i32_4 : i32 to index
    %c0_5 = arith.constant 0 : index
    %c0_6 = arith.constant 0 : index
    %6 = vector.load %arg2[%5, %c0_5, %c0_6] : memref<4x16x64xbf16, #tpu.memory_space<vmem>>, vector<1x16x64xbf16>
    %7 = vector.shape_cast %6 : vector<1x16x64xbf16> to vector<16x64xbf16>
    %c0_7 = arith.constant 0 : index
    %c0_8 = arith.constant 0 : index
    %8 = vector.load %arg6[%c0_7, %c0_8] : memref<64x256xbf16, #tpu.memory_space<vmem>>, vector<64x256xbf16>
    %cst = arith.constant dense<0.000000e+00> : vector<16x256xf32>
    %9 = tpu.matmul %7, %8, %cst {dimension_numbers = #tpu.dot_dimension_numbers<[1], [0], [0], [1], [0, 0, 1, 1], [], []>} : vector<16x64xbf16>, vector<64x256xbf16>, vector<16x256xf32> -> vector<16x256xf32>
    %c0_9 = arith.constant 0 : index
    %c0_10 = arith.constant 0 : index
    %10 = vector.load %arg7[%c0_9, %c0_10] : memref<1x256xf32, #tpu.memory_space<vmem>>, vector<1x256xf32>
    %11 = vector.broadcast %10 : vector<1x256xf32> to vector<16x256xf32>
    %12 = arith.addf %9, %11 : vector<16x256xf32>
    %cst_11 = arith.constant 0.000000e+00 : f32
    %13 = vector.broadcast %cst_11 : f32 to vector<16x256xf32>
    %14 = arith.maximumf %12, %13 : vector<16x256xf32>
    %15 = arith.index_cast %c0_i32_4 : i32 to index
    %c0_12 = arith.constant 0 : index
    %c0_13 = arith.constant 0 : index
    %16 = vector.load %arg3[%15, %c0_12, %c0_13] : memref<4x16x1xi32, #tpu.memory_space<vmem>>, vector<1x16x1xi32>
    %17 = vector.shape_cast %16 : vector<1x16x1xi32> to vector<16x1xi32>
    %cst_14 = arith.constant 0.000000e+00 : f32
    %18 = vector.broadcast %cst_14 : f32 to vector<16x1024xf32>
    %c0_i32_15 = arith.constant 0 : i32
    %19 = vector.broadcast %c0_i32_15 : i32 to vector<16x1xi32>
    %20 = arith.cmpi eq, %17, %19 : vector<16x1xi32>
    %cst_16 = arith.constant 1.000000e+00 : f32
    %cst_17 = arith.constant 0.000000e+00 : f32
    %21 = vector.broadcast %cst_16 : f32 to vector<16x1xf32>
    %22 = vector.broadcast %cst_17 : f32 to vector<16x1xf32>
    %23 = arith.select %20, %21, %22 : vector<16x1xi1>, vector<16x1xf32>
    %c0_18 = arith.constant 0 : index
    %c0_19 = arith.constant 0 : index
    %24 = vector.load %arg9[%c0_18, %c0_19] : memref<8x1024xbf16, #tpu.memory_space<vmem>>, vector<1x1024xbf16>
    %25 = arith.extf %24 : vector<1x1024xbf16> to vector<1x1024xf32>
    %26 = vector.broadcast %23 : vector<16x1xf32> to vector<16x1024xf32>
    %27 = vector.broadcast %25 : vector<1x1024xf32> to vector<16x1024xf32>
    %28 = arith.mulf %26, %27 : vector<16x1024xf32>
    %29 = arith.addf %18, %28 : vector<16x1024xf32>
    %c1_i32 = arith.constant 1 : i32
    %30 = vector.broadcast %c1_i32 : i32 to vector<16x1xi32>
    %31 = arith.cmpi eq, %17, %30 : vector<16x1xi32>
    %cst_20 = arith.constant 1.000000e+00 : f32
    %cst_21 = arith.constant 0.000000e+00 : f32
    %32 = vector.broadcast %cst_20 : f32 to vector<16x1xf32>
    %33 = vector.broadcast %cst_21 : f32 to vector<16x1xf32>
    %34 = arith.select %31, %32, %33 : vector<16x1xi1>, vector<16x1xf32>
    %c1 = arith.constant 1 : index
    %c0_22 = arith.constant 0 : index
    %35 = vector.load %arg9[%c1, %c0_22] : memref<8x1024xbf16, #tpu.memory_space<vmem>>, vector<1x1024xbf16>
    %36 = arith.extf %35 : vector<1x1024xbf16> to vector<1x1024xf32>
    %37 = vector.broadcast %34 : vector<16x1xf32> to vector<16x1024xf32>
    %38 = vector.broadcast %36 : vector<1x1024xf32> to vector<16x1024xf32>
    %39 = arith.mulf %37, %38 : vector<16x1024xf32>
    %40 = arith.addf %29, %39 : vector<16x1024xf32>
    %c2_i32 = arith.constant 2 : i32
    %41 = vector.broadcast %c2_i32 : i32 to vector<16x1xi32>
    %42 = arith.cmpi eq, %17, %41 : vector<16x1xi32>
    %cst_23 = arith.constant 1.000000e+00 : f32
    %cst_24 = arith.constant 0.000000e+00 : f32
    %43 = vector.broadcast %cst_23 : f32 to vector<16x1xf32>
    %44 = vector.broadcast %cst_24 : f32 to vector<16x1xf32>
    %45 = arith.select %42, %43, %44 : vector<16x1xi1>, vector<16x1xf32>
    %c2 = arith.constant 2 : index
    %c0_25 = arith.constant 0 : index
    %46 = vector.load %arg9[%c2, %c0_25] : memref<8x1024xbf16, #tpu.memory_space<vmem>>, vector<1x1024xbf16>
    %47 = arith.extf %46 : vector<1x1024xbf16> to vector<1x1024xf32>
    %48 = vector.broadcast %45 : vector<16x1xf32> to vector<16x1024xf32>
    %49 = vector.broadcast %47 : vector<1x1024xf32> to vector<16x1024xf32>
    %50 = arith.mulf %48, %49 : vector<16x1024xf32>
    %51 = arith.addf %40, %50 : vector<16x1024xf32>
    %c3_i32 = arith.constant 3 : i32
    %52 = vector.broadcast %c3_i32 : i32 to vector<16x1xi32>
    %53 = arith.cmpi eq, %17, %52 : vector<16x1xi32>
    %cst_26 = arith.constant 1.000000e+00 : f32
    %cst_27 = arith.constant 0.000000e+00 : f32
    %54 = vector.broadcast %cst_26 : f32 to vector<16x1xf32>
    %55 = vector.broadcast %cst_27 : f32 to vector<16x1xf32>
    %56 = arith.select %53, %54, %55 : vector<16x1xi1>, vector<16x1xf32>
    %c3 = arith.constant 3 : index
    %c0_28 = arith.constant 0 : index
    %57 = vector.load %arg9[%c3, %c0_28] : memref<8x1024xbf16, #tpu.memory_space<vmem>>, vector<1x1024xbf16>
    %58 = arith.extf %57 : vector<1x1024xbf16> to vector<1x1024xf32>
    %59 = vector.broadcast %56 : vector<16x1xf32> to vector<16x1024xf32>
    %60 = vector.broadcast %58 : vector<1x1024xf32> to vector<16x1024xf32>
    %61 = arith.mulf %59, %60 : vector<16x1024xf32>
    %62 = arith.addf %51, %61 : vector<16x1024xf32>
    %c4_i32 = arith.constant 4 : i32
    %63 = vector.broadcast %c4_i32 : i32 to vector<16x1xi32>
    %64 = arith.cmpi eq, %17, %63 : vector<16x1xi32>
    %cst_29 = arith.constant 1.000000e+00 : f32
    %cst_30 = arith.constant 0.000000e+00 : f32
    %65 = vector.broadcast %cst_29 : f32 to vector<16x1xf32>
    %66 = vector.broadcast %cst_30 : f32 to vector<16x1xf32>
    %67 = arith.select %64, %65, %66 : vector<16x1xi1>, vector<16x1xf32>
    %c4 = arith.constant 4 : index
    %c0_31 = arith.constant 0 : index
    %68 = vector.load %arg9[%c4, %c0_31] : memref<8x1024xbf16, #tpu.memory_space<vmem>>, vector<1x1024xbf16>
    %69 = arith.extf %68 : vector<1x1024xbf16> to vector<1x1024xf32>
    %70 = vector.broadcast %67 : vector<16x1xf32> to vector<16x1024xf32>
    %71 = vector.broadcast %69 : vector<1x1024xf32> to vector<16x1024xf32>
    %72 = arith.mulf %70, %71 : vector<16x1024xf32>
    %73 = arith.addf %62, %72 : vector<16x1024xf32>
    %c5_i32 = arith.constant 5 : i32
    %74 = vector.broadcast %c5_i32 : i32 to vector<16x1xi32>
    %75 = arith.cmpi eq, %17, %74 : vector<16x1xi32>
    %cst_32 = arith.constant 1.000000e+00 : f32
    %cst_33 = arith.constant 0.000000e+00 : f32
    %76 = vector.broadcast %cst_32 : f32 to vector<16x1xf32>
    %77 = vector.broadcast %cst_33 : f32 to vector<16x1xf32>
    %78 = arith.select %75, %76, %77 : vector<16x1xi1>, vector<16x1xf32>
    %c5 = arith.constant 5 : index
    %c0_34 = arith.constant 0 : index
    %79 = vector.load %arg9[%c5, %c0_34] : memref<8x1024xbf16, #tpu.memory_space<vmem>>, vector<1x1024xbf16>
    %80 = arith.extf %79 : vector<1x1024xbf16> to vector<1x1024xf32>
    %81 = vector.broadcast %78 : vector<16x1xf32> to vector<16x1024xf32>
    %82 = vector.broadcast %80 : vector<1x1024xf32> to vector<16x1024xf32>
    %83 = arith.mulf %81, %82 : vector<16x1024xf32>
    %84 = arith.addf %73, %83 : vector<16x1024xf32>
    %c6_i32 = arith.constant 6 : i32
    %85 = vector.broadcast %c6_i32 : i32 to vector<16x1xi32>
    %86 = arith.cmpi eq, %17, %85 : vector<16x1xi32>
    %cst_35 = arith.constant 1.000000e+00 : f32
    %cst_36 = arith.constant 0.000000e+00 : f32
    %87 = vector.broadcast %cst_35 : f32 to vector<16x1xf32>
    %88 = vector.broadcast %cst_36 : f32 to vector<16x1xf32>
    %89 = arith.select %86, %87, %88 : vector<16x1xi1>, vector<16x1xf32>
    %c6 = arith.constant 6 : index
    %c0_37 = arith.constant 0 : index
    %90 = vector.load %arg9[%c6, %c0_37] : memref<8x1024xbf16, #tpu.memory_space<vmem>>, vector<1x1024xbf16>
    %91 = arith.extf %90 : vector<1x1024xbf16> to vector<1x1024xf32>
    %92 = vector.broadcast %89 : vector<16x1xf32> to vector<16x1024xf32>
    %93 = vector.broadcast %91 : vector<1x1024xf32> to vector<16x1024xf32>
    %94 = arith.mulf %92, %93 : vector<16x1024xf32>
    %95 = arith.addf %84, %94 : vector<16x1024xf32>
    %c7_i32 = arith.constant 7 : i32
    %96 = vector.broadcast %c7_i32 : i32 to vector<16x1xi32>
    %97 = arith.cmpi eq, %17, %96 : vector<16x1xi32>
    %cst_38 = arith.constant 1.000000e+00 : f32
    %cst_39 = arith.constant 0.000000e+00 : f32
    %98 = vector.broadcast %cst_38 : f32 to vector<16x1xf32>
    %99 = vector.broadcast %cst_39 : f32 to vector<16x1xf32>
    %100 = arith.select %97, %98, %99 : vector<16x1xi1>, vector<16x1xf32>
    %c7 = arith.constant 7 : index
    %c0_40 = arith.constant 0 : index
    %101 = vector.load %arg9[%c7, %c0_40] : memref<8x1024xbf16, #tpu.memory_space<vmem>>, vector<1x1024xbf16>
    %102 = arith.extf %101 : vector<1x1024xbf16> to vector<1x1024xf32>
    %103 = vector.broadcast %100 : vector<16x1xf32> to vector<16x1024xf32>
    %104 = vector.broadcast %102 : vector<1x1024xf32> to vector<16x1024xf32>
    %105 = arith.mulf %103, %104 : vector<16x1024xf32>
    %106 = arith.addf %95, %105 : vector<16x1024xf32>
    %107 = arith.truncf %14 : vector<16x256xf32> to vector<16x256xbf16>
    %c0_41 = arith.constant 0 : index
    %c0_42 = arith.constant 0 : index
    %108 = vector.load %arg8[%c0_41, %c0_42] : memref<256x1024xbf16, #tpu.memory_space<vmem>>, vector<256x1024xbf16>
    %cst_43 = arith.constant dense<0.000000e+00> : vector<16x1024xf32>
    %109 = tpu.matmul %107, %108, %cst_43 {dimension_numbers = #tpu.dot_dimension_numbers<[1], [0], [0], [1], [0, 0, 1, 1], [], []>} : vector<16x256xbf16>, vector<256x1024xbf16>, vector<16x1024xf32> -> vector<16x1024xf32>
    %110 = arith.truncf %3 : vector<16x256xf32> to vector<16x256xbf16>
    %c0_44 = arith.constant 0 : index
    %c0_45 = arith.constant 0 : index
    %111 = vector.load %arg10[%c0_44, %c0_45] : memref<256x1024xbf16, #tpu.memory_space<vmem>>, vector<256x1024xbf16>
    %cst_46 = arith.constant dense<0.000000e+00> : vector<16x1024xf32>
    %112 = tpu.matmul %110, %111, %cst_46 {dimension_numbers = #tpu.dot_dimension_numbers<[1], [0], [0], [1], [0, 0, 1, 1], [], []>} : vector<16x256xbf16>, vector<256x1024xbf16>, vector<16x1024xf32> -> vector<16x1024xf32>
    %113 = arith.addf %109, %112 : vector<16x1024xf32>
    %114 = arith.addf %113, %106 : vector<16x1024xf32>
    %c0_47 = arith.constant 0 : index
    %c0_48 = arith.constant 0 : index
    %115 = vector.load %arg11[%c0_47, %c0_48] : memref<1x1024xf32, #tpu.memory_space<vmem>>, vector<1x1024xf32>
    %116 = vector.broadcast %115 : vector<1x1024xf32> to vector<16x1024xf32>
    %117 = arith.addf %114, %116 : vector<16x1024xf32>
    %118 = vector.extract_strided_slice %117 {offsets = [0, 0], sizes = [16, 768], strides = [1, 1]} : vector<16x1024xf32> to vector<16x768xf32>
    %cst_49 = arith.constant 5.000000e-01 : f32
    %119 = vector.broadcast %cst_49 : f32 to vector<16x768xf32>
    %120 = arith.mulf %119, %118 : vector<16x768xf32>
    %121 = math.tanh %120 : vector<16x768xf32>
    %cst_50 = arith.constant 1.000000e+00 : f32
    %122 = vector.broadcast %cst_50 : f32 to vector<16x768xf32>
    %123 = arith.addf %121, %122 : vector<16x768xf32>
    %cst_51 = arith.constant 5.000000e-01 : f32
    %124 = vector.broadcast %cst_51 : f32 to vector<16x768xf32>
    %125 = arith.mulf %124, %123 : vector<16x768xf32>
    %126 = vector.extract_strided_slice %117 {offsets = [0, 768], sizes = [16, 256], strides = [1, 1]} : vector<16x1024xf32> to vector<16x256xf32>
    %127 = math.tanh %126 : vector<16x256xf32>
    %128 = vector.extract_strided_slice %125 {offsets = [0, 0], sizes = [16, 256], strides = [1, 1]} : vector<16x768xf32> to vector<16x256xf32>
    %129 = vector.extract_strided_slice %125 {offsets = [0, 256], sizes = [16, 256], strides = [1, 1]} : vector<16x768xf32> to vector<16x256xf32>
    %130 = vector.extract_strided_slice %125 {offsets = [0, 512], sizes = [16, 256], strides = [1, 1]} : vector<16x768xf32> to vector<16x256xf32>
    %131 = arith.mulf %129, %4 : vector<16x256xf32>
    %132 = arith.mulf %128, %127 : vector<16x256xf32>
    %133 = arith.addf %131, %132 : vector<16x256xf32>
    %134 = math.tanh %133 : vector<16x256xf32>
    %135 = arith.mulf %130, %134 : vector<16x256xf32>
    %136 = arith.index_cast %c0_i32_4 : i32 to index
    %c0_52 = arith.constant 0 : index
    %c0_53 = arith.constant 0 : index
    %137 = vector.load %arg12[%136, %c0_52, %c0_53] : memref<4x16x256xf32, #tpu.memory_space<vmem>>, vector<1x16x256xf32>
    %138 = vector.shape_cast %137 : vector<1x16x256xf32> to vector<16x256xf32>
    %139 = vector.shape_cast %135 : vector<16x256xf32> to vector<1x16x256xf32>
    tpu.vector_store %arg12[%136, %c0_52, %c0_53], %139 {strides = array<i32>} : memref<4x16x256xf32, #tpu.memory_space<vmem>>, vector<1x16x256xf32>,
    %140 = arith.index_cast %c0_i32_4 : i32 to index
    %c0_54 = arith.constant 0 : index
    %c0_55 = arith.constant 0 : index
    %141 = vector.load %arg13[%140, %c0_54, %c0_55] : memref<4x16x256xf32, #tpu.memory_space<vmem>>, vector<1x16x256xf32>
    %142 = vector.shape_cast %141 : vector<1x16x256xf32> to vector<16x256xf32>
    %143 = vector.shape_cast %133 : vector<16x256xf32> to vector<1x16x256xf32>
    tpu.vector_store %arg13[%140, %c0_54, %c0_55], %143 {strides = array<i32>} : memref<4x16x256xf32, #tpu.memory_space<vmem>>, vector<1x16x256xf32>,
    %c1_i32_56 = arith.constant 1 : i32
    %144 = arith.index_cast %c1_i32_56 : i32 to index
    %c0_57 = arith.constant 0 : index
    %c0_58 = arith.constant 0 : index
    %145 = vector.load %arg2[%144, %c0_57, %c0_58] : memref<4x16x64xbf16, #tpu.memory_space<vmem>>, vector<1x16x64xbf16>
    %146 = vector.shape_cast %145 : vector<1x16x64xbf16> to vector<16x64xbf16>
    %c0_59 = arith.constant 0 : index
    %c0_60 = arith.constant 0 : index
    %147 = vector.load %arg6[%c0_59, %c0_60] : memref<64x256xbf16, #tpu.memory_space<vmem>>, vector<64x256xbf16>
    %cst_61 = arith.constant dense<0.000000e+00> : vector<16x256xf32>
    %148 = tpu.matmul %146, %147, %cst_61 {dimension_numbers = #tpu.dot_dimension_numbers<[1], [0], [0], [1], [0, 0, 1, 1], [], []>} : vector<16x64xbf16>, vector<64x256xbf16>, vector<16x256xf32> -> vector<16x256xf32>
    %c0_62 = arith.constant 0 : index
    %c0_63 = arith.constant 0 : index
    %149 = vector.load %arg7[%c0_62, %c0_63] : memref<1x256xf32, #tpu.memory_space<vmem>>, vector<1x256xf32>
    %150 = vector.broadcast %149 : vector<1x256xf32> to vector<16x256xf32>
    %151 = arith.addf %148, %150 : vector<16x256xf32>
    %cst_64 = arith.constant 0.000000e+00 : f32
    %152 = vector.broadcast %cst_64 : f32 to vector<16x256xf32>
    %153 = arith.maximumf %151, %152 : vector<16x256xf32>
    %154 = arith.index_cast %c1_i32_56 : i32 to index
    %c0_65 = arith.constant 0 : index
    %c0_66 = arith.constant 0 : index
    %155 = vector.load %arg3[%154, %c0_65, %c0_66] : memref<4x16x1xi32, #tpu.memory_space<vmem>>, vector<1x16x1xi32>
    %156 = vector.shape_cast %155 : vector<1x16x1xi32> to vector<16x1xi32>
    %cst_67 = arith.constant 0.000000e+00 : f32
    %157 = vector.broadcast %cst_67 : f32 to vector<16x1024xf32>
    %c0_i32_68 = arith.constant 0 : i32
    %158 = vector.broadcast %c0_i32_68 : i32 to vector<16x1xi32>
    %159 = arith.cmpi eq, %156, %158 : vector<16x1xi32>
    %cst_69 = arith.constant 1.000000e+00 : f32
    %cst_70 = arith.constant 0.000000e+00 : f32
    %160 = vector.broadcast %cst_69 : f32 to vector<16x1xf32>
    %161 = vector.broadcast %cst_70 : f32 to vector<16x1xf32>
    %162 = arith.select %159, %160, %161 : vector<16x1xi1>, vector<16x1xf32>
    %c0_71 = arith.constant 0 : index
    %c0_72 = arith.constant 0 : index
    %163 = vector.load %arg9[%c0_71, %c0_72] : memref<8x1024xbf16, #tpu.memory_space<vmem>>, vector<1x1024xbf16>
    %164 = arith.extf %163 : vector<1x1024xbf16> to vector<1x1024xf32>
    %165 = vector.broadcast %162 : vector<16x1xf32> to vector<16x1024xf32>
    %166 = vector.broadcast %164 : vector<1x1024xf32> to vector<16x1024xf32>
    %167 = arith.mulf %165, %166 : vector<16x1024xf32>
    %168 = arith.addf %157, %167 : vector<16x1024xf32>
    %c1_i32_73 = arith.constant 1 : i32
    %169 = vector.broadcast %c1_i32_73 : i32 to vector<16x1xi32>
    %170 = arith.cmpi eq, %156, %169 : vector<16x1xi32>
    %cst_74 = arith.constant 1.000000e+00 : f32
    %cst_75 = arith.constant 0.000000e+00 : f32
    %171 = vector.broadcast %cst_74 : f32 to vector<16x1xf32>
    %172 = vector.broadcast %cst_75 : f32 to vector<16x1xf32>
    %173 = arith.select %170, %171, %172 : vector<16x1xi1>, vector<16x1xf32>
    %c1_76 = arith.constant 1 : index
    %c0_77 = arith.constant 0 : index
    %174 = vector.load %arg9[%c1_76, %c0_77] : memref<8x1024xbf16, #tpu.memory_space<vmem>>, vector<1x1024xbf16>
    %175 = arith.extf %174 : vector<1x1024xbf16> to vector<1x1024xf32>
    %176 = vector.broadcast %173 : vector<16x1xf32> to vector<16x1024xf32>
    %177 = vector.broadcast %175 : vector<1x1024xf32> to vector<16x1024xf32>
    %178 = arith.mulf %176, %177 : vector<16x1024xf32>
    %179 = arith.addf %168, %178 : vector<16x1024xf32>
    %c2_i32_78 = arith.constant 2 : i32
    %180 = vector.broadcast %c2_i32_78 : i32 to vector<16x1xi32>
    %181 = arith.cmpi eq, %156, %180 : vector<16x1xi32>
    %cst_79 = arith.constant 1.000000e+00 : f32
    %cst_80 = arith.constant 0.000000e+00 : f32
    %182 = vector.broadcast %cst_79 : f32 to vector<16x1xf32>
    %183 = vector.broadcast %cst_80 : f32 to vector<16x1xf32>
    %184 = arith.select %181, %182, %183 : vector<16x1xi1>, vector<16x1xf32>
    %c2_81 = arith.constant 2 : index
    %c0_82 = arith.constant 0 : index
    %185 = vector.load %arg9[%c2_81, %c0_82] : memref<8x1024xbf16, #tpu.memory_space<vmem>>, vector<1x1024xbf16>
    %186 = arith.extf %185 : vector<1x1024xbf16> to vector<1x1024xf32>
    %187 = vector.broadcast %184 : vector<16x1xf32> to vector<16x1024xf32>
    %188 = vector.broadcast %186 : vector<1x1024xf32> to vector<16x1024xf32>
    %189 = arith.mulf %187, %188 : vector<16x1024xf32>
    %190 = arith.addf %179, %189 : vector<16x1024xf32>
    %c3_i32_83 = arith.constant 3 : i32
    %191 = vector.broadcast %c3_i32_83 : i32 to vector<16x1xi32>
    %192 = arith.cmpi eq, %156, %191 : vector<16x1xi32>
    %cst_84 = arith.constant 1.000000e+00 : f32
    %cst_85 = arith.constant 0.000000e+00 : f32
    %193 = vector.broadcast %cst_84 : f32 to vector<16x1xf32>
    %194 = vector.broadcast %cst_85 : f32 to vector<16x1xf32>
    %195 = arith.select %192, %193, %194 : vector<16x1xi1>, vector<16x1xf32>
    %c3_86 = arith.constant 3 : index
    %c0_87 = arith.constant 0 : index
    %196 = vector.load %arg9[%c3_86, %c0_87] : memref<8x1024xbf16, #tpu.memory_space<vmem>>, vector<1x1024xbf16>
    %197 = arith.extf %196 : vector<1x1024xbf16> to vector<1x1024xf32>
    %198 = vector.broadcast %195 : vector<16x1xf32> to vector<16x1024xf32>
    %199 = vector.broadcast %197 : vector<1x1024xf32> to vector<16x1024xf32>
    %200 = arith.mulf %198, %199 : vector<16x1024xf32>
    %201 = arith.addf %190, %200 : vector<16x1024xf32>
    %c4_i32_88 = arith.constant 4 : i32
    %202 = vector.broadcast %c4_i32_88 : i32 to vector<16x1xi32>
    %203 = arith.cmpi eq, %156, %202 : vector<16x1xi32>
    %cst_89 = arith.constant 1.000000e+00 : f32
    %cst_90 = arith.constant 0.000000e+00 : f32
    %204 = vector.broadcast %cst_89 : f32 to vector<16x1xf32>
    %205 = vector.broadcast %cst_90 : f32 to vector<16x1xf32>
    %206 = arith.select %203, %204, %205 : vector<16x1xi1>, vector<16x1xf32>
    %c4_91 = arith.constant 4 : index
    %c0_92 = arith.constant 0 : index
    %207 = vector.load %arg9[%c4_91, %c0_92] : memref<8x1024xbf16, #tpu.memory_space<vmem>>, vector<1x1024xbf16>
    %208 = arith.extf %207 : vector<1x1024xbf16> to vector<1x1024xf32>
    %209 = vector.broadcast %206 : vector<16x1xf32> to vector<16x1024xf32>
    %210 = vector.broadcast %208 : vector<1x1024xf32> to vector<16x1024xf32>
    %211 = arith.mulf %209, %210 : vector<16x1024xf32>
    %212 = arith.addf %201, %211 : vector<16x1024xf32>
    %c5_i32_93 = arith.constant 5 : i32
    %213 = vector.broadcast %c5_i32_93 : i32 to vector<16x1xi32>
    %214 = arith.cmpi eq, %156, %213 : vector<16x1xi32>
    %cst_94 = arith.constant 1.000000e+00 : f32
    %cst_95 = arith.constant 0.000000e+00 : f32
    %215 = vector.broadcast %cst_94 : f32 to vector<16x1xf32>
    %216 = vector.broadcast %cst_95 : f32 to vector<16x1xf32>
    %217 = arith.select %214, %215, %216 : vector<16x1xi1>, vector<16x1xf32>
    %c5_96 = arith.constant 5 : index
    %c0_97 = arith.constant 0 : index
    %218 = vector.load %arg9[%c5_96, %c0_97] : memref<8x1024xbf16, #tpu.memory_space<vmem>>, vector<1x1024xbf16>
    %219 = arith.extf %218 : vector<1x1024xbf16> to vector<1x1024xf32>
    %220 = vector.broadcast %217 : vector<16x1xf32> to vector<16x1024xf32>
    %221 = vector.broadcast %219 : vector<1x1024xf32> to vector<16x1024xf32>
    %222 = arith.mulf %220, %221 : vector<16x1024xf32>
    %223 = arith.addf %212, %222 : vector<16x1024xf32>
    %c6_i32_98 = arith.constant 6 : i32
    %224 = vector.broadcast %c6_i32_98 : i32 to vector<16x1xi32>
    %225 = arith.cmpi eq, %156, %224 : vector<16x1xi32>
    %cst_99 = arith.constant 1.000000e+00 : f32
    %cst_100 = arith.constant 0.000000e+00 : f32
    %226 = vector.broadcast %cst_99 : f32 to vector<16x1xf32>
    %227 = vector.broadcast %cst_100 : f32 to vector<16x1xf32>
    %228 = arith.select %225, %226, %227 : vector<16x1xi1>, vector<16x1xf32>
    %c6_101 = arith.constant 6 : index
    %c0_102 = arith.constant 0 : index
    %229 = vector.load %arg9[%c6_101, %c0_102] : memref<8x1024xbf16, #tpu.memory_space<vmem>>, vector<1x1024xbf16>
    %230 = arith.extf %229 : vector<1x1024xbf16> to vector<1x1024xf32>
    %231 = vector.broadcast %228 : vector<16x1xf32> to vector<16x1024xf32>
    %232 = vector.broadcast %230 : vector<1x1024xf32> to vector<16x1024xf32>
    %233 = arith.mulf %231, %232 : vector<16x1024xf32>
    %234 = arith.addf %223, %233 : vector<16x1024xf32>
    %c7_i32_103 = arith.constant 7 : i32
    %235 = vector.broadcast %c7_i32_103 : i32 to vector<16x1xi32>
    %236 = arith.cmpi eq, %156, %235 : vector<16x1xi32>
    %cst_104 = arith.constant 1.000000e+00 : f32
    %cst_105 = arith.constant 0.000000e+00 : f32
    %237 = vector.broadcast %cst_104 : f32 to vector<16x1xf32>
    %238 = vector.broadcast %cst_105 : f32 to vector<16x1xf32>
    %239 = arith.select %236, %237, %238 : vector<16x1xi1>, vector<16x1xf32>
    %c7_106 = arith.constant 7 : index
    %c0_107 = arith.constant 0 : index
    %240 = vector.load %arg9[%c7_106, %c0_107] : memref<8x1024xbf16, #tpu.memory_space<vmem>>, vector<1x1024xbf16>
    %241 = arith.extf %240 : vector<1x1024xbf16> to vector<1x1024xf32>
    %242 = vector.broadcast %239 : vector<16x1xf32> to vector<16x1024xf32>
    %243 = vector.broadcast %241 : vector<1x1024xf32> to vector<16x1024xf32>
    %244 = arith.mulf %242, %243 : vector<16x1024xf32>
    %245 = arith.addf %234, %244 : vector<16x1024xf32>
    %246 = arith.truncf %153 : vector<16x256xf32> to vector<16x256xbf16>
    %c0_108 = arith.constant 0 : index
    %c0_109 = arith.constant 0 : index
    %247 = vector.load %arg8[%c0_108, %c0_109] : memref<256x1024xbf16, #tpu.memory_space<vmem>>, vector<256x1024xbf16>
    %cst_110 = arith.constant dense<0.000000e+00> : vector<16x1024xf32>
    %248 = tpu.matmul %246, %247, %cst_110 {dimension_numbers = #tpu.dot_dimension_numbers<[1], [0], [0], [1], [0, 0, 1, 1], [], []>} : vector<16x256xbf16>, vector<256x1024xbf16>, vector<16x1024xf32> -> vector<16x1024xf32>
    %249 = arith.truncf %135 : vector<16x256xf32> to vector<16x256xbf16>
    %c0_111 = arith.constant 0 : index
    %c0_112 = arith.constant 0 : index
    %250 = vector.load %arg10[%c0_111, %c0_112] : memref<256x1024xbf16, #tpu.memory_space<vmem>>, vector<256x1024xbf16>
    %cst_113 = arith.constant dense<0.000000e+00> : vector<16x1024xf32>
    %251 = tpu.matmul %249, %250, %cst_113 {dimension_numbers = #tpu.dot_dimension_numbers<[1], [0], [0], [1], [0, 0, 1, 1], [], []>} : vector<16x256xbf16>, vector<256x1024xbf16>, vector<16x1024xf32> -> vector<16x1024xf32>
    %252 = arith.addf %248, %251 : vector<16x1024xf32>
    %253 = arith.addf %252, %245 : vector<16x1024xf32>
    %c0_114 = arith.constant 0 : index
    %c0_115 = arith.constant 0 : index
    %254 = vector.load %arg11[%c0_114, %c0_115] : memref<1x1024xf32, #tpu.memory_space<vmem>>, vector<1x1024xf32>
    %255 = vector.broadcast %254 : vector<1x1024xf32> to vector<16x1024xf32>
    %256 = arith.addf %253, %255 : vector<16x1024xf32>
    %257 = vector.extract_strided_slice %256 {offsets = [0, 0], sizes = [16, 768], strides = [1, 1]} : vector<16x1024xf32> to vector<16x768xf32>
    %cst_116 = arith.constant 5.000000e-01 : f32
    %258 = vector.broadcast %cst_116 : f32 to vector<16x768xf32>
    %259 = arith.mulf %258, %257 : vector<16x768xf32>
    %260 = math.tanh %259 : vector<16x768xf32>
    %cst_117 = arith.constant 1.000000e+00 : f32
    %261 = vector.broadcast %cst_117 : f32 to vector<16x768xf32>
    %262 = arith.addf %260, %261 : vector<16x768xf32>
    %cst_118 = arith.constant 5.000000e-01 : f32
    %263 = vector.broadcast %cst_118 : f32 to vector<16x768xf32>
    %264 = arith.mulf %263, %262 : vector<16x768xf32>
    %265 = vector.extract_strided_slice %256 {offsets = [0, 768], sizes = [16, 256], strides = [1, 1]} : vector<16x1024xf32> to vector<16x256xf32>
    %266 = math.tanh %265 : vector<16x256xf32>
    %267 = vector.extract_strided_slice %264 {offsets = [0, 0], sizes = [16, 256], strides = [1, 1]} : vector<16x768xf32> to vector<16x256xf32>
    %268 = vector.extract_strided_slice %264 {offsets = [0, 256], sizes = [16, 256], strides = [1, 1]} : vector<16x768xf32> to vector<16x256xf32>
    %269 = vector.extract_strided_slice %264 {offsets = [0, 512], sizes = [16, 256], strides = [1, 1]} : vector<16x768xf32> to vector<16x256xf32>
    %270 = arith.mulf %268, %133 : vector<16x256xf32>
    %271 = arith.mulf %267, %266 : vector<16x256xf32>
    %272 = arith.addf %270, %271 : vector<16x256xf32>
    %273 = math.tanh %272 : vector<16x256xf32>
    %274 = arith.mulf %269, %273 : vector<16x256xf32>
    %275 = arith.index_cast %c1_i32_56 : i32 to index
    %c0_119 = arith.constant 0 : index
    %c0_120 = arith.constant 0 : index
    %276 = vector.load %arg12[%275, %c0_119, %c0_120] : memref<4x16x256xf32, #tpu.memory_space<vmem>>, vector<1x16x256xf32>
    %277 = vector.shape_cast %276 : vector<1x16x256xf32> to vector<16x256xf32>
    %278 = vector.shape_cast %274 : vector<16x256xf32> to vector<1x16x256xf32>
    tpu.vector_store %arg12[%275, %c0_119, %c0_120], %278 {strides = array<i32>} : memref<4x16x256xf32, #tpu.memory_space<vmem>>, vector<1x16x256xf32>,
    %279 = arith.index_cast %c1_i32_56 : i32 to index
    %c0_121 = arith.constant 0 : index
    %c0_122 = arith.constant 0 : index
    %280 = vector.load %arg13[%279, %c0_121, %c0_122] : memref<4x16x256xf32, #tpu.memory_space<vmem>>, vector<1x16x256xf32>
    %281 = vector.shape_cast %280 : vector<1x16x256xf32> to vector<16x256xf32>
    %282 = vector.shape_cast %272 : vector<16x256xf32> to vector<1x16x256xf32>
    tpu.vector_store %arg13[%279, %c0_121, %c0_122], %282 {strides = array<i32>} : memref<4x16x256xf32, #tpu.memory_space<vmem>>, vector<1x16x256xf32>,
    %c2_i32_123 = arith.constant 2 : i32
    %283 = arith.index_cast %c2_i32_123 : i32 to index
    %c0_124 = arith.constant 0 : index
    %c0_125 = arith.constant 0 : index
    %284 = vector.load %arg2[%283, %c0_124, %c0_125] : memref<4x16x64xbf16, #tpu.memory_space<vmem>>, vector<1x16x64xbf16>
    %285 = vector.shape_cast %284 : vector<1x16x64xbf16> to vector<16x64xbf16>
    %c0_126 = arith.constant 0 : index
    %c0_127 = arith.constant 0 : index
    %286 = vector.load %arg6[%c0_126, %c0_127] : memref<64x256xbf16, #tpu.memory_space<vmem>>, vector<64x256xbf16>
    %cst_128 = arith.constant dense<0.000000e+00> : vector<16x256xf32>
    %287 = tpu.matmul %285, %286, %cst_128 {dimension_numbers = #tpu.dot_dimension_numbers<[1], [0], [0], [1], [0, 0, 1, 1], [], []>} : vector<16x64xbf16>, vector<64x256xbf16>, vector<16x256xf32> -> vector<16x256xf32>
    %c0_129 = arith.constant 0 : index
    %c0_130 = arith.constant 0 : index
    %288 = vector.load %arg7[%c0_129, %c0_130] : memref<1x256xf32, #tpu.memory_space<vmem>>, vector<1x256xf32>
    %289 = vector.broadcast %288 : vector<1x256xf32> to vector<16x256xf32>
    %290 = arith.addf %287, %289 : vector<16x256xf32>
    %cst_131 = arith.constant 0.000000e+00 : f32
    %291 = vector.broadcast %cst_131 : f32 to vector<16x256xf32>
    %292 = arith.maximumf %290, %291 : vector<16x256xf32>
    %293 = arith.index_cast %c2_i32_123 : i32 to index
    %c0_132 = arith.constant 0 : index
    %c0_133 = arith.constant 0 : index
    %294 = vector.load %arg3[%293, %c0_132, %c0_133] : memref<4x16x1xi32, #tpu.memory_space<vmem>>, vector<1x16x1xi32>
    %295 = vector.shape_cast %294 : vector<1x16x1xi32> to vector<16x1xi32>
    %cst_134 = arith.constant 0.000000e+00 : f32
    %296 = vector.broadcast %cst_134 : f32 to vector<16x1024xf32>
    %c0_i32_135 = arith.constant 0 : i32
    %297 = vector.broadcast %c0_i32_135 : i32 to vector<16x1xi32>
    %298 = arith.cmpi eq, %295, %297 : vector<16x1xi32>
    %cst_136 = arith.constant 1.000000e+00 : f32
    %cst_137 = arith.constant 0.000000e+00 : f32
    %299 = vector.broadcast %cst_136 : f32 to vector<16x1xf32>
    %300 = vector.broadcast %cst_137 : f32 to vector<16x1xf32>
    %301 = arith.select %298, %299, %300 : vector<16x1xi1>, vector<16x1xf32>
    %c0_138 = arith.constant 0 : index
    %c0_139 = arith.constant 0 : index
    %302 = vector.load %arg9[%c0_138, %c0_139] : memref<8x1024xbf16, #tpu.memory_space<vmem>>, vector<1x1024xbf16>
    %303 = arith.extf %302 : vector<1x1024xbf16> to vector<1x1024xf32>
    %304 = vector.broadcast %301 : vector<16x1xf32> to vector<16x1024xf32>
    %305 = vector.broadcast %303 : vector<1x1024xf32> to vector<16x1024xf32>
    %306 = arith.mulf %304, %305 : vector<16x1024xf32>
    %307 = arith.addf %296, %306 : vector<16x1024xf32>
    %c1_i32_140 = arith.constant 1 : i32
    %308 = vector.broadcast %c1_i32_140 : i32 to vector<16x1xi32>
    %309 = arith.cmpi eq, %295, %308 : vector<16x1xi32>
    %cst_141 = arith.constant 1.000000e+00 : f32
    %cst_142 = arith.constant 0.000000e+00 : f32
    %310 = vector.broadcast %cst_141 : f32 to vector<16x1xf32>
    %311 = vector.broadcast %cst_142 : f32 to vector<16x1xf32>
    %312 = arith.select %309, %310, %311 : vector<16x1xi1>, vector<16x1xf32>
    %c1_143 = arith.constant 1 : index
    %c0_144 = arith.constant 0 : index
    %313 = vector.load %arg9[%c1_143, %c0_144] : memref<8x1024xbf16, #tpu.memory_space<vmem>>, vector<1x1024xbf16>
    %314 = arith.extf %313 : vector<1x1024xbf16> to vector<1x1024xf32>
    %315 = vector.broadcast %312 : vector<16x1xf32> to vector<16x1024xf32>
    %316 = vector.broadcast %314 : vector<1x1024xf32> to vector<16x1024xf32>
    %317 = arith.mulf %315, %316 : vector<16x1024xf32>
    %318 = arith.addf %307, %317 : vector<16x1024xf32>
    %c2_i32_145 = arith.constant 2 : i32
    %319 = vector.broadcast %c2_i32_145 : i32 to vector<16x1xi32>
    %320 = arith.cmpi eq, %295, %319 : vector<16x1xi32>
    %cst_146 = arith.constant 1.000000e+00 : f32
    %cst_147 = arith.constant 0.000000e+00 : f32
    %321 = vector.broadcast %cst_146 : f32 to vector<16x1xf32>
    %322 = vector.broadcast %cst_147 : f32 to vector<16x1xf32>
    %323 = arith.select %320, %321, %322 : vector<16x1xi1>, vector<16x1xf32>
    %c2_148 = arith.constant 2 : index
    %c0_149 = arith.constant 0 : index
    %324 = vector.load %arg9[%c2_148, %c0_149] : memref<8x1024xbf16, #tpu.memory_space<vmem>>, vector<1x1024xbf16>
    %325 = arith.extf %324 : vector<1x1024xbf16> to vector<1x1024xf32>
    %326 = vector.broadcast %323 : vector<16x1xf32> to vector<16x1024xf32>
    %327 = vector.broadcast %325 : vector<1x1024xf32> to vector<16x1024xf32>
    %328 = arith.mulf %326, %327 : vector<16x1024xf32>
    %329 = arith.addf %318, %328 : vector<16x1024xf32>
    %c3_i32_150 = arith.constant 3 : i32
    %330 = vector.broadcast %c3_i32_150 : i32 to vector<16x1xi32>
    %331 = arith.cmpi eq, %295, %330 : vector<16x1xi32>
    %cst_151 = arith.constant 1.000000e+00 : f32
    %cst_152 = arith.constant 0.000000e+00 : f32
    %332 = vector.broadcast %cst_151 : f32 to vector<16x1xf32>
    %333 = vector.broadcast %cst_152 : f32 to vector<16x1xf32>
    %334 = arith.select %331, %332, %333 : vector<16x1xi1>, vector<16x1xf32>
    %c3_153 = arith.constant 3 : index
    %c0_154 = arith.constant 0 : index
    %335 = vector.load %arg9[%c3_153, %c0_154] : memref<8x1024xbf16, #tpu.memory_space<vmem>>, vector<1x1024xbf16>
    %336 = arith.extf %335 : vector<1x1024xbf16> to vector<1x1024xf32>
    %337 = vector.broadcast %334 : vector<16x1xf32> to vector<16x1024xf32>
    %338 = vector.broadcast %336 : vector<1x1024xf32> to vector<16x1024xf32>
    %339 = arith.mulf %337, %338 : vector<16x1024xf32>
    %340 = arith.addf %329, %339 : vector<16x1024xf32>
    %c4_i32_155 = arith.constant 4 : i32
    %341 = vector.broadcast %c4_i32_155 : i32 to vector<16x1xi32>
    %342 = arith.cmpi eq, %295, %341 : vector<16x1xi32>
    %cst_156 = arith.constant 1.000000e+00 : f32
    %cst_157 = arith.constant 0.000000e+00 : f32
    %343 = vector.broadcast %cst_156 : f32 to vector<16x1xf32>
    %344 = vector.broadcast %cst_157 : f32 to vector<16x1xf32>
    %345 = arith.select %342, %343, %344 : vector<16x1xi1>, vector<16x1xf32>
    %c4_158 = arith.constant 4 : index
    %c0_159 = arith.constant 0 : index
    %346 = vector.load %arg9[%c4_158, %c0_159] : memref<8x1024xbf16, #tpu.memory_space<vmem>>, vector<1x1024xbf16>
    %347 = arith.extf %346 : vector<1x1024xbf16> to vector<1x1024xf32>
    %348 = vector.broadcast %345 : vector<16x1xf32> to vector<16x1024xf32>
    %349 = vector.broadcast %347 : vector<1x1024xf32> to vector<16x1024xf32>
    %350 = arith.mulf %348, %349 : vector<16x1024xf32>
    %351 = arith.addf %340, %350 : vector<16x1024xf32>
    %c5_i32_160 = arith.constant 5 : i32
    %352 = vector.broadcast %c5_i32_160 : i32 to vector<16x1xi32>
    %353 = arith.cmpi eq, %295, %352 : vector<16x1xi32>
    %cst_161 = arith.constant 1.000000e+00 : f32
    %cst_162 = arith.constant 0.000000e+00 : f32
    %354 = vector.broadcast %cst_161 : f32 to vector<16x1xf32>
    %355 = vector.broadcast %cst_162 : f32 to vector<16x1xf32>
    %356 = arith.select %353, %354, %355 : vector<16x1xi1>, vector<16x1xf32>
    %c5_163 = arith.constant 5 : index
    %c0_164 = arith.constant 0 : index
    %357 = vector.load %arg9[%c5_163, %c0_164] : memref<8x1024xbf16, #tpu.memory_space<vmem>>, vector<1x1024xbf16>
    %358 = arith.extf %357 : vector<1x1024xbf16> to vector<1x1024xf32>
    %359 = vector.broadcast %356 : vector<16x1xf32> to vector<16x1024xf32>
    %360 = vector.broadcast %358 : vector<1x1024xf32> to vector<16x1024xf32>
    %361 = arith.mulf %359, %360 : vector<16x1024xf32>
    %362 = arith.addf %351, %361 : vector<16x1024xf32>
    %c6_i32_165 = arith.constant 6 : i32
    %363 = vector.broadcast %c6_i32_165 : i32 to vector<16x1xi32>
    %364 = arith.cmpi eq, %295, %363 : vector<16x1xi32>
    %cst_166 = arith.constant 1.000000e+00 : f32
    %cst_167 = arith.constant 0.000000e+00 : f32
    %365 = vector.broadcast %cst_166 : f32 to vector<16x1xf32>
    %366 = vector.broadcast %cst_167 : f32 to vector<16x1xf32>
    %367 = arith.select %364, %365, %366 : vector<16x1xi1>, vector<16x1xf32>
    %c6_168 = arith.constant 6 : index
    %c0_169 = arith.constant 0 : index
    %368 = vector.load %arg9[%c6_168, %c0_169] : memref<8x1024xbf16, #tpu.memory_space<vmem>>, vector<1x1024xbf16>
    %369 = arith.extf %368 : vector<1x1024xbf16> to vector<1x1024xf32>
    %370 = vector.broadcast %367 : vector<16x1xf32> to vector<16x1024xf32>
    %371 = vector.broadcast %369 : vector<1x1024xf32> to vector<16x1024xf32>
    %372 = arith.mulf %370, %371 : vector<16x1024xf32>
    %373 = arith.addf %362, %372 : vector<16x1024xf32>
    %c7_i32_170 = arith.constant 7 : i32
    %374 = vector.broadcast %c7_i32_170 : i32 to vector<16x1xi32>
    %375 = arith.cmpi eq, %295, %374 : vector<16x1xi32>
    %cst_171 = arith.constant 1.000000e+00 : f32
    %cst_172 = arith.constant 0.000000e+00 : f32
    %376 = vector.broadcast %cst_171 : f32 to vector<16x1xf32>
    %377 = vector.broadcast %cst_172 : f32 to vector<16x1xf32>
    %378 = arith.select %375, %376, %377 : vector<16x1xi1>, vector<16x1xf32>
    %c7_173 = arith.constant 7 : index
    %c0_174 = arith.constant 0 : index
    %379 = vector.load %arg9[%c7_173, %c0_174] : memref<8x1024xbf16, #tpu.memory_space<vmem>>, vector<1x1024xbf16>
    %380 = arith.extf %379 : vector<1x1024xbf16> to vector<1x1024xf32>
    %381 = vector.broadcast %378 : vector<16x1xf32> to vector<16x1024xf32>
    %382 = vector.broadcast %380 : vector<1x1024xf32> to vector<16x1024xf32>
    %383 = arith.mulf %381, %382 : vector<16x1024xf32>
    %384 = arith.addf %373, %383 : vector<16x1024xf32>
    %385 = arith.truncf %292 : vector<16x256xf32> to vector<16x256xbf16>
    %c0_175 = arith.constant 0 : index
    %c0_176 = arith.constant 0 : index
    %386 = vector.load %arg8[%c0_175, %c0_176] : memref<256x1024xbf16, #tpu.memory_space<vmem>>, vector<256x1024xbf16>
    %cst_177 = arith.constant dense<0.000000e+00> : vector<16x1024xf32>
    %387 = tpu.matmul %385, %386, %cst_177 {dimension_numbers = #tpu.dot_dimension_numbers<[1], [0], [0], [1], [0, 0, 1, 1], [], []>} : vector<16x256xbf16>, vector<256x1024xbf16>, vector<16x1024xf32> -> vector<16x1024xf32>
    %388 = arith.truncf %274 : vector<16x256xf32> to vector<16x256xbf16>
    %c0_178 = arith.constant 0 : index
    %c0_179 = arith.constant 0 : index
    %389 = vector.load %arg10[%c0_178, %c0_179] : memref<256x1024xbf16, #tpu.memory_space<vmem>>, vector<256x1024xbf16>
    %cst_180 = arith.constant dense<0.000000e+00> : vector<16x1024xf32>
    %390 = tpu.matmul %388, %389, %cst_180 {dimension_numbers = #tpu.dot_dimension_numbers<[1], [0], [0], [1], [0, 0, 1, 1], [], []>} : vector<16x256xbf16>, vector<256x1024xbf16>, vector<16x1024xf32> -> vector<16x1024xf32>
    %391 = arith.addf %387, %390 : vector<16x1024xf32>
    %392 = arith.addf %391, %384 : vector<16x1024xf32>
    %c0_181 = arith.constant 0 : index
    %c0_182 = arith.constant 0 : index
    %393 = vector.load %arg11[%c0_181, %c0_182] : memref<1x1024xf32, #tpu.memory_space<vmem>>, vector<1x1024xf32>
    %394 = vector.broadcast %393 : vector<1x1024xf32> to vector<16x1024xf32>
    %395 = arith.addf %392, %394 : vector<16x1024xf32>
    %396 = vector.extract_strided_slice %395 {offsets = [0, 0], sizes = [16, 768], strides = [1, 1]} : vector<16x1024xf32> to vector<16x768xf32>
    %cst_183 = arith.constant 5.000000e-01 : f32
    %397 = vector.broadcast %cst_183 : f32 to vector<16x768xf32>
    %398 = arith.mulf %397, %396 : vector<16x768xf32>
    %399 = math.tanh %398 : vector<16x768xf32>
    %cst_184 = arith.constant 1.000000e+00 : f32
    %400 = vector.broadcast %cst_184 : f32 to vector<16x768xf32>
    %401 = arith.addf %399, %400 : vector<16x768xf32>
    %cst_185 = arith.constant 5.000000e-01 : f32
    %402 = vector.broadcast %cst_185 : f32 to vector<16x768xf32>
    %403 = arith.mulf %402, %401 : vector<16x768xf32>
    %404 = vector.extract_strided_slice %395 {offsets = [0, 768], sizes = [16, 256], strides = [1, 1]} : vector<16x1024xf32> to vector<16x256xf32>
    %405 = math.tanh %404 : vector<16x256xf32>
    %406 = vector.extract_strided_slice %403 {offsets = [0, 0], sizes = [16, 256], strides = [1, 1]} : vector<16x768xf32> to vector<16x256xf32>
    %407 = vector.extract_strided_slice %403 {offsets = [0, 256], sizes = [16, 256], strides = [1, 1]} : vector<16x768xf32> to vector<16x256xf32>
    %408 = vector.extract_strided_slice %403 {offsets = [0, 512], sizes = [16, 256], strides = [1, 1]} : vector<16x768xf32> to vector<16x256xf32>
    %409 = arith.mulf %407, %272 : vector<16x256xf32>
    %410 = arith.mulf %406, %405 : vector<16x256xf32>
    %411 = arith.addf %409, %410 : vector<16x256xf32>
    %412 = math.tanh %411 : vector<16x256xf32>
    %413 = arith.mulf %408, %412 : vector<16x256xf32>
    %414 = arith.index_cast %c2_i32_123 : i32 to index
    %c0_186 = arith.constant 0 : index
    %c0_187 = arith.constant 0 : index
    %415 = vector.load %arg12[%414, %c0_186, %c0_187] : memref<4x16x256xf32, #tpu.memory_space<vmem>>, vector<1x16x256xf32>
    %416 = vector.shape_cast %415 : vector<1x16x256xf32> to vector<16x256xf32>
    %417 = vector.shape_cast %413 : vector<16x256xf32> to vector<1x16x256xf32>
    tpu.vector_store %arg12[%414, %c0_186, %c0_187], %417 {strides = array<i32>} : memref<4x16x256xf32, #tpu.memory_space<vmem>>, vector<1x16x256xf32>,
    %418 = arith.index_cast %c2_i32_123 : i32 to index
    %c0_188 = arith.constant 0 : index
    %c0_189 = arith.constant 0 : index
    %419 = vector.load %arg13[%418, %c0_188, %c0_189] : memref<4x16x256xf32, #tpu.memory_space<vmem>>, vector<1x16x256xf32>
    %420 = vector.shape_cast %419 : vector<1x16x256xf32> to vector<16x256xf32>
    %421 = vector.shape_cast %411 : vector<16x256xf32> to vector<1x16x256xf32>
    tpu.vector_store %arg13[%418, %c0_188, %c0_189], %421 {strides = array<i32>} : memref<4x16x256xf32, #tpu.memory_space<vmem>>, vector<1x16x256xf32>,
    %c3_i32_190 = arith.constant 3 : i32
    %422 = arith.index_cast %c3_i32_190 : i32 to index
    %c0_191 = arith.constant 0 : index
    %c0_192 = arith.constant 0 : index
    %423 = vector.load %arg2[%422, %c0_191, %c0_192] : memref<4x16x64xbf16, #tpu.memory_space<vmem>>, vector<1x16x64xbf16>
    %424 = vector.shape_cast %423 : vector<1x16x64xbf16> to vector<16x64xbf16>
    %c0_193 = arith.constant 0 : index
    %c0_194 = arith.constant 0 : index
    %425 = vector.load %arg6[%c0_193, %c0_194] : memref<64x256xbf16, #tpu.memory_space<vmem>>, vector<64x256xbf16>
    %cst_195 = arith.constant dense<0.000000e+00> : vector<16x256xf32>
    %426 = tpu.matmul %424, %425, %cst_195 {dimension_numbers = #tpu.dot_dimension_numbers<[1], [0], [0], [1], [0, 0, 1, 1], [], []>} : vector<16x64xbf16>, vector<64x256xbf16>, vector<16x256xf32> -> vector<16x256xf32>
    %c0_196 = arith.constant 0 : index
    %c0_197 = arith.constant 0 : index
    %427 = vector.load %arg7[%c0_196, %c0_197] : memref<1x256xf32, #tpu.memory_space<vmem>>, vector<1x256xf32>
    %428 = vector.broadcast %427 : vector<1x256xf32> to vector<16x256xf32>
    %429 = arith.addf %426, %428 : vector<16x256xf32>
    %cst_198 = arith.constant 0.000000e+00 : f32
    %430 = vector.broadcast %cst_198 : f32 to vector<16x256xf32>
    %431 = arith.maximumf %429, %430 : vector<16x256xf32>
    %432 = arith.index_cast %c3_i32_190 : i32 to index
    %c0_199 = arith.constant 0 : index
    %c0_200 = arith.constant 0 : index
    %433 = vector.load %arg3[%432, %c0_199, %c0_200] : memref<4x16x1xi32, #tpu.memory_space<vmem>>, vector<1x16x1xi32>
    %434 = vector.shape_cast %433 : vector<1x16x1xi32> to vector<16x1xi32>
    %cst_201 = arith.constant 0.000000e+00 : f32
    %435 = vector.broadcast %cst_201 : f32 to vector<16x1024xf32>
    %c0_i32_202 = arith.constant 0 : i32
    %436 = vector.broadcast %c0_i32_202 : i32 to vector<16x1xi32>
    %437 = arith.cmpi eq, %434, %436 : vector<16x1xi32>
    %cst_203 = arith.constant 1.000000e+00 : f32
    %cst_204 = arith.constant 0.000000e+00 : f32
    %438 = vector.broadcast %cst_203 : f32 to vector<16x1xf32>
    %439 = vector.broadcast %cst_204 : f32 to vector<16x1xf32>
    %440 = arith.select %437, %438, %439 : vector<16x1xi1>, vector<16x1xf32>
    %c0_205 = arith.constant 0 : index
    %c0_206 = arith.constant 0 : index
    %441 = vector.load %arg9[%c0_205, %c0_206] : memref<8x1024xbf16, #tpu.memory_space<vmem>>, vector<1x1024xbf16>
    %442 = arith.extf %441 : vector<1x1024xbf16> to vector<1x1024xf32>
    %443 = vector.broadcast %440 : vector<16x1xf32> to vector<16x1024xf32>
    %444 = vector.broadcast %442 : vector<1x1024xf32> to vector<16x1024xf32>
    %445 = arith.mulf %443, %444 : vector<16x1024xf32>
    %446 = arith.addf %435, %445 : vector<16x1024xf32>
    %c1_i32_207 = arith.constant 1 : i32
    %447 = vector.broadcast %c1_i32_207 : i32 to vector<16x1xi32>
    %448 = arith.cmpi eq, %434, %447 : vector<16x1xi32>
    %cst_208 = arith.constant 1.000000e+00 : f32
    %cst_209 = arith.constant 0.000000e+00 : f32
    %449 = vector.broadcast %cst_208 : f32 to vector<16x1xf32>
    %450 = vector.broadcast %cst_209 : f32 to vector<16x1xf32>
    %451 = arith.select %448, %449, %450 : vector<16x1xi1>, vector<16x1xf32>
    %c1_210 = arith.constant 1 : index
    %c0_211 = arith.constant 0 : index
    %452 = vector.load %arg9[%c1_210, %c0_211] : memref<8x1024xbf16, #tpu.memory_space<vmem>>, vector<1x1024xbf16>
    %453 = arith.extf %452 : vector<1x1024xbf16> to vector<1x1024xf32>
    %454 = vector.broadcast %451 : vector<16x1xf32> to vector<16x1024xf32>
    %455 = vector.broadcast %453 : vector<1x1024xf32> to vector<16x1024xf32>
    %456 = arith.mulf %454, %455 : vector<16x1024xf32>
    %457 = arith.addf %446, %456 : vector<16x1024xf32>
    %c2_i32_212 = arith.constant 2 : i32
    %458 = vector.broadcast %c2_i32_212 : i32 to vector<16x1xi32>
    %459 = arith.cmpi eq, %434, %458 : vector<16x1xi32>
    %cst_213 = arith.constant 1.000000e+00 : f32
    %cst_214 = arith.constant 0.000000e+00 : f32
    %460 = vector.broadcast %cst_213 : f32 to vector<16x1xf32>
    %461 = vector.broadcast %cst_214 : f32 to vector<16x1xf32>
    %462 = arith.select %459, %460, %461 : vector<16x1xi1>, vector<16x1xf32>
    %c2_215 = arith.constant 2 : index
    %c0_216 = arith.constant 0 : index
    %463 = vector.load %arg9[%c2_215, %c0_216] : memref<8x1024xbf16, #tpu.memory_space<vmem>>, vector<1x1024xbf16>
    %464 = arith.extf %463 : vector<1x1024xbf16> to vector<1x1024xf32>
    %465 = vector.broadcast %462 : vector<16x1xf32> to vector<16x1024xf32>
    %466 = vector.broadcast %464 : vector<1x1024xf32> to vector<16x1024xf32>
    %467 = arith.mulf %465, %466 : vector<16x1024xf32>
    %468 = arith.addf %457, %467 : vector<16x1024xf32>
    %c3_i32_217 = arith.constant 3 : i32
    %469 = vector.broadcast %c3_i32_217 : i32 to vector<16x1xi32>
    %470 = arith.cmpi eq, %434, %469 : vector<16x1xi32>
    %cst_218 = arith.constant 1.000000e+00 : f32
    %cst_219 = arith.constant 0.000000e+00 : f32
    %471 = vector.broadcast %cst_218 : f32 to vector<16x1xf32>
    %472 = vector.broadcast %cst_219 : f32 to vector<16x1xf32>
    %473 = arith.select %470, %471, %472 : vector<16x1xi1>, vector<16x1xf32>
    %c3_220 = arith.constant 3 : index
    %c0_221 = arith.constant 0 : index
    %474 = vector.load %arg9[%c3_220, %c0_221] : memref<8x1024xbf16, #tpu.memory_space<vmem>>, vector<1x1024xbf16>
    %475 = arith.extf %474 : vector<1x1024xbf16> to vector<1x1024xf32>
    %476 = vector.broadcast %473 : vector<16x1xf32> to vector<16x1024xf32>
    %477 = vector.broadcast %475 : vector<1x1024xf32> to vector<16x1024xf32>
    %478 = arith.mulf %476, %477 : vector<16x1024xf32>
    %479 = arith.addf %468, %478 : vector<16x1024xf32>
    %c4_i32_222 = arith.constant 4 : i32
    %480 = vector.broadcast %c4_i32_222 : i32 to vector<16x1xi32>
    %481 = arith.cmpi eq, %434, %480 : vector<16x1xi32>
    %cst_223 = arith.constant 1.000000e+00 : f32
    %cst_224 = arith.constant 0.000000e+00 : f32
    %482 = vector.broadcast %cst_223 : f32 to vector<16x1xf32>
    %483 = vector.broadcast %cst_224 : f32 to vector<16x1xf32>
    %484 = arith.select %481, %482, %483 : vector<16x1xi1>, vector<16x1xf32>
    %c4_225 = arith.constant 4 : index
    %c0_226 = arith.constant 0 : index
    %485 = vector.load %arg9[%c4_225, %c0_226] : memref<8x1024xbf16, #tpu.memory_space<vmem>>, vector<1x1024xbf16>
    %486 = arith.extf %485 : vector<1x1024xbf16> to vector<1x1024xf32>
    %487 = vector.broadcast %484 : vector<16x1xf32> to vector<16x1024xf32>
    %488 = vector.broadcast %486 : vector<1x1024xf32> to vector<16x1024xf32>
    %489 = arith.mulf %487, %488 : vector<16x1024xf32>
    %490 = arith.addf %479, %489 : vector<16x1024xf32>
    %c5_i32_227 = arith.constant 5 : i32
    %491 = vector.broadcast %c5_i32_227 : i32 to vector<16x1xi32>
    %492 = arith.cmpi eq, %434, %491 : vector<16x1xi32>
    %cst_228 = arith.constant 1.000000e+00 : f32
    %cst_229 = arith.constant 0.000000e+00 : f32
    %493 = vector.broadcast %cst_228 : f32 to vector<16x1xf32>
    %494 = vector.broadcast %cst_229 : f32 to vector<16x1xf32>
    %495 = arith.select %492, %493, %494 : vector<16x1xi1>, vector<16x1xf32>
    %c5_230 = arith.constant 5 : index
    %c0_231 = arith.constant 0 : index
    %496 = vector.load %arg9[%c5_230, %c0_231] : memref<8x1024xbf16, #tpu.memory_space<vmem>>, vector<1x1024xbf16>
    %497 = arith.extf %496 : vector<1x1024xbf16> to vector<1x1024xf32>
    %498 = vector.broadcast %495 : vector<16x1xf32> to vector<16x1024xf32>
    %499 = vector.broadcast %497 : vector<1x1024xf32> to vector<16x1024xf32>
    %500 = arith.mulf %498, %499 : vector<16x1024xf32>
    %501 = arith.addf %490, %500 : vector<16x1024xf32>
    %c6_i32_232 = arith.constant 6 : i32
    %502 = vector.broadcast %c6_i32_232 : i32 to vector<16x1xi32>
    %503 = arith.cmpi eq, %434, %502 : vector<16x1xi32>
    %cst_233 = arith.constant 1.000000e+00 : f32
    %cst_234 = arith.constant 0.000000e+00 : f32
    %504 = vector.broadcast %cst_233 : f32 to vector<16x1xf32>
    %505 = vector.broadcast %cst_234 : f32 to vector<16x1xf32>
    %506 = arith.select %503, %504, %505 : vector<16x1xi1>, vector<16x1xf32>
    %c6_235 = arith.constant 6 : index
    %c0_236 = arith.constant 0 : index
    %507 = vector.load %arg9[%c6_235, %c0_236] : memref<8x1024xbf16, #tpu.memory_space<vmem>>, vector<1x1024xbf16>
    %508 = arith.extf %507 : vector<1x1024xbf16> to vector<1x1024xf32>
    %509 = vector.broadcast %506 : vector<16x1xf32> to vector<16x1024xf32>
    %510 = vector.broadcast %508 : vector<1x1024xf32> to vector<16x1024xf32>
    %511 = arith.mulf %509, %510 : vector<16x1024xf32>
    %512 = arith.addf %501, %511 : vector<16x1024xf32>
    %c7_i32_237 = arith.constant 7 : i32
    %513 = vector.broadcast %c7_i32_237 : i32 to vector<16x1xi32>
    %514 = arith.cmpi eq, %434, %513 : vector<16x1xi32>
    %cst_238 = arith.constant 1.000000e+00 : f32
    %cst_239 = arith.constant 0.000000e+00 : f32
    %515 = vector.broadcast %cst_238 : f32 to vector<16x1xf32>
    %516 = vector.broadcast %cst_239 : f32 to vector<16x1xf32>
    %517 = arith.select %514, %515, %516 : vector<16x1xi1>, vector<16x1xf32>
    %c7_240 = arith.constant 7 : index
    %c0_241 = arith.constant 0 : index
    %518 = vector.load %arg9[%c7_240, %c0_241] : memref<8x1024xbf16, #tpu.memory_space<vmem>>, vector<1x1024xbf16>
    %519 = arith.extf %518 : vector<1x1024xbf16> to vector<1x1024xf32>
    %520 = vector.broadcast %517 : vector<16x1xf32> to vector<16x1024xf32>
    %521 = vector.broadcast %519 : vector<1x1024xf32> to vector<16x1024xf32>
    %522 = arith.mulf %520, %521 : vector<16x1024xf32>
    %523 = arith.addf %512, %522 : vector<16x1024xf32>
    %524 = arith.truncf %431 : vector<16x256xf32> to vector<16x256xbf16>
    %c0_242 = arith.constant 0 : index
    %c0_243 = arith.constant 0 : index
    %525 = vector.load %arg8[%c0_242, %c0_243] : memref<256x1024xbf16, #tpu.memory_space<vmem>>, vector<256x1024xbf16>
    %cst_244 = arith.constant dense<0.000000e+00> : vector<16x1024xf32>
    %526 = tpu.matmul %524, %525, %cst_244 {dimension_numbers = #tpu.dot_dimension_numbers<[1], [0], [0], [1], [0, 0, 1, 1], [], []>} : vector<16x256xbf16>, vector<256x1024xbf16>, vector<16x1024xf32> -> vector<16x1024xf32>
    %527 = arith.truncf %413 : vector<16x256xf32> to vector<16x256xbf16>
    %c0_245 = arith.constant 0 : index
    %c0_246 = arith.constant 0 : index
    %528 = vector.load %arg10[%c0_245, %c0_246] : memref<256x1024xbf16, #tpu.memory_space<vmem>>, vector<256x1024xbf16>
    %cst_247 = arith.constant dense<0.000000e+00> : vector<16x1024xf32>
    %529 = tpu.matmul %527, %528, %cst_247 {dimension_numbers = #tpu.dot_dimension_numbers<[1], [0], [0], [1], [0, 0, 1, 1], [], []>} : vector<16x256xbf16>, vector<256x1024xbf16>, vector<16x1024xf32> -> vector<16x1024xf32>
    %530 = arith.addf %526, %529 : vector<16x1024xf32>
    %531 = arith.addf %530, %523 : vector<16x1024xf32>
    %c0_248 = arith.constant 0 : index
    %c0_249 = arith.constant 0 : index
    %532 = vector.load %arg11[%c0_248, %c0_249] : memref<1x1024xf32, #tpu.memory_space<vmem>>, vector<1x1024xf32>
    %533 = vector.broadcast %532 : vector<1x1024xf32> to vector<16x1024xf32>
    %534 = arith.addf %531, %533 : vector<16x1024xf32>
    %535 = vector.extract_strided_slice %534 {offsets = [0, 0], sizes = [16, 768], strides = [1, 1]} : vector<16x1024xf32> to vector<16x768xf32>
    %cst_250 = arith.constant 5.000000e-01 : f32
    %536 = vector.broadcast %cst_250 : f32 to vector<16x768xf32>
    %537 = arith.mulf %536, %535 : vector<16x768xf32>
    %538 = math.tanh %537 : vector<16x768xf32>
    %cst_251 = arith.constant 1.000000e+00 : f32
    %539 = vector.broadcast %cst_251 : f32 to vector<16x768xf32>
    %540 = arith.addf %538, %539 : vector<16x768xf32>
    %cst_252 = arith.constant 5.000000e-01 : f32
    %541 = vector.broadcast %cst_252 : f32 to vector<16x768xf32>
    %542 = arith.mulf %541, %540 : vector<16x768xf32>
    %543 = vector.extract_strided_slice %534 {offsets = [0, 768], sizes = [16, 256], strides = [1, 1]} : vector<16x1024xf32> to vector<16x256xf32>
    %544 = math.tanh %543 : vector<16x256xf32>
    %545 = vector.extract_strided_slice %542 {offsets = [0, 0], sizes = [16, 256], strides = [1, 1]} : vector<16x768xf32> to vector<16x256xf32>
    %546 = vector.extract_strided_slice %542 {offsets = [0, 256], sizes = [16, 256], strides = [1, 1]} : vector<16x768xf32> to vector<16x256xf32>
    %547 = vector.extract_strided_slice %542 {offsets = [0, 512], sizes = [16, 256], strides = [1, 1]} : vector<16x768xf32> to vector<16x256xf32>
    %548 = arith.mulf %546, %411 : vector<16x256xf32>
    %549 = arith.mulf %545, %544 : vector<16x256xf32>
    %550 = arith.addf %548, %549 : vector<16x256xf32>
    %551 = math.tanh %550 : vector<16x256xf32>
    %552 = arith.mulf %547, %551 : vector<16x256xf32>
    %553 = arith.index_cast %c3_i32_190 : i32 to index
    %c0_253 = arith.constant 0 : index
    %c0_254 = arith.constant 0 : index
    %554 = vector.load %arg12[%553, %c0_253, %c0_254] : memref<4x16x256xf32, #tpu.memory_space<vmem>>, vector<1x16x256xf32>
    %555 = vector.shape_cast %554 : vector<1x16x256xf32> to vector<16x256xf32>
    %556 = vector.shape_cast %552 : vector<16x256xf32> to vector<1x16x256xf32>
    tpu.vector_store %arg12[%553, %c0_253, %c0_254], %556 {strides = array<i32>} : memref<4x16x256xf32, #tpu.memory_space<vmem>>, vector<1x16x256xf32>,
    %557 = arith.index_cast %c3_i32_190 : i32 to index
    %c0_255 = arith.constant 0 : index
    %c0_256 = arith.constant 0 : index
    %558 = vector.load %arg13[%557, %c0_255, %c0_256] : memref<4x16x256xf32, #tpu.memory_space<vmem>>, vector<1x16x256xf32>
    %559 = vector.shape_cast %558 : vector<1x16x256xf32> to vector<16x256xf32>
    %560 = vector.shape_cast %550 : vector<16x256xf32> to vector<1x16x256xf32>
    tpu.vector_store %arg13[%557, %c0_255, %c0_256], %560 {strides = array<i32>} : memref<4x16x256xf32, #tpu.memory_space<vmem>>, vector<1x16x256xf32>,
    %c4_i32_257 = arith.constant 4 : i32
    %c0_258 = arith.constant 0 : index
    %c0_259 = arith.constant 0 : index
    %561 = vector.load %arg14[%c0_258, %c0_259] : memref<16x256xf32, #tpu.memory_space<vmem>>, vector<16x256xf32>
    tpu.vector_store %arg14[%c0_258, %c0_259], %552 {strides = array<i32>} : memref<16x256xf32, #tpu.memory_space<vmem>>, vector<16x256xf32>,
    %c0_260 = arith.constant 0 : index
    %c0_261 = arith.constant 0 : index
    %562 = vector.load %arg15[%c0_260, %c0_261] : memref<16x256xf32, #tpu.memory_space<vmem>>, vector<16x256xf32>
    tpu.vector_store %arg15[%c0_260, %c0_261], %550 {strides = array<i32>} : memref<16x256xf32, #tpu.memory_space<vmem>>, vector<16x256xf32>,
    return
  }
  func.func @transform_0(%arg0: i32, %arg1: i32) -> (i32, i32, i32) {
    %c0_i32 = arith.constant 0 : i32
    %c0_i32_0 = arith.constant 0 : i32
    return %arg1, %arg0, %c0_i32 : i32, i32, i32
  }
  func.func @transform_1(%arg0: i32, %arg1: i32) -> (i32, i32, i32) {
    %c0_i32 = arith.constant 0 : i32
    %c0_i32_0 = arith.constant 0 : i32
    return %arg1, %arg0, %c0_i32 : i32, i32, i32
  }
  func.func @transform_2(%arg0: i32, %arg1: i32) -> (i32, i32) {
    %c0_i32 = arith.constant 0 : i32
    %c0_i32_0 = arith.constant 0 : i32
    return %arg0, %c0_i32 : i32, i32
  }
  func.func @transform_3(%arg0: i32, %arg1: i32) -> (i32, i32) {
    %c0_i32 = arith.constant 0 : i32
    %c0_i32_0 = arith.constant 0 : i32
    return %arg0, %c0_i32 : i32, i32
  }
  func.func @transform_4(%arg0: i32, %arg1: i32) -> (i32, i32) {
    %c0_i32 = arith.constant 0 : i32
    %c0_i32_0 = arith.constant 0 : i32
    %c0_i32_1 = arith.constant 0 : i32
    return %c0_i32, %c0_i32_0 : i32, i32
  }
  func.func @transform_5(%arg0: i32, %arg1: i32) -> (i32, i32) {
    %c0_i32 = arith.constant 0 : i32
    %c0_i32_0 = arith.constant 0 : i32
    %c0_i32_1 = arith.constant 0 : i32
    return %c0_i32, %c0_i32_0 : i32, i32
  }
  func.func @transform_6(%arg0: i32, %arg1: i32) -> (i32, i32) {
    %c0_i32 = arith.constant 0 : i32
    %c0_i32_0 = arith.constant 0 : i32
    %c0_i32_1 = arith.constant 0 : i32
    return %c0_i32, %c0_i32_0 : i32, i32
  }
  func.func @transform_7(%arg0: i32, %arg1: i32) -> (i32, i32) {
    %c0_i32 = arith.constant 0 : i32
    %c0_i32_0 = arith.constant 0 : i32
    %c0_i32_1 = arith.constant 0 : i32
    return %c0_i32, %c0_i32_0 : i32, i32
  }
  func.func @transform_8(%arg0: i32, %arg1: i32) -> (i32, i32) {
    %c0_i32 = arith.constant 0 : i32
    %c0_i32_0 = arith.constant 0 : i32
    %c0_i32_1 = arith.constant 0 : i32
    return %c0_i32, %c0_i32_0 : i32, i32
  }
  func.func @transform_9(%arg0: i32, %arg1: i32) -> (i32, i32) {
    %c0_i32 = arith.constant 0 : i32
    %c0_i32_0 = arith.constant 0 : i32
    %c0_i32_1 = arith.constant 0 : i32
    return %c0_i32, %c0_i32_0 : i32, i32
  }
  func.func @transform_10(%arg0: i32, %arg1: i32) -> (i32, i32, i32) {
    %c0_i32 = arith.constant 0 : i32
    %c0_i32_0 = arith.constant 0 : i32
    return %arg1, %arg0, %c0_i32 : i32, i32, i32
  }
  func.func @transform_11(%arg0: i32, %arg1: i32) -> (i32, i32, i32) {
    %c0_i32 = arith.constant 0 : i32
    %c0_i32_0 = arith.constant 0 : i32
    return %arg1, %arg0, %c0_i32 : i32, i32, i32
  }
}

</mosaic_0001>

<bundles_post_ra>
// kernel: tpu_custom_call.1
= control target key start
LH: loop header
LB: loop body
LE: loop exit
PB: predicated region body
PF: predicated region fallthrough
CT: control target
= control target key end

     0   :  { %s18013_s0 = inlined_call_operand.vmem [shape: bf16[8,16,64], index: 0, kind: input, shape index: {}]   ;;  %s18014_s1 = inlined_call_operand.vmem [shape: s32[8,16,1], index: 1, kind: input, shape index: {}]   ;;  %s18015_s2 = inlined_call_operand.hbm [shape: f32[16,256], index: 2, kind: input, shape index: {}]   ;;  %s18016_s3 = inlined_call_operand.hbm [shape: f32[16,256], index: 3, kind: input, shape index: {}]   ;;  %s18017_s4 = inlined_call_operand.vmem [shape: bf16[64,256], index: 4, kind: input, shape index: {}]   ;;  %s18018_s5 = inlined_call_operand.vmem [shape: f32[1,256], index: 5, kind: input, shape index: {}]   ;;  %s18019_s6 = inlined_call_operand.hbm [shape: bf16[256,1024], index: 6, kind: input, shape index: {}]   ;;  %s18020_s7 = inlined_call_operand.vmem [shape: bf16[8,1024], index: 7, kind: input, shape index: {}]   ;;  %s18021_s8 = inlined_call_operand.hbm [shape: bf16[256,1024], index: 8, kind: input, shape index: {}]   ;;  %s18022_s9 = inlined_call_operand.vmem [shape: f32[1,1024], index: 9, kind: input, shape index: {}]   ;;  %s18023_s10 = inlined_call_operand.hbm [shape: f32[8,16,256], index: 10, kind: output, shape index: {0}]   ;;  %s18024_s11 = inlined_call_operand.hbm [shape: f32[8,16,256], index: 11, kind: output, shape index: {1}]  }
   0x1   :  { %18253 = sst [smem:[#allocation78_spill]] %s18016_s3 }
   0x2   :  { %18254 = sst [smem:[#allocation79_spill]] %s18023_s10 }
   0x3   :  { %17 = vsyncpa [#allocation5], 0 }
   0x4   :  { %18 = vsyncpa [#allocation8], 0 }
   0x5   :  { %19 = vsyncpa [#allocation11], 0 }
   0x6   :  { %20 = vsyncpa [#allocation6], 0 }
   0x7   :  { %22 = vsyncpa [#allocation6 + $0x1], 0 }
   0x8   :  { %23 = vsyncpa [#allocation14], 0 }
   0x9   :  { %25 = vsyncpa [#allocation14 + $0x1], 0  ;;  %s14150_s17 = smov 0   ;;  %s14152_s18 = smov 0  }
   0xa   :  { %s14154_s19 = smov 0   ;;  %s14156_s20 = smov 0  }
   0xb   :  { %s14158_s21 = smov 0   ;;  %s14160_s22 = smov 0  }
   0xc LB: > { %18255 = sst [smem:[#allocation20_spill]] %s14054_s17  ;;  %s12143_s23 = sadd.s32 4294967295, %s14074_s22   ;;  %s14074_s22 = sphi %s14160_s22, %s31_s22   ;;  %s14070_s21 = sphi %s14158_s21, %s18814_s21   ;;  %s14066_s20 = sphi %s14156_s20, %s18813_s20   ;;  %s14062_s19 = sphi %s14154_s19, %s18812_s19   ;;  %s14058_s18 = sphi %s14152_s18, %s18816_s18   ;;  %s14054_s17 = sphi %s14150_s17, %s18815_s17  }
   0xd   : > { %18256 = sst [smem:[#allocation21_spill]] %s14062_s19  ;;  %s12144_s24 = sadd.s32 4294967294, %s14074_s22  }
   0xe   : > { %18257 = sst [smem:[#allocation22_spill]] %s14070_s21  ;;  %s40_s25 = sadd.s32 1, %s14070_s21 }
   0xf   : > { %18258 = sst [smem:[#allocation23_spill]] %s14074_s22  ;;  %s286_s26 = sadd.s32 1, %s14062_s19 }
  0x10   : > { %p41_p0 = scmp.ge.s32.totalorder %s40_s25, 2  ;;  %p296_p1 = scmp.ne.s32.totalorder %s14062_s19, %s14058_s18 }
  0x11   : > { %p297_p2 = scmp.eq.s32.totalorder %s12143_s23, 1  ;;  %p302_p3 = scmp.ne.s32.totalorder %s14058_s18, %s14054_s17 }
  0x12   : > { %s18818_s25 = smov (%p41_p0, %s40_s25), 0  ;;  %p303_p5 = scmp.eq.s32.totalorder %s12144_s24, 1 }
  0x13   : > { %18259 = sst [smem:[#allocation24_spill]] %s18818_s25  ;;  %p14190_p4 = por %p297_p2, %p296_p1 }
  0x14   : > { %s281_s28 = ssub.s32 %s14070_s21, %s18818_s25  ;;  %p12145_p6 = scmp.ge.s32.totalorder %s14074_s22, 1 }
  0x15   : > { %s18260_s27 = scalar_select %p14190_p4, 1, 0 }
  0x16   : > { %p284_p7 = scmp.eq.s32.totalorder %s281_s28, 0  ;;  %p14197_p8 = por %p303_p5, %p302_p3 }
  0x17   : > { %p338_p9 = scmp.lt.s32.totalorder %s14074_s22, 3  ;;  %p14209_p11 = scmp.eq.s32.totalorder %s12143_s23, 0 }
  0x18   : > { %s18261_s29 = scalar_select %p14197_p8, 1, 0 }
  0x19   : > { %s14203_s30 = scalar_select %p284_p7, %s14062_s19, %s286_s26  }
  0x1a   : > { %18262 = sst [smem:[#allocation25_spill]] %s18261_s29  ;;  %p14205_p10 = pnand %p12145_p6, %p338_p9 }
  0x1b   : > { %18263 = sst [smem:[#allocation26_spill]] %s14203_s30  ;;  %s14076_s14 = smov [#allocation7]  }
  0x1c   : > { %s18264_s12 = scalar_select %p14205_p10, 1, 0 }
  0x1d   : > { %s18265_s13 = scalar_select %p14209_p11, 1, 0 }
  0x1e   : > { %p13365_p12 = pneg %p14205_p10  ;;  %s371_s15 = sshll.u32 %s14076_s14, 4  ;;  %s372_s15 = int_to_ptr.vmem [resolvable:$true] %s371_s15 }
  0x1f   : > { %s14077_s24 = smov [#allocation4]   ;;  %s18267_s3 = sld [smem:[#allocation78_spill]] }
  0x20   : > { %p14217_p13 = pnand %p14209_p11, %p13365_p12  ;;  %s354_s26 = sshll.u32 %s14077_s24, 4  ;;  %s355_s26 = int_to_ptr.vmem [resolvable:$true] %s354_s26 }
  0x22   : > { %p14229_p1 = pneg %p14217_p13 }
  0x25   : > { %s13840_s23 = scalar_lea.hbm %s18267_s3, 512 }
  0x26   : > { %p13841_p0 = scmp.ne.s32.totalorder %s18267_s3, %s13840_s23  ;;  %p13847_p5 = scmp.lt.u32.totalorder %s13840_s23, %s18267_s3 }
  0x28   : > { %p13843_p2 = pnand %p14229_p1, %p13841_p0 }
  0x2a   : > { %p13844_p3 = pneg %p13843_p2 }
  0x2c   : > { %p13849_p6 = pnand %p13847_p5, %p13844_p3 }
  0x2e   : > { %13852 = shalt.err (!%p13849_p6)
}
  0x2f   : > { %s13853_s25 = scalar_lea.vmem %s372_s15, 512  ;;  %p13861_p8 = scmp.lt.s32.totalorder %s372_s15, %s372_s15 }
  0x30   : > { %p13854_p7 = scmp.ne.s32.totalorder %s372_s15, %s13853_s25  ;;  %p13862_p4 = scmp.lt.s32.totalorder %s13853_s25, %s13853_s25 }
  0x32   : > { %p13856_p9 = pnand %p13854_p7, %p14229_p1  ;;  %p13863_p11 = por %p13862_p4, %p13861_p8 }
  0x34   : > { %p13857_p12 = pneg %p13856_p9 }
  0x36   : > { %p13864_p10 = pnand %p13863_p11, %p13857_p12 }
  0x38   : > { %13867 = shalt.err (!%p13864_p10)
}
  0x39   : > { %s14078_s21 = smov 256   ;;  %s14079_s30 = smov 16  }
  0x3a   : > { %13371 = dma.hbm_to_vmem [thread:$0]  (!%p14217_p13), %s18267_s3, 512, %s372_s15, [#allocation8], %s14078_s21, %s14078_s21, %s14079_s30  }
  0x3b   : > { %s13868_s23 = scalar_lea.hbm %s18015_s2, 512 }
  0x3c   : > { %p13869_p4 = scmp.ne.s32.totalorder %s18015_s2, %s13868_s23  ;;  %p13875_p11 = scmp.lt.u32.totalorder %s13868_s23, %s18015_s2 }
  0x3e   : > { %p13871_p8 = pnand %p13869_p4, %p14229_p1 }
  0x40   : > { %p13872_p10 = pneg %p13871_p8 }
  0x42   : > { %p13877_p0 = pnand %p13875_p11, %p13872_p10 }
  0x44   : > { %13880 = shalt.err (!%p13877_p0)
}
  0x45   : > { %s13881_s19 = scalar_lea.vmem %s355_s26, 512  ;;  %p13889_p6 = scmp.lt.s32.totalorder %s355_s26, %s355_s26 }
  0x46   : > { %p13882_p2 = scmp.ne.s32.totalorder %s355_s26, %s13881_s19  ;;  %p13890_p7 = scmp.lt.s32.totalorder %s13881_s19, %s13881_s19 }
  0x48   : > { %p13884_p3 = pnand %p13882_p2, %p14229_p1  ;;  %p13891_p9 = por %p13890_p7, %p13889_p6 }
  0x4a   : > { %p13885_p5 = pneg %p13884_p3 }
  0x4c   : > { %p13892_p12 = pnand %p13891_p9, %p13885_p5 }
  0x4e   : > { %13895 = shalt.err (!%p13892_p12)
}
  0x4f   : > { %13368 = dma.hbm_to_vmem [thread:$0]  (!%p14217_p13), %s18015_s2, 512, %s355_s26, [#allocation5], %s14078_s21, %s14078_s21, %s14079_s30  }
  0x50   : > { %s14080_s10 = smov [#allocation9]   ;;  %s13896_s28 = scalar_lea.hbm %s18019_s6, 16384 }
  0x51   : > { %s390_s15 = sshll.u32 %s14080_s10, 4  ;;  %p13897_p4 = scmp.ne.s32.totalorder %s18019_s6, %s13896_s28  ;;  %s391_s15 = int_to_ptr.vmem [resolvable:$true] %s390_s15 }
  0x52   : > { %p13903_p11 = scmp.lt.u32.totalorder %s13896_s28, %s18019_s6 }
  0x53   : > { %p13899_p8 = pnand %p13897_p4, %p14229_p1 }
  0x55   : > { %p13900_p10 = pneg %p13899_p8 }
  0x57   : > { %p13905_p0 = pnand %p13903_p11, %p13900_p10 }
  0x59   : > { %13908 = shalt.err (!%p13905_p0)
}
  0x5a   : > { %s13909_s26 = scalar_lea.vmem %s391_s15, 16384  ;;  %p13917_p6 = scmp.lt.s32.totalorder %s391_s15, %s391_s15 }
  0x5b   : > { %p13910_p2 = scmp.ne.s32.totalorder %s391_s15, %s13909_s26  ;;  %p13918_p7 = scmp.lt.s32.totalorder %s13909_s26, %s13909_s26 }
  0x5d   : > { %p13912_p3 = pnand %p13910_p2, %p14229_p1  ;;  %p13919_p9 = por %p13918_p7, %p13917_p6 }
  0x5f   : > { %p13913_p5 = pneg %p13912_p3 }
  0x61   : > { %p13920_p12 = pnand %p13919_p9, %p13913_p5 }
  0x63   : > { %13923 = shalt.err (!%p13920_p12)
}
  0x64   : > { %s14081_s21 = smov 512   ;;  %s14082_s30 = smov 32  }
  0x65   : > { %13374 = dma.hbm_to_vmem [thread:$0]  (!%p14217_p13), %s18019_s6, 16384, %s391_s15, [#allocation8], %s14081_s21, %s14081_s21, %s14082_s30  }
  0x66   : > { %s14083_s22 = smov [#allocation10]   ;;  %s13924_s28 = scalar_lea.hbm %s18021_s8, 16384 }
  0x67   : > { %s406_s10 = sshll.u32 %s14083_s22, 4  ;;  %p13925_p4 = scmp.ne.s32.totalorder %s18021_s8, %s13924_s28  ;;  %s407_s10 = int_to_ptr.vmem [resolvable:$true] %s406_s10 }
  0x68   : > { %p13931_p11 = scmp.lt.u32.totalorder %s13924_s28, %s18021_s8 }
  0x69   : > { %p13927_p8 = pnand %p13925_p4, %p14229_p1 }
  0x6b   : > { %p13928_p10 = pneg %p13927_p8 }
  0x6d   : > { %p13933_p0 = pnand %p13931_p11, %p13928_p10 }
  0x6f   : > { %13936 = shalt.err (!%p13933_p0)
}
  0x70   : > { %s13937_s15 = scalar_lea.vmem %s407_s10, 16384  ;;  %p13945_p6 = scmp.lt.s32.totalorder %s407_s10, %s407_s10 }
  0x71   : > { %p13938_p2 = scmp.ne.s32.totalorder %s407_s10, %s13937_s15  ;;  %p13946_p7 = scmp.lt.s32.totalorder %s13937_s15, %s13937_s15 }
  0x73   : > { %p13940_p3 = pnand %p13938_p2, %p14229_p1  ;;  %p13947_p9 = por %p13946_p7, %p13945_p6 }
  0x75   : > { %p13941_p5 = pneg %p13940_p3 }
  0x77   : > { %p13948_p12 = pnand %p13947_p9, %p13941_p5 }
  0x79   : > { %13951 = shalt.err (!%p13948_p12)
}
  0x7a   : > { %13377 = dma.hbm_to_vmem [thread:$0]  (!%p14217_p13), %s18021_s8, 16384, %s407_s10, [#allocation11], %s14081_s21, %s14081_s21, %s14082_s30  }
  0x7b   : > { %p18269_p4 = scmp.ne.s32.totalorder %s18264_s12, 0 }
  0x7d   : > { %455 = sbr.rel (%p18269_p4) target bundleno = 2068 (0x814), region = 60 }
  0x84   : > { %p18270_p8 = scmp.ne.s32.totalorder %s18265_s13, 0 }
  0x86   : > { %14033 = dma.done.wait (%p18270_p8), [#allocation5], 512  }
  0x87   : > { %14035 = vsyncadd (%p18270_p8), [#allocation5], 4294966784 }
  0x88   : > { %14037 = dma.done.wait (%p18270_p8), [#allocation8], 16896  }
  0x89   : > { %14039 = vsyncadd (%p18270_p8), [#allocation8], 4294950400 }
  0x8a   : > { %14041 = dma.done.wait (%p18270_p8), [#allocation11], 16384  }
  0x8b   : > { %14043 = vsyncadd (%p18270_p8), [#allocation11], 4294950912  ;;  %s14314_s12 = sand.u32 1, %s14058_s18   ;;  %s12158_s16 = sshll.u32 %s14066_s20, 2 }
  0x8c   : > { %s12156_s14 = sshll.u32 %s14314_s12, 7  ;;  %p529_p13 = scmp.lt.s32.totalorder %s12158_s16, 7 }
  0x8d   : > { %s14328_s23 = scalar_lea.vmem [#allocation12], %s12156_s14  ;;  %s14330_s25 = scalar_lea.vmem [#allocation13], %s12156_s14 }
  0x8e   : > { %s18820_s16 = smov (!%p529_p13, %s12158_s16), 7  ;;  %p12164_p1 = scmp.ne.s32.totalorder %s14066_s20, 0 }
  0x8f   : > { %s13275_s21 = sshll.u32 %s18820_s16, 3  ;;  %s13276_s30 = sshll.u32 %s18820_s16, 4  ;;  %v562_v0 = vld [vmem:[#allocation4] sm:$0xff] (!%p12164_p1)  ;;  %v563_v1 = vld [vmem:[#allocation4 + $0x8] sm:$0xff] (!%p12164_p1)  ;;  %v564_v2 = vld [vmem:[#allocation4 + $0x10] sm:$0xff] (!%p12164_p1) }
  0x90   : > { %s14321_s29 = scalar_lea.vmem %s18013_s0, %s13275_s21  ;;  %s14326_s13 = scalar_lea.vmem %s18014_s1, %s13276_s30  ;;  %566 = vst [vmem:[#allocation2] sm:$0xff] (!%p12164_p1), %v562_v0  ;;  %567 = vst [vmem:[#allocation2 + $0x8] sm:$0xff] (!%p12164_p1), %v563_v1  ;;  %v565_v3 = vld [vmem:[#allocation4 + $0x18] sm:$0xff] (!%p12164_p1)  ;;  %v570_v4 = vld [vmem:[#allocation7] sm:$0xff] (!%p12164_p1) }
  0x91   : > { %561 = sbr.rel (%p12164_p1) target bundleno = 152 (0x98), region = 80  ;;  %568 = vst [vmem:[#allocation2 + $0x10] sm:$0xff] (!%p12164_p1), %v564_v2  ;;  %v571_v5 = vld [vmem:[#allocation7 + $0x8] sm:$0xff] (!%p12164_p1)  ;;  %569 = vst [vmem:[#allocation2 + $0x18] sm:$0xff] (!%p12164_p1), %v565_v3  ;;  %v572_v6 = vld [vmem:[#allocation7 + $0x10] sm:$0xff] (!%p12164_p1) }
  0x92   : > { %574 = vst [vmem:[#allocation3] sm:$0xff] (!%p12164_p1), %v570_v4  ;;  %575 = vst [vmem:[#allocation3 + $0x8] sm:$0xff] (!%p12164_p1), %v571_v5  ;;  %v573_v7 = vld [vmem:[#allocation7 + $0x18] sm:$0xff] (!%p12164_p1) }
  0x93   : > { %576 = vst [vmem:[#allocation3 + $0x10] sm:$0xff] (!%p12164_p1), %v572_v6  ;;  %577 = vst [vmem:[#allocation3 + $0x18] sm:$0xff] (!%p12164_p1), %v573_v7 }
  0x98 PF: > { %v13616_v8 = vld [vmem:[%s18017_s4 + $0x4] ss:$8 sps:$4 sm:$0xff]   ;;  %v13618_v9 = vld [vmem:[%s18017_s4] ss:$8 sps:$4 sm:$0xff]   ;;  %v18037_v10 = vmov 0   ;;  %vm653_vm0 = vcmask 523264  }
  0x99   : > { %689 = vmatprep.mubr.bf16.mxu0 %v18037_v10  ;;  %13454 = vset.pattern.permute.xlu0 %v18037_v10  ;;  %v13619_v11 = vld [vmem:[%s18017_s4 + $0x14] ss:$8 sps:$4 sm:$0xff]   ;;  %v13621_v12 = vld [vmem:[%s18017_s4 + $0x10] ss:$8 sps:$4 sm:$0xff]   ;;  %v13622_v13 = vld [vmem:[%s18017_s4 + $0x24] ss:$8 sps:$4 sm:$0xff]  }
  0x9a   : > { %657 = vmatprep.subr.bf16.mxu0 %v13616_v8  ;;  %13465 = vset.pattern.permute.xlu1 %v18037_v10  ;;  %v1510_v14 = vld [vmem:[#allocation10] sm:$0xff]  ;;  %v13625_v20 = vld [vmem:[%s18017_s4 + $0x34] ss:$8 sps:$4 sm:$0xff]   ;;  %v1511_v21 = vld [vmem:[#allocation10 + $0x8] sm:$0xff]  ;;  %s13278_s21 = sshll.u32 %s14066_s20, 11  ;;  %s11966_s30 = sshll.u32 %s14330_s25, 4  ;;  %s17920_s30 = int_to_ptr.vmem [resolvable:$true] %s11966_s30 }
  0x9b   : > { %658 = vmatpush1.bf16.msra.mxu0 %v13618_v9  ;;  %v1514_v15 = vld [vmem:[#allocation10 + $0x20] sm:$0xff]  ;;  %v1515_v23 = vld [vmem:[#allocation10 + $0x28] sm:$0xff]  ;;  %v13627_v28 = vld [vmem:[%s18017_s4 + $0x30] ss:$8 sps:$4 sm:$0xff]   ;;  %s17918_s24 = scalar_lea.hbm %s18024_s11, %s13278_s21  ;;  %s13952_s28 = scalar_lea.vmem %s17920_s30, 2048 }
  0x9c   : > { %659 = vmatprep.subr.bf16.mxu0 %v13619_v11  ;;  %v13624_v16 = vld [vmem:[%s18017_s4 + $0x20] ss:$8 sps:$4 sm:$0xff]   ;;  %v12176_v17 = vcombine.high %v1510_v14, %v1514_v15  ;;  %v12175_v18 = vcombine.low %v1510_v14, %v1514_v15  ;;  %v12178_v30 = vcombine.high %v1511_v21, %v1515_v23  ;;  %v12177_v37 = vcombine.low %v1511_v21, %v1515_v23  ;;  %v581_v3 = vld [vmem:[#allocation2 + $0x18] sm:$0xff]  ;;  %p13953_p10 = scmp.ne.s32.totalorder %s17920_s30, %s13952_s28  ;;  %p18805_p11 = scmp.ne.s32.totalorder %s18260_s27, 0 }
  0x9d   : > { %v1518_v19 = vld [vmem:[#allocation10 + $0x40] sm:$0xff]  ;;  %v1519_v33 = vld [vmem:[#allocation10 + $0x48] sm:$0xff]  ;;  %s14086_s19 = smov [#allocation13]  }
  0x9e   : > { %v1522_v22 = vld [vmem:[#allocation10 + $0x60] sm:$0xff]  ;;  %2278 = vmatprep.subr.bf16.mxu1 %v12176_v17  ;;  %v1523_v34 = vld [vmem:[#allocation10 + $0x68] sm:$0xff]  ;;  %p13954_p0 = pnand %p13953_p10, %p18805_p11  ;;  %s13956_s26 = sshll.u32 %s14086_s19, 4  ;;  %s13957_s26 = int_to_ptr.vmem [resolvable:$false] %s13956_s26 }
  0x9f   : > { %660 = vmatpush1.bf16.msra.mxu0 %v13621_v12  ;;  %v12184_v24 = vcombine.high %v1518_v19, %v1522_v22  ;;  %v1526_v25 = vld [vmem:[#allocation10 + $0x80] sm:$0xff]  ;;  %2279 = vmatpush1.bf16.msra.mxu1 %v12175_v18  ;;  %v12183_v27 = vcombine.low %v1518_v19, %v1522_v22  ;;  %v12186_v39 = vcombine.high %v1519_v33, %v1523_v34  ;;  %v1527_v42 = vld [vmem:[#allocation10 + $0x88] sm:$0xff]  ;;  %s13958_s15 = scalar_lea.vmem %s13957_s26, 4096  ;;  %p13959_p3 = scmp.lt.s32.totalorder %s17920_s30, %s13957_s26 }
  0xa0   : > { %661 = vmatprep.subr.bf16.mxu0 %v13622_v13  ;;  %v1530_v26 = vld [vmem:[#allocation10 + $0xa0] sm:$0xff]  ;;  %v1531_v43 = vld [vmem:[#allocation10 + $0xa8] sm:$0xff]  ;;  %v12185_v45 = vcombine.low %v1519_v33, %v1523_v34  ;;  %p13955_p2 = pneg %p13954_p0  ;;  %p13960_p5 = scmp.lt.s32.totalorder %s13958_s15, %s13952_s28 }
  0xa1   : > { %2280 = vmatprep.subr.bf16.mxu1 %v12184_v24  ;;  %v12192_v29 = vcombine.high %v1526_v25, %v1530_v26  ;;  %v1534_v31 = vld [vmem:[#allocation10 + $0xc0] sm:$0xff]  ;;  %v12191_v36 = vcombine.low %v1526_v25, %v1530_v26  ;;  %v12194_v47 = vcombine.high %v1527_v42, %v1531_v43  ;;  %v1535_v50 = vld [vmem:[#allocation10 + $0xc8] sm:$0xff]  ;;  %v12193_v53 = vcombine.low %v1527_v42, %v1531_v43 }
  0xa2   : > { %v1538_v32 = vld [vmem:[#allocation10 + $0xe0] sm:$0xff]  ;;  %v1539_v51 = vld [vmem:[#allocation10 + $0xe8] sm:$0xff]  ;;  %p13961_p6 = por %p13960_p5, %p13959_p3 }
  0xa3   : > { %662 = vmatpush1.bf16.msra.mxu0 %v13624_v16  ;;  %v13628_v35 = vld [vmem:[%s14321_s29] sm:$0xff]   ;;  %2281 = vmatpush1.bf16.msra.mxu1 %v12183_v27  ;;  %v12200_v38 = vcombine.high %v1534_v31, %v1538_v32  ;;  %v12199_v44 = vcombine.low %v1534_v31, %v1538_v32  ;;  %v12202_v55 = vcombine.high %v1535_v50, %v1539_v51  ;;  %v1543_v58 = vld [vmem:[#allocation10 + $0x108] sm:$0xff] }
  0xa4   : > { %663 = vmatprep.subr.bf16.mxu0 %v13625_v20  ;;  %2282 = vmatprep.subr.bf16.mxu1 %v12192_v29  ;;  %v1542_v40 = vld [vmem:[#allocation10 + $0x100] sm:$0xff]  ;;  %v1547_v59 = vld [vmem:[#allocation10 + $0x128] sm:$0xff]  ;;  %v12201_v61 = vcombine.low %v1535_v50, %v1539_v51  ;;  %p13962_p7 = pnand %p13961_p6, %p13955_p2 }
  0xa5   : > { %v1546_v41 = vld [vmem:[#allocation10 + $0x120] sm:$0xff]  ;;  %v579_v63 = vld [vmem:[#allocation2 + $0x8] sm:$0xff]  ;;  %v12210_v0 = vcombine.high %v1543_v58, %v1547_v59  ;;  %v12209_v8 = vcombine.low %v1543_v58, %v1547_v59 }
  0xa6   : > { %v12208_v46 = vcombine.high %v1542_v40, %v1546_v41  ;;  %v1550_v48 = vld [vmem:[#allocation10 + $0x140] sm:$0xff]  ;;  %v12207_v52 = vcombine.low %v1542_v40, %v1546_v41  ;;  %v1551_v4 = vld [vmem:[#allocation10 + $0x148] sm:$0xff]  ;;  %v14362_v6 = vpack.c.bf16 %v581_v3, %v579_v63 }
  0xa7   : > { %664 = vmatpush1.bf16.msra.mxu0 %v13627_v28  ;;  %2283 = vmatpush1.bf16.msra.mxu1 %v12191_v36  ;;  %v1554_v49 = vld [vmem:[#allocation10 + $0x160] sm:$0xff]  ;;  %v1555_v5 = vld [vmem:[#allocation10 + $0x168] sm:$0xff] }
  0xa8   : > { %2321 = vmatprep.subr.bf16.mxu0 %v12178_v30  ;;  %2284 = vmatprep.subr.bf16.mxu1 %v12200_v38  ;;  %v12216_v54 = vcombine.high %v1550_v48, %v1554_v49  ;;  %v1558_v56 = vld [vmem:[#allocation10 + $0x180] sm:$0xff]  ;;  %v12215_v60 = vcombine.low %v1550_v48, %v1554_v49  ;;  %v12218_v11 = vcombine.high %v1551_v4, %v1555_v5  ;;  %v1559_v14 = vld [vmem:[#allocation10 + $0x188] sm:$0xff] }
  0xa9   : > { %v1562_v57 = vld [vmem:[#allocation10 + $0x1a0] sm:$0xff]  ;;  %2310 = vmatprep.mubr.bf16.mxu1 %v14362_v6  ;;  %v1563_v15 = vld [vmem:[#allocation10 + $0x1a8] sm:$0xff]  ;;  %v12217_v17 = vcombine.low %v1551_v4, %v1555_v5 }
  0xaa   : > { %12174 = vmatmul.mubr.msk.bf16.vlgmr.msra.gmra.mrb[0].mxu0 %vm653_vm0, %v13628_v35  ;;  %v12224_v62 = vcombine.high %v1558_v56, %v1562_v57  ;;  %v1566_v1 = vld [vmem:[#allocation10 + $0x1c0] sm:$0xff]  ;;  %v12223_v7 = vcombine.low %v1558_v56, %v1562_v57  ;;  %v12226_v19 = vcombine.high %v1559_v14, %v1563_v15  ;;  %v1567_v22 = vld [vmem:[#allocation10 + $0x1c8] sm:$0xff]  ;;  %v12225_v25 = vcombine.low %v1559_v14, %v1563_v15  ;;  %v1512_v14 = vld [vmem:[#allocation10 + $0x10] sm:$0xff] }
  0xab   : > { %2322 = vmatpush1.bf16.msra.mxu0 %v12177_v37  ;;  %2285 = vmatpush1.bf16.msra.mxu1 %v12199_v44  ;;  %v1570_v2 = vld [vmem:[#allocation10 + $0x1e0] sm:$0xff]  ;;  %v1571_v23 = vld [vmem:[#allocation10 + $0x1e8] sm:$0xff]  ;;  %v1516_v15 = vld [vmem:[#allocation10 + $0x30] sm:$0xff] }
  0xac   : > { %2323 = vmatprep.subr.bf16.mxu0 %v12186_v39  ;;  %2286 = vmatprep.subr.bf16.mxu1 %v12208_v46  ;;  %v12232_v9 = vcombine.high %v1566_v1, %v1570_v2  ;;  %v1574_v12 = vld [vmem:[#allocation10 + $0x200] sm:$0xff]  ;;  %v12231_v16 = vcombine.low %v1566_v1, %v1570_v2  ;;  %v12234_v27 = vcombine.high %v1567_v22, %v1571_v23  ;;  %v1575_v30 = vld [vmem:[#allocation10 + $0x208] sm:$0xff] }
  0xad   : > { %v1578_v13 = vld [vmem:[#allocation10 + $0x220] sm:$0xff]  ;;  %2353 = vmatprep.mubr.bf16.mxu0 %v14362_v6  ;;  %v1579_v31 = vld [vmem:[#allocation10 + $0x228] sm:$0xff]  ;;  %v12233_v33 = vcombine.low %v1567_v22, %v1571_v23  ;;  %v12180_v23 = vcombine.high %v1512_v14, %v1516_v15 }
  0xae   : > { %v12240_v18 = vcombine.high %v1574_v12, %v1578_v13  ;;  %v1582_v20 = vld [vmem:[#allocation10 + $0x240] sm:$0xff]  ;;  %v12239_v24 = vcombine.low %v1574_v12, %v1578_v13  ;;  %v12242_v35 = vcombine.high %v1575_v30, %v1579_v31  ;;  %v1583_v38 = vld [vmem:[#allocation10 + $0x248] sm:$0xff]  ;;  %v12241_v41 = vcombine.low %v1575_v30, %v1579_v31  ;;  %v1528_v30 = vld [vmem:[#allocation10 + $0x90] sm:$0xff] }
  0xaf   : > { %2324 = vmatpush1.bf16.msra.mxu0 %v12185_v45  ;;  %2287 = vmatpush1.bf16.msra.mxu1 %v12207_v52  ;;  %v1586_v21 = vld [vmem:[#allocation10 + $0x260] sm:$0xff]  ;;  %v1587_v39 = vld [vmem:[#allocation10 + $0x268] sm:$0xff] }
  0xb0   : > { %2325 = vmatprep.subr.bf16.mxu0 %v12194_v47  ;;  %2288 = vmatprep.subr.bf16.mxu1 %v12216_v54  ;;  %v12248_v26 = vcombine.high %v1582_v20, %v1586_v21  ;;  %v1590_v28 = vld [vmem:[#allocation10 + $0x280] sm:$0xff]  ;;  %v12247_v32 = vcombine.low %v1582_v20, %v1586_v21  ;;  %v12250_v43 = vcombine.high %v1583_v38, %v1587_v39  ;;  %v1591_v46 = vld [vmem:[#allocation10 + $0x288] sm:$0xff]  ;;  %v580_v20 = vld [vmem:[#allocation2 + $0x10] sm:$0xff] }
  0xb1   : > { %v1594_v29 = vld [vmem:[#allocation10 + $0x2a0] sm:$0xff]  ;;  %v1595_v47 = vld [vmem:[#allocation10 + $0x2a8] sm:$0xff]  ;;  %v12249_v49 = vcombine.low %v1583_v38, %v1587_v39  ;;  %v1536_v38 = vld [vmem:[#allocation10 + $0xd0] sm:$0xff] }
  0xb2   : > { %v12256_v34 = vcombine.high %v1590_v28, %v1594_v29  ;;  %v1598_v36 = vld [vmem:[#allocation10 + $0x2c0] sm:$0xff]  ;;  %v12255_v40 = vcombine.low %v1590_v28, %v1594_v29  ;;  %v12258_v51 = vcombine.high %v1591_v46, %v1595_v47  ;;  %v1599_v54 = vld [vmem:[#allocation10 + $0x2c8] sm:$0xff]  ;;  %v12257_v57 = vcombine.low %v1591_v46, %v1595_v47  ;;  %v1540_v39 = vld [vmem:[#allocation10 + $0xf0] sm:$0xff] }
  0xb3   : > { %2326 = vmatpush1.bf16.msra.mxu0 %v12193_v53  ;;  %2289 = vmatpush1.bf16.msra.mxu1 %v12215_v60  ;;  %v1602_v37 = vld [vmem:[#allocation10 + $0x2e0] sm:$0xff]  ;;  %v1611_v63 = vld [vmem:[#allocation10 + $0x328] sm:$0xff]  ;;  %v12179_v29 = vcombine.low %v1512_v14, %v1516_v15  ;;  %v12204_v47 = vcombine.high %v1536_v38, %v1540_v39 }
  0xb4   : > { %2327 = vmatprep.subr.bf16.mxu0 %v12202_v55  ;;  %2290 = vmatprep.subr.bf16.mxu1 %v12224_v62  ;;  %v12264_v42 = vcombine.high %v1598_v36, %v1602_v37  ;;  %v1606_v44 = vld [vmem:[#allocation10 + $0x300] sm:$0xff]  ;;  %v12263_v48 = vcombine.low %v1598_v36, %v1602_v37  ;;  %v1603_v55 = vld [vmem:[#allocation10 + $0x2e8] sm:$0xff] }
  0xb5   : > { %v1610_v45 = vld [vmem:[#allocation10 + $0x320] sm:$0xff]  ;;  %v12266_v59 = vcombine.high %v1599_v54, %v1603_v55  ;;  %v1607_v62 = vld [vmem:[#allocation10 + $0x308] sm:$0xff]  ;;  %v12265_v1 = vcombine.low %v1599_v54, %v1603_v55 }
  0xb6   : > { %v12272_v50 = vcombine.high %v1606_v44, %v1610_v45  ;;  %v1614_v52 = vld [vmem:[#allocation10 + $0x340] sm:$0xff]  ;;  %v12271_v56 = vcombine.low %v1606_v44, %v1610_v45  ;;  %v12274_v3 = vcombine.high %v1607_v62, %v1611_v63  ;;  %v1631_v22 = vld [vmem:[#allocation10 + $0x3c8] sm:$0xff] }
  0xb7   : > { %2328 = vmatpush1.bf16.msra.mxu0 %v12201_v61  ;;  %2291 = vmatpush1.bf16.msra.mxu1 %v12223_v7  ;;  %v1618_v53 = vld [vmem:[#allocation10 + $0x360] sm:$0xff]  ;;  %v1615_v7 = vld [vmem:[#allocation10 + $0x348] sm:$0xff] }
  0xb8   : > { %2329 = vmatprep.subr.bf16.mxu0 %v12210_v0  ;;  %2292 = vmatprep.subr.bf16.mxu1 %v12232_v9  ;;  %v12280_v58 = vcombine.high %v1614_v52, %v1618_v53  ;;  %v1622_v60 = vld [vmem:[#allocation10 + $0x380] sm:$0xff]  ;;  %v12279_v0 = vcombine.low %v1614_v52, %v1618_v53  ;;  %v1533_v52 = vld [vmem:[#allocation10 + $0xb8] sm:$0xff]  ;;  %v12203_v53 = vcombine.low %v1536_v38, %v1540_v39 }
  0xb9   : > { %v1626_v61 = vld [vmem:[#allocation10 + $0x3a0] sm:$0xff]  ;;  %v1581_v38 = vld [vmem:[#allocation10 + $0x238] sm:$0xff] }
  0xba   : > { %v12288_v2 = vcombine.high %v1622_v60, %v1626_v61  ;;  %v1630_v4 = vld [vmem:[#allocation10 + $0x3c0] sm:$0xff]  ;;  %v12287_v9 = vcombine.low %v1622_v60, %v1626_v61  ;;  %v1541_v60 = vld [vmem:[#allocation10 + $0xf8] sm:$0xff] }
  0xbb   : > { %2330 = vmatpush1.bf16.msra.mxu0 %v12209_v8  ;;  %2293 = vmatpush1.bf16.msra.mxu1 %v12231_v16  ;;  %v1634_v5 = vld [vmem:[#allocation10 + $0x3e0] sm:$0xff]  ;;  %v1619_v8 = vld [vmem:[#allocation10 + $0x368] sm:$0xff] }
  0xbc   : > { %2331 = vmatprep.subr.bf16.mxu0 %v12218_v11  ;;  %2294 = vmatprep.subr.bf16.mxu1 %v12240_v18  ;;  %v12273_v11 = vcombine.low %v1607_v62, %v1611_v63  ;;  %v12296_v12 = vcombine.high %v1630_v4, %v1634_v5  ;;  %v12282_v13 = vcombine.high %v1615_v7, %v1619_v8  ;;  %v1623_v16 = vld [vmem:[#allocation10 + $0x388] sm:$0xff] }
  0xbd   : > { %v12295_v18 = vcombine.low %v1630_v4, %v1634_v5  ;;  %v12281_v21 = vcombine.low %v1615_v7, %v1619_v8  ;;  %v1549_v4 = vld [vmem:[#allocation10 + $0x138] sm:$0xff] }
  0xbf   : > { %2332 = vmatpush1.bf16.msra.mxu0 %v12217_v17  ;;  %2295 = vmatpush1.bf16.msra.mxu1 %v12239_v24  ;;  %v1627_v17 = vld [vmem:[#allocation10 + $0x3a8] sm:$0xff] }
  0xc0   : > { %2333 = vmatprep.subr.bf16.mxu0 %v12226_v19  ;;  %2296 = vmatprep.subr.bf16.mxu1 %v12248_v26  ;;  %v578_v19 = vld [vmem:[#allocation2] sm:$0xff]  ;;  %v12290_v24 = vcombine.high %v1623_v16, %v1627_v17  ;;  %v1520_v26 = vld [vmem:[#allocation10 + $0x50] sm:$0xff]  ;;  %v12289_v31 = vcombine.low %v1623_v16, %v1627_v17 }
  0xc1   : > { %v14366_v28 = vpack.c.bf16 %v580_v20, %v578_v19  ;;  %v1580_v19 = vld [vmem:[#allocation10 + $0x230] sm:$0xff]  ;;  %v1561_v20 = vld [vmem:[#allocation10 + $0x198] sm:$0xff] }
  0xc3   : > { %2334 = vmatpush1.bf16.msra.mxu0 %v12225_v25  ;;  %2297 = vmatpush1.bf16.msra.mxu1 %v12247_v32  ;;  %v1635_v25 = vld [vmem:[#allocation10 + $0x3e8] sm:$0xff]  ;;  %v1513_v32 = vld [vmem:[#allocation10 + $0x18] sm:$0xff] }
  0xc4   : > { %2335 = vmatprep.subr.bf16.mxu0 %v12234_v27  ;;  %2298 = vmatprep.subr.bf16.mxu1 %v12256_v34  ;;  %v1524_v27 = vld [vmem:[#allocation10 + $0x70] sm:$0xff]  ;;  %v12298_v36 = vcombine.high %v1631_v22, %v1635_v25 }
  0xc5   : > { %v12188_v34 = vcombine.high %v1520_v26, %v1524_v27  ;;  %v12187_v37 = vcombine.low %v1520_v26, %v1524_v27  ;;  %v1584_v26 = vld [vmem:[#allocation10 + $0x250] sm:$0xff] }
  0xc6   : > { %v1588_v27 = vld [vmem:[#allocation10 + $0x270] sm:$0xff] }
  0xc7   : > { %2336 = vmatpush1.bf16.msra.mxu0 %v12233_v33  ;;  %2299 = vmatpush1.bf16.msra.mxu1 %v12255_v40  ;;  %v1517_v33 = vld [vmem:[#allocation10 + $0x38] sm:$0xff]  ;;  %v12297_v40 = vcombine.low %v1631_v22, %v1635_v25  ;;  %v12251_v39 = vcombine.low %v1584_v26, %v1588_v27 }
  0xc8   : > { %2337 = vmatprep.subr.bf16.mxu0 %v12242_v35  ;;  %2300 = vmatprep.subr.bf16.mxu1 %v12264_v42  ;;  %v1532_v35 = vld [vmem:[#allocation10 + $0xb0] sm:$0xff]  ;;  %v1525_v42 = vld [vmem:[#allocation10 + $0x78] sm:$0xff]  ;;  %v12182_v44 = vcombine.high %v1513_v32, %v1517_v33  ;;  %v12181_v46 = vcombine.low %v1513_v32, %v1517_v33  ;;  %v12252_v33 = vcombine.high %v1584_v26, %v1588_v27 }
  0xc9   : > { %v12195_v45 = vcombine.low %v1528_v30, %v1532_v35 }
  0xcb   : > { %2338 = vmatpush1.bf16.msra.mxu0 %v12241_v41  ;;  %2301 = vmatpush1.bf16.msra.mxu1 %v12263_v48  ;;  %v1521_v41 = vld [vmem:[#allocation10 + $0x58] sm:$0xff] }
  0xcc   : > { %2339 = vmatprep.subr.bf16.mxu0 %v12250_v43  ;;  %2302 = vmatprep.subr.bf16.mxu1 %v12272_v50  ;;  %v12196_v43 = vcombine.high %v1528_v30, %v1532_v35  ;;  %v12190_v48 = vcombine.high %v1521_v41, %v1525_v42  ;;  %v1548_v50 = vld [vmem:[#allocation10 + $0x130] sm:$0xff]  ;;  %v12189_v54 = vcombine.low %v1521_v41, %v1525_v42  ;;  %v1573_v30 = vld [vmem:[#allocation10 + $0x1f8] sm:$0xff] }
  0xcd   : > { %v1592_v35 = vld [vmem:[#allocation10 + $0x290] sm:$0xff] }
  0xcf   : > { %2340 = vmatpush1.bf16.msra.mxu0 %v12249_v49  ;;  %2303 = vmatpush1.bf16.msra.mxu1 %v12271_v56  ;;  %v1544_v49 = vld [vmem:[#allocation10 + $0x110] sm:$0xff] }
  0xd0   : > { %2341 = vmatprep.subr.bf16.mxu0 %v12258_v51  ;;  %2304 = vmatprep.subr.bf16.mxu1 %v12280_v58  ;;  %v1529_v51 = vld [vmem:[#allocation10 + $0x98] sm:$0xff]  ;;  %v12212_v55 = vcombine.high %v1544_v49, %v1548_v50  ;;  %v1556_v58 = vld [vmem:[#allocation10 + $0x170] sm:$0xff]  ;;  %v12211_v61 = vcombine.low %v1544_v49, %v1548_v50 }
  0xd1   : > { %v12198_v56 = vcombine.high %v1529_v51, %v1533_v52  ;;  %v12197_v62 = vcombine.low %v1529_v51, %v1533_v52  ;;  %v1608_v51 = vld [vmem:[#allocation10 + $0x310] sm:$0xff] }
  0xd2   : > { %v1612_v52 = vld [vmem:[#allocation10 + $0x330] sm:$0xff] }
  0xd3   : > { %2342 = vmatpush1.bf16.msra.mxu0 %v12257_v57  ;;  %2305 = vmatpush1.bf16.msra.mxu1 %v12279_v0  ;;  %v1552_v57 = vld [vmem:[#allocation10 + $0x150] sm:$0xff] }
  0xd4   : > { %2343 = vmatprep.subr.bf16.mxu0 %v12266_v59  ;;  %2306 = vmatprep.subr.bf16.mxu1 %v12288_v2  ;;  %v1537_v59 = vld [vmem:[#allocation10 + $0xd8] sm:$0xff]  ;;  %v12220_v63 = vcombine.high %v1552_v57, %v1556_v58  ;;  %v1564_v2 = vld [vmem:[#allocation10 + $0x1b0] sm:$0xff]  ;;  %v12219_v5 = vcombine.low %v1552_v57, %v1556_v58  ;;  %v12276_v57 = vcombine.high %v1608_v51, %v1612_v52 }
  0xd5   : > { %v12206_v0 = vcombine.high %v1537_v59, %v1541_v60  ;;  %v12205_v7 = vcombine.low %v1537_v59, %v1541_v60  ;;  %v1616_v59 = vld [vmem:[#allocation10 + $0x350] sm:$0xff] }
  0xd6   : > { %v1620_v60 = vld [vmem:[#allocation10 + $0x370] sm:$0xff] }
  0xd7   : > { %2344 = vmatpush1.bf16.msra.mxu0 %v12265_v1  ;;  %2307 = vmatpush1.bf16.msra.mxu1 %v12287_v9  ;;  %v1560_v1 = vld [vmem:[#allocation10 + $0x190] sm:$0xff] }
  0xd8   : > { %2345 = vmatprep.subr.bf16.mxu0 %v12274_v3  ;;  %2308 = vmatprep.subr.bf16.mxu1 %v12296_v12  ;;  %v1545_v3 = vld [vmem:[#allocation10 + $0x118] sm:$0xff]  ;;  %v1568_v9 = vld [vmem:[#allocation10 + $0x1d0] sm:$0xff]  ;;  %v12227_v14 = vcombine.low %v1560_v1, %v1564_v2 }
  0xd9   : > { %v12214_v8 = vcombine.high %v1545_v3, %v1549_v4  ;;  %v1553_v12 = vld [vmem:[#allocation10 + $0x158] sm:$0xff]  ;;  %v12213_v15 = vcombine.low %v1545_v3, %v1549_v4  ;;  %v1624_v3 = vld [vmem:[#allocation10 + $0x390] sm:$0xff] }
  0xda   : > { %v1628_v4 = vld [vmem:[#allocation10 + $0x3b0] sm:$0xff] }
  0xdb   : > { %2346 = vmatpush1.bf16.msra.mxu0 %v12273_v11  ;;  %2309 = vmatpush1.bf16.msra.mxu1 %v12295_v18  ;;  %v1572_v11 = vld [vmem:[#allocation10 + $0x1f0] sm:$0xff] }
  0xdc   : > { %2347 = vmatprep.subr.bf16.mxu0 %v12282_v13  ;;  %2364 = vmatprep.subr.bf16.mxu1 %v12180_v23  ;;  %v1557_v13 = vld [vmem:[#allocation10 + $0x178] sm:$0xff]  ;;  %v12236_v16 = vcombine.high %v1568_v9, %v1572_v11  ;;  %v1576_v18 = vld [vmem:[#allocation10 + $0x210] sm:$0xff]  ;;  %v12235_v22 = vcombine.low %v1568_v9, %v1572_v11  ;;  %v12292_v9 = vcombine.high %v1624_v3, %v1628_v4 }
  0xdd   : > { %v12222_v17 = vcombine.high %v1553_v12, %v1557_v13  ;;  %v12221_v23 = vcombine.low %v1553_v12, %v1557_v13  ;;  %v1632_v12 = vld [vmem:[#allocation10 + $0x3d0] sm:$0xff] }
  0xde   : > { %2311 = vmatmul.mubr.bf16.vlgmr.msra.gmra.mrb[0].mxu1 %v14366_v28  ;;  %v1636_v13 = vld [vmem:[#allocation10 + $0x3f0] sm:$0xff] }
  0xdf   : > { %2348 = vmatpush1.bf16.msra.mxu0 %v12281_v21  ;;  %2365 = vmatpush1.bf16.msra.mxu1 %v12179_v29  ;;  %v1565_v21 = vld [vmem:[#allocation10 + $0x1b8] sm:$0xff] }
  0xe0   : > { %2349 = vmatprep.subr.bf16.mxu0 %v12290_v24  ;;  %2396 = vmatprep.mubr.bf16.mxu1 %v14362_v6  ;;  %v12244_v24 = vcombine.high %v1576_v18, %v1580_v19  ;;  %v12230_v25 = vcombine.high %v1561_v20, %v1565_v21  ;;  %v1569_v29 = vld [vmem:[#allocation10 + $0x1d8] sm:$0xff]  ;;  %v12229_v32 = vcombine.low %v1561_v20, %v1565_v21  ;;  %v1380_v20 = vld [vmem:[#allocation9] sm:$0xff] }
  0xe1   : > { %2366 = vmatprep.subr.bf16.mxu1 %v12188_v34  ;;  %v12238_v34 = vcombine.high %v1569_v29, %v1573_v30  ;;  %v1384_v21 = vld [vmem:[#allocation9 + $0x20] sm:$0xff] }
  0xe2   : > { %v12304_v26 = vcombine.high %v1380_v20, %v1384_v21 }
  0xe3   : > { %2350 = vmatpush1.bf16.msra.mxu0 %v12289_v31  ;;  %2367 = vmatpush1.bf16.msra.mxu1 %v12187_v37  ;;  %v12243_v31 = vcombine.low %v1576_v18, %v1580_v19  ;;  %v1577_v37 = vld [vmem:[#allocation10 + $0x218] sm:$0xff]  ;;  %v12300_v18 = vcombine.high %v1632_v12, %v1636_v13 }
  0xe4   : > { %2351 = vmatprep.subr.bf16.mxu0 %v12298_v36  ;;  %2368 = vmatprep.subr.bf16.mxu1 %v12196_v43  ;;  %v1596_v36 = vld [vmem:[#allocation10 + $0x2b0] sm:$0xff]  ;;  %v12246_v42 = vcombine.high %v1577_v37, %v1581_v38 }
  0xe5   : > { %v12260_v41 = vcombine.high %v1592_v35, %v1596_v36  ;;  %v1600_v43 = vld [vmem:[#allocation10 + $0x2d0] sm:$0xff] }
  0xe7   : > { %2352 = vmatpush1.bf16.msra.mxu0 %v12297_v40  ;;  %2369 = vmatpush1.bf16.msra.mxu1 %v12195_v45  ;;  %v12237_v40 = vcombine.low %v1569_v29, %v1573_v30  ;;  %v1585_v45 = vld [vmem:[#allocation10 + $0x258] sm:$0xff]  ;;  %v1388_v29 = vld [vmem:[#allocation9 + $0x40] sm:$0xff] }
  0xe8   : > { %2407 = vmatprep.subr.bf16.mxu0 %v12182_v44  ;;  %2370 = vmatprep.subr.bf16.mxu1 %v12204_v47  ;;  %v1604_v44 = vld [vmem:[#allocation10 + $0x2f0] sm:$0xff]  ;;  %v12259_v47 = vcombine.low %v1592_v35, %v1596_v36  ;;  %v1392_v30 = vld [vmem:[#allocation9 + $0x60] sm:$0xff] }
  0xe9   : > { %v12268_v49 = vcombine.high %v1600_v43, %v1604_v44  ;;  %v12312_v35 = vcombine.high %v1388_v29, %v1392_v30 }
  0xea   : > { %2354 = vmatmul.mubr.bf16.vlgmr.msra.gmra.mrb[4].mxu0 %v14366_v28 }
  0xeb   : > { %2408 = vmatpush1.bf16.msra.mxu0 %v12181_v46  ;;  %2439 = vmatprep.mubr.bf16.mxu0 %v14362_v6  ;;  %v12228_v6 = vcombine.high %v1560_v1, %v1564_v2  ;;  %v1589_v46 = vld [vmem:[#allocation10 + $0x278] sm:$0xff]  ;;  %v12284_v1 = vcombine.high %v1616_v59, %v1620_v60 }
  0xec   : > { %2409 = vmatprep.subr.bf16.mxu0 %v12190_v48  ;;  %2371 = vmatpush1.bf16.msra.mxu1 %v12203_v53  ;;  %v12245_v48 = vcombine.low %v1577_v37, %v1581_v38  ;;  %v12254_v50 = vcombine.high %v1585_v45, %v1589_v46  ;;  %v1593_v53 = vld [vmem:[#allocation10 + $0x298] sm:$0xff]  ;;  %v1396_v37 = vld [vmem:[#allocation9 + $0x80] sm:$0xff] }
  0xed   : > { %2372 = vmatprep.subr.bf16.mxu1 %v12212_v55  ;;  %v12267_v55 = vcombine.low %v1600_v43, %v1604_v44  ;;  %v1400_v38 = vld [vmem:[#allocation9 + $0xa0] sm:$0xff] }
  0xee   : > { %v12320_v43 = vcombine.high %v1396_v37, %v1400_v38 }
  0xef   : > { %2410 = vmatpush1.bf16.msra.mxu0 %v12189_v54  ;;  %v1597_v54 = vld [vmem:[#allocation10 + $0x2b8] sm:$0xff] }
  0xf0   : > { %2411 = vmatprep.subr.bf16.mxu0 %v12198_v56  ;;  %2373 = vmatpush1.bf16.msra.mxu1 %v12211_v61  ;;  %v12253_v56 = vcombine.low %v1585_v45, %v1589_v46  ;;  %v12262_v58 = vcombine.high %v1593_v53, %v1597_v54  ;;  %v1601_v61 = vld [vmem:[#allocation10 + $0x2d8] sm:$0xff]  ;;  %v1404_v45 = vld [vmem:[#allocation9 + $0xc0] sm:$0xff] }
  0xf1   : > { %2374 = vmatprep.subr.bf16.mxu1 %v12220_v63  ;;  %v12275_v63 = vcombine.low %v1608_v51, %v1612_v52  ;;  %v1408_v46 = vld [vmem:[#allocation9 + $0xe0] sm:$0xff] }
  0xf2   : > { %v12328_v51 = vcombine.high %v1404_v45, %v1408_v46 }
  0xf3   : > { %2412 = vmatpush1.bf16.msra.mxu0 %v12197_v62  ;;  %v1605_v62 = vld [vmem:[#allocation10 + $0x2f8] sm:$0xff] }
  0xf4   : > { %2413 = vmatprep.subr.bf16.mxu0 %v12206_v0  ;;  %2375 = vmatpush1.bf16.msra.mxu1 %v12219_v5  ;;  %v12261_v0 = vcombine.low %v1593_v53, %v1597_v54  ;;  %v12270_v2 = vcombine.high %v1601_v61, %v1605_v62  ;;  %v1609_v5 = vld [vmem:[#allocation10 + $0x318] sm:$0xff]  ;;  %v1412_v53 = vld [vmem:[#allocation9 + $0x100] sm:$0xff] }
  0xf5   : > { %2376 = vmatprep.subr.bf16.mxu1 %v12228_v6  ;;  %v12283_v6 = vcombine.low %v1616_v59, %v1620_v60  ;;  %v1416_v54 = vld [vmem:[#allocation9 + $0x120] sm:$0xff] }
  0xf6   : > { %v12336_v59 = vcombine.high %v1412_v53, %v1416_v54 }
  0xf7   : > { %2414 = vmatpush1.bf16.msra.mxu0 %v12205_v7  ;;  %v1613_v7 = vld [vmem:[#allocation10 + $0x338] sm:$0xff] }
  0xf8   : > { %2415 = vmatprep.subr.bf16.mxu0 %v12214_v8  ;;  %2377 = vmatpush1.bf16.msra.mxu1 %v12227_v14  ;;  %v12269_v8 = vcombine.low %v1601_v61, %v1605_v62  ;;  %v12278_v11 = vcombine.high %v1609_v5, %v1613_v7  ;;  %v1617_v14 = vld [vmem:[#allocation10 + $0x358] sm:$0xff]  ;;  %v1420_v61 = vld [vmem:[#allocation9 + $0x140] sm:$0xff] }
  0xf9   : > { %2378 = vmatprep.subr.bf16.mxu1 %v12236_v16  ;;  %v12291_v16 = vcombine.low %v1624_v3, %v1628_v4  ;;  %v1424_v62 = vld [vmem:[#allocation9 + $0x160] sm:$0xff] }
  0xfa   : > { %v12344_v3 = vcombine.high %v1420_v61, %v1424_v62  ;;  %v1428_v4 = vld [vmem:[#allocation9 + $0x180] sm:$0xff] }
  0xfb   : > { %2416 = vmatpush1.bf16.msra.mxu0 %v12213_v15  ;;  %v1621_v15 = vld [vmem:[#allocation10 + $0x378] sm:$0xff] }
  0xfc   : > { %2417 = vmatprep.subr.bf16.mxu0 %v12222_v17  ;;  %2379 = vmatpush1.bf16.msra.mxu1 %v12235_v22  ;;  %v12277_v17 = vcombine.low %v1609_v5, %v1613_v7  ;;  %v12286_v19 = vcombine.high %v1617_v14, %v1621_v15  ;;  %v1625_v22 = vld [vmem:[#allocation10 + $0x398] sm:$0xff]  ;;  %v1432_v5 = vld [vmem:[#allocation9 + $0x1a0] sm:$0xff]  ;;  %v1413_v7 = vld [vmem:[#allocation9 + $0x108] sm:$0xff] }
  0xfd   : > { %2380 = vmatprep.subr.bf16.mxu1 %v12244_v24  ;;  %v12299_v24 = vcombine.low %v1632_v12, %v1636_v13  ;;  %v1436_v13 = vld [vmem:[#allocation9 + $0x1c0] sm:$0xff] }
  0xff   : > { %2418 = vmatpush1.bf16.msra.mxu0 %v12221_v23  ;;  %v1629_v23 = vld [vmem:[#allocation10 + $0x3b8] sm:$0xff] }
 0x100   : > { %2419 = vmatprep.subr.bf16.mxu0 %v12230_v25  ;;  %2381 = vmatpush1.bf16.msra.mxu1 %v12243_v31  ;;  %v12285_v25 = vcombine.low %v1617_v14, %v1621_v15  ;;  %v12294_v27 = vcombine.high %v1625_v22, %v1629_v23  ;;  %v1633_v31 = vld [vmem:[#allocation10 + $0x3d8] sm:$0xff]  ;;  %v1440_v14 = vld [vmem:[#allocation9 + $0x1e0] sm:$0xff]  ;;  %v1421_v15 = vld [vmem:[#allocation9 + $0x148] sm:$0xff] }
 0x101   : > { %2382 = vmatprep.subr.bf16.mxu1 %v12252_v33  ;;  %v12303_v33 = vcombine.low %v1380_v20, %v1384_v21  ;;  %v1444_v21 = vld [vmem:[#allocation9 + $0x200] sm:$0xff] }
 0x103   : > { %2420 = vmatpush1.bf16.msra.mxu0 %v12229_v32  ;;  %v1637_v32 = vld [vmem:[#allocation10 + $0x3f8] sm:$0xff] }
 0x104   : > { %2421 = vmatprep.subr.bf16.mxu0 %v12238_v34  ;;  %2383 = vmatpush1.bf16.msra.mxu1 %v12251_v39  ;;  %v12293_v34 = vcombine.low %v1625_v22, %v1629_v23  ;;  %v12302_v36 = vcombine.high %v1633_v31, %v1637_v32  ;;  %v1381_v39 = vld [vmem:[#allocation9 + $0x8] sm:$0xff]  ;;  %v1448_v22 = vld [vmem:[#allocation9 + $0x220] sm:$0xff] }
 0x105   : > { %2384 = vmatprep.subr.bf16.mxu1 %v12260_v41  ;;  %v12311_v41 = vcombine.low %v1388_v29, %v1392_v30  ;;  %v1429_v23 = vld [vmem:[#allocation9 + $0x188] sm:$0xff]  ;;  %v1452_v30 = vld [vmem:[#allocation9 + $0x240] sm:$0xff] }
 0x107   : > { %2422 = vmatpush1.bf16.msra.mxu0 %v12237_v40  ;;  %v1385_v40 = vld [vmem:[#allocation9 + $0x28] sm:$0xff] }
 0x108   : > { %2423 = vmatprep.subr.bf16.mxu0 %v12246_v42  ;;  %2385 = vmatpush1.bf16.msra.mxu1 %v12259_v47  ;;  %v12301_v42 = vcombine.low %v1633_v31, %v1637_v32  ;;  %v12306_v44 = vcombine.high %v1381_v39, %v1385_v40  ;;  %v1389_v47 = vld [vmem:[#allocation9 + $0x48] sm:$0xff]  ;;  %v1456_v31 = vld [vmem:[#allocation9 + $0x260] sm:$0xff] }
 0x109   : > { %2386 = vmatprep.subr.bf16.mxu1 %v12268_v49  ;;  %v12319_v49 = vcombine.low %v1396_v37, %v1400_v38  ;;  %v1437_v32 = vld [vmem:[#allocation9 + $0x1c8] sm:$0xff]  ;;  %v12376_v38 = vcombine.high %v1452_v30, %v1456_v31 }
 0x10a   : > { %v14376_v37 = vld [vmem:[#allocation9 + $0x228] sm:$0xff] }
 0x10b   : > { %2424 = vmatpush1.bf16.msra.mxu0 %v12245_v48  ;;  %v1393_v48 = vld [vmem:[#allocation9 + $0x68] sm:$0xff] }
 0x10c   : > { %2425 = vmatprep.subr.bf16.mxu0 %v12254_v50  ;;  %2387 = vmatpush1.bf16.msra.mxu1 %v12267_v55  ;;  %v12305_v50 = vcombine.low %v1381_v39, %v1385_v40  ;;  %v12314_v52 = vcombine.high %v1389_v47, %v1393_v48  ;;  %v1397_v55 = vld [vmem:[#allocation9 + $0x88] sm:$0xff] }
 0x10d   : > { %2388 = vmatprep.subr.bf16.mxu1 %v12276_v57  ;;  %v12327_v57 = vcombine.low %v1404_v45, %v1408_v46  ;;  %v14378_v39 = vld [vmem:[#allocation9 + $0x248] sm:$0xff] }
 0x10e   : > { %v14380_v40 = vld [vmem:[#allocation9 + $0x268] sm:$0xff] }
 0x10f   : > { %2426 = vmatpush1.bf16.msra.mxu0 %v12253_v56  ;;  %v1401_v56 = vld [vmem:[#allocation9 + $0xa8] sm:$0xff] }
 0x110   : > { %2427 = vmatprep.subr.bf16.mxu0 %v12262_v58  ;;  %2389 = vmatpush1.bf16.msra.mxu1 %v12275_v63  ;;  %v12313_v58 = vcombine.low %v1389_v47, %v1393_v48  ;;  %v12322_v60 = vcombine.high %v1397_v55, %v1401_v56  ;;  %v1405_v63 = vld [vmem:[#allocation9 + $0xc8] sm:$0xff]  ;;  %v14386_v47 = vld [vmem:[#allocation9 + $0x2c0] sm:$0xff] }
 0x111   : > { %2390 = vmatprep.subr.bf16.mxu1 %v12284_v1  ;;  %v12335_v1 = vcombine.low %v1412_v53, %v1416_v54  ;;  %v14384_v46 = vld [vmem:[#allocation9 + $0x2a8] sm:$0xff]  ;;  %v14388_v48 = vld [vmem:[#allocation9 + $0x2e0] sm:$0xff] }
 0x112   : > { %v14397_v53 = vld [vmem:[%s14326_s13] sm:$0xff]  ;;  %v14400_v54 = vld [vmem:[%s14326_s13 + $0x8] sm:$0xff] }
 0x113   : > { %2428 = vmatpush1.bf16.msra.mxu0 %v12261_v0  ;;  %v1409_v0 = vld [vmem:[#allocation9 + $0xe8] sm:$0xff]  ;;  %vm706_vm1 = vcmp.eq.s32.totalorder %v14397_v53, 0  ;;  %vm707_vm2 = vcmp.eq.s32.totalorder %v14400_v54, 0  ;;  %vm874_vm3 = vcmp.eq.s32.totalorder %v14397_v53, 2  ;;  %vm875_vm4 = vcmp.eq.s32.totalorder %v14400_v54, 2 }
 0x114   : > { %2429 = vmatprep.subr.bf16.mxu0 %v12270_v2  ;;  %2391 = vmatpush1.bf16.msra.mxu1 %v12283_v6  ;;  %v12321_v2 = vcombine.low %v1397_v55, %v1401_v56  ;;  %v1417_v6 = vld [vmem:[#allocation9 + $0x128] sm:$0xff]  ;;  %v12378_v55 = vcombine.high %v14378_v39, %v14380_v40  ;;  %vm796_vm5 = vcmp.eq.s32.totalorder %v14397_v53, 1  ;;  %vm797_vm6 = vcmp.eq.s32.totalorder %v14400_v54, 1 }
 0x115   : > { %2392 = vmatprep.subr.bf16.mxu1 %v12292_v9  ;;  %v12329_v9 = vcombine.low %v1405_v63, %v1409_v0  ;;  %v12338_v12 = vcombine.high %v1413_v7, %v1417_v6  ;;  %vm964_vm7 = vcmp.eq.s32.totalorder %v14397_v53, 3  ;;  %vm965_vm8 = vcmp.eq.s32.totalorder %v14400_v54, 3 }
 0x116   : > { %vm1042_vm9 = vcmp.eq.s32.totalorder %v14397_v53, 4  ;;  %vm1043_vm10 = vcmp.eq.s32.totalorder %v14400_v54, 4  ;;  %vm1132_vm11 = vcmp.eq.s32.totalorder %v14397_v53, 5  ;;  %vm1133_vm12 = vcmp.eq.s32.totalorder %v14400_v54, 5 }
 0x117   : > { %2430 = vmatpush1.bf16.msra.mxu0 %v12269_v8  ;;  %v12343_v8 = vcombine.low %v1420_v61, %v1424_v62  ;;  %v14412_v61 = vld [vmem:[#allocation9 + $0x320] sm:$0xff]  ;;  %v14085_v62 = vmov 0.0   ;;  %vm1210_vm13 = vcmp.eq.s32.totalorder %v14397_v53, 6  ;;  %vm1211_vm14 = vcmp.eq.s32.totalorder %v14400_v54, 6 }
 0x118   : > { %2431 = vmatprep.subr.bf16.mxu0 %v12278_v11  ;;  %2393 = vmatpush1.bf16.msra.mxu1 %v12291_v16  ;;  %v12352_v11 = vcombine.high %v1428_v4, %v1432_v5  ;;  %v1425_v16 = vld [vmem:[#allocation9 + $0x168] sm:$0xff]  ;;  %vm1300_vm15 = vcmp.eq.s32.totalorder %v14397_v53, 7 }
 0x119   : > { %2394 = vmatprep.subr.bf16.mxu1 %v12300_v18  ;;  %v12337_v18 = vcombine.low %v1413_v7, %v1417_v6  ;;  %v12346_v20 = vcombine.high %v1421_v15, %v1425_v16  ;;  %v798_v7 = vsel %vm796_vm5, 1.0, %v14085_v62  ;;  %v799_v6 = vsel %vm797_vm6, 1.0, %v14085_v62 }
 0x11b   : > { %2432 = vmatpush1.bf16.msra.mxu0 %v12277_v17  ;;  %v12351_v17 = vcombine.low %v1428_v4, %v1432_v5 }
 0x11c   : > { %2433 = vmatprep.subr.bf16.mxu0 %v12286_v19  ;;  %2395 = vmatpush1.bf16.msra.mxu1 %v12299_v24  ;;  %v12360_v19 = vcombine.high %v1436_v13, %v1440_v14  ;;  %v1433_v24 = vld [vmem:[#allocation9 + $0x1a8] sm:$0xff] }
 0x11d   : > { %3090 = vmatprep.subr.bf16.mxu1 %v12304_v26  ;;  %v12345_v26 = vcombine.low %v1421_v15, %v1425_v16  ;;  %v12354_v29 = vcombine.high %v1429_v23, %v1433_v24  ;;  %v1134_v15 = vsel %vm1132_vm11, 1.0, %v14085_v62  ;;  %v14441_v16 = vld [vmem:[%s14326_s13 + $0x10] sm:$0xff] }
 0x11e   : > { %vm3705_vm6 = vcmp.eq.s32.totalorder %v14441_v16, 2 }
 0x11f   : > { %2434 = vmatpush1.bf16.msra.mxu0 %v12285_v25  ;;  %2397 = vmatmul.mubr.bf16.vlgmr.msra.gmra.mrb[4].mxu1 %v14366_v28  ;;  %v12359_v25 = vcombine.low %v1436_v13, %v1440_v14  ;;  %v1044_v13 = vsel %vm1042_vm9, 1.0, %v14085_v62  ;;  %v1045_v14 = vsel %vm1043_vm10, 1.0, %v14085_v62  ;;  %vm3873_vm10 = vcmp.eq.s32.totalorder %v14441_v16, 4 }
 0x120   : > { %2435 = vmatprep.subr.bf16.mxu0 %v12294_v27  ;;  %3091 = vmatpush1.bf16.msra.mxu1 %v12303_v33  ;;  %v12368_v27 = vcombine.high %v1444_v21, %v1448_v22  ;;  %v1441_v33 = vld [vmem:[#allocation9 + $0x1e8] sm:$0xff] }
 0x121   : > { %3092 = vmatprep.subr.bf16.mxu1 %v12312_v35  ;;  %v14374_v35 = vld [vmem:[#allocation9 + $0x208] sm:$0xff]  ;;  %v12361_v45 = vcombine.low %v1437_v32, %v1441_v33 }
 0x123   : > { %2436 = vmatpush1.bf16.msra.mxu0 %v12293_v34  ;;  %v12367_v34 = vcombine.low %v1444_v21, %v1448_v22  ;;  %v1212_v21 = vsel %vm1210_vm13, 1.0, %v14085_v62  ;;  %v14451_v22 = vld [vmem:[%s14326_s13 + $0x18] sm:$0xff] }
 0x124   : > { %2437 = vmatprep.subr.bf16.mxu0 %v12302_v36  ;;  %3093 = vmatpush1.bf16.msra.mxu1 %v12311_v41  ;;  %v12353_v36 = vcombine.low %v1429_v23, %v1433_v24  ;;  %v12362_v41 = vcombine.high %v1437_v32, %v1441_v33  ;;  %v1469_v23 = vld [vmem:[#allocation9 + $0x2c8] sm:$0xff]  ;;  %vm3628_vm5 = vcmp.eq.s32.totalorder %v14451_v22, 1  ;;  %vm3796_vm9 = vcmp.eq.s32.totalorder %v14451_v22, 3 }
 0x125   : > { %3094 = vmatprep.subr.bf16.mxu1 %v12320_v43  ;;  %v1464_v43 = vld [vmem:[#allocation9 + $0x2a0] sm:$0xff]  ;;  %v1473_v24 = vld [vmem:[#allocation9 + $0x2e8] sm:$0xff]  ;;  %vm3874_vm11 = vcmp.eq.s32.totalorder %v14451_v22, 4  ;;  %vm3964_vm13 = vcmp.eq.s32.totalorder %v14451_v22, 5 }
 0x126   : > { %v12394_v33 = vcombine.high %v1469_v23, %v1473_v24 }
 0x127   : > { %2438 = vmatpush1.bf16.msra.mxu0 %v12301_v42  ;;  %v1460_v42 = vld [vmem:[#allocation9 + $0x280] sm:$0xff] }
 0x128   : > { %3133 = vmatprep.subr.bf16.mxu0 %v12306_v44  ;;  %3095 = vmatpush1.bf16.msra.mxu1 %v12319_v49  ;;  %v14382_v44 = vld [vmem:[#allocation9 + $0x288] sm:$0xff]  ;;  %v12369_v49 = vcombine.low %v14374_v35, %v14376_v37  ;;  %v12384_v56 = vcombine.high %v1460_v42, %v1464_v43 }
 0x129   : > { %3096 = vmatprep.subr.bf16.mxu1 %v12328_v51  ;;  %v12375_v51 = vcombine.low %v1452_v30, %v1456_v31  ;;  %v12385_v31 = vcombine.low %v14382_v44, %v14384_v46 }
 0x12a   : > { %2440 = vmatmul.mubr.bf16.vlgmr.msra.gmra.mrb[8].mxu0 %v14366_v28  ;;  %v12330_v28 = vcombine.high %v1405_v63, %v1409_v0  ;;  %v708_v63 = vsel %vm706_vm1, 1.0, %v14085_v62  ;;  %v709_v0 = vsel %vm707_vm2, 1.0, %v14085_v62  ;;  %vm1301_vm1 = vcmp.eq.s32.totalorder %v14400_v54, 7 }
 0x12b   : > { %3134 = vmatpush1.bf16.msra.mxu0 %v12305_v50  ;;  %v12370_v50 = vcombine.high %v14374_v35, %v14376_v37  ;;  %v1303_v30 = vsel %vm1301_vm1, 1.0, %v14085_v62  ;;  %vm3537_vm2 = vcmp.eq.s32.totalorder %v14441_v16, 0  ;;  %v1496_v35 = vld [vmem:[#allocation9 + $0x3a0] sm:$0xff]  ;;  %v1477_v37 = vld [vmem:[#allocation9 + $0x308] sm:$0xff]  ;;  %vm4131_vm1 = vcmp.eq.s32.totalorder %v14441_v16, 7 }
 0x12c   : > { %3135 = vmatprep.subr.bf16.mxu0 %v12314_v52  ;;  %3097 = vmatpush1.bf16.msra.mxu1 %v12327_v57  ;;  %v12377_v52 = vcombine.low %v14378_v39, %v14380_v40  ;;  %v12383_v57 = vcombine.low %v1460_v42, %v1464_v43 }
 0x12d   : > { %3098 = vmatprep.subr.bf16.mxu1 %v12336_v59  ;;  %v12391_v59 = vcombine.low %v14386_v47, %v14388_v48 }
 0x12f   : > { %3136 = vmatpush1.bf16.msra.mxu0 %v12313_v58  ;;  %v12386_v58 = vcombine.high %v14382_v44, %v14384_v46  ;;  %v3630_v44 = vsel %vm3628_vm5, 1.0, %v14085_v62 }
 0x130   : > { %3137 = vmatprep.subr.bf16.mxu0 %v12322_v60  ;;  %3099 = vmatpush1.bf16.msra.mxu1 %v12335_v1  ;;  %v14410_v60 = vld [vmem:[#allocation9 + $0x300] sm:$0xff]  ;;  %v12392_v1 = vcombine.high %v14386_v47, %v14388_v48 }
 0x131   : > { %3100 = vmatprep.subr.bf16.mxu1 %v12344_v3  ;;  %v876_v3 = vsel %vm874_vm3, 1.0, %v14085_v62  ;;  %v12400_v4 = vcombine.high %v14410_v60, %v14412_v61  ;;  %vm3538_vm3 = vcmp.eq.s32.totalorder %v14451_v22, 0  ;;  %v1500_v48 = vld [vmem:[#allocation9 + $0x3c0] sm:$0xff] }
 0x132   : > { %v3540_v42 = vsel %vm3538_vm3, 1.0, %v14085_v62 }
 0x133   : > { %3138 = vmatpush1.bf16.msra.mxu0 %v12321_v2  ;;  %v13455_v2 = vpack.i.bf16 %v709_v0, %v708_v63  ;;  %v14504_v63 = vld [vmem:[#allocation9 + $0x10] sm:$0xff] }
 0x134   : > { %3139 = vmatprep.subr.bf16.mxu0 %v12330_v28  ;;  %3101 = vmatpush1.bf16.msra.mxu1 %v12343_v8  ;;  %v877_v28 = vsel %vm875_vm4, 1.0, %v14085_v62  ;;  %v13460_v8 = vpack.i.bf16 %v799_v6, %v798_v7  ;;  %vm3627_vm4 = vcmp.eq.s32.totalorder %v14441_v16, 1  ;;  %v14506_v0 = vld [vmem:[#allocation9 + $0x30] sm:$0xff]  ;;  %v3876_v7 = vsel %vm3874_vm11, 1.0, %v14085_v62 }
 0x135   : > { %3102 = vmatprep.subr.bf16.mxu1 %v12352_v11  ;;  %v13466_v5 = vpack.i.bf16 %v877_v28, %v876_v3  ;;  %13456 = vperm.xlu0 %13454, %v13455_v2   ;;  %v967_v11 = vsel %vm965_vm8, 1.0, %v14085_v62  ;;  %v3629_v43 = vsel %vm3627_vm4, 1.0, %v14085_v62  ;;  %vm3795_vm8 = vcmp.eq.s32.totalorder %v14441_v16, 3  ;;  %v1493_v2 = vld [vmem:[#allocation9 + $0x388] sm:$0xff] }
 0x136   : > { %v13501_v54 = vpack.i.bf16 %v3630_v44, %v3629_v43  ;;  %v1497_v3 = vld [vmem:[#allocation9 + $0x3a8] sm:$0xff] }
 0x137   : > { %3140 = vmatpush1.bf16.msra.mxu0 %v12329_v9  ;;  %13467 = vperm.xlu1 %13465, %v13466_v5   ;;  %v966_v9 = vsel %vm964_vm7, 1.0, %v14085_v62  ;;  %vm3706_vm7 = vcmp.eq.s32.totalorder %v14451_v22, 2  ;;  %v3875_v5 = vsel %vm3873_vm10, 1.0, %v14085_v62 }
 0x138   : > { %3141 = vmatprep.subr.bf16.mxu0 %v12338_v12  ;;  %3103 = vmatpush1.bf16.msra.mxu1 %v12351_v17  ;;  %v13471_v12 = vpack.i.bf16 %v967_v11, %v966_v9  ;;  %v14443_v17 = vld [vmem:[#allocation9 + $0x340] sm:$0xff]  ;;  %v12308_v11 = vcombine.high %v14504_v63, %v14506_v0 }
 0x139   : > { %3104 = vmatprep.subr.bf16.mxu1 %v12360_v19  ;;  %13461 = vperm.xlu0 %13454, %v13460_v8   ;;  %v13476_v19 = vpack.i.bf16 %v1045_v14, %v1044_v13  ;;  %v3966_v8 = vsel %vm3964_vm13, 1.0, %v14085_v62  ;;  %v14530_v13 = vld [vmem:[%s14326_s13 + $0x28] sm:$0xff]  ;;  %v12418_v14 = vcombine.high %v1493_v2, %v1497_v3 }
 0x13a   : > { %vm6371_vm4 = vcmp.eq.s32.totalorder %v14530_v13, 0  ;;  %vm6629_vm10 = vcmp.eq.s32.totalorder %v14530_v13, 3 }
 0x13b   : > { %3142 = vmatpush1.bf16.msra.mxu0 %v12337_v18  ;;  %v14445_v18 = vld [vmem:[#allocation9 + $0x360] sm:$0xff]  ;;  %13472 = vperm.xlu1 %13465, %v13471_v12  }
 0x13c   : > { %3143 = vmatprep.subr.bf16.mxu0 %v12346_v20  ;;  %3105 = vmatpush1.bf16.msra.mxu1 %v12359_v25  ;;  %v1135_v20 = vsel %vm1133_vm12, 1.0, %v14085_v62  ;;  %v12408_v32 = vcombine.high %v14443_v17, %v14445_v18  ;;  %v12407_v39 = vcombine.low %v14443_v17, %v14445_v18  ;;  %vm3963_vm12 = vcmp.eq.s32.totalorder %v14441_v16, 5  ;;  %v14527_v12 = vld [vmem:[%s14326_s13 + $0x20] sm:$0xff]  ;;  %v1501_v17 = vld [vmem:[#allocation9 + $0x3c8] sm:$0xff] }
 0x13d   : > { %3106 = vmatprep.subr.bf16.mxu1 %v12368_v27  ;;  %v13481_v25 = vpack.i.bf16 %v1135_v20, %v1134_v15  ;;  %v12399_v27 = vcombine.low %v14410_v60, %v14412_v61  ;;  %13477 = vperm.xlu0 %13454, %v13476_v19   ;;  %v3965_v6 = vsel %vm3963_vm12, 1.0, %v14085_v62  ;;  %v13516_v15 = vpack.i.bf16 %v3876_v7, %v3875_v5  ;;  %v1505_v18 = vld [vmem:[#allocation9 + $0x3e8] sm:$0xff] }
 0x13e   : > { %v13521_v19 = vpack.i.bf16 %v3966_v8, %v3965_v6  ;;  %vm6370_vm3 = vcmp.eq.s32.totalorder %v14527_v12, 0  ;;  %vm6460_vm5 = vcmp.eq.s32.totalorder %v14527_v12, 1  ;;  %vm6706_vm11 = vcmp.eq.s32.totalorder %v14527_v12, 4  ;;  %v596_v6 = vld [vmem:[%s18018_s5] sm:$0x3] }
 0x13f   : > { %3144 = vmatpush1.bf16.msra.mxu0 %v12345_v26  ;;  %v1213_v26 = vsel %vm1211_vm14, 1.0, %v14085_v62  ;;  %13482 = vperm.xlu1 %13465, %v13481_v25   ;;  %vm4041_vm14 = vcmp.eq.s32.totalorder %v14441_v16, 6  ;;  %v12417_v25 = vcombine.low %v1493_v2, %v1497_v3  ;;  %v12426_v16 = vcombine.high %v1501_v17, %v1505_v18 }
 0x140   : > { %3145 = vmatprep.subr.bf16.mxu0 %v12354_v29  ;;  %3107 = vmatpush1.bf16.msra.mxu1 %v12367_v34  ;;  %v1302_v29 = vsel %vm1300_vm15, 1.0, %v14085_v62  ;;  %v1492_v34 = vld [vmem:[#allocation9 + $0x380] sm:$0xff]  ;;  %vm4042_vm15 = vcmp.eq.s32.totalorder %v14451_v22, 6  ;;  %v4043_v20 = vsel %vm4041_vm14, 1.0, %v14085_v62  ;;  %vm6707_vm12 = vcmp.eq.s32.totalorder %v14530_v13, 4 }
 0x141   : > { %3108 = vmatprep.subr.bf16.mxu1 %v12376_v38  ;;  %v1481_v38 = vld [vmem:[#allocation9 + $0x328] sm:$0xff]  ;;  %v13491_v40 = vpack.i.bf16 %v1303_v30, %v1302_v29  ;;  %v12416_v46 = vcombine.high %v1492_v34, %v1496_v35  ;;  %v12415_v53 = vcombine.low %v1492_v34, %v1496_v35  ;;  %v6372_v30 = vsel %vm6370_vm3, 1.0, %v14085_v62 }
 0x142   : > { %v12402_v47 = vcombine.high %v1477_v37, %v1481_v38  ;;  %v12425_v34 = vcombine.low %v1501_v17, %v1505_v18  ;;  %vm6796_vm13 = vcmp.eq.s32.totalorder %v14527_v12, 5  ;;  %vm6797_vm14 = vcmp.eq.s32.totalorder %v14530_v13, 5 }
 0x143   : > { %3146 = vmatpush1.bf16.msra.mxu0 %v12353_v36  ;;  %v13486_v36 = vpack.i.bf16 %v1213_v26, %v1212_v21  ;;  %13492 = vperm.xlu1 %13465, %v13491_v40   ;;  %v4044_v21 = vsel %vm4042_vm15, 1.0, %v14085_v62  ;;  %v14544_v26 = vld [vmem:[#allocation9 + $0x18] sm:$0xff]  ;;  %v6708_v44 = vsel %vm6706_vm11, 1.0, %v14085_v62  ;;  %vm6874_vm15 = vcmp.eq.s32.totalorder %v14527_v12, 6 }
 0x144   : > { %3147 = vmatprep.subr.bf16.mxu0 %v12362_v41  ;;  %3109 = vmatpush1.bf16.msra.mxu1 %v12375_v51  ;;  %v3539_v41 = vsel %vm3537_vm2, 1.0, %v14085_v62  ;;  %v1485_v51 = vld [vmem:[#allocation9 + $0x348] sm:$0xff]  ;;  %vm4132_vm2 = vcmp.eq.s32.totalorder %v14451_v22, 7  ;;  %v13526_v22 = vpack.i.bf16 %v4044_v21, %v4043_v20  ;;  %vm6965_vm3 = vcmp.eq.s32.totalorder %v14530_v13, 7 }
 0x145   : > { %3110 = vmatprep.subr.bf16.mxu1 %v12384_v56  ;;  %13487 = vperm.xlu0 %13454, %v13486_v36   ;;  %v3708_v56 = vsel %vm3706_vm7, 1.0, %v14085_v62  ;;  %vm6538_vm7 = vcmp.eq.s32.totalorder %v14527_v12, 2 }
 0x147   : > { %3148 = vmatpush1.bf16.msra.mxu0 %v12361_v45  ;;  %v12393_v45 = vcombine.low %v1469_v23, %v1473_v24  ;;  %13502 = vperm.xlu1 %13465, %v13501_v54   ;;  %v4133_v23 = vsel %vm4131_vm1, 1.0, %v14085_v62  ;;  %v4134_v24 = vsel %vm4132_vm2, 1.0, %v14085_v62  ;;  %vm6875_vm1 = vcmp.eq.s32.totalorder %v14530_v13, 6 }
 0x148   : > { %3149 = vmatprep.subr.bf16.mxu0 %v12370_v50  ;;  %3111 = vmatpush1.bf16.msra.mxu1 %v12383_v57  ;;  %v13496_v50 = vpack.i.bf16 %v3540_v42, %v3539_v41  ;;  %v3797_v57 = vsel %vm3795_vm8, 1.0, %v14085_v62  ;;  %v13531_v29 = vpack.i.bf16 %v4134_v24, %v4133_v23  ;;  %vm6539_vm8 = vcmp.eq.s32.totalorder %v14530_v13, 2 }
 0x149   : > { %3112 = vmatprep.subr.bf16.mxu1 %v12392_v1  ;;  %v6631_v41 = vsel %vm6629_vm10, 1.0, %v14085_v62  ;;  %vm6964_vm2 = vcmp.eq.s32.totalorder %v14527_v12, 7  ;;  %v6877_v54 = vsel %vm6875_vm1, 1.0, %v14085_v62 }
 0x14a   : > { %13497 = vperm.xlu0 %13454, %v13496_v50  }
 0x14b   : > { %3150 = vmatpush1.bf16.msra.mxu0 %v12369_v49  ;;  %v1504_v49 = vld [vmem:[#allocation9 + $0x3e0] sm:$0xff] }
 0x14c   : > { %3151 = vmatprep.subr.bf16.mxu0 %v12378_v55  ;;  %3113 = vmatpush1.bf16.msra.mxu1 %v12391_v59  ;;  %v3707_v55 = vsel %vm3705_vm6, 1.0, %v14085_v62  ;;  %v12401_v59 = vcombine.low %v1477_v37, %v1481_v38  ;;  %v12424_v60 = vcombine.high %v1500_v48, %v1504_v49  ;;  %v12423_v28 = vcombine.low %v1500_v48, %v1504_v49  ;;  %v14575_v48 = vld [vmem:[%s14326_s13 + $0x30] sm:$0xff]  ;;  %v14578_v49 = vld [vmem:[%s14326_s13 + $0x38] sm:$0xff] }
 0x14d   : > { %3114 = vmatprep.subr.bf16.mxu1 %v12400_v4  ;;  %v13506_v1 = vpack.i.bf16 %v3708_v56, %v3707_v55  ;;  %vm6461_vm6 = vcmp.eq.s32.totalorder %v14530_v13, 1  ;;  %v6540_v38 = vsel %vm6538_vm7, 1.0, %v14085_v62  ;;  %v6966_v55 = vsel %vm6964_vm2, 1.0, %v14085_v62 }
 0x14e   : > { %v6967_v56 = vsel %vm6965_vm3, 1.0, %v14085_v62  ;;  %vm9294_vm7 = vcmp.eq.s32.totalorder %v14578_v49, 1  ;;  %vm9461_vm10 = vcmp.eq.s32.totalorder %v14575_v48, 3  ;;  %vm9462_vm11 = vcmp.eq.s32.totalorder %v14578_v49, 3 }
 0x14f   : > { %3152 = vmatpush1.bf16.msra.mxu0 %v12377_v52  ;;  %v1489_v52 = vld [vmem:[#allocation9 + $0x368] sm:$0xff]  ;;  %13507 = vperm.xlu0 %13454, %v13506_v1   ;;  %v9296_v2 = vsel %vm9294_vm7, 1.0, %v14085_v62  ;;  %v9463_v8 = vsel %vm9461_vm10, 1.0, %v14085_v62  ;;  %vm9707_vm1 = vcmp.eq.s32.totalorder %v14575_v48, 6  ;;  %vm9708_vm2 = vcmp.eq.s32.totalorder %v14578_v49, 6 }
 0x150   : > { %3153 = vmatprep.subr.bf16.mxu0 %v12386_v58  ;;  %3115 = vmatpush1.bf16.msra.mxu1 %v12399_v27  ;;  %v3798_v58 = vsel %vm3796_vm9, 1.0, %v14085_v62  ;;  %v12410_v61 = vcombine.high %v1485_v51, %v1489_v52  ;;  %v12409_v9 = vcombine.low %v1485_v51, %v1489_v52  ;;  %v14546_v27 = vld [vmem:[#allocation9 + $0x38] sm:$0xff]  ;;  %vm6628_vm9 = vcmp.eq.s32.totalorder %v14527_v12, 3 }
 0x151   : > { %3116 = vmatprep.subr.bf16.mxu1 %v12408_v32  ;;  %v13511_v4 = vpack.i.bf16 %v3798_v58, %v3797_v57  ;;  %v6462_v32 = vsel %vm6460_vm5, 1.0, %v14085_v62  ;;  %v12310_v35 = vcombine.high %v14544_v26, %v14546_v27  ;;  %v6630_v40 = vsel %vm6628_vm9, 1.0, %v14085_v62 }
 0x152   : > { %v13551_v43 = vpack.i.bf16 %v6631_v41, %v6630_v40  ;;  %v598_v51 = vlaneseq  ;;  %vm9204_vm5 = vcmp.eq.s32.totalorder %v14578_v49, 0  ;;  %vm9372_vm9 = vcmp.eq.s32.totalorder %v14578_v49, 2 }
 0x153   : > { %3154 = vmatpush1.bf16.msra.mxu0 %v12385_v31  ;;  %13512 = vperm.xlu1 %13465, %v13511_v4   ;;  %v6373_v31 = vsel %vm6371_vm4, 1.0, %v14085_v62  ;;  %vm9203_vm4 = vcmp.eq.s32.totalorder %v14575_v48, 0  ;;  %v9374_v7 = vsel %vm9372_vm9, 1.0, %v14085_v62  ;;  %vm9797_vm3 = vcmp.eq.s32.totalorder %v14575_v48, 7 }
 0x154   : > { %3155 = vmatprep.subr.bf16.mxu0 %v12394_v33  ;;  %3117 = vmatpush1.bf16.msra.mxu1 %v12407_v39  ;;  %v6463_v33 = vsel %vm6461_vm6, 1.0, %v14085_v62  ;;  %v13536_v36 = vpack.i.bf16 %v6373_v31, %v6372_v30  ;;  %v6541_v39 = vsel %vm6539_vm8, 1.0, %v14085_v62  ;;  %vm9293_vm6 = vcmp.eq.s32.totalorder %v14575_v48, 1 }
 0x155   : > { %3118 = vmatprep.subr.bf16.mxu1 %v12416_v46  ;;  %13517 = vperm.xlu0 %13454, %v13516_v15   ;;  %v13541_v37 = vpack.i.bf16 %v6463_v33, %v6462_v32  ;;  %v13546_v42 = vpack.i.bf16 %v6541_v39, %v6540_v38  ;;  %v6798_v46 = vsel %vm6796_vm13, 1.0, %v14085_v62  ;;  %v14588_v58 = vshrl.u32 %v598_v51, 7 }
 0x156   : > { %v9295_v1 = vsel %vm9293_vm6, 1.0, %v14085_v62  ;;  %vm9371_vm8 = vcmp.eq.s32.totalorder %v14575_v48, 2  ;;  %vm9540_vm13 = vcmp.eq.s32.totalorder %v14578_v49, 4  ;;  %v9799_v30 = vsel %vm9797_vm3, 1.0, %v14085_v62 }
 0x157   : > { %3156 = vmatpush1.bf16.msra.mxu0 %v12393_v45  ;;  %13522 = vperm.xlu1 %13465, %v13521_v19   ;;  %v6709_v45 = vsel %vm6707_vm12, 1.0, %v14085_v62  ;;  %v13581_v4 = vpack.i.bf16 %v9296_v2, %v9295_v1  ;;  %v9373_v5 = vsel %vm9371_vm8, 1.0, %v14085_v62  ;;  %vm9539_vm12 = vcmp.eq.s32.totalorder %v14575_v48, 4 }
 0x158   : > { %3157 = vmatprep.subr.bf16.mxu0 %v12402_v47  ;;  %3119 = vmatpush1.bf16.msra.mxu1 %v12415_v53  ;;  %v6799_v47 = vsel %vm6797_vm14, 1.0, %v14085_v62  ;;  %v13556_v50 = vpack.i.bf16 %v6709_v45, %v6708_v44  ;;  %v6876_v53 = vsel %vm6874_vm15, 1.0, %v14085_v62  ;;  %vm9629_vm14 = vcmp.eq.s32.totalorder %v14575_v48, 5  ;;  %v1394_v45 = vld [vmem:[#allocation9 + $0x70] sm:$0xff] }
 0x159   : > { %3120 = vmatprep.subr.bf16.mxu1 %v12424_v60  ;;  %13527 = vperm.xlu0 %13454, %v13526_v22   ;;  %v13561_v52 = vpack.i.bf16 %v6799_v47, %v6798_v46  ;;  %v13566_v57 = vpack.i.bf16 %v6877_v54, %v6876_v53  ;;  %v9205_v60 = vsel %vm9203_vm4, 1.0, %v14085_v62  ;;  %vm9630_vm15 = vcmp.eq.s32.totalorder %v14578_v49, 5  ;;  %v1391_v46 = vld [vmem:[#allocation9 + $0x58] sm:$0xff]  ;;  %v1402_v53 = vld [vmem:[#allocation9 + $0xb0] sm:$0xff] }
 0x15a   : > { %v13586_v12 = vpack.i.bf16 %v9374_v7, %v9373_v5  ;;  %v9541_v15 = vsel %vm9539_vm12, 1.0, %v14085_v62  ;;  %v9542_v17 = vsel %vm9540_vm13, 1.0, %v14085_v62  ;;  %v9631_v18 = vsel %vm9629_vm14, 1.0, %v14085_v62  ;;  %v1395_v47 = vld [vmem:[#allocation9 + $0x78] sm:$0xff]  ;;  %v1418_v5 = vld [vmem:[#allocation9 + $0x130] sm:$0xff] }
 0x15b   : > { %3158 = vmatpush1.bf16.msra.mxu0 %v12401_v59  ;;  %13532 = vperm.xlu1 %13465, %v13531_v29   ;;  %v13571_v59 = vpack.i.bf16 %v6967_v56, %v6966_v55  ;;  %v9632_v19 = vsel %vm9630_vm15, 1.0, %v14085_v62  ;;  %vm9798_vm4 = vcmp.eq.s32.totalorder %v14578_v49, 7  ;;  %v13596_v21 = vpack.i.bf16 %v9542_v17, %v9541_v15  ;;  %v1399_v54 = vld [vmem:[#allocation9 + $0x98] sm:$0xff]  ;;  %v1426_v15 = vld [vmem:[#allocation9 + $0x170] sm:$0xff] }
 0x15c   : > { %3159 = vmatprep.subr.bf16.mxu0 %v12410_v61  ;;  %3121 = vmatpush1.bf16.msra.mxu1 %v12423_v28  ;;  %v9206_v61 = vsel %vm9204_vm5, 1.0, %v14085_v62  ;;  %v14599_v28 = vsub.s32 0, %v14588_v58  ;;  %v13601_v24 = vpack.i.bf16 %v9632_v19, %v9631_v18  ;;  %v9800_v31 = vsel %vm9798_vm4, 1.0, %v14085_v62  ;;  %v1403_v55 = vld [vmem:[#allocation9 + $0xb8] sm:$0xff] }
 0x15d   : > { %3176 = vmatprep.subr.bf16.mxu1 %v12308_v11  ;;  %13537 = vperm.xlu0 %13454, %v13536_v36   ;;  %v13576_v3 = vpack.i.bf16 %v9206_v61, %v9205_v60  ;;  %v14611_v11 = vsub.s32 1, %v14588_v58  ;;  %v13611_v38 = vpack.i.bf16 %v9800_v31, %v9799_v30  ;;  %v12307_v48 = vcombine.low %v14504_v63, %v14506_v0  ;;  %v1411_v60 = vld [vmem:[#allocation9 + $0xf8] sm:$0xff] }
 0x15e   : > { %18271 = vst [vmem:[#allocation27_spill] sm:$0xff] %v14599_v28  ;;  %v601_v13 = vrot.slane %v596_v6, %v14599_v28  ;;  %v12309_v49 = vcombine.low %v14544_v26, %v14546_v27  ;;  %v12317_v63 = vcombine.low %v1391_v46, %v1395_v47  ;;  %v12326_v26 = vcombine.high %v1399_v54, %v1403_v55  ;;  %v1406_v27 = vld [vmem:[#allocation9 + $0xd0] sm:$0xff]  ;;  %v1415_v7 = vld [vmem:[#allocation9 + $0x118] sm:$0xff] }
 0x15f   : > { %3160 = vmatpush1.bf16.msra.mxu0 %v12409_v9  ;;  %13542 = vperm.xlu1 %13465, %v13541_v37   ;;  %v9464_v9 = vsel %vm9462_vm11, 1.0, %v14085_v62  ;;  %18272 = vst [vmem:[#allocation28_spill] sm:$0xff] %v14611_v11  ;;  %v605_v20 = vrot.slane %v596_v6, %v14611_v11  ;;  %v12325_v1 = vcombine.low %v1399_v54, %v1403_v55  ;;  %v1419_v6 = vld [vmem:[#allocation9 + $0x138] sm:$0xff] }
 0x160   : > { %3161 = vmatprep.subr.bf16.mxu0 %v12418_v14  ;;  %v13591_v14 = vpack.i.bf16 %v9464_v9, %v9463_v8  ;;  %v1423_v17 = vld [vmem:[#allocation9 + $0x158] sm:$0xff] }
 0x161   : > { %13547 = vperm.xlu0 %13454, %v13546_v42   ;;  %v1427_v18 = vld [vmem:[#allocation9 + $0x178] sm:$0xff] }
 0x162   : > { %v12349_v30 = vcombine.low %v1423_v17, %v1427_v18 }
 0x163   : > { %3162 = vmatpush1.bf16.msra.mxu0 %v12417_v25  ;;  %13552 = vperm.xlu1 %13465, %v13551_v43   ;;  %v9709_v25 = vsel %vm9707_vm1, 1.0, %v14085_v62  ;;  %v1390_v43 = vld [vmem:[#allocation9 + $0x50] sm:$0xff] }
 0x164   : > { %3163 = vmatprep.subr.bf16.mxu0 %v12426_v16  ;;  %v9710_v16 = vsel %vm9708_vm2, 1.0, %v14085_v62  ;;  %v12316_v51 = vcombine.high %v1390_v43, %v1394_v45  ;;  %v12315_v56 = vcombine.low %v1390_v43, %v1394_v45  ;;  %v1447_v43 = vld [vmem:[#allocation9 + $0x218] sm:$0xff] }
 0x165   : > { %13557 = vperm.xlu0 %13454, %v13556_v50   ;;  %v13606_v36 = vpack.i.bf16 %v9710_v16, %v9709_v25  ;;  %v1398_v50 = vld [vmem:[#allocation9 + $0x90] sm:$0xff]  ;;  %v1431_v16 = vld [vmem:[#allocation9 + $0x198] sm:$0xff] }
 0x166   : > { %v12324_v0 = vcombine.high %v1398_v50, %v1402_v53  ;;  %v12323_v61 = vcombine.low %v1398_v50, %v1402_v53  ;;  %v1434_v25 = vld [vmem:[#allocation9 + $0x1b0] sm:$0xff]  ;;  %v1451_v45 = vld [vmem:[#allocation9 + $0x238] sm:$0xff] }
 0x167   : > { %3164 = vmatpush1.bf16.msra.mxu0 %v12425_v34  ;;  %13562 = vperm.xlu1 %13465, %v13561_v52   ;;  %v12318_v52 = vcombine.high %v1391_v46, %v1395_v47  ;;  %v1458_v50 = vld [vmem:[#allocation9 + $0x270] sm:$0xff]  ;;  %v12373_v54 = vcombine.low %v1447_v43, %v1451_v45 }
 0x168   : > { %3219 = vmatprep.subr.bf16.mxu0 %v12310_v35 }
 0x169   : > { %13567 = vperm.xlu0 %13454, %v13566_v57   ;;  %v1410_v57 = vld [vmem:[#allocation9 + $0xf0] sm:$0xff] }
 0x16a   : > { %v12332_v2 = vcombine.high %v1406_v27, %v1410_v57  ;;  %v12331_v8 = vcombine.low %v1406_v27, %v1410_v57  ;;  %v1467_v27 = vld [vmem:[#allocation9 + $0x2b8] sm:$0xff] }
 0x16b   : > { %13572 = vperm.xlu1 %13465, %v13571_v59   ;;  %v1407_v59 = vld [vmem:[#allocation9 + $0xd8] sm:$0xff] }
 0x16c   : > { %v12333_v9 = vcombine.low %v1407_v59, %v1411_v60 }
 0x16d   : > { %13577 = vperm.xlu0 %13454, %v13576_v3   ;;  %v12334_v3 = vcombine.high %v1407_v59, %v1411_v60 }
 0x16f   : > { %13582 = vperm.xlu1 %13465, %v13581_v4   ;;  %v1414_v4 = vld [vmem:[#allocation9 + $0x110] sm:$0xff] }
 0x170   : > { %v12339_v19 = vcombine.low %v1414_v4, %v1418_v5 }
 0x171   : > { %13587 = vperm.xlu0 %13454, %v13586_v12   ;;  %v12340_v12 = vcombine.high %v1414_v4, %v1418_v5  ;;  %v1475_v4 = vld [vmem:[#allocation9 + $0x2f8] sm:$0xff] }
 0x173   : > { %13592 = vperm.xlu1 %13465, %v13591_v14   ;;  %v1422_v14 = vld [vmem:[#allocation9 + $0x150] sm:$0xff] }
 0x175   : > { %13597 = vperm.xlu0 %13454, %v13596_v21   ;;  %v12348_v21 = vcombine.high %v1422_v14, %v1426_v15 }
 0x177   : > { %13602 = vperm.xlu1 %13465, %v13601_v24   ;;  %v1430_v24 = vld [vmem:[#allocation9 + $0x190] sm:$0xff] }
 0x178   : > { %v12356_v31 = vcombine.high %v1430_v24, %v1434_v25 }
 0x179   : > { %13607 = vperm.xlu0 %13454, %v13606_v36   ;;  %v1443_v36 = vld [vmem:[#allocation9 + $0x1f8] sm:$0xff] }
 0x17b   : > { %13612 = vperm.xlu1 %13465, %v13611_v38  }
 0x17d   : > { %v691_v23 = vpop.f32.mrb[0].mxu0 }
 0x17e   : > { %v692_v22 = vadd.f32 %v691_v23, %v601_v13  ;;  %v693_v29 = vpop.f32.mrb[1].mxu0  ;;  %v12350_v23 = vcombine.high %v1423_v17, %v1427_v18 }
 0x17f   : > { %v694_v32 = vadd.f32 %v693_v29, %v605_v20  ;;  %v695_v33 = vpop.f32.mrb[2].mxu0  ;;  %v12347_v29 = vcombine.low %v1422_v14, %v1426_v15  ;;  %v1483_v14 = vld [vmem:[#allocation9 + $0x338] sm:$0xff] }
 0x180   : > { %v696_v34 = vadd.f32 %v695_v33, %v601_v13  ;;  %v697_v35 = vpop.f32.mrb[3].mxu0  ;;  %v700_v39 = vmax.f32 %v692_v22, 0.0  ;;  %v12342_v13 = vcombine.high %v1415_v7, %v1419_v6  ;;  %v1435_v22 = vld [vmem:[#allocation9 + $0x1b8] sm:$0xff]  ;;  %v1438_v33 = vld [vmem:[#allocation9 + $0x1d0] sm:$0xff] }
 0x181   : > { %v698_v37 = vadd.f32 %v697_v35, %v605_v20  ;;  %v701_v41 = vmax.f32 %v694_v32, 0.0  ;;  %v12341_v20 = vcombine.low %v1415_v7, %v1419_v6  ;;  %v12358_v32 = vcombine.high %v1431_v16, %v1435_v22  ;;  %v1439_v35 = vld [vmem:[#allocation9 + $0x1d8] sm:$0xff] }
 0x182   : > { %v702_v40 = vmax.f32 %v696_v34, 0.0  ;;  %v1442_v34 = vld [vmem:[#allocation9 + $0x1f0] sm:$0xff]  ;;  %v12357_v38 = vcombine.low %v1431_v16, %v1435_v22  ;;  %v12365_v47 = vcombine.low %v1439_v35, %v1443_v36 }
 0x183   : > { %v703_v42 = vmax.f32 %v698_v37, 0.0  ;;  %v12355_v37 = vcombine.low %v1430_v24, %v1434_v25  ;;  %v12363_v46 = vcombine.low %v1438_v33, %v1442_v34  ;;  %v1491_v24 = vld [vmem:[#allocation9 + $0x378] sm:$0xff] }
 0x184   : > { %v14629_v44 = vpack.c.bf16 %v702_v40, %v700_v39  ;;  %v12364_v39 = vcombine.high %v1438_v33, %v1442_v34  ;;  %v12366_v40 = vcombine.high %v1439_v35, %v1443_v36  ;;  %v1499_v33 = vld [vmem:[#allocation9 + $0x3b8] sm:$0xff] }
 0x185   : > { %v1379_v62 = vpack.c.bf16 %v703_v42, %v701_v41  ;;  %v1446_v41 = vld [vmem:[#allocation9 + $0x210] sm:$0xff] }
 0x186   : > { %v1450_v42 = vld [vmem:[#allocation9 + $0x230] sm:$0xff] }
 0x187   : > { %3122 = vmatprep.mubr.bf16.mxu1 %v1379_v62  ;;  %3165 = vmatprep.mubr.bf16.mxu0 %v1379_v62  ;;  %v12371_v53 = vcombine.low %v1446_v41, %v1450_v42 }
 0x188   : > { %3123 = vmatmul.mubr.bf16.vlgmr.msra.gmra.mrb[0].mxu1 %v14629_v44  ;;  %3166 = vmatmul.mubr.bf16.vlgmr.msra.gmra.mrb[4].mxu0 %v14629_v44 }
 0x189   : > { %3177 = vmatpush1.bf16.msra.mxu1 %v12307_v48  ;;  %3220 = vmatpush1.bf16.msra.mxu0 %v12309_v49  ;;  %v12374_v48 = vcombine.high %v1447_v43, %v1451_v45  ;;  %v1454_v49 = vld [vmem:[#allocation9 + $0x250] sm:$0xff] }
 0x18a   : > { %3208 = vmatprep.mubr.bf16.mxu1 %v1379_v62  ;;  %3251 = vmatprep.mubr.bf16.mxu0 %v1379_v62  ;;  %v12372_v62 = vcombine.high %v1446_v41, %v1450_v42  ;;  %v12380_v55 = vcombine.high %v1454_v49, %v1458_v50  ;;  %v12379_v57 = vcombine.low %v1454_v49, %v1458_v50  ;;  %v1507_v41 = vld [vmem:[#allocation9 + $0x3f8] sm:$0xff]  ;;  %v13629_v49 = vld [vmem:[%s18017_s4] ss:$8 sps:$4 sm:$0xff]  }
 0x18b   : > { %3178 = vmatprep.subr.bf16.mxu1 %v12316_v51  ;;  %3221 = vmatprep.subr.bf16.mxu0 %v12318_v52  ;;  %v1455_v51 = vld [vmem:[#allocation9 + $0x258] sm:$0xff] }
 0x18c   : > { %v1459_v52 = vld [vmem:[#allocation9 + $0x278] sm:$0xff] }
 0x18d   : > { %3179 = vmatpush1.bf16.msra.mxu1 %v12315_v56  ;;  %3222 = vmatpush1.bf16.msra.mxu0 %v12317_v63  ;;  %v12382_v56 = vcombine.high %v1455_v51, %v1459_v52  ;;  %v1462_v63 = vld [vmem:[#allocation9 + $0x290] sm:$0xff]  ;;  %v12381_v59 = vcombine.low %v1455_v51, %v1459_v52  ;;  %v13637_v52 = vld [vmem:[%s18017_s4 + $0x24] ss:$8 sps:$4 sm:$0xff]  }
 0x18e   : > { %3180 = vmatprep.subr.bf16.mxu1 %v12324_v0  ;;  %3223 = vmatprep.subr.bf16.mxu0 %v12326_v26  ;;  %v1466_v0 = vld [vmem:[#allocation9 + $0x2b0] sm:$0xff]  ;;  %v1463_v26 = vld [vmem:[#allocation9 + $0x298] sm:$0xff] }
 0x18f   : > { %v12388_v60 = vcombine.high %v1462_v63, %v1466_v0  ;;  %v12387_v5 = vcombine.low %v1462_v63, %v1466_v0  ;;  %v12389_v7 = vcombine.low %v1463_v26, %v1467_v27  ;;  %v13634_v50 = vld [vmem:[%s18017_s4 + $0x14] ss:$8 sps:$4 sm:$0xff]   ;;  %v13632_v51 = vld [vmem:[%s18017_s4 + $0x10] ss:$8 sps:$4 sm:$0xff]   ;;  %v4345_v63 = vld [vmem:[#allocation10 + $0x20] sm:$0xff] }
 0x190   : > { %v4342_v0 = vld [vmem:[#allocation10 + $0x8] sm:$0xff] }
 0x191   : > { %3181 = vmatpush1.bf16.msra.mxu1 %v12323_v61  ;;  %3224 = vmatpush1.bf16.msra.mxu0 %v12325_v1  ;;  %v12390_v61 = vcombine.high %v1463_v26, %v1467_v27  ;;  %v1470_v1 = vld [vmem:[#allocation9 + $0x2d0] sm:$0xff]  ;;  %v4346_v26 = vld [vmem:[#allocation10 + $0x28] sm:$0xff]  ;;  %v4349_v27 = vld [vmem:[#allocation10 + $0x40] sm:$0xff] }
 0x192   : > { %3182 = vmatprep.subr.bf16.mxu1 %v12332_v2  ;;  %3225 = vmatprep.subr.bf16.mxu0 %v12334_v3  ;;  %v1474_v2 = vld [vmem:[#allocation9 + $0x2f0] sm:$0xff]  ;;  %v1471_v3 = vld [vmem:[#allocation9 + $0x2d8] sm:$0xff] }
 0x193   : > { %v12396_v6 = vcombine.high %v1470_v1, %v1474_v2  ;;  %v12395_v15 = vcombine.low %v1470_v1, %v1474_v2  ;;  %v12397_v17 = vcombine.low %v1471_v3, %v1475_v4  ;;  %v12447_v2 = vcombine.low %v4342_v0, %v4346_v26 }
 0x195   : > { %3183 = vmatpush1.bf16.msra.mxu1 %v12331_v8  ;;  %3226 = vmatpush1.bf16.msra.mxu0 %v12333_v9  ;;  %v12398_v8 = vcombine.high %v1471_v3, %v1475_v4  ;;  %v1478_v9 = vld [vmem:[#allocation9 + $0x310] sm:$0xff]  ;;  %v12448_v3 = vcombine.high %v4342_v0, %v4346_v26  ;;  %v4357_v4 = vld [vmem:[#allocation10 + $0x80] sm:$0xff] }
 0x196   : > { %3184 = vmatprep.subr.bf16.mxu1 %v12340_v12  ;;  %3227 = vmatprep.subr.bf16.mxu0 %v12342_v13  ;;  %v1482_v12 = vld [vmem:[#allocation9 + $0x330] sm:$0xff]  ;;  %v1479_v13 = vld [vmem:[#allocation9 + $0x318] sm:$0xff]  ;;  %v14669_v0 = vld [vmem:[%s18020_s7] sm:$0x11] }
 0x197   : > { %v12404_v18 = vcombine.high %v1478_v9, %v1482_v12  ;;  %v12403_v25 = vcombine.low %v1478_v9, %v1482_v12  ;;  %v12405_v16 = vcombine.low %v1479_v13, %v1483_v14 }
 0x199   : > { %3185 = vmatpush1.bf16.msra.mxu1 %v12339_v19  ;;  %3228 = vmatpush1.bf16.msra.mxu0 %v12341_v20  ;;  %v12406_v19 = vcombine.high %v1479_v13, %v1483_v14  ;;  %v1486_v20 = vld [vmem:[#allocation9 + $0x350] sm:$0xff] }
 0x19a   : > { %3186 = vmatprep.subr.bf16.mxu1 %v12348_v21  ;;  %3229 = vmatprep.subr.bf16.mxu0 %v12350_v23  ;;  %v1490_v21 = vld [vmem:[#allocation9 + $0x370] sm:$0xff]  ;;  %v1487_v23 = vld [vmem:[#allocation9 + $0x358] sm:$0xff] }
 0x19b   : > { %v12412_v22 = vcombine.high %v1486_v20, %v1490_v21  ;;  %v12411_v34 = vcombine.low %v1486_v20, %v1490_v21  ;;  %v12413_v35 = vcombine.low %v1487_v23, %v1491_v24  ;;  %v4370_v20 = vld [vmem:[#allocation10 + $0xe8] sm:$0xff] }
 0x19d   : > { %3187 = vmatpush1.bf16.msra.mxu1 %v12347_v29  ;;  %3230 = vmatpush1.bf16.msra.mxu0 %v12349_v30  ;;  %v12414_v29 = vcombine.high %v1487_v23, %v1491_v24  ;;  %v1494_v30 = vld [vmem:[#allocation9 + $0x390] sm:$0xff] }
 0x19e   : > { %3188 = vmatprep.subr.bf16.mxu1 %v12356_v31  ;;  %3231 = vmatprep.subr.bf16.mxu0 %v12358_v32  ;;  %v1498_v31 = vld [vmem:[#allocation9 + $0x3b0] sm:$0xff]  ;;  %v1495_v32 = vld [vmem:[#allocation9 + $0x398] sm:$0xff] }
 0x19f   : > { %v12420_v36 = vcombine.high %v1494_v30, %v1498_v31  ;;  %v12419_v42 = vcombine.low %v1494_v30, %v1498_v31  ;;  %v12421_v43 = vcombine.low %v1495_v32, %v1499_v33  ;;  %v4378_v30 = vld [vmem:[#allocation10 + $0x128] sm:$0xff] }
 0x1a1   : > { %3189 = vmatpush1.bf16.msra.mxu1 %v12355_v37  ;;  %3232 = vmatpush1.bf16.msra.mxu0 %v12357_v38  ;;  %v12422_v37 = vcombine.high %v1495_v32, %v1499_v33  ;;  %v1502_v38 = vld [vmem:[#allocation9 + $0x3d0] sm:$0xff] }
 0x1a2   : > { %3190 = vmatprep.subr.bf16.mxu1 %v12364_v39  ;;  %3233 = vmatprep.subr.bf16.mxu0 %v12366_v40  ;;  %v1506_v39 = vld [vmem:[#allocation9 + $0x3f0] sm:$0xff]  ;;  %v1503_v40 = vld [vmem:[#allocation9 + $0x3d8] sm:$0xff] }
 0x1a3   : > { %v12428_v45 = vcombine.high %v1502_v38, %v1506_v39 }
 0x1a5   : > { %3191 = vmatpush1.bf16.msra.mxu1 %v12363_v46  ;;  %3234 = vmatpush1.bf16.msra.mxu0 %v12365_v47  ;;  %v12430_v46 = vcombine.high %v1503_v40, %v1507_v41  ;;  %v12427_v47 = vcombine.low %v1502_v38, %v1506_v39  ;;  %v4386_v38 = vld [vmem:[#allocation10 + $0x168] sm:$0xff] }
 0x1a6   : > { %3192 = vmatprep.subr.bf16.mxu1 %v12372_v62  ;;  %3235 = vmatprep.subr.bf16.mxu0 %v12374_v48  ;;  %v12429_v62 = vcombine.low %v1503_v40, %v1507_v41  ;;  %v13631_v48 = vld [vmem:[%s18017_s4 + $0x4] ss:$8 sps:$4 sm:$0xff]  }
 0x1a9   : > { %3193 = vmatpush1.bf16.msra.mxu1 %v12371_v53  ;;  %3236 = vmatpush1.bf16.msra.mxu0 %v12373_v54  ;;  %v13635_v53 = vld [vmem:[%s18017_s4 + $0x20] ss:$8 sps:$4 sm:$0xff]   ;;  %v13638_v54 = vld [vmem:[%s18017_s4 + $0x30] ss:$8 sps:$4 sm:$0xff]  }
 0x1aa   : > { %3194 = vmatprep.subr.bf16.mxu1 %v12380_v55  ;;  %3237 = vmatprep.subr.bf16.mxu0 %v12382_v56  ;;  %v13641_v55 = vld [vmem:[%s14321_s29 + $0x8] sm:$0xff]   ;;  %v4341_v56 = vld [vmem:[#allocation10] sm:$0xff] }
 0x1ab   : > { %v12446_v1 = vcombine.high %v4341_v56, %v4345_v63 }
 0x1ad   : > { %3195 = vmatpush1.bf16.msra.mxu1 %v12379_v57  ;;  %3238 = vmatpush1.bf16.msra.mxu0 %v12381_v59  ;;  %v4353_v57 = vld [vmem:[#allocation10 + $0x60] sm:$0xff]  ;;  %v4350_v59 = vld [vmem:[#allocation10 + $0x48] sm:$0xff] }
 0x1ae   : > { %3196 = vmatprep.subr.bf16.mxu1 %v12388_v60  ;;  %3239 = vmatprep.subr.bf16.mxu0 %v12390_v61  ;;  %v4354_v60 = vld [vmem:[#allocation10 + $0x68] sm:$0xff]  ;;  %v12445_v61 = vcombine.low %v4341_v56, %v4345_v63  ;;  %v12453_v12 = vcombine.low %v4349_v27, %v4353_v57 }
 0x1af   : > { %v12456_v9 = vcombine.high %v4350_v59, %v4354_v60  ;;  %v12455_v13 = vcombine.low %v4350_v59, %v4354_v60  ;;  %v14676_v59 = vld [vmem:[%s18020_s7] sm:$0x22]  ;;  %v14681_v60 = vld [vmem:[%s18020_s7 + $0x8] sm:$0x11] }
 0x1b1   : > { %3197 = vmatpush1.bf16.msra.mxu1 %v12387_v5  ;;  %3240 = vmatpush1.bf16.msra.mxu0 %v12389_v7  ;;  %v12454_v5 = vcombine.high %v4349_v27, %v4353_v57  ;;  %v4361_v7 = vld [vmem:[#allocation10 + $0xa0] sm:$0xff] }
 0x1b2   : > { %3198 = vmatprep.subr.bf16.mxu1 %v12396_v6  ;;  %3241 = vmatprep.subr.bf16.mxu0 %v12398_v8  ;;  %v4358_v6 = vld [vmem:[#allocation10 + $0x88] sm:$0xff]  ;;  %v12462_v14 = vcombine.high %v4357_v4, %v4361_v7  ;;  %v12461_v21 = vcombine.low %v4357_v4, %v4361_v7  ;;  %v716_v4 = vunpack.c.l.bf16 %v14681_v60  ;;  %v4409_v7 = vld [vmem:[#allocation10 + $0x220] sm:$0xff] }
 0x1b3   : > { %v4362_v8 = vld [vmem:[#allocation10 + $0xa8] sm:$0xff] }
 0x1b4   : > { %v12463_v23 = vcombine.low %v4358_v6, %v4362_v8  ;;  %v14671_v57 = vpop.permute.xlu0 %13456 }
 0x1b5   : > { %3199 = vmatpush1.bf16.msra.mxu1 %v12395_v15  ;;  %3242 = vmatpush1.bf16.msra.mxu0 %v12397_v17  ;;  %v12464_v15 = vcombine.high %v4358_v6, %v4362_v8  ;;  %v4365_v17 = vld [vmem:[#allocation10 + $0xc0] sm:$0xff]  ;;  %v4406_v6 = vld [vmem:[#allocation10 + $0x208] sm:$0xff] }
 0x1b6   : > { %3200 = vmatprep.subr.bf16.mxu1 %v12404_v18  ;;  %3243 = vmatprep.subr.bf16.mxu0 %v12406_v19  ;;  %v4369_v18 = vld [vmem:[#allocation10 + $0xe0] sm:$0xff]  ;;  %v4366_v19 = vld [vmem:[#allocation10 + $0xc8] sm:$0xff] }
 0x1b7   : > { %v12470_v24 = vcombine.high %v4365_v17, %v4369_v18  ;;  %v12469_v31 = vcombine.low %v4365_v17, %v4369_v18  ;;  %v12471_v32 = vcombine.low %v4366_v19, %v4370_v20  ;;  %v4410_v8 = vld [vmem:[#allocation10 + $0x228] sm:$0xff]  ;;  %v4413_v18 = vld [vmem:[#allocation10 + $0x240] sm:$0xff] }
 0x1b8   : > { %v14709_v17 = vld [vmem:[%s18020_s7 + $0x8] sm:$0x22] }
 0x1b9   : > { %3201 = vmatpush1.bf16.msra.mxu1 %v12403_v25  ;;  %3244 = vmatpush1.bf16.msra.mxu0 %v12405_v16  ;;  %v12472_v25 = vcombine.high %v4366_v19, %v4370_v20  ;;  %v4373_v16 = vld [vmem:[#allocation10 + $0x100] sm:$0xff]  ;;  %v14712_v20 = vunpack.i.l.bf16 %v14671_v57 }
 0x1ba   : > { %3202 = vmatprep.subr.bf16.mxu1 %v12412_v22  ;;  %3245 = vmatprep.subr.bf16.mxu0 %v12414_v29  ;;  %v4377_v22 = vld [vmem:[#allocation10 + $0x120] sm:$0xff]  ;;  %v4374_v29 = vld [vmem:[#allocation10 + $0x108] sm:$0xff] }
 0x1bb   : > { %v12478_v33 = vcombine.high %v4373_v16, %v4377_v22  ;;  %v12477_v39 = vcombine.low %v4373_v16, %v4377_v22  ;;  %v12479_v40 = vcombine.low %v4374_v29, %v4378_v30  ;;  %v4417_v19 = vld [vmem:[#allocation10 + $0x260] sm:$0xff]  ;;  %v4418_v16 = vld [vmem:[#allocation10 + $0x268] sm:$0xff]  ;;  %v14717_v22 = vpop.permute.xlu1 %13467 }
 0x1bd   : > { %3203 = vmatpush1.bf16.msra.mxu1 %v12411_v34  ;;  %3246 = vmatpush1.bf16.msra.mxu0 %v12413_v35  ;;  %v12480_v34 = vcombine.high %v4374_v29, %v4378_v30  ;;  %v4381_v35 = vld [vmem:[#allocation10 + $0x140] sm:$0xff]  ;;  %v14720_v29 = vrot.slane %v716_v4, %v14599_v28  ;;  %v715_v30 = vunpack.c.h.bf16 %v14669_v0 }
 0x1be   : > { %3204 = vmatprep.subr.bf16.mxu1 %v12420_v36  ;;  %3247 = vmatprep.subr.bf16.mxu0 %v12422_v37  ;;  %v4385_v36 = vld [vmem:[#allocation10 + $0x160] sm:$0xff]  ;;  %v4382_v37 = vld [vmem:[#allocation10 + $0x148] sm:$0xff] }
 0x1bf   : > { %v12486_v41 = vcombine.high %v4381_v35, %v4385_v36  ;;  %18278 = vst [vmem:[#allocation34_spill] sm:$0xff] %v14720_v29 }
 0x1c1   : > { %3205 = vmatpush1.bf16.msra.mxu1 %v12419_v42  ;;  %3248 = vmatpush1.bf16.msra.mxu0 %v12421_v43  ;;  %v12488_v42 = vcombine.high %v4382_v37, %v4386_v38  ;;  %v4389_v43 = vld [vmem:[#allocation10 + $0x180] sm:$0xff] }
 0x1c2   : > { %3206 = vmatprep.subr.bf16.mxu1 %v12428_v45  ;;  %3249 = vmatprep.subr.bf16.mxu0 %v12430_v46  ;;  %v4393_v45 = vld [vmem:[#allocation10 + $0x1a0] sm:$0xff]  ;;  %v4390_v46 = vld [vmem:[#allocation10 + $0x188] sm:$0xff] }
 0x1c5   : > { %3207 = vmatpush1.bf16.msra.mxu1 %v12427_v47  ;;  %3250 = vmatpush1.bf16.msra.mxu0 %v12429_v62  ;;  %v4394_v47 = vld [vmem:[#allocation10 + $0x1a8] sm:$0xff]  ;;  %v12485_v62 = vcombine.low %v4381_v35, %v4385_v36  ;;  %v14733_v36 = vld [vmem:[%s18020_s7] sm:$0x88] }
 0x1c6   : > { %3487 = vmatprep.subr.bf16.mxu1 %v13631_v48  ;;  %5109 = vmatprep.subr.bf16.mxu0 %v12446_v1  ;;  %v12487_v48 = vcombine.low %v4382_v37, %v4386_v38  ;;  %v882_v1 = vunpack.c.l.bf16 %v14676_v59  ;;  %v14736_v37 = vrot.slane %v716_v4, %v14611_v11  ;;  %v884_v38 = vunpack.c.l.bf16 %v14709_v17 }
 0x1c8   : > { %3209 = vmatmul.mubr.bf16.vlgmr.msra.gmra.mrb[4].mxu1 %v14629_v44  ;;  %3252 = vmatmul.mubr.bf16.vlgmr.msra.gmra.mrb[8].mxu0 %v14629_v44  ;;  %v13640_v44 = vld [vmem:[%s18017_s4 + $0x34] ss:$8 sps:$4 sm:$0xff]   ;;  %18279 = vst [vmem:[#allocation35_spill] sm:$0xff] %v14736_v37 }
 0x1c9   : > { %3488 = vmatpush1.bf16.msra.mxu1 %v13629_v49  ;;  %3519 = vmatprep.mubr.bf16.mxu1 %v18037_v10  ;;  %v12494_v49 = vcombine.high %v4389_v43, %v4393_v45 }
 0x1ca   : > { %3489 = vmatprep.subr.bf16.mxu1 %v13634_v50  ;;  %5110 = vmatpush1.bf16.msra.mxu0 %v12445_v61  ;;  %v12496_v50 = vcombine.high %v4390_v46, %v4394_v47  ;;  %v714_v61 = vunpack.c.l.bf16 %v14669_v0 }
 0x1cb   : > { %5111 = vmatprep.subr.bf16.mxu0 %v12454_v5  ;;  %v4405_v5 = vld [vmem:[#allocation10 + $0x200] sm:$0xff] }
 0x1cd   : > { %3490 = vmatpush1.bf16.msra.mxu1 %v13632_v51  ;;  %v12493_v51 = vcombine.low %v4389_v43, %v4393_v45  ;;  %v14743_v43 = vsub.s32 4, %v14588_v58  ;;  %v12517_v45 = vcombine.low %v4413_v18, %v4417_v19 }
 0x1ce   : > { %3491 = vmatprep.subr.bf16.mxu1 %v13637_v52  ;;  %5112 = vmatpush1.bf16.msra.mxu0 %v12453_v12  ;;  %v12495_v52 = vcombine.low %v4390_v46, %v4394_v47  ;;  %v14697_v12 = vrot.slane %v714_v61, %v14599_v28  ;;  %v14746_v47 = vunpack.i.l.bf16 %v14717_v22 }
 0x1cf   : > { %5113 = vmatprep.subr.bf16.mxu0 %v12462_v14  ;;  %v14703_v14 = vsub.s32 3, %v14588_v58  ;;  %18281 = vst [vmem:[#allocation37_spill] sm:$0xff] %v14743_v43 }
 0x1d0   : > { %18274 = vst [vmem:[#allocation30_spill] sm:$0xff] %v14697_v12 }
 0x1d1   : > { %3492 = vmatpush1.bf16.msra.mxu1 %v13635_v53  ;;  %v4397_v53 = vld [vmem:[#allocation10 + $0x1c0] sm:$0xff]  ;;  %18276 = vst [vmem:[#allocation32_spill] sm:$0xff] %v14703_v14 }
 0x1d2   : > { %3493 = vmatprep.subr.bf16.mxu1 %v13640_v44  ;;  %5114 = vmatpush1.bf16.msra.mxu0 %v12461_v21  ;;  %v4401_v44 = vld [vmem:[#allocation10 + $0x1e0] sm:$0xff] }
 0x1d3   : > { %5115 = vmatprep.subr.bf16.mxu0 %v12470_v24  ;;  %v12501_v56 = vcombine.low %v4397_v53, %v4401_v44  ;;  %v12502_v63 = vcombine.high %v4397_v53, %v4401_v44  ;;  %v12510_v24 = vcombine.high %v4405_v5, %v4409_v7  ;;  %v14762_v53 = vrot.slane %v715_v30, %v14599_v28 }
 0x1d5   : > { %3494 = vmatpush1.bf16.msra.mxu1 %v13638_v54  ;;  %v4398_v54 = vld [vmem:[#allocation10 + $0x1c8] sm:$0xff]  ;;  %18283 = vst [vmem:[#allocation39_spill] sm:$0xff] %v14762_v53 }
 0x1d6   : > { %5152 = vmatprep.subr.bf16.mxu1 %v12448_v3  ;;  %5116 = vmatpush1.bf16.msra.mxu0 %v12469_v31  ;;  %v14691_v3 = vld [vmem:[%s18020_s7] sm:$0x44]  ;;  %v12511_v31 = vcombine.low %v4406_v6, %v4410_v8 }
 0x1d7   : > { %5117 = vmatprep.subr.bf16.mxu0 %v12478_v33  ;;  %v14723_v33 = vld [vmem:[#allocation10 + $0x280] sm:$0xff] }
 0x1d8   : > { %12442 = vmatmul.mubr.msk.bf16.vlgmr.msra.gmra.mrb[8].mxu1 %vm653_vm0, %v13641_v55  ;;  %v4402_v55 = vld [vmem:[#allocation10 + $0x1e8] sm:$0xff] }
 0x1d9   : > { %5153 = vmatpush1.bf16.msra.mxu1 %v12447_v2  ;;  %v12503_v26 = vcombine.low %v4398_v54, %v4402_v55  ;;  %v12504_v27 = vcombine.high %v4398_v54, %v4402_v55  ;;  %v14686_v2 = vsub.s32 2, %v14588_v58  ;;  %v14764_v54 = vld [vmem:[#allocation10 + $0x2c0] sm:$0xff] }
 0x1da   : > { %5154 = vmatprep.subr.bf16.mxu1 %v12456_v9  ;;  %5118 = vmatpush1.bf16.msra.mxu0 %v12477_v39  ;;  %v14694_v9 = vpop.permute.xlu0 %13461  ;;  %v12518_v39 = vcombine.high %v4413_v18, %v4417_v19  ;;  %v4433_v55 = vld [vmem:[#allocation10 + $0x2e0] sm:$0xff]  ;;  %v14795_v18 = vsub.s32 6, %v14588_v58 }
 0x1db   : > { %5119 = vmatprep.subr.bf16.mxu0 %v12486_v41  ;;  %18273 = vst [vmem:[#allocation29_spill] sm:$0xff] %v14686_v2  ;;  %v14715_v21 = vrot.slane %v882_v1, %v14686_v2  ;;  %v14728_v35 = vunpack.i.l.bf16 %v14694_v9  ;;  %v4426_v41 = vld [vmem:[#allocation10 + $0x2a8] sm:$0xff] }
 0x1dc   : > { %18287 = vst [vmem:[#allocation43_spill] sm:$0xff] %v14795_v18 }
 0x1dd   : > { %5155 = vmatpush1.bf16.msra.mxu1 %v12455_v13  ;;  %v14700_v13 = vrot.slane %v714_v61, %v14611_v11  ;;  %18277 = vst [vmem:[#allocation33_spill] sm:$0xff] %v14715_v21  ;;  %v844_v0 = vmul.f32 %v14728_v35, %v14736_v37  ;;  %v14777_v61 = vld [vmem:[#allocation10 + $0x2e8] sm:$0xff]  ;;  %v1051_v37 = vunpack.c.h.bf16 %v14691_v3 }
 0x1de   : > { %5156 = vmatprep.subr.bf16.mxu1 %v12464_v15  ;;  %5120 = vmatpush1.bf16.msra.mxu0 %v12485_v62  ;;  %v1050_v15 = vunpack.c.l.bf16 %v14691_v3  ;;  %v14749_v62 = vsub.s32 5, %v14588_v58  ;;  %v18302_v3 = vunpack.c.l.bf16 %v14733_v36 }
 0x1df   : > { %5121 = vmatprep.subr.bf16.mxu0 %v12494_v49  ;;  %18275 = vst [vmem:[#allocation31_spill] sm:$0xff] %v14700_v13 }
 0x1e0   : > { %18282 = vst [vmem:[#allocation38_spill] sm:$0xff] %v14749_v62  ;;  %v14784_v4 = vrot.slane %v1050_v15, %v14743_v43 }
 0x1e1   : > { %5157 = vmatpush1.bf16.msra.mxu1 %v12463_v23  ;;  %v12509_v23 = vcombine.low %v4405_v5, %v4409_v7  ;;  %v14788_v7 = vrot.slane %v715_v30, %v14611_v11 }
 0x1e2   : > { %5158 = vmatprep.subr.bf16.mxu1 %v12472_v25  ;;  %5122 = vmatpush1.bf16.msra.mxu0 %v12493_v51  ;;  %v4414_v25 = vld [vmem:[#allocation10 + $0x248] sm:$0xff]  ;;  %v764_v51 = vmul.f32 %v14712_v20, %v14697_v12  ;;  %18285 = vst [vmem:[#allocation41_spill] sm:$0xff] %v14784_v4 }
 0x1e3   : > { %5123 = vmatprep.subr.bf16.mxu0 %v12502_v63  ;;  %v12520_v46 = vcombine.high %v4414_v25, %v4418_v16  ;;  %v12519_v49 = vcombine.low %v4414_v25, %v4418_v16  ;;  %v766_v63 = vmul.f32 %v14712_v20, %v14720_v29  ;;  %18286 = vst [vmem:[#allocation42_spill] sm:$0xff] %v14788_v7  ;;  %v883_v16 = vunpack.c.h.bf16 %v14676_v59  ;;  %v14819_v59 = vld [vmem:[#allocation10 + $0x328] sm:$0xff] }
 0x1e4   : > { %v765_v25 = vmul.f32 %v14712_v20, %v14762_v53 }
 0x1e5   : > { %5159 = vmatpush1.bf16.msra.mxu1 %v12471_v32  ;;  %v12512_v32 = vcombine.high %v4406_v6, %v4410_v8  ;;  %v932_v8 = vmul.f32 %v14746_v47, %v14715_v21 }
 0x1e6   : > { %5160 = vmatprep.subr.bf16.mxu1 %v12480_v34  ;;  %5124 = vmatpush1.bf16.msra.mxu0 %v12501_v56  ;;  %v14725_v34 = vld [vmem:[#allocation10 + $0x2a0] sm:$0xff]  ;;  %v842_v56 = vmul.f32 %v14728_v35, %v14700_v13 }
 0x1e7   : > { %5125 = vmatprep.subr.bf16.mxu0 %v12510_v24  ;;  %v12525_v6 = vcombine.low %v14723_v33, %v14725_v34 }
 0x1e9   : > { %5161 = vmatpush1.bf16.msra.mxu1 %v12479_v40  ;;  %v4422_v40 = vld [vmem:[#allocation10 + $0x288] sm:$0xff] }
 0x1ea   : > { %5162 = vmatprep.subr.bf16.mxu1 %v12488_v42  ;;  %v14740_v42 = vrot.slane %v882_v1, %v14703_v14  ;;  %5126 = vmatpush1.bf16.msra.mxu0 %v12509_v23  ;;  %v12528_v44 = vcombine.high %v4422_v40, %v4426_v41  ;;  %v14779_v1 = vpop.permute.xlu1 %13472  ;;  %v12527_v19 = vcombine.low %v4422_v40, %v4426_v41 }
 0x1eb   : > { %5127 = vmatprep.subr.bf16.mxu0 %v12518_v39  ;;  %v12534_v23 = vcombine.high %v14764_v54, %v4433_v55  ;;  %v14799_v24 = vunpack.i.l.bf16 %v14779_v1  ;;  %v860_v39 = vadd.f32 %v844_v0, %v766_v63  ;;  %v14815_v41 = vrot.slane %v884_v38, %v14703_v14 }
 0x1ec   : > { %18280 = vst [vmem:[#allocation36_spill] sm:$0xff] %v14740_v42 }
 0x1ed   : > { %5163 = vmatpush1.bf16.msra.mxu1 %v12487_v48  ;;  %v14754_v48 = vld [vmem:[%s18020_s7 + $0x8] sm:$0x44]  ;;  %18288 = vst [vmem:[#allocation44_spill] sm:$0xff] %v14815_v41  ;;  %v1012_v10 = vmul.f32 %v14799_v24, %v14815_v41  ;;  %v14887_v41 = vrot.slane %v883_v16, %v14703_v14 }
 0x1ee   : > { %5164 = vmatprep.subr.bf16.mxu1 %v12496_v50  ;;  %v12526_v50 = vcombine.high %v14723_v33, %v14725_v34  ;;  %v18040_v5 = vunpack.c.l.bf16 %v14754_v48  ;;  %5128 = vmatpush1.bf16.msra.mxu0 %v12517_v45  ;;  %v14810_v33 = vpop.permute.xlu0 %13477  ;;  %v858_v34 = vadd.f32 %v842_v56, %v764_v51  ;;  %v14817_v45 = vld [vmem:[#allocation10 + $0x308] sm:$0xff]  ;;  %v12533_v51 = vcombine.low %v14764_v54, %v4433_v55  ;;  %v14844_v0 = vpop.permute.xlu1 %13482 }
 0x1ef   : > { %v1010_v54 = vmul.f32 %v14799_v24, %v14740_v42  ;;  %v12544_v55 = vcombine.high %v14817_v45, %v14819_v59  ;;  %18297 = vst [vmem:[#allocation53_spill] sm:$0xff] %v14887_v41  ;;  %v14910_v42 = vunpack.i.h.bf16 %v14671_v57 }
 0x1f0   : > { %5129 = vmatprep.subr.bf16.mxu0 %v12526_v50  ;;  %v843_v50 = vmul.f32 %v14728_v35, %v14788_v7 }
 0x1f1   : > { %5165 = vmatpush1.bf16.msra.mxu1 %v12495_v52  ;;  %v18039_v52 = vunpack.c.l.bf16 %v14733_v36  ;;  %18301 = vst [vmem:[#allocation56_spill] sm:$0xff] %v14910_v42 }
 0x1f2   : > { %5166 = vmatprep.subr.bf16.mxu1 %v12504_v27  ;;  %v14775_v27 = vld [vmem:[#allocation10 + $0x2c8] sm:$0xff]  ;;  %5130 = vmatpush1.bf16.msra.mxu0 %v12525_v6  ;;  %v14863_v6 = vunpack.i.l.bf16 %v14844_v0  ;;  %v14912_v21 = vpop.permute.xlu0 %13487 }
 0x1f3   : > { %v12536_v30 = vcombine.high %v14775_v27, %v14777_v61  ;;  %5131 = vmatprep.subr.bf16.mxu0 %v12534_v23  ;;  %v12535_v56 = vcombine.low %v14775_v27, %v14777_v61  ;;  %v14858_v27 = vld [vmem:[#allocation10 + $0x340] sm:$0xff] }
 0x1f4   : > { %v14860_v61 = vld [vmem:[#allocation10 + $0x360] sm:$0xff]  ;;  %18293 = vst [vmem:[#allocation49_spill] sm:$0xff] %v14863_v6 }
 0x1f5   : > { %5167 = vmatpush1.bf16.msra.mxu1 %v12503_v26  ;;  %v14773_v26 = vrot.slane %v884_v38, %v14686_v2  ;;  %v14835_v38 = vrot.slane %v1050_v15, %v14749_v62  ;;  %v14851_v15 = vrot.slane %v18039_v52, %v14795_v18  ;;  %v14870_v52 = vld [vmem:[%s18020_s7 + $0x8] sm:$0x88] }
 0x1f6   : > { %5168 = vmatprep.subr.bf16.mxu1 %v12512_v32  ;;  %v14808_v32 = vld [vmem:[#allocation10 + $0x320] sm:$0xff]  ;;  %5132 = vmatpush1.bf16.msra.mxu0 %v12533_v51 }
 0x1f7   : > { %18284 = vst [vmem:[#allocation40_spill] sm:$0xff] %v14773_v26  ;;  %v934_v40 = vmul.f32 %v14746_v47, %v14773_v26  ;;  %18290 = vst [vmem:[#allocation46_spill] sm:$0xff] %v14835_v38  ;;  %v859_v26 = vadd.f32 %v843_v50, %v765_v25  ;;  %v12543_v25 = vcombine.low %v14817_v45, %v14819_v59 }
 0x1f8   : > { %v12550_v50 = vcombine.high %v14858_v27, %v14860_v61  ;;  %v1178_v57 = vmul.f32 %v14863_v6, %v14835_v38 }
 0x1f9   : > { %5169 = vmatpush1.bf16.msra.mxu1 %v12511_v31  ;;  %v14806_v31 = vld [vmem:[#allocation10 + $0x300] sm:$0xff]  ;;  %v950_v23 = vadd.f32 %v934_v40, %v860_v39  ;;  %v14882_v39 = vld [vmem:[#allocation10 + $0x30] sm:$0xff]  ;;  %v14884_v40 = vld [vmem:[#allocation10 + $0x18] sm:$0xff] }
 0x1fa   : > { %5170 = vmatprep.subr.bf16.mxu1 %v12520_v46  ;;  %v14822_v46 = vunpack.i.l.bf16 %v14810_v33  ;;  %v12542_v63 = vcombine.high %v14806_v31, %v14808_v32  ;;  %18295 = vst [vmem:[#allocation51_spill] sm:$0xff] %v14882_v39  ;;  %18296 = vst [vmem:[#allocation52_spill] sm:$0xff] %v14884_v40 }
 0x1fb   : > { %v1028_v59 = vadd.f32 %v1012_v10, %v950_v23  ;;  %v717_v10 = vunpack.c.h.bf16 %v14681_v60  ;;  %v14931_v60 = vrot.slane %v1051_v37, %v14743_v43 }
 0x1fc   : > { %v1100_v7 = vmul.f32 %v14822_v46, %v14784_v4  ;;  %5133 = vmatprep.subr.bf16.mxu0 %v12542_v63  ;;  %v18299_v63 = vunpack.c.l.bf16 %v14754_v48  ;;  %v4458_v4 = vld [vmem:[#allocation10 + $0x3a8] sm:$0xff] }
 0x1fd   : > { %5171 = vmatpush1.bf16.msra.mxu1 %v12519_v49  ;;  %v14827_v49 = vrot.slane %v18040_v5, %v14743_v43  ;;  %v4450_v5 = vld [vmem:[#allocation10 + $0x368] sm:$0xff] }
 0x1fe   : > { %5172 = vmatprep.subr.bf16.mxu1 %v12528_v44  ;;  %v14838_v44 = vsub.s32 7, %v14588_v58  ;;  %v14854_v58 = vrot.slane %v883_v16, %v14686_v2  ;;  %v4453_v16 = vld [vmem:[#allocation10 + $0x380] sm:$0xff]  ;;  %v14906_v29 = vrot.slane %v18299_v63, %v14749_v62 }
 0x1ff   : > { %18289 = vst [vmem:[#allocation45_spill] sm:$0xff] %v14827_v49  ;;  %v1102_v53 = vmul.f32 %v14822_v46, %v14827_v49  ;;  %v4457_v49 = vld [vmem:[#allocation10 + $0x3a0] sm:$0xff] }
 0x200   : > { %18291 = vst [vmem:[#allocation47_spill] sm:$0xff] %v14838_v44  ;;  %18292 = vst [vmem:[#allocation48_spill] sm:$0xff] %v14854_v58  ;;  %v12558_v63 = vcombine.high %v4453_v16, %v4457_v49 }
 0x201   : > { %5173 = vmatpush1.bf16.msra.mxu1 %v12527_v19  ;;  %v948_v19 = vadd.f32 %v932_v8, %v858_v34  ;;  %v12541_v8 = vcombine.low %v14806_v31, %v14808_v32  ;;  %v14880_v34 = vld [vmem:[#allocation10 + $0x10] sm:$0xff]  ;;  %v14894_v31 = vld [vmem:[#allocation10 + $0x38] sm:$0xff]  ;;  %v933_v32 = vmul.f32 %v14746_v47, %v14854_v58  ;;  %18300 = vst [vmem:[#allocation55_spill] sm:$0xff] %v14906_v29  ;;  %v1220_v58 = vunpack.c.l.bf16 %v14870_v52 }
 0x202   : > { %5174 = vmatprep.subr.bf16.mxu1 %v12536_v30  ;;  %v14872_v30 = vld [vmem:[#allocation10 + $0x348] sm:$0xff]  ;;  %18294 = vst [vmem:[#allocation50_spill] sm:$0xff] %v14880_v34  ;;  %18298 = vst [vmem:[#allocation54_spill] sm:$0xff] %v14894_v31  ;;  %v1118_v12 = vadd.f32 %v1102_v53, %v1028_v59 }
 0x203   : > { %v12552_v51 = vcombine.high %v14872_v30, %v4450_v5  ;;  %v1026_v45 = vadd.f32 %v1010_v54, %v948_v19  ;;  %5134 = vmatpush1.bf16.msra.mxu0 %v12541_v8  ;;  %v12549_v54 = vcombine.low %v14858_v27, %v14860_v61  ;;  %v14923_v19 = vunpack.i.l.bf16 %v14912_v21  ;;  %v4461_v61 = vld [vmem:[#allocation10 + $0x3c0] sm:$0xff] }
 0x204   : > { %5135 = vmatprep.subr.bf16.mxu0 %v12550_v50  ;;  %v12551_v23 = vcombine.low %v14872_v30, %v4450_v5  ;;  %v949_v13 = vadd.f32 %v933_v32, %v859_v26  ;;  %v4465_v8 = vld [vmem:[#allocation10 + $0x3e0] sm:$0xff]  ;;  %v14936_v50 = vrot.slane %v1220_v58, %v14795_v18  ;;  %v4462_v5 = vld [vmem:[#allocation10 + $0x3c8] sm:$0xff]  ;;  %v13493_v30 = vpop.permute.xlu1 %13492  ;;  %v14939_v32 = vrot.slane %v717_v10, %v14599_v28 }
 0x205   : > { %5175 = vmatpush1.bf16.msra.mxu1 %v12535_v56  ;;  %v14917_v56 = vrot.slane %v18302_v3, %v14838_v44  ;;  %18303 = vst [vmem:[#allocation57_spill] sm:$0xff] %v14923_v19  ;;  %v1011_v3 = vmul.f32 %v14799_v24, %v14887_v41  ;;  %v1116_v42 = vadd.f32 %v1100_v7, %v1026_v45  ;;  %v4466_v26 = vld [vmem:[#allocation10 + $0x3e8] sm:$0xff]  ;;  %v14945_v53 = vunpack.i.l.bf16 %v13493_v30 }
 0x206   : > { %5176 = vmatprep.subr.bf16.mxu1 %v12544_v55  ;;  %v4454_v55 = vld [vmem:[#allocation10 + $0x388] sm:$0xff]  ;;  %v14942_v41 = vrot.slane %v717_v10, %v14611_v11  ;;  %v12557_v7 = vcombine.low %v4453_v16, %v4457_v49  ;;  %v14948_v45 = vrot.slane %v1051_v37, %v14749_v62  ;;  %v1101_v28 = vmul.f32 %v14822_v46, %v14931_v60 }
 0x207   : > { %v12560_v27 = vcombine.high %v4454_v55, %v4458_v4  ;;  %5136 = vmatpush1.bf16.msra.mxu0 %v12549_v54  ;;  %18304 = vst [vmem:[#allocation58_spill] sm:$0xff] %v14945_v53  ;;  %v12559_v59 = vcombine.low %v4454_v55, %v4458_v4  ;;  %v1027_v38 = vadd.f32 %v1011_v3, %v949_v13  ;;  %v1219_v10 = vunpack.c.h.bf16 %v14733_v36 }
 0x208   : > { %5137 = vmatprep.subr.bf16.mxu0 %v12558_v63  ;;  %v12568_v11 = vcombine.high %v4462_v5, %v4466_v26  ;;  %v1268_v49 = vmul.f32 %v14923_v19, %v14851_v15  ;;  %v1270_v37 = vmul.f32 %v14923_v19, %v14936_v50  ;;  %v14958_v16 = vrot.slane %v1220_v58, %v14838_v44 }
 0x209   : > { %5177 = vmatpush1.bf16.msra.mxu1 %v12543_v25  ;;  %v1180_v25 = vmul.f32 %v14863_v6, %v14906_v29  ;;  %v12566_v29 = vcombine.high %v4461_v61, %v4465_v8  ;;  %v767_v13 = vmul.f32 %v14712_v20, %v14939_v32  ;;  %v845_v4 = vmul.f32 %v14728_v35, %v14942_v41 }
 0x20a   : > { %5178 = vmatprep.subr.bf16.mxu1 %v12552_v51  ;;  %v885_v51 = vunpack.c.h.bf16 %v14709_v17  ;;  %v1194_v17 = vadd.f32 %v1178_v57, %v1116_v42  ;;  %v12565_v42 = vcombine.low %v4461_v61, %v4465_v8  ;;  %v14968_v55 = vunpack.i.h.bf16 %v14717_v22 }
 0x20b   : > { %5138 = vmatpush1.bf16.msra.mxu0 %v12557_v7  ;;  %v1196_v54 = vadd.f32 %v1180_v25, %v1118_v12  ;;  %v12567_v57 = vcombine.low %v4462_v5, %v4466_v26  ;;  %v12450_v58 = vcombine.high %v14880_v34, %v14882_v39  ;;  %v1179_v63 = vmul.f32 %v14863_v6, %v14948_v45  ;;  %v15005_v26 = vld [vmem:[%s18022_s9] sm:$0xff]  ;;  %v18327_v34 = vld [vmem:[#allocation36_spill] sm:$0xff] }
 0x20c   : > { %v14965_v36 = vrot.slane %v885_v51, %v14686_v2  ;;  %5139 = vmatprep.subr.bf16.mxu0 %v12566_v29  ;;  %v14975_v3 = vrot.slane %v1219_v10, %v14795_v18  ;;  %v14980_v22 = vunpack.i.h.bf16 %v14694_v9  ;;  %v14983_v12 = vunpack.i.h.bf16 %v14779_v1  ;;  %18309 = vst [vmem:[#allocation63_spill] sm:$0xff] %v15005_v26 }
 0x20d   : > { %5179 = vmatpush1.bf16.msra.mxu1 %v12551_v23  ;;  %v1117_v23 = vadd.f32 %v1101_v28, %v1027_v38  ;;  %v1346_v29 = vmul.f32 %v14945_v53, %v14917_v56  ;;  %v1053_v28 = vunpack.c.h.bf16 %v14754_v48  ;;  %v861_v38 = vadd.f32 %v845_v4, %v767_v13  ;;  %v18314_v4 = vld [vmem:[#allocation27_spill] sm:$0xff] }
 0x20e   : > { %5180 = vmatprep.subr.bf16.mxu1 %v12560_v27  ;;  %v12452_v27 = vcombine.high %v14884_v40, %v14894_v31  ;;  %18305 = vst [vmem:[#allocation59_spill] sm:$0xff] %v14980_v22  ;;  %18306 = vst [vmem:[#allocation60_spill] sm:$0xff] %v14983_v12  ;;  %v935_v61 = vmul.f32 %v14746_v47, %v14965_v36  ;;  %v1221_v8 = vunpack.c.h.bf16 %v14870_v52  ;;  %v14995_v9 = vunpack.i.h.bf16 %v14810_v33  ;;  %v15078_v31 = vld [vmem:[%s18020_s7 + $0x10] sm:$0x22] }
 0x20f   : > { %5140 = vmatpush1.bf16.msra.mxu0 %v12565_v42  ;;  %v1284_v1 = vadd.f32 %v1268_v49, %v1194_v17  ;;  %v1286_v25 = vadd.f32 %v1270_v37, %v1196_v54  ;;  %v1348_v5 = vmul.f32 %v14945_v53, %v14958_v16  ;;  %v15000_v48 = vunpack.i.h.bf16 %v14844_v0 }
 0x210   : > { %18307 = vst [vmem:[#allocation61_spill] sm:$0xff] %v14995_v9  ;;  %5195 = vmatprep.subr.bf16.mxu0 %v12450_v58  ;;  %v1195_v52 = vadd.f32 %v1179_v63, %v1117_v23  ;;  %v1269_v33 = vmul.f32 %v14923_v19, %v14975_v3  ;;  %v15013_v7 = vunpack.i.h.bf16 %v14912_v21  ;;  %v15018_v0 = vrot.slane %v1053_v28, %v14743_v43  ;;  %v15034_v21 = vld [vmem:[%s18020_s7 + $0x10] sm:$0x11]  ;;  %v18318_v63 = vld [vmem:[#allocation30_spill] sm:$0xff] }
 0x211   : > { %5181 = vmatpush1.bf16.msra.mxu1 %v12559_v59  ;;  %18308 = vst [vmem:[#allocation62_spill] sm:$0xff] %v15000_v48  ;;  %v15015_v59 = vunpack.i.h.bf16 %v13493_v30  ;;  %v15021_v17 = vrot.slane %v1053_v28, %v14749_v62  ;;  %v951_v49 = vadd.f32 %v935_v61, %v861_v38  ;;  %v15026_v13 = vrot.slane %v1221_v8, %v14795_v18  ;;  %v18320_v38 = vld [vmem:[#allocation31_spill] sm:$0xff]  ;;  %v18321_v61 = vld [vmem:[#allocation28_spill] sm:$0xff] }
 0x212   : > { %5182 = vmatprep.subr.bf16.mxu1 %v12568_v11  ;;  %v14991_v11 = vrot.slane %v885_v51, %v14703_v14  ;;  %v15010_v51 = vrot.slane %v1219_v10, %v14838_v44  ;;  %18310 = vst [vmem:[#allocation64_spill] sm:$0xff] %v15013_v7  ;;  %v15029_v10 = vrot.slane %v1221_v8, %v14838_v44 }
 0x213   : > { %18311 = vst [vmem:[#allocation65_spill] sm:$0xff] %v15026_v13  ;;  %v15036_v30 = vadd.f32 %v1346_v29, %v1284_v1  ;;  %v15040_v42 = vrot.slane %v15005_v26, %v18314_v4  ;;  %v15042_v54 = vadd.f32 %v1348_v5, %v1286_v25  ;;  %v1285_v58 = vadd.f32 %v1269_v33, %v1195_v52 }
 0x214   : > { %v1013_v37 = vmul.f32 %v14799_v24, %v14991_v11  ;;  %18312 = vst [vmem:[#allocation66_spill] sm:$0xff] %v15029_v10  ;;  %v1347_v23 = vmul.f32 %v14945_v53, %v15010_v51  ;;  %v850_v29 = vmul.f32 %v14980_v22, %v18320_v38  ;;  %v15056_v8 = vrot.slane %v15005_v26, %v18321_v61 }
 0x215   : > { %5183 = vmatpush1.bf16.msra.mxu1 %v12567_v57  ;;  %18313 = vst [vmem:[#allocation67_spill] sm:$0xff] %v15036_v30  ;;  %18315 = vst [vmem:[#allocation68_spill] sm:$0xff] %v15040_v42  ;;  %v15046_v57 = vrot.slane %v15005_v26, %v14686_v2  ;;  %v1103_v1 = vmul.f32 %v14822_v46, %v15018_v0  ;;  %v15062_v25 = vrot.slane %v15005_v26, %v14703_v14  ;;  %v18328_v42 = vld [vmem:[#allocation41_spill] sm:$0xff] }
 0x216   : > { %5238 = vmatprep.subr.bf16.mxu1 %v12452_v27  ;;  %18316 = vst [vmem:[#allocation69_spill] sm:$0xff] %v15042_v54  ;;  %v18319_v27 = vld [vmem:[#allocation56_spill] sm:$0xff]  ;;  %18322 = vst [vmem:[#allocation30_spill] sm:$0xff] %v15056_v8  ;;  %v718_v5 = vunpack.c.l.bf16 %v15034_v21  ;;  %v1029_v52 = vadd.f32 %v1013_v37, %v951_v49  ;;  %v1181_v33 = vmul.f32 %v14863_v6, %v15021_v17  ;;  %v18326_v49 = vld [vmem:[#allocation33_spill] sm:$0xff] }
 0x217   : > { %18317 = vst [vmem:[#allocation70_spill] sm:$0xff] %v15046_v57  ;;  %v772_v28 = vmul.f32 %v18319_v27, %v18318_v63  ;;  %18323 = vst [vmem:[#allocation31_spill] sm:$0xff] %v15062_v25  ;;  %v15069_v63 = vmul.f32 %v14923_v19, %v15026_v13  ;;  %v15073_v38 = vmul.f32 %v14945_v53, %v15029_v10  ;;  %v18329_v57 = vld [vmem:[#allocation46_spill] sm:$0xff] }
 0x218   : > { %v940_v37 = vmul.f32 %v14968_v55, %v18326_v49  ;;  %v1018_v8 = vmul.f32 %v14983_v12, %v18327_v34  ;;  %v1108_v25 = vmul.f32 %v14995_v9, %v18328_v42  ;;  %v15092_v30 = vmul.f32 %v15000_v48, %v18329_v57  ;;  %v15097_v54 = vld [vmem:[%s18020_s7 + $0x18] sm:$0x11]  ;;  %v18335_v42 = vld [vmem:[#allocation35_spill] sm:$0xff] }
 0x219   : > { %18330 = vst [vmem:[#allocation33_spill] sm:$0xff] %v15097_v54  ;;  %v866_v26 = vadd.f32 %v850_v29, %v772_v28  ;;  %v18334_v34 = vld [vmem:[#allocation34_spill] sm:$0xff]  ;;  %v852_v10 = vmul.f32 %v14980_v22, %v18335_v42  ;;  %v15111_v57 = vmul.f32 %v15013_v7, %v14851_v15  ;;  %v886_v28 = vunpack.c.l.bf16 %v15078_v31  ;;  %v18342_v42 = vld [vmem:[#allocation40_spill] sm:$0xff] }
 0x21a   : > { %v774_v53 = vmul.f32 %v18319_v27, %v18334_v34  ;;  %v1119_v29 = vadd.f32 %v1103_v1, %v1029_v52  ;;  %v15126_v34 = vmul.f32 %v15015_v59, %v14917_v56  ;;  %v942_v15 = vmul.f32 %v14968_v55, %v18342_v42  ;;  %v15146_v52 = vld [vmem:[%s18020_s7 + $0x18] sm:$0x22] }
 0x21b   : > { %18336 = vst [vmem:[#allocation34_spill] sm:$0xff] %v15111_v57  ;;  %v775_v1 = vmul.f32 %v18319_v27, %v14939_v32  ;;  %v853_v56 = vmul.f32 %v14980_v22, %v14942_v41  ;;  %v956_v42 = vadd.f32 %v940_v37, %v866_v26  ;;  %v888_v37 = vunpack.c.l.bf16 %v15146_v52 }
 0x21c   : > { %18341 = vst [vmem:[#allocation76_spill] sm:$0xff] %v15126_v34 }
 0x21d   : > { %v1034_v18 = vadd.f32 %v1018_v8, %v956_v42  ;;  %v15200_v8 = vrot.slane %v888_v37, %v14686_v2 }
 0x25b   : > { %v15080_v40 = vpop.f32.mrb[0].mxu1  ;;  %v15082_v39 = vpop.f32.mrb[4].mxu0 }
 0x25c   : > { %18324 = vst [vmem:[#allocation71_spill] sm:$0xff] %v15080_v40  ;;  %18325 = vst [vmem:[#allocation72_spill] sm:$0xff] %v15082_v39  ;;  %v15099_v40 = vadd.f32 %v1347_v23, %v1285_v58  ;;  %v15101_v39 = vpop.f32.mrb[1].mxu1  ;;  %v15103_v49 = vpop.f32.mrb[5].mxu0  ;;  %v15118_v58 = vrot.slane %v718_v5, %v18314_v4  ;;  %v15121_v23 = vrot.slane %v718_v5, %v18321_v61 }
 0x25d   : > { %18332 = vst [vmem:[#allocation41_spill] sm:$0xff] %v15101_v39  ;;  %18333 = vst [vmem:[#allocation46_spill] sm:$0xff] %v15103_v49  ;;  %v15113_v19 = vpop.f32.mrb[2].mxu1  ;;  %v15115_v44 = vpop.f32.mrb[6].mxu0  ;;  %v18346_v49 = vld [vmem:[#allocation42_spill] sm:$0xff] }
 0x25e   : > { %18331 = vst [vmem:[#allocation36_spill] sm:$0xff] %v15099_v40  ;;  %18337 = vst [vmem:[#allocation35_spill] sm:$0xff] %v15113_v19  ;;  %v15130_v39 = vpop.f32.mrb[3].mxu1  ;;  %v15132_v19 = vpop.f32.mrb[7].mxu0  ;;  %v18345_v40 = vld [vmem:[#allocation39_spill] sm:$0xff]  ;;  %v851_v57 = vmul.f32 %v14980_v22, %v18346_v49  ;;  %v768_v41 = vmul.f32 %v14712_v20, %v15118_v58  ;;  %v846_v32 = vmul.f32 %v14728_v35, %v15121_v23 }
 0x25f   : > { %18338 = vst [vmem:[#allocation73_spill] sm:$0xff] %v15115_v44  ;;  %18339 = vst [vmem:[#allocation74_spill] sm:$0xff] %v15118_v58  ;;  %v720_v44 = vunpack.c.l.bf16 %v15097_v54  ;;  %v773_v5 = vmul.f32 %v18319_v27, %v18345_v40  ;;  %v18348_v40 = vld [vmem:[#allocation45_spill] sm:$0xff]  ;;  %v18349_v49 = vld [vmem:[#allocation55_spill] sm:$0xff]  ;;  %v15161_v22 = vrot.slane %v886_v28, %v14686_v2  ;;  %v869_v27 = vadd.f32 %v853_v56, %v775_v1 }
 0x260   : > { %18340 = vst [vmem:[#allocation75_spill] sm:$0xff] %v15121_v23  ;;  %18343 = vst [vmem:[#allocation40_spill] sm:$0xff] %v15130_v39  ;;  %v868_v39 = vadd.f32 %v852_v10, %v774_v53  ;;  %v1110_v54 = vmul.f32 %v14995_v9, %v18348_v40  ;;  %v15154_v13 = vmul.f32 %v15000_v48, %v18349_v49  ;;  %v18352_v49 = vld [vmem:[#allocation48_spill] sm:$0xff]  ;;  %v18353_v1 = vld [vmem:[#allocation53_spill] sm:$0xff] }
 0x261   : > { %18344 = vst [vmem:[#allocation77_spill] sm:$0xff] %v15132_v19  ;;  %v18347_v19 = vld [vmem:[#allocation44_spill] sm:$0xff]  ;;  %v15170_v53 = vmul.f32 %v15013_v7, %v14936_v50  ;;  %v15173_v26 = vrot.slane %v720_v44, %v18314_v4  ;;  %v15176_v10 = vrot.slane %v720_v44, %v18321_v61  ;;  %v867_v40 = vadd.f32 %v851_v57, %v773_v5 }
 0x262   : > { %v1020_v34 = vmul.f32 %v14983_v12, %v18347_v19  ;;  %18350 = vst [vmem:[#allocation39_spill] sm:$0xff] %v15154_v13  ;;  %v15166_v19 = vld [vmem:[%s18020_s7 + $0x10] sm:$0x44]  ;;  %v941_v23 = vmul.f32 %v14968_v55, %v18352_v49  ;;  %v943_v58 = vmul.f32 %v14968_v55, %v14965_v36  ;;  %v1197_v13 = vadd.f32 %v1181_v33, %v1119_v29 }
 0x263   : > { %18351 = vst [vmem:[#allocation42_spill] sm:$0xff] %v15170_v53  ;;  %v15185_v50 = vmul.f32 %v15015_v59, %v14958_v16  ;;  %v1054_v53 = vunpack.c.l.bf16 %v15166_v19  ;;  %v958_v44 = vadd.f32 %v942_v15, %v868_v39  ;;  %v862_v6 = vadd.f32 %v846_v32, %v768_v41  ;;  %v15209_v15 = vld [vmem:[%s18020_s7 + $0x18] sm:$0x44] }
 0x264   : > { %v936_v57 = vmul.f32 %v14746_v47, %v15161_v22  ;;  %v15191_v5 = vrot.slane %v886_v28, %v14703_v14  ;;  %v1019_v56 = vmul.f32 %v14983_v12, %v18353_v1  ;;  %v770_v36 = vmul.f32 %v14712_v20, %v15173_v26 }
 0x265   : > { %v848_v16 = vmul.f32 %v14728_v35, %v15176_v10  ;;  %v957_v39 = vadd.f32 %v941_v23, %v867_v40  ;;  %v1109_v33 = vmul.f32 %v14995_v9, %v14931_v60  ;;  %v959_v29 = vadd.f32 %v943_v58, %v869_v27 }
 0x266   : > { %v1021_v28 = vmul.f32 %v14983_v12, %v14991_v11  ;;  %v1287_v42 = vadd.f32 %v15069_v63, %v1197_v13  ;;  %v1124_v41 = vadd.f32 %v1108_v25, %v1034_v18  ;;  %v1187_v32 = vmul.f32 %v15000_v48, %v14948_v45  ;;  %v15222_v11 = vld [vmem:[%s18020_s7 + $0x10] sm:$0x88] }
 0x267   : > { %v15215_v23 = vrot.slane %v1054_v53, %v14743_v43  ;;  %v1036_v40 = vadd.f32 %v1020_v34, %v958_v44  ;;  %v952_v60 = vadd.f32 %v936_v57, %v862_v6  ;;  %v1014_v27 = vmul.f32 %v14799_v24, %v15191_v5  ;;  %v18365_v12 = vld [vmem:[#allocation57_spill] sm:$0xff] }
 0x268   : > { %v719_v58 = vunpack.c.h.bf16 %v15034_v21  ;;  %v864_v13 = vadd.f32 %v848_v16, %v770_v36  ;;  %v938_v18 = vmul.f32 %v14746_v47, %v15200_v8  ;;  %v15228_v45 = vrot.slane %v888_v37, %v14703_v14 }
 0x269   : > { %18354 = vst [vmem:[#allocation44_spill] sm:$0xff] %v15215_v23  ;;  %v1056_v25 = vunpack.c.l.bf16 %v15209_v15  ;;  %v1035_v6 = vadd.f32 %v1019_v56, %v957_v39  ;;  %v1277_v63 = vmul.f32 %v15013_v7, %v14975_v3  ;;  %v1037_v34 = vadd.f32 %v1021_v28, %v959_v29  ;;  %v15248_v3 = vld [vmem:[%s18020_s7 + $0x18] sm:$0x88] }
 0x26a   : > { %18355 = vst [vmem:[#allocation45_spill] sm:$0xff] %v15228_v45  ;;  %v1111_v49 = vmul.f32 %v14995_v9, %v15018_v0  ;;  %v15237_v21 = vmul.f32 %v15015_v59, %v15010_v51  ;;  %v1104_v44 = vmul.f32 %v14822_v46, %v15215_v23  ;;  %v15242_v37 = vrot.slane %v1054_v53, %v14749_v62  ;;  %v18364_v23 = vld [vmem:[#allocation34_spill] sm:$0xff] }
 0x26b   : > { %v1222_v57 = vunpack.c.l.bf16 %v15222_v11  ;;  %v1030_v1 = vadd.f32 %v1014_v27, %v952_v60  ;;  %v15251_v0 = vrot.slane %v719_v58, %v18314_v4  ;;  %v15254_v51 = vrot.slane %v719_v58, %v18321_v61 }
 0x26c   : > { %18356 = vst [vmem:[#allocation55_spill] sm:$0xff] %v15242_v37  ;;  %v887_v56 = vunpack.c.h.bf16 %v15078_v31  ;;  %v1126_v36 = vadd.f32 %v1110_v54, %v1036_v40  ;;  %v954_v16 = vadd.f32 %v938_v18, %v864_v13  ;;  %v1016_v53 = vmul.f32 %v14799_v24, %v15228_v45  ;;  %v18358_v31 = vld [vmem:[#allocation49_spill] sm:$0xff]  ;;  %v18359_v40 = vld [vmem:[#allocation43_spill] sm:$0xff] }
 0x26d   : > { %v15260_v39 = vrot.slane %v1056_v25, %v14743_v43  ;;  %v15263_v29 = vadd.f32 %v15073_v38, %v1287_v42  ;;  %v1125_v28 = vadd.f32 %v1109_v33, %v1035_v6  ;;  %v1127_v60 = vadd.f32 %v1111_v49, %v1037_v34 }
 0x26e   : > { %v1189_v27 = vmul.f32 %v15000_v48, %v15021_v17  ;;  %v1202_v58 = vadd.f32 %v15092_v30, %v1124_v41  ;;  %v1182_v54 = vmul.f32 %v18358_v31, %v15242_v37  ;;  %v15271_v13 = vrot.slane %v1222_v57, %v18359_v40  ;;  %v18361_v17 = vld [vmem:[#allocation39_spill] sm:$0xff] }
 0x26f   : > { %18357 = vst [vmem:[#allocation48_spill] sm:$0xff] %v15263_v29  ;;  %v1224_v18 = vunpack.c.l.bf16 %v15248_v3  ;;  %v1120_v9 = vadd.f32 %v1104_v44, %v1030_v1  ;;  %v769_v38 = vmul.f32 %v14712_v20, %v15251_v0  ;;  %v847_v33 = vmul.f32 %v14728_v35, %v15254_v51  ;;  %v18362_v1 = vld [vmem:[#allocation65_spill] sm:$0xff]  ;;  %v18363_v37 = vld [vmem:[#allocation47_spill] sm:$0xff] }
 0x270   : > { %18360 = vst [vmem:[#allocation53_spill] sm:$0xff] %v15271_v13  ;;  %v15279_v42 = vrot.slane %v887_v56, %v14686_v2  ;;  %v1204_v30 = vadd.f32 %v18361_v17, %v1126_v36  ;;  %v1032_v41 = vadd.f32 %v1016_v53, %v954_v16  ;;  %v1106_v6 = vmul.f32 %v14822_v46, %v15260_v39 }
 0x271   : > { %v15285_v34 = vrot.slane %v1056_v25, %v14749_v62  ;;  %v1203_v49 = vadd.f32 %v1187_v32, %v1125_v28  ;;  %v1205_v44 = vadd.f32 %v1189_v27, %v1127_v60  ;;  %v1279_v48 = vmul.f32 %v15013_v7, %v18362_v1  ;;  %v18369_v7 = vld [vmem:[#allocation42_spill] sm:$0xff] }
 0x272   : > { %v15290_v29 = vrot.slane %v1222_v57, %v18363_v37  ;;  %v1292_v45 = vadd.f32 %v18364_v23, %v1202_v58  ;;  %v1272_v36 = vmul.f32 %v18365_v12, %v15271_v13  ;;  %v15296_v16 = vrot.slane %v1224_v18, %v18359_v40  ;;  %v18367_v57 = vld [vmem:[#allocation66_spill] sm:$0xff]  ;;  %v18368_v58 = vld [vmem:[#allocation33_spill] sm:$0xff] }
 0x273   : > { %v1055_v53 = vunpack.c.h.bf16 %v15166_v19  ;;  %v1198_v25 = vadd.f32 %v1182_v54, %v1120_v9  ;;  %v863_v17 = vadd.f32 %v847_v33, %v769_v38  ;;  %v937_v32 = vmul.f32 %v14746_v47, %v15279_v42  ;;  %v18370_v54 = vld [vmem:[#allocation58_spill] sm:$0xff] }
 0x274   : > { %18366 = vst [vmem:[#allocation49_spill] sm:$0xff] %v15296_v16  ;;  %v15302_v28 = vrot.slane %v887_v56, %v14703_v14  ;;  %v1357_v60 = vmul.f32 %v15015_v59, %v18367_v57  ;;  %v1122_v23 = vadd.f32 %v1106_v6, %v1032_v41  ;;  %v1184_v27 = vmul.f32 %v18358_v31, %v15285_v34 }
 0x275   : > { %v721_v1 = vunpack.c.h.bf16 %v18368_v58  ;;  %v1294_v13 = vadd.f32 %v18369_v7, %v1204_v30  ;;  %v1293_v19 = vadd.f32 %v1277_v63, %v1203_v49  ;;  %v1295_v9 = vadd.f32 %v1279_v48, %v1205_v44  ;;  %v18371_v44 = vld [vmem:[#allocation76_spill] sm:$0xff] }
 0x276   : > { %v1350_v38 = vmul.f32 %v18370_v54, %v15290_v29  ;;  %v1274_v56 = vmul.f32 %v18365_v12, %v15296_v16  ;;  %v15315_v33 = vrot.slane %v1224_v18, %v18363_v37  ;;  %v15318_v41 = vrot.slane %v1055_v53, %v14743_v43 }
 0x277   : > { %v1223_v6 = vunpack.c.h.bf16 %v15222_v11  ;;  %v1288_v57 = vadd.f32 %v1272_v36, %v1198_v25  ;;  %v953_v58 = vadd.f32 %v937_v32, %v863_v17  ;;  %v1015_v7 = vmul.f32 %v14799_v24, %v15302_v28 }
 0x278   : > { %v15324_v48 = vrot.slane %v1055_v53, %v14749_v62  ;;  %v1200_v63 = vadd.f32 %v1184_v27, %v1122_v23  ;;  %v763_v30 = vrot.slane %v721_v1, %v18314_v4  ;;  %v841_v49 = vrot.slane %v721_v1, %v18321_v61 }
 0x279   : > { %v889_v18 = vunpack.c.h.bf16 %v15146_v52  ;;  %v15330_v16 = vadd.f32 %v18371_v44, %v1292_v45  ;;  %v15333_v11 = vadd.f32 %v15185_v50, %v1294_v13  ;;  %v15336_v36 = vadd.f32 %v15237_v21, %v1293_v19  ;;  %v18374_v50 = vld [vmem:[#allocation63_spill] sm:$0xff] }
 0x27a   : > { %v15338_v25 = vadd.f32 %v1357_v60, %v1295_v9  ;;  %v1352_v53 = vmul.f32 %v18370_v54, %v15315_v33  ;;  %v1105_v17 = vmul.f32 %v14822_v46, %v15318_v41  ;;  %v15345_v32 = vrot.slane %v1223_v6, %v18359_v40  ;;  %v18376_v9 = vld [vmem:[#allocation74_spill] sm:$0xff] }
 0x27b   : > { %v15348_v52 = vrot.slane %v1223_v6, %v18363_v37  ;;  %v15350_v45 = vadd.f32 %v1350_v38, %v1288_v57  ;;  %v15354_v21 = vrot.slane %v18374_v50, %v14743_v43  ;;  %v1031_v13 = vadd.f32 %v1015_v7, %v953_v58  ;;  %v18377_v6 = vld [vmem:[#allocation56_spill] sm:$0xff]  ;;  %v18378_v38 = vld [vmem:[#allocation75_spill] sm:$0xff] }
 0x27c   : > { %v1183_v60 = vmul.f32 %v18358_v31, %v15324_v48  ;;  %v1290_v23 = vadd.f32 %v1274_v56, %v1200_v63  ;;  %v771_v27 = vmul.f32 %v14712_v20, %v763_v30  ;;  %v849_v1 = vmul.f32 %v14728_v35, %v841_v49  ;;  %v18379_v57 = vld [vmem:[#allocation59_spill] sm:$0xff] }
 0x27d   : > { %18372 = vst [vmem:[#allocation43_spill] sm:$0xff] %v15348_v52  ;;  %18373 = vst [vmem:[#allocation39_spill] sm:$0xff] %v15350_v45  ;;  %v931_v19 = vrot.slane %v889_v18, %v14686_v2  ;;  %v776_v44 = vmul.f32 %v18377_v6, %v18376_v9  ;;  %v854_v61 = vmul.f32 %v18379_v57, %v18378_v38  ;;  %v1057_v7 = vunpack.c.h.bf16 %v15209_v15 }
 0x27e   : > { %18375 = vst [vmem:[#allocation65_spill] sm:$0xff] %v15354_v21  ;;  %v778_v4 = vmul.f32 %v18377_v6, %v15173_v26  ;;  %v856_v58 = vmul.f32 %v18379_v57, %v15176_v10  ;;  %v1273_v56 = vmul.f32 %v18365_v12, %v15345_v32  ;;  %v15373_v20 = vmul.f32 %v18370_v54, %v15348_v52 }
 0x27f   : > { %v1009_v35 = vrot.slane %v889_v18, %v14703_v14  ;;  %v1121_v63 = vadd.f32 %v1105_v17, %v1031_v13  ;;  %v1225_v9 = vunpack.c.h.bf16 %v15248_v3  ;;  %v779_v38 = vmul.f32 %v18377_v6, %v763_v30 }
 0x280   : > { %v857_v26 = vmul.f32 %v18379_v57, %v841_v49  ;;  %v15380_v2 = vadd.f32 %v1352_v53, %v1290_v23  ;;  %v15384_v10 = vrot.slane %v18374_v50, %v18359_v40  ;;  %v865_v21 = vadd.f32 %v849_v1, %v771_v27 }
 0x281   : > { %v939_v45 = vmul.f32 %v14746_v47, %v931_v19  ;;  %v870_v52 = vadd.f32 %v854_v61, %v776_v44  ;;  %v944_v15 = vmul.f32 %v14968_v55, %v15161_v22  ;;  %v872_v18 = vadd.f32 %v856_v58, %v778_v4 }
 0x282   : > { %v946_v3 = vmul.f32 %v14968_v55, %v15200_v8  ;;  %v1099_v30 = vrot.slane %v1057_v7, %v14743_v43  ;;  %v1177_v49 = vrot.slane %v1057_v7, %v14749_v62  ;;  %v777_v53 = vmul.f32 %v18377_v6, %v15251_v0  ;;  %v18381_v6 = vld [vmem:[#allocation45_spill] sm:$0xff] }
 0x283   : > { %v855_v17 = vmul.f32 %v18379_v57, %v15254_v51  ;;  %v1199_v13 = vadd.f32 %v1183_v60, %v1121_v63  ;;  %v15398_v47 = vrot.slane %v1225_v9, %v18359_v40  ;;  %v873_v61 = vadd.f32 %v857_v26, %v779_v38  ;;  %v18380_v51 = vld [vmem:[#allocation60_spill] sm:$0xff]  ;;  %v18382_v7 = vld [vmem:[#allocation69_spill] sm:$0xff] }
 0x284   : > { %v947_v22 = vmul.f32 %v14968_v55, %v931_v19  ;;  %v15403_v4 = vrot.slane %v18374_v50, %v14749_v62  ;;  %v955_v8 = vadd.f32 %v939_v45, %v865_v21  ;;  %v1017_v23 = vmul.f32 %v14799_v24, %v1009_v35  ;;  %v18383_v63 = vld [vmem:[#allocation72_spill] sm:$0xff]  ;;  %v18385_v26 = vld [vmem:[#allocation61_spill] sm:$0xff] }
 0x285   : > { %v15407_v27 = vrot.slane %v1225_v9, %v18363_v37  ;;  %v960_v0 = vadd.f32 %v944_v15, %v870_v52  ;;  %v1022_v60 = vmul.f32 %v18380_v51, %v15191_v5  ;;  %v962_v1 = vadd.f32 %v946_v3, %v872_v18 }
 0x286   : > { %v1024_v44 = vmul.f32 %v18380_v51, %v18381_v6  ;;  %v1107_v19 = vmul.f32 %v14822_v46, %v1099_v30  ;;  %v1185_v57 = vmul.f32 %v18358_v31, %v1177_v49  ;;  %v871_v58 = vadd.f32 %v855_v17, %v777_v53  ;;  %v18384_v31 = vld [vmem:[#allocation44_spill] sm:$0xff]  ;;  %v18389_v53 = vld [vmem:[#allocation71_spill] sm:$0xff]  ;;  %v18393_v6 = vld [vmem:[#allocation41_spill] sm:$0xff] }
 0x287   : > { %v945_v45 = vmul.f32 %v14968_v55, %v15279_v42  ;;  %v15417_v24 = vadd.f32 %v1273_v56, %v1199_v13  ;;  %v1275_v52 = vmul.f32 %v18365_v12, %v15398_v47  ;;  %v963_v21 = vadd.f32 %v947_v22, %v873_v61  ;;  %v18386_v55 = vld [vmem:[#allocation48_spill] sm:$0xff]  ;;  %v18387_v42 = vld [vmem:[#allocation46_spill] sm:$0xff]  ;;  %v18390_v13 = vld [vmem:[#allocation55_spill] sm:$0xff] }
 0x288   : > { %v1025_v5 = vmul.f32 %v18380_v51, %v1009_v35  ;;  %v3264_v9 = vadd.f32 %v18383_v63, %v18382_v7  ;;  %v1033_v38 = vadd.f32 %v1017_v23, %v955_v8  ;;  %v15426_v46 = vmul.f32 %v18370_v54, %v15407_v27  ;;  %v18388_v35 = vld [vmem:[#allocation67_spill] sm:$0xff]  ;;  %v18391_v61 = vld [vmem:[#allocation62_spill] sm:$0xff]  ;;  %v18392_v23 = vld [vmem:[#allocation36_spill] sm:$0xff] }
 0x289   : > { %v1112_v15 = vmul.f32 %v18385_v26, %v18384_v31  ;;  %v3265_v56 = vadd.f32 %v18387_v42, %v18386_v55  ;;  %v1038_v18 = vadd.f32 %v1022_v60, %v960_v0  ;;  %v1040_v3 = vadd.f32 %v1024_v44, %v962_v1  ;;  %v18394_v63 = vld [vmem:[#allocation53_spill] sm:$0xff]  ;;  %v18395_v31 = vld [vmem:[#allocation64_spill] sm:$0xff] }
 0x28a   : > { %v1114_v12 = vmul.f32 %v18385_v26, %v15260_v39  ;;  %v3262_v17 = vadd.f32 %v18389_v53, %v18388_v35  ;;  %v1190_v22 = vmul.f32 %v18391_v61, %v18390_v13  ;;  %v961_v8 = vadd.f32 %v945_v45, %v871_v58  ;;  %v18396_v39 = vld [vmem:[#allocation70_spill] sm:$0xff]  ;;  %v18397_v45 = vld [vmem:[#allocation31_spill] sm:$0xff] }
 0x28b   : > { %v1023_v54 = vmul.f32 %v18380_v51, %v15302_v28  ;;  %v3263_v7 = vadd.f32 %v18393_v6, %v18392_v23  ;;  %v1280_v0 = vmul.f32 %v18395_v31, %v18394_v63  ;;  %v1041_v60 = vadd.f32 %v1025_v5, %v963_v21  ;;  %v18398_v51 = vld [vmem:[#allocation73_spill] sm:$0xff]  ;;  %v18399_v23 = vld [vmem:[#allocation68_spill] sm:$0xff] }
 0x28c   : > { %v1115_v1 = vmul.f32 %v18385_v26, %v1099_v30  ;;  %v3322_v44 = vadd.f32 %v18396_v39, %v3264_v9  ;;  %v1123_v55 = vadd.f32 %v1107_v19, %v1033_v38  ;;  %v1358_v42 = vmul.f32 %v15015_v59, %v15290_v29  ;;  %v18400_v30 = vld [vmem:[#allocation35_spill] sm:$0xff]  ;;  %v18401_v29 = vld [vmem:[#allocation30_spill] sm:$0xff] }
 0x28d   : > { %v1192_v58 = vmul.f32 %v18391_v61, %v15285_v34  ;;  %v3323_v28 = vadd.f32 %v18397_v45, %v3265_v56  ;;  %v3272_v35 = vadd.f32 %v18398_v51, %v15333_v11  ;;  %v1128_v53 = vadd.f32 %v1112_v15, %v1038_v18  ;;  %v18402_v34 = vld [vmem:[#allocation77_spill] sm:$0xff]  ;;  %v18403_v15 = vld [vmem:[#allocation40_spill] sm:$0xff] }
 0x28e   : > { %v1130_v13 = vadd.f32 %v1114_v12, %v1040_v3  ;;  %v3320_v21 = vadd.f32 %v18399_v23, %v3262_v17  ;;  %v3270_v5 = vadd.f32 %v18400_v30, %v15330_v16  ;;  %v1039_v9 = vadd.f32 %v1023_v54, %v961_v8  ;;  %v18404_v12 = vld [vmem:[#allocation49_spill] sm:$0xff] }
 0x28f   : > { %v1113_v19 = vmul.f32 %v18385_v26, %v15318_v41  ;;  %v3321_v38 = vadd.f32 %v18401_v29, %v3263_v7  ;;  %v3273_v6 = vadd.f32 %v18402_v34, %v15338_v25  ;;  %v1131_v56 = vadd.f32 %v1115_v1, %v1041_v60 }
 0x290   : > { %v1193_v63 = vmul.f32 %v18391_v61, %v1177_v49  ;;  %v3338_v11 = vmul.f32 0.5, %v3322_v44  ;;  %v3271_v18 = vadd.f32 %v18403_v15, %v15336_v36  ;;  %v1201_v3 = vadd.f32 %v1185_v57, %v1123_v55 }
 0x291   : > { %v1282_v16 = vmul.f32 %v18395_v31, %v18404_v12  ;;  %v3339_v17 = vmul.f32 0.5, %v3323_v28  ;;  %v3330_v8 = vadd.f32 %v18396_v39, %v3272_v35  ;;  %v1206_v41 = vadd.f32 %v1190_v22, %v1128_v53 }
 0x292   : > { %v1208_v26 = vadd.f32 %v1192_v58, %v1130_v13  ;;  %v3336_v54 = vmul.f32 0.5, %v3320_v21  ;;  %v3328_v7 = vadd.f32 %v18399_v23, %v3270_v5  ;;  %v1129_v25 = vadd.f32 %v1113_v19, %v1039_v9  ;;  %v18406_v5 = vld [vmem:[#allocation39_spill] sm:$0xff] }
 0x293   : > { %v1191_v49 = vmul.f32 %v18391_v61, %v15324_v48  ;;  %v3337_v60 = vmul.f32 0.5, %v3321_v38  ;;  %v3331_v1 = vadd.f32 %v18397_v45, %v3273_v6  ;;  %v1209_v36 = vadd.f32 %v1193_v63, %v1131_v56 }
 0x294   : > { %v1283_v57 = vmul.f32 %v18395_v31, %v15398_v47  ;;  %13668 = vtanh.f32 %v3338_v11  ;;  %v3329_v44 = vadd.f32 %v18401_v29, %v3271_v18  ;;  %v1291_v39 = vadd.f32 %v1275_v52, %v1201_v3 }
 0x295   : > { %v1360_v22 = vmul.f32 %v15015_v59, %v15315_v33  ;;  %13670 = vtanh.f32 %v3339_v17  ;;  %v3344_v55 = vmul.f32 0.5, %v3330_v8  ;;  %v1296_v58 = vadd.f32 %v1280_v0, %v1206_v41 }
 0x296   : > { %v1298_v28 = vadd.f32 %v1282_v16, %v1208_v26  ;;  %13672 = vtanh.f32 %v3336_v54  ;;  %v3342_v48 = vmul.f32 0.5, %v3328_v7  ;;  %v1207_v61 = vadd.f32 %v1191_v49, %v1129_v25 }
 0x297   : > { %v1281_v45 = vmul.f32 %v18395_v31, %v15345_v32  ;;  %13674 = vtanh.f32 %v3337_v60  ;;  %v3345_v51 = vmul.f32 0.5, %v3331_v1  ;;  %v1299_v47 = vadd.f32 %v1283_v57, %v1209_v36  ;;  %v18405_v31 = vld [vmem:[#allocation43_spill] sm:$0xff] }
 0x298   : > { %v1361_v35 = vmul.f32 %v15015_v59, %v15407_v27  ;;  %v3343_v52 = vmul.f32 0.5, %v3329_v44  ;;  %v1367_v33 = vadd.f32 %v15373_v20, %v15417_v24  ;;  %v1369_v53 = vadd.f32 %v15426_v46, %v1291_v39 }
 0x299   : > { %v3311_v0 = vrot.slane %v18374_v50, %v18363_v37  ;;  %13676 = vtanh.f32 %v3344_v55  ;;  %v1374_v21 = vadd.f32 %v1358_v42, %v1296_v58  ;;  %v1376_v32 = vadd.f32 %v1360_v22, %v1298_v28  ;;  %v18407_v42 = vld [vmem:[#allocation65_spill] sm:$0xff] }
 0x29a   : > { %v1359_v30 = vmul.f32 %v15015_v59, %v18405_v31  ;;  %13678 = vtanh.f32 %v3342_v48  ;;  %v1297_v24 = vadd.f32 %v1281_v45, %v1207_v61  ;;  %v1377_v34 = vadd.f32 %v1361_v35, %v1299_v47  ;;  %v582_v48 = vld [vmem:[#allocation3] sm:$0xff]  ;;  %v583_v35 = vld [vmem:[#allocation3 + $0x8] sm:$0xff] }
 0x29b   : > { %v3210_v13 = vpop.f32.mrb[4].mxu1  ;;  %v3253_v23 = vpop.f32.mrb[8].mxu0  ;;  %13680 = vtanh.f32 %v3345_v51 }
 0x29c   : > { %v3266_v27 = vadd.f32 %v3210_v13, %v18406_v5  ;;  %v3268_v9 = vadd.f32 %v3253_v23, %v15380_v2  ;;  %v3212_v19 = vpop.f32.mrb[5].mxu1  ;;  %v3255_v20 = vpop.f32.mrb[9].mxu0  ;;  %13682 = vtanh.f32 %v3343_v52  ;;  %v1375_v16 = vadd.f32 %v1359_v30, %v1297_v24 }
 0x29d   : > { %v3267_v46 = vadd.f32 %v3212_v19, %v1367_v33  ;;  %v3269_v29 = vadd.f32 %v3255_v20, %v1369_v53  ;;  %v3214_v50 = vpop.f32.mrb[6].mxu1  ;;  %v3257_v38 = vpop.f32.mrb[10].mxu0 }
 0x29e   : > { %v3324_v6 = vadd.f32 %v18407_v42, %v3266_v27  ;;  %v3326_v56 = vadd.f32 %v15384_v10, %v3268_v9  ;;  %v3276_v59 = vadd.f32 %v3257_v38, %v1376_v32  ;;  %v3216_v63 = vpop.f32.mrb[7].mxu1  ;;  %v3259_v11 = vpop.f32.mrb[11].mxu0  ;;  %v3274_v12 = vadd.f32 %v3214_v50, %v1374_v21  ;;  %v584_v27 = vld [vmem:[#allocation3 + $0x10] sm:$0xff] }
 0x29f   : > { %v3327_v15 = vadd.f32 %v3311_v0, %v3269_v29  ;;  %v3277_v18 = vadd.f32 %v3259_v11, %v1377_v34  ;;  %v13669_v2 = vpop.eup %13668  ;;  %v3325_v3 = vadd.f32 %v15403_v4, %v3267_v46  ;;  %v3275_v54 = vadd.f32 %v3216_v63, %v1375_v16  ;;  %v585_v29 = vld [vmem:[#allocation3 + $0x18] sm:$0xff] }
 0x2a0   : > { %13684 = vtanh.f32 %v3326_v56  ;;  %v13671_v17 = vpop.eup %13670  ;;  %v3334_v8 = vadd.f32 %v15384_v10, %v3276_v59  ;;  %v3340_v26 = vmul.f32 0.5, %v3324_v6  ;;  %v3362_v25 = vadd.f32 1.0, %v13669_v2 }
 0x2a1   : > { %13686 = vtanh.f32 %v3327_v15  ;;  %v13673_v41 = vpop.eup %13672  ;;  %v3335_v49 = vadd.f32 %v3311_v0, %v3277_v18  ;;  %v3363_v60 = vadd.f32 1.0, %v13671_v17  ;;  %v3341_v1 = vmul.f32 0.5, %v3325_v3 }
 0x2a2   : > { %v13675_v7 = vpop.eup %13674  ;;  %v3332_v36 = vadd.f32 %v18407_v42, %v3274_v12  ;;  %v3360_v44 = vadd.f32 1.0, %v13673_v41  ;;  %13688 = vtanh.f32 %v3334_v8  ;;  %v3333_v55 = vadd.f32 %v15403_v4, %v3275_v54  ;;  %v3427_v12 = vld [vmem:[%s18018_s5] sm:$0x3]  ;;  %v18409_v54 = vld [vmem:[#allocation28_spill] sm:$0xff] }
 0x2a3   : > { %v13677_v57 = vpop.eup %13676  ;;  %v3361_v22 = vadd.f32 1.0, %v13675_v7  ;;  %13690 = vtanh.f32 %v3340_v26  ;;  %v3374_v10 = vmul.f32 0.5, %v3362_v25  ;;  %v3375_v61 = vmul.f32 0.5, %v3363_v60  ;;  %v18408_v41 = vld [vmem:[#allocation27_spill] sm:$0xff] }
 0x2a4   : > { %v13679_v39 = vpop.eup %13678  ;;  %13692 = vtanh.f32 %v3335_v49  ;;  %v3368_v45 = vadd.f32 1.0, %v13677_v57  ;;  %v3346_v51 = vmul.f32 0.5, %v3332_v36  ;;  %v3372_v47 = vmul.f32 0.5, %v3360_v44 }
 0x2a5   : > { %v13681_v58 = vpop.eup %13680  ;;  %13694 = vtanh.f32 %v3341_v1  ;;  %v3373_v33 = vmul.f32 0.5, %v3361_v22  ;;  %v3366_v53 = vadd.f32 1.0, %v13679_v39  ;;  %v3347_v13 = vmul.f32 0.5, %v3333_v55 }
 0x2a6   : > { %v13683_v28 = vpop.eup %13682  ;;  %v3369_v0 = vadd.f32 1.0, %v13681_v58  ;;  %v3388_v21 = vmul.f32 %v3374_v10, %v582_v48  ;;  %v3389_v31 = vmul.f32 %v3375_v61, %v583_v35  ;;  %v3380_v30 = vmul.f32 0.5, %v3368_v45 }
 0x2a7   : > { %v3367_v4 = vadd.f32 1.0, %v13683_v28  ;;  %13696 = vtanh.f32 %v3346_v51  ;;  %v3378_v19 = vmul.f32 0.5, %v3366_v53  ;;  %v3432_v26 = vrot.slane %v3427_v12, %v18408_v41 }
 0x2a8   : > { %v3381_v20 = vmul.f32 0.5, %v3369_v0  ;;  %13698 = vtanh.f32 %v3347_v13  ;;  %v3390_v38 = vmul.f32 %v3380_v30, %v584_v27  ;;  %v3436_v7 = vrot.slane %v3427_v12, %v18409_v54  ;;  %v4352_v30 = vld [vmem:[#allocation10 + $0x58] sm:$0xff] }
 0x2a9   : > { %v3379_v34 = vmul.f32 0.5, %v3367_v4  ;;  %v4372_v12 = vld [vmem:[#allocation10 + $0xf8] sm:$0xff] }
 0x2aa   : > { %v13685_v52 = vpop.eup %13684  ;;  %v3391_v59 = vmul.f32 %v3381_v20, %v585_v29  ;;  %v4364_v29 = vld [vmem:[#allocation10 + $0xb8] sm:$0xff] }
 0x2ab   : > { %v13687_v23 = vpop.eup %13686  ;;  %v3392_v32 = vmul.f32 %v13685_v52, %v3372_v47  ;;  %v3521_v16 = vpop.f32.mrb[8].mxu1 }
 0x2ac   : > { %v3393_v5 = vmul.f32 %v13687_v23, %v3373_v33  ;;  %v13689_v46 = vpop.eup %13688  ;;  %v3523_v25 = vpop.f32.mrb[9].mxu1  ;;  %v3522_v39 = vadd.f32 %v3521_v16, %v3432_v26 }
 0x2ad   : > { %v3396_v9 = vadd.f32 %v3392_v32, %v3388_v21  ;;  %v13691_v50 = vpop.eup %13690  ;;  %v3394_v42 = vmul.f32 %v13689_v46, %v3378_v19  ;;  %v3525_v36 = vpop.f32.mrb[10].mxu1  ;;  %v3524_v22 = vadd.f32 %v3523_v25, %v3436_v7  ;;  %v4351_v32 = vld [vmem:[#allocation10 + $0x50] sm:$0xff]  ;;  %v4360_v46 = vld [vmem:[#allocation10 + $0x98] sm:$0xff] }
 0x2ae   : > { %v3397_v24 = vadd.f32 %v3393_v5, %v3389_v31  ;;  %v13693_v6 = vpop.eup %13692  ;;  %v3364_v15 = vadd.f32 1.0, %v13691_v50  ;;  %v3526_v55 = vadd.f32 %v3525_v36, %v3432_v26  ;;  %v3527_v28 = vpop.f32.mrb[11].mxu1  ;;  %v3530_v48 = vmax.f32 %v3522_v39, 0.0  ;;  %v4355_v31 = vld [vmem:[#allocation10 + $0x70] sm:$0xff]  ;;  %v4356_v5 = vld [vmem:[#allocation10 + $0x78] sm:$0xff] }
 0x2af   : > { %3412 = vst [vmem:[%s14330_s25] sm:$0xff] %v3396_v9  ;;  %13700 = vtanh.f32 %v3396_v9  ;;  %v13695_v56 = vpop.eup %13694  ;;  %v3398_v63 = vadd.f32 %v3394_v42, %v3390_v38  ;;  %v3395_v11 = vmul.f32 %v13693_v6, %v3379_v34  ;;  %v3531_v61 = vmax.f32 %v3524_v22, 0.0  ;;  %v4359_v9 = vld [vmem:[#allocation10 + $0x90] sm:$0xff]  ;;  %v18410_v50 = vld [vmem:[#allocation50_spill] sm:$0xff]  ;;  %v18411_v38 = vld [vmem:[#allocation51_spill] sm:$0xff] }
 0x2b0   : > { %3413 = vst [vmem:[%s14330_s25 + $0x8] sm:$0xff] %v3397_v24  ;;  %13702 = vtanh.f32 %v3397_v24  ;;  %v3365_v2 = vadd.f32 1.0, %v13695_v56  ;;  %v3376_v8 = vmul.f32 0.5, %v3364_v15  ;;  %v3532_v45 = vmax.f32 %v3526_v55, 0.0  ;;  %v4363_v24 = vld [vmem:[#allocation10 + $0xb0] sm:$0xff]  ;;  %v18413_v42 = vld [vmem:[#allocation52_spill] sm:$0xff] }
 0x2b1   : > { %3414 = vst [vmem:[%s14330_s25 + $0x10] sm:$0xff] %v3398_v63  ;;  %v3399_v18 = vadd.f32 %v3395_v11, %v3391_v59  ;;  %13704 = vtanh.f32 %v3398_v63  ;;  %v13697_v3 = vpop.eup %13696  ;;  %v3528_v51 = vadd.f32 %v3527_v28, %v3436_v7  ;;  %v12458_v19 = vcombine.high %v4351_v32, %v4355_v31  ;;  %v18414_v6 = vld [vmem:[#allocation54_spill] sm:$0xff]  ;;  %v4375_v7 = vld [vmem:[#allocation10 + $0x110] sm:$0xff] }
 0x2b2   : > { %v13699_v17 = vpop.eup %13698  ;;  %v3377_v60 = vmul.f32 0.5, %v3365_v2  ;;  %v3370_v1 = vadd.f32 1.0, %v13697_v3  ;;  %v15506_v52 = vpack.c.bf16 %v3532_v45, %v3530_v48  ;;  %v12460_v20 = vcombine.high %v4352_v30, %v4356_v5  ;;  %v4371_v2 = vld [vmem:[#allocation10 + $0xf0] sm:$0xff]  ;;  %v4368_v3 = vld [vmem:[#allocation10 + $0xd8] sm:$0xff] }
 0x2b3   : > { %3415 = vst [vmem:[%s14330_s25 + $0x18] sm:$0xff] %v3399_v18  ;;  %13706 = vtanh.f32 %v3399_v18  ;;  %v3371_v58 = vadd.f32 1.0, %v13699_v17  ;;  %v3533_v33 = vmax.f32 %v3528_v51, 0.0  ;;  %v18412_v34 = vcombine.low %v18410_v50, %v18411_v38  ;;  %v4367_v18 = vld [vmem:[#allocation10 + $0xd0] sm:$0xff]  ;;  %v4384_v55 = vld [vmem:[#allocation10 + $0x158] sm:$0xff] }
 0x2b4   : > { %v3382_v47 = vmul.f32 0.5, %v3370_v1  ;;  %v18415_v56 = vcombine.low %v18413_v42, %v18414_v6  ;;  %v12457_v59 = vcombine.low %v4351_v32, %v4355_v31  ;;  %v12459_v63 = vcombine.low %v4352_v30, %v4356_v5  ;;  %v4379_v25 = vld [vmem:[#allocation10 + $0x130] sm:$0xff]  ;;  %v4400_v31 = vld [vmem:[#allocation10 + $0x1d8] sm:$0xff] }
 0x2b5   : > { %v3383_v53 = vmul.f32 0.5, %v3371_v58  ;;  %v15508_v23 = vpack.c.bf16 %v3533_v33, %v3531_v61  ;;  %v12466_v11 = vcombine.high %v4359_v9, %v4363_v24  ;;  %v12468_v15 = vcombine.high %v4360_v46, %v4364_v29  ;;  %v4383_v39 = vld [vmem:[#allocation10 + $0x150] sm:$0xff]  ;;  %v4388_v58 = vld [vmem:[#allocation10 + $0x178] sm:$0xff] }
 0x2b6   : > { %v12465_v16 = vcombine.low %v4359_v9, %v4363_v24  ;;  %v12467_v17 = vcombine.low %v4360_v46, %v4364_v29  ;;  %v12476_v26 = vcombine.high %v4368_v3, %v4372_v12  ;;  %v12473_v1 = vcombine.low %v4367_v18, %v4371_v2  ;;  %v4387_v22 = vld [vmem:[#allocation10 + $0x170] sm:$0xff]  ;;  %v4404_v30 = vld [vmem:[#allocation10 + $0x1f8] sm:$0xff] }
 0x2b7   : > { %v12475_v36 = vcombine.low %v4368_v3, %v4372_v12  ;;  %v12490_v48 = vcombine.high %v4383_v39, %v4387_v22  ;;  %v12492_v61 = vcombine.high %v4384_v55, %v4388_v58  ;;  %v4391_v45 = vld [vmem:[#allocation10 + $0x190] sm:$0xff]  ;;  %v12489_v33 = vcombine.low %v4383_v39, %v4387_v22  ;;  %v4408_v46 = vld [vmem:[#allocation10 + $0x218] sm:$0xff] }
 0x2b8   : > { %v4395_v51 = vld [vmem:[#allocation10 + $0x1b0] sm:$0xff]  ;;  %v4412_v29 = vld [vmem:[#allocation10 + $0x238] sm:$0xff]  ;;  %v12507_v38 = vcombine.low %v4400_v31, %v4404_v30 }
 0x2b9   : > { %v13701_v49 = vpop.eup %13700  ;;  %v4403_v32 = vld [vmem:[#allocation10 + $0x1f0] sm:$0xff]  ;;  %v12497_v5 = vcombine.low %v4391_v45, %v4395_v51  ;;  %v12516_v42 = vcombine.high %v4408_v46, %v4412_v29 }
 0x2ba   : > { %v13703_v57 = vpop.eup %13702  ;;  %v3404_v44 = vmul.f32 %v13701_v49, %v3376_v8  ;;  %v12474_v8 = vcombine.high %v4367_v18, %v4371_v2  ;;  %v4376_v49 = vld [vmem:[#allocation10 + $0x118] sm:$0xff]  ;;  %v4411_v24 = vld [vmem:[#allocation10 + $0x230] sm:$0xff] }
 0x2bb   : > { %v3405_v10 = vmul.f32 %v13703_v57, %v3377_v60  ;;  %v13705_v35 = vpop.eup %13704  ;;  %v4380_v60 = vld [vmem:[#allocation10 + $0x138] sm:$0xff]  ;;  %v12482_v57 = vcombine.high %v4375_v7, %v4379_v25  ;;  %v4415_v6 = vld [vmem:[#allocation10 + $0x250] sm:$0xff] }
 0x2bc   : > { %3408 = vst [vmem:[%s14328_s23] sm:$0xff] %v3404_v44  ;;  %v3406_v0 = vmul.f32 %v13705_v35, %v3382_v47  ;;  %v12483_v28 = vcombine.low %v4376_v49, %v4380_v60  ;;  %v4392_v47 = vld [vmem:[#allocation10 + $0x198] sm:$0xff]  ;;  %v4423_v3 = vld [vmem:[#allocation10 + $0x290] sm:$0xff] }
 0x2bd   : > { %3409 = vst [vmem:[%s14328_s23 + $0x8] sm:$0xff] %v3405_v10  ;;  %v13707_v13 = vpop.eup %13706  ;;  %v4396_v35 = vld [vmem:[#allocation10 + $0x1b8] sm:$0xff]  ;;  %v4427_v12 = vld [vmem:[#allocation10 + $0x2b0] sm:$0xff] }
 0x2be   : > { %v3407_v21 = vmul.f32 %v13707_v13, %v3383_v53  ;;  %3410 = vst [vmem:[%s14328_s23 + $0x10] sm:$0xff] %v3406_v0  ;;  %v15511_v4 = vpack.c.bf16 %v3406_v0, %v3404_v44  ;;  %v12484_v44 = vcombine.high %v4376_v49, %v4380_v60  ;;  %v12491_v53 = vcombine.low %v4384_v55, %v4388_v58  ;;  %v4431_v49 = vld [vmem:[#allocation10 + $0x2d0] sm:$0xff] }
 0x2bf   : > { %v12498_v0 = vcombine.high %v4391_v45, %v4395_v51  ;;  %v12500_v13 = vcombine.high %v4392_v47, %v4396_v35  ;;  %v4435_v60 = vld [vmem:[#allocation10 + $0x2f0] sm:$0xff] }
 0x2c0   : > { %3411 = vst [vmem:[%s14328_s23 + $0x18] sm:$0xff] %v3407_v21  ;;  %v4340_v27 = vpack.c.bf16 %v3407_v21, %v3405_v10  ;;  %v12481_v10 = vcombine.low %v4375_v7, %v4379_v25  ;;  %v4399_v21 = vld [vmem:[#allocation10 + $0x1d0] sm:$0xff]  ;;  %v12530_v7 = vcombine.high %v4423_v3, %v4427_v12  ;;  %v12538_v39 = vcombine.high %v4431_v49, %v4435_v60 }
 0x2c1   : > { %v12506_v9 = vcombine.high %v4399_v21, %v4403_v32  ;;  %v12505_v50 = vcombine.low %v4399_v21, %v4403_v32  ;;  %v4439_v55 = vld [vmem:[#allocation10 + $0x310] sm:$0xff] }
 0x2c2   : > { %5141 = vmatprep.mubr.bf16.mxu0 %v4340_v27  ;;  %5184 = vmatprep.mubr.bf16.mxu1 %v4340_v27  ;;  %v4443_v58 = vld [vmem:[#allocation10 + $0x330] sm:$0xff] }
 0x2c3   : > { %5142 = vmatmul.mubr.bf16.vlgmr.msra.gmra.mrb[12].mxu0 %v15511_v4  ;;  %5185 = vmatmul.mubr.bf16.vlgmr.msra.gmra.mrb[12].mxu1 %v15511_v4  ;;  %v12546_v45 = vcombine.high %v4439_v55, %v4443_v58 }
 0x2c4   : > { %5196 = vmatpush1.bf16.msra.mxu0 %v18412_v34  ;;  %5239 = vmatpush1.bf16.msra.mxu1 %v18415_v56  ;;  %v4419_v56 = vld [vmem:[#allocation10 + $0x270] sm:$0xff] }
 0x2c5   : > { %5227 = vmatprep.mubr.bf16.mxu0 %v4340_v27  ;;  %5270 = vmatprep.mubr.bf16.mxu1 %v4340_v27  ;;  %v12499_v27 = vcombine.low %v4392_v47, %v4396_v35  ;;  %v12522_v18 = vcombine.high %v4415_v6, %v4419_v56  ;;  %v4447_v47 = vld [vmem:[#allocation10 + $0x350] sm:$0xff] }
 0x2c6   : > { %5197 = vmatprep.subr.bf16.mxu0 %v12458_v19  ;;  %5240 = vmatprep.subr.bf16.mxu1 %v12460_v20  ;;  %v12508_v19 = vcombine.high %v4400_v31, %v4404_v30  ;;  %v4407_v20 = vld [vmem:[#allocation10 + $0x210] sm:$0xff] }
 0x2c7   : > { %v12514_v34 = vcombine.high %v4407_v20, %v4411_v24  ;;  %v4451_v35 = vld [vmem:[#allocation10 + $0x370] sm:$0xff] }
 0x2c8   : > { %5198 = vmatpush1.bf16.msra.mxu0 %v12457_v59  ;;  %5241 = vmatpush1.bf16.msra.mxu1 %v12459_v63  ;;  %v4416_v59 = vld [vmem:[#allocation10 + $0x258] sm:$0xff]  ;;  %v12554_v21 = vcombine.high %v4447_v47, %v4451_v35  ;;  %v4455_v31 = vld [vmem:[#allocation10 + $0x390] sm:$0xff] }
 0x2c9   : > { %5199 = vmatprep.subr.bf16.mxu0 %v12466_v11  ;;  %5242 = vmatprep.subr.bf16.mxu1 %v12468_v15  ;;  %v4420_v63 = vld [vmem:[#allocation10 + $0x278] sm:$0xff]  ;;  %v12513_v11 = vcombine.low %v4407_v20, %v4411_v24  ;;  %v12515_v15 = vcombine.low %v4408_v46, %v4412_v29  ;;  %v4459_v30 = vld [vmem:[#allocation10 + $0x3b0] sm:$0xff] }
 0x2ca   : > { %v12524_v2 = vcombine.high %v4416_v59, %v4420_v63  ;;  %v12562_v20 = vcombine.high %v4455_v31, %v4459_v30  ;;  %v4463_v46 = vld [vmem:[#allocation10 + $0x3d0] sm:$0xff] }
 0x2cb   : > { %v4467_v29 = vld [vmem:[#allocation10 + $0x3f0] sm:$0xff] }
 0x2cc   : > { %5200 = vmatpush1.bf16.msra.mxu0 %v12465_v16  ;;  %5243 = vmatpush1.bf16.msra.mxu1 %v12467_v17  ;;  %v4424_v16 = vld [vmem:[#allocation10 + $0x298] sm:$0xff] }
 0x2cd   : > { %5201 = vmatprep.subr.bf16.mxu0 %v12474_v8  ;;  %5244 = vmatprep.subr.bf16.mxu1 %v12476_v26  ;;  %v4428_v17 = vld [vmem:[#allocation10 + $0x2b8] sm:$0xff]  ;;  %v12521_v8 = vcombine.low %v4415_v6, %v4419_v56  ;;  %v12523_v26 = vcombine.low %v4416_v59, %v4420_v63  ;;  %v12570_v6 = vcombine.high %v4463_v46, %v4467_v29  ;;  %v4211_v59 = vld [vmem:[#allocation9] sm:$0xff] }
 0x2ce   : > { %v12532_v25 = vcombine.high %v4424_v16, %v4428_v17  ;;  %v4215_v63 = vld [vmem:[#allocation9 + $0x20] sm:$0xff] }
 0x2d0   : > { %5202 = vmatpush1.bf16.msra.mxu0 %v12473_v1  ;;  %5245 = vmatpush1.bf16.msra.mxu1 %v12475_v36  ;;  %v4432_v1 = vld [vmem:[#allocation10 + $0x2d8] sm:$0xff] }
 0x2d1   : > { %5203 = vmatprep.subr.bf16.mxu0 %v12482_v57  ;;  %5246 = vmatprep.subr.bf16.mxu1 %v12484_v44  ;;  %v4436_v36 = vld [vmem:[#allocation10 + $0x2f8] sm:$0xff]  ;;  %v12529_v57 = vcombine.low %v4423_v3, %v4427_v12  ;;  %v12531_v44 = vcombine.low %v4424_v16, %v4428_v17  ;;  %v12574_v3 = vcombine.high %v4211_v59, %v4215_v63  ;;  %v4219_v16 = vld [vmem:[#allocation9 + $0x40] sm:$0xff] }
 0x2d2   : > { %v12540_v22 = vcombine.high %v4432_v1, %v4436_v36  ;;  %v4223_v17 = vld [vmem:[#allocation9 + $0x60] sm:$0xff] }
 0x2d4   : > { %5204 = vmatpush1.bf16.msra.mxu0 %v12481_v10  ;;  %5247 = vmatpush1.bf16.msra.mxu1 %v12483_v28  ;;  %v4440_v10 = vld [vmem:[#allocation10 + $0x318] sm:$0xff] }
 0x2d5   : > { %5205 = vmatprep.subr.bf16.mxu0 %v12490_v48  ;;  %5248 = vmatprep.subr.bf16.mxu1 %v12492_v61  ;;  %v4444_v28 = vld [vmem:[#allocation10 + $0x338] sm:$0xff]  ;;  %v12537_v48 = vcombine.low %v4431_v49, %v4435_v60  ;;  %v12539_v61 = vcombine.low %v4432_v1, %v4436_v36  ;;  %v12582_v49 = vcombine.high %v4219_v16, %v4223_v17  ;;  %v4227_v1 = vld [vmem:[#allocation9 + $0x80] sm:$0xff] }
 0x2d6   : > { %v12548_v51 = vcombine.high %v4440_v10, %v4444_v28  ;;  %v4231_v36 = vld [vmem:[#allocation9 + $0xa0] sm:$0xff] }
 0x2d8   : > { %5206 = vmatpush1.bf16.msra.mxu0 %v12489_v33  ;;  %5249 = vmatpush1.bf16.msra.mxu1 %v12491_v53  ;;  %v4448_v33 = vld [vmem:[#allocation10 + $0x358] sm:$0xff] }
 0x2d9   : > { %5207 = vmatprep.subr.bf16.mxu0 %v12498_v0  ;;  %5250 = vmatprep.subr.bf16.mxu1 %v12500_v13  ;;  %v4452_v53 = vld [vmem:[#allocation10 + $0x378] sm:$0xff]  ;;  %v12545_v0 = vcombine.low %v4439_v55, %v4443_v58  ;;  %v12547_v13 = vcombine.low %v4440_v10, %v4444_v28  ;;  %v12590_v55 = vcombine.high %v4227_v1, %v4231_v36  ;;  %v4235_v10 = vld [vmem:[#allocation9 + $0xc0] sm:$0xff] }
 0x2da   : > { %v12556_v32 = vcombine.high %v4448_v33, %v4452_v53  ;;  %v4239_v28 = vld [vmem:[#allocation9 + $0xe0] sm:$0xff] }
 0x2dc   : > { %5208 = vmatpush1.bf16.msra.mxu0 %v12497_v5  ;;  %5251 = vmatpush1.bf16.msra.mxu1 %v12499_v27  ;;  %v4456_v5 = vld [vmem:[#allocation10 + $0x398] sm:$0xff] }
 0x2dd   : > { %5209 = vmatprep.subr.bf16.mxu0 %v12506_v9  ;;  %5252 = vmatprep.subr.bf16.mxu1 %v12508_v19  ;;  %v4460_v27 = vld [vmem:[#allocation10 + $0x3b8] sm:$0xff]  ;;  %v12553_v9 = vcombine.low %v4447_v47, %v4451_v35  ;;  %v12555_v19 = vcombine.low %v4448_v33, %v4452_v53  ;;  %v4243_v35 = vld [vmem:[#allocation9 + $0x100] sm:$0xff]  ;;  %v4244_v53 = vld [vmem:[#allocation9 + $0x108] sm:$0xff] }
 0x2de   : > { %v12564_v24 = vcombine.high %v4456_v5, %v4460_v27  ;;  %v4247_v33 = vld [vmem:[#allocation9 + $0x120] sm:$0xff] }
 0x2e0   : > { %5210 = vmatpush1.bf16.msra.mxu0 %v12505_v50  ;;  %5253 = vmatpush1.bf16.msra.mxu1 %v12507_v38  ;;  %v4464_v50 = vld [vmem:[#allocation10 + $0x3d8] sm:$0xff] }
 0x2e1   : > { %5211 = vmatprep.subr.bf16.mxu0 %v12514_v34  ;;  %5254 = vmatprep.subr.bf16.mxu1 %v12516_v42  ;;  %v4468_v38 = vld [vmem:[#allocation10 + $0x3f8] sm:$0xff]  ;;  %v12561_v34 = vcombine.low %v4455_v31, %v4459_v30  ;;  %v12563_v42 = vcombine.low %v4456_v5, %v4460_v27  ;;  %v4251_v30 = vld [vmem:[#allocation9 + $0x140] sm:$0xff]  ;;  %v4252_v27 = vld [vmem:[#allocation9 + $0x148] sm:$0xff] }
 0x2e2   : > { %v12572_v56 = vcombine.high %v4464_v50, %v4468_v38  ;;  %v4255_v5 = vld [vmem:[#allocation9 + $0x160] sm:$0xff] }
 0x2e4   : > { %5212 = vmatpush1.bf16.msra.mxu0 %v12513_v11  ;;  %5255 = vmatpush1.bf16.msra.mxu1 %v12515_v15  ;;  %v4212_v11 = vld [vmem:[#allocation9 + $0x8] sm:$0xff] }
 0x2e5   : > { %5213 = vmatprep.subr.bf16.mxu0 %v12522_v18  ;;  %5256 = vmatprep.subr.bf16.mxu1 %v12524_v2  ;;  %v4216_v15 = vld [vmem:[#allocation9 + $0x28] sm:$0xff]  ;;  %v12569_v18 = vcombine.low %v4463_v46, %v4467_v29  ;;  %v12571_v2 = vcombine.low %v4464_v50, %v4468_v38  ;;  %v4259_v29 = vld [vmem:[#allocation9 + $0x180] sm:$0xff] }
 0x2e6   : > { %v12576_v12 = vcombine.high %v4212_v11, %v4216_v15  ;;  %v4263_v50 = vld [vmem:[#allocation9 + $0x1a0] sm:$0xff]  ;;  %v4260_v38 = vld [vmem:[#allocation9 + $0x188] sm:$0xff] }
 0x2e8   : > { %5214 = vmatpush1.bf16.msra.mxu0 %v12521_v8  ;;  %5257 = vmatpush1.bf16.msra.mxu1 %v12523_v26  ;;  %v4220_v8 = vld [vmem:[#allocation9 + $0x48] sm:$0xff] }
 0x2e9   : > { %5215 = vmatprep.subr.bf16.mxu0 %v12530_v7  ;;  %5258 = vmatprep.subr.bf16.mxu1 %v12532_v25  ;;  %v4224_v26 = vld [vmem:[#allocation9 + $0x68] sm:$0xff]  ;;  %v12573_v7 = vcombine.low %v4211_v59, %v4215_v63  ;;  %v12575_v25 = vcombine.low %v4212_v11, %v4216_v15  ;;  %v4267_v63 = vld [vmem:[#allocation9 + $0x1c0] sm:$0xff] }
 0x2ea   : > { %v12584_v60 = vcombine.high %v4220_v8, %v4224_v26  ;;  %v4271_v11 = vld [vmem:[#allocation9 + $0x1e0] sm:$0xff]  ;;  %v4268_v15 = vld [vmem:[#allocation9 + $0x1c8] sm:$0xff] }
 0x2ec   : > { %5216 = vmatpush1.bf16.msra.mxu0 %v12529_v57  ;;  %5259 = vmatpush1.bf16.msra.mxu1 %v12531_v44  ;;  %v4228_v57 = vld [vmem:[#allocation9 + $0x88] sm:$0xff] }
 0x2ed   : > { %5217 = vmatprep.subr.bf16.mxu0 %v12538_v39  ;;  %5260 = vmatprep.subr.bf16.mxu1 %v12540_v22  ;;  %v4232_v44 = vld [vmem:[#allocation9 + $0xa8] sm:$0xff]  ;;  %v12581_v39 = vcombine.low %v4219_v16, %v4223_v17  ;;  %v12583_v22 = vcombine.low %v4220_v8, %v4224_v26  ;;  %v4275_v17 = vld [vmem:[#allocation9 + $0x200] sm:$0xff] }
 0x2ee   : > { %v12592_v58 = vcombine.high %v4228_v57, %v4232_v44  ;;  %v4279_v8 = vld [vmem:[#allocation9 + $0x220] sm:$0xff]  ;;  %v4276_v26 = vld [vmem:[#allocation9 + $0x208] sm:$0xff] }
 0x2f0   : > { %5218 = vmatpush1.bf16.msra.mxu0 %v12537_v48  ;;  %5261 = vmatpush1.bf16.msra.mxu1 %v12539_v61  ;;  %v4236_v48 = vld [vmem:[#allocation9 + $0xc8] sm:$0xff] }
 0x2f1   : > { %5219 = vmatprep.subr.bf16.mxu0 %v12546_v45  ;;  %5262 = vmatprep.subr.bf16.mxu1 %v12548_v51  ;;  %v4240_v61 = vld [vmem:[#allocation9 + $0xe8] sm:$0xff]  ;;  %v12589_v45 = vcombine.low %v4227_v1, %v4231_v36  ;;  %v12598_v51 = vcombine.high %v4235_v10, %v4239_v28  ;;  %v4283_v36 = vld [vmem:[#allocation9 + $0x240] sm:$0xff] }
 0x2f2   : > { %v12600_v47 = vcombine.high %v4236_v48, %v4240_v61 }
 0x2f4   : > { %5220 = vmatpush1.bf16.msra.mxu0 %v12545_v0  ;;  %5263 = vmatpush1.bf16.msra.mxu1 %v12547_v13  ;;  %v4248_v0 = vld [vmem:[#allocation9 + $0x128] sm:$0xff]  ;;  %v12597_v13 = vcombine.low %v4235_v10, %v4239_v28  ;;  %v4291_v28 = vld [vmem:[#allocation9 + $0x280] sm:$0xff] }
 0x2f5   : > { %5221 = vmatprep.subr.bf16.mxu0 %v12554_v21  ;;  %5264 = vmatprep.subr.bf16.mxu1 %v12556_v32  ;;  %v12599_v21 = vcombine.low %v4236_v48, %v4240_v61  ;;  %v12606_v32 = vcombine.high %v4243_v35, %v4247_v33  ;;  %v12608_v31 = vcombine.high %v4244_v53, %v4248_v0  ;;  %v4295_v48 = vld [vmem:[#allocation9 + $0x2a0] sm:$0xff]  ;;  %v4292_v61 = vld [vmem:[#allocation9 + $0x288] sm:$0xff] }
 0x2f8   : > { %5222 = vmatpush1.bf16.msra.mxu0 %v12553_v9  ;;  %5265 = vmatpush1.bf16.msra.mxu1 %v12555_v19  ;;  %v4256_v9 = vld [vmem:[#allocation9 + $0x168] sm:$0xff]  ;;  %v12605_v19 = vcombine.low %v4243_v35, %v4247_v33  ;;  %v4299_v33 = vld [vmem:[#allocation9 + $0x2c0] sm:$0xff] }
 0x2f9   : > { %5223 = vmatprep.subr.bf16.mxu0 %v12562_v20  ;;  %5266 = vmatprep.subr.bf16.mxu1 %v12564_v24  ;;  %v12607_v20 = vcombine.low %v4244_v53, %v4248_v0  ;;  %v12614_v24 = vcombine.high %v4251_v30, %v4255_v5  ;;  %v12616_v46 = vcombine.high %v4252_v27, %v4256_v9  ;;  %v4303_v53 = vld [vmem:[#allocation9 + $0x2e0] sm:$0xff]  ;;  %v4300_v0 = vld [vmem:[#allocation9 + $0x2c8] sm:$0xff] }
 0x2fc   : > { %5224 = vmatpush1.bf16.msra.mxu0 %v12561_v34  ;;  %5267 = vmatpush1.bf16.msra.mxu1 %v12563_v42  ;;  %v4264_v34 = vld [vmem:[#allocation9 + $0x1a8] sm:$0xff]  ;;  %v12613_v42 = vcombine.low %v4251_v30, %v4255_v5  ;;  %v4307_v5 = vld [vmem:[#allocation9 + $0x300] sm:$0xff] }
 0x2fd   : > { %5225 = vmatprep.subr.bf16.mxu0 %v12570_v6  ;;  %5268 = vmatprep.subr.bf16.mxu1 %v12572_v56  ;;  %v12615_v6 = vcombine.low %v4252_v27, %v4256_v9  ;;  %v12622_v56 = vcombine.high %v4259_v29, %v4263_v50  ;;  %v12624_v59 = vcombine.high %v4260_v38, %v4264_v34  ;;  %v4311_v27 = vld [vmem:[#allocation9 + $0x320] sm:$0xff]  ;;  %v4308_v9 = vld [vmem:[#allocation9 + $0x308] sm:$0xff] }
 0x300   : > { %5226 = vmatpush1.bf16.msra.mxu0 %v12569_v18  ;;  %5269 = vmatpush1.bf16.msra.mxu1 %v12571_v2  ;;  %v4272_v18 = vld [vmem:[#allocation9 + $0x1e8] sm:$0xff]  ;;  %v12621_v2 = vcombine.low %v4259_v29, %v4263_v50  ;;  %v4315_v50 = vld [vmem:[#allocation9 + $0x340] sm:$0xff] }
 0x301   : > { %5921 = vmatprep.subr.bf16.mxu0 %v12574_v3  ;;  %5964 = vmatprep.subr.bf16.mxu1 %v12576_v12  ;;  %v12623_v3 = vcombine.low %v4260_v38, %v4264_v34  ;;  %v12630_v12 = vcombine.high %v4267_v63, %v4271_v11  ;;  %v12632_v16 = vcombine.high %v4268_v15, %v4272_v18  ;;  %v4319_v38 = vld [vmem:[#allocation9 + $0x360] sm:$0xff]  ;;  %v4316_v34 = vld [vmem:[#allocation9 + $0x348] sm:$0xff] }
 0x303   : > { %5228 = vmatmul.mubr.bf16.vlgmr.msra.gmra.mrb[16].mxu0 %v15511_v4  ;;  %5271 = vmatmul.mubr.bf16.vlgmr.msra.gmra.mrb[16].mxu1 %v15511_v4  ;;  %v12591_v4 = vcombine.low %v4228_v57, %v4232_v44  ;;  %v4287_v57 = vld [vmem:[#allocation9 + $0x260] sm:$0xff]  ;;  %v4284_v44 = vld [vmem:[#allocation9 + $0x248] sm:$0xff] }
 0x304   : > { %5922 = vmatpush1.bf16.msra.mxu0 %v12573_v7  ;;  %5965 = vmatpush1.bf16.msra.mxu1 %v12575_v25  ;;  %v4280_v7 = vld [vmem:[#allocation9 + $0x228] sm:$0xff]  ;;  %v12629_v25 = vcombine.low %v4267_v63, %v4271_v11  ;;  %v4323_v11 = vld [vmem:[#allocation9 + $0x380] sm:$0xff] }
 0x305   : > { %5923 = vmatprep.subr.bf16.mxu0 %v12582_v49  ;;  %5966 = vmatprep.subr.bf16.mxu1 %v12584_v60  ;;  %v12631_v49 = vcombine.low %v4268_v15, %v4272_v18  ;;  %v12638_v60 = vcombine.high %v4275_v17, %v4279_v8  ;;  %v12640_v1 = vcombine.high %v4276_v26, %v4280_v7  ;;  %v4327_v15 = vld [vmem:[#allocation9 + $0x3a0] sm:$0xff]  ;;  %v4324_v18 = vld [vmem:[#allocation9 + $0x388] sm:$0xff] }
 0x306   : > { %5953 = vmatprep.mubr.bf16.mxu0 %v15508_v23  ;;  %5996 = vmatprep.mubr.bf16.mxu1 %v15508_v23 }
 0x308   : > { %5924 = vmatpush1.bf16.msra.mxu0 %v12581_v39  ;;  %5967 = vmatpush1.bf16.msra.mxu1 %v12583_v22  ;;  %v4288_v39 = vld [vmem:[#allocation9 + $0x268] sm:$0xff]  ;;  %v12637_v22 = vcombine.low %v4275_v17, %v4279_v8  ;;  %v4331_v8 = vld [vmem:[#allocation9 + $0x3c0] sm:$0xff] }
 0x309   : > { %5925 = vmatprep.subr.bf16.mxu0 %v12590_v55  ;;  %5968 = vmatprep.subr.bf16.mxu1 %v12592_v58  ;;  %v12639_v55 = vcombine.low %v4276_v26, %v4280_v7  ;;  %v12646_v58 = vcombine.high %v4283_v36, %v4287_v57  ;;  %v12648_v10 = vcombine.high %v4284_v44, %v4288_v39  ;;  %v4335_v26 = vld [vmem:[#allocation9 + $0x3e0] sm:$0xff]  ;;  %v4332_v7 = vld [vmem:[#allocation9 + $0x3c8] sm:$0xff] }
 0x30c   : > { %5926 = vmatpush1.bf16.msra.mxu0 %v12589_v45  ;;  %5969 = vmatpush1.bf16.msra.mxu1 %v12591_v4  ;;  %v4296_v45 = vld [vmem:[#allocation9 + $0x2a8] sm:$0xff]  ;;  %v12645_v4 = vcombine.low %v4283_v36, %v4287_v57  ;;  %v4213_v57 = vld [vmem:[#allocation9 + $0x10] sm:$0xff] }
 0x30d   : > { %5927 = vmatprep.subr.bf16.mxu0 %v12598_v51  ;;  %5970 = vmatprep.subr.bf16.mxu1 %v12600_v47  ;;  %v12647_v51 = vcombine.low %v4284_v44, %v4288_v39  ;;  %v12654_v47 = vcombine.high %v4291_v28, %v4295_v48  ;;  %v12656_v35 = vcombine.high %v4292_v61, %v4296_v45  ;;  %v4217_v44 = vld [vmem:[#allocation9 + $0x30] sm:$0xff]  ;;  %v4214_v39 = vld [vmem:[#allocation9 + $0x18] sm:$0xff] }
 0x310   : > { %5928 = vmatpush1.bf16.msra.mxu0 %v12597_v13  ;;  %5971 = vmatpush1.bf16.msra.mxu1 %v12599_v21  ;;  %v4304_v13 = vld [vmem:[#allocation9 + $0x2e8] sm:$0xff]  ;;  %v12653_v21 = vcombine.low %v4291_v28, %v4295_v48  ;;  %v4221_v48 = vld [vmem:[#allocation9 + $0x50] sm:$0xff] }
 0x311   : > { %5929 = vmatprep.subr.bf16.mxu0 %v12606_v32  ;;  %5972 = vmatprep.subr.bf16.mxu1 %v12608_v31  ;;  %v12655_v32 = vcombine.low %v4292_v61, %v4296_v45  ;;  %v12662_v31 = vcombine.high %v4299_v33, %v4303_v53  ;;  %v12664_v30 = vcombine.high %v4300_v0, %v4304_v13  ;;  %v4225_v61 = vld [vmem:[#allocation9 + $0x70] sm:$0xff]  ;;  %v4222_v45 = vld [vmem:[#allocation9 + $0x58] sm:$0xff] }
 0x314   : > { %5930 = vmatpush1.bf16.msra.mxu0 %v12605_v19  ;;  %5973 = vmatpush1.bf16.msra.mxu1 %v12607_v20  ;;  %v4312_v19 = vld [vmem:[#allocation9 + $0x328] sm:$0xff]  ;;  %v12661_v20 = vcombine.low %v4299_v33, %v4303_v53  ;;  %v4229_v53 = vld [vmem:[#allocation9 + $0x90] sm:$0xff] }
 0x315   : > { %5931 = vmatprep.subr.bf16.mxu0 %v12614_v24  ;;  %5974 = vmatprep.subr.bf16.mxu1 %v12616_v46  ;;  %v12663_v24 = vcombine.low %v4300_v0, %v4304_v13  ;;  %v12670_v46 = vcombine.high %v4307_v5, %v4311_v27  ;;  %v12672_v29 = vcombine.high %v4308_v9, %v4312_v19  ;;  %v4233_v0 = vld [vmem:[#allocation9 + $0xb0] sm:$0xff]  ;;  %v4230_v13 = vld [vmem:[#allocation9 + $0x98] sm:$0xff] }
 0x318   : > { %5932 = vmatpush1.bf16.msra.mxu0 %v12613_v42  ;;  %5975 = vmatpush1.bf16.msra.mxu1 %v12615_v6  ;;  %v4320_v42 = vld [vmem:[#allocation9 + $0x368] sm:$0xff]  ;;  %v12669_v6 = vcombine.low %v4307_v5, %v4311_v27  ;;  %v4237_v27 = vld [vmem:[#allocation9 + $0xd0] sm:$0xff] }
 0x319   : > { %5933 = vmatprep.subr.bf16.mxu0 %v12622_v56  ;;  %5976 = vmatprep.subr.bf16.mxu1 %v12624_v59  ;;  %v12671_v56 = vcombine.low %v4308_v9, %v4312_v19  ;;  %v12678_v59 = vcombine.high %v4315_v50, %v4319_v38  ;;  %v12680_v63 = vcombine.high %v4316_v34, %v4320_v42  ;;  %v4241_v9 = vld [vmem:[#allocation9 + $0xf0] sm:$0xff]  ;;  %v4238_v19 = vld [vmem:[#allocation9 + $0xd8] sm:$0xff] }
 0x31c   : > { %5934 = vmatpush1.bf16.msra.mxu0 %v12621_v2  ;;  %5977 = vmatpush1.bf16.msra.mxu1 %v12623_v3  ;;  %v4328_v2 = vld [vmem:[#allocation9 + $0x3a8] sm:$0xff]  ;;  %v12677_v3 = vcombine.low %v4315_v50, %v4319_v38  ;;  %v4245_v38 = vld [vmem:[#allocation9 + $0x110] sm:$0xff] }
 0x31d   : > { %5935 = vmatprep.subr.bf16.mxu0 %v12630_v12  ;;  %5978 = vmatprep.subr.bf16.mxu1 %v12632_v16  ;;  %v12679_v12 = vcombine.low %v4316_v34, %v4320_v42  ;;  %v12686_v16 = vcombine.high %v4323_v11, %v4327_v15  ;;  %v12688_v17 = vcombine.high %v4324_v18, %v4328_v2  ;;  %v4249_v34 = vld [vmem:[#allocation9 + $0x130] sm:$0xff]  ;;  %v4250_v42 = vld [vmem:[#allocation9 + $0x138] sm:$0xff] }
 0x320   : > { %5936 = vmatpush1.bf16.msra.mxu0 %v12629_v25  ;;  %5979 = vmatpush1.bf16.msra.mxu1 %v12631_v49  ;;  %v4336_v25 = vld [vmem:[#allocation9 + $0x3e8] sm:$0xff]  ;;  %v12685_v49 = vcombine.low %v4323_v11, %v4327_v15  ;;  %v4253_v11 = vld [vmem:[#allocation9 + $0x150] sm:$0xff] }
 0x321   : > { %5937 = vmatprep.subr.bf16.mxu0 %v12638_v60  ;;  %5980 = vmatprep.subr.bf16.mxu1 %v12640_v1  ;;  %v12687_v60 = vcombine.low %v4324_v18, %v4328_v2  ;;  %v12694_v1 = vcombine.high %v4331_v8, %v4335_v26  ;;  %v12696_v36 = vcombine.high %v4332_v7, %v4336_v25  ;;  %v4257_v15 = vld [vmem:[#allocation9 + $0x170] sm:$0xff]  ;;  %v4254_v18 = vld [vmem:[#allocation9 + $0x158] sm:$0xff] }
 0x322   : > { %v4258_v2 = vld [vmem:[#allocation9 + $0x178] sm:$0xff] }
 0x324   : > { %5938 = vmatpush1.bf16.msra.mxu0 %v12637_v22  ;;  %5981 = vmatpush1.bf16.msra.mxu1 %v12639_v55  ;;  %v4218_v22 = vld [vmem:[#allocation9 + $0x38] sm:$0xff]  ;;  %v12693_v55 = vcombine.low %v4331_v8, %v4335_v26  ;;  %v4261_v8 = vld [vmem:[#allocation9 + $0x190] sm:$0xff] }
 0x325   : > { %5939 = vmatprep.subr.bf16.mxu0 %v12646_v58  ;;  %5982 = vmatprep.subr.bf16.mxu1 %v12648_v10  ;;  %v12695_v58 = vcombine.low %v4332_v7, %v4336_v25  ;;  %v12578_v10 = vcombine.high %v4213_v57, %v4217_v44  ;;  %v12580_v28 = vcombine.high %v4214_v39, %v4218_v22  ;;  %v4265_v26 = vld [vmem:[#allocation9 + $0x1b0] sm:$0xff]  ;;  %v4262_v7 = vld [vmem:[#allocation9 + $0x198] sm:$0xff] }
 0x326   : > { %v4266_v25 = vld [vmem:[#allocation9 + $0x1b8] sm:$0xff] }
 0x328   : > { %5940 = vmatpush1.bf16.msra.mxu0 %v12645_v4  ;;  %5983 = vmatpush1.bf16.msra.mxu1 %v12647_v51  ;;  %v4226_v4 = vld [vmem:[#allocation9 + $0x78] sm:$0xff]  ;;  %v12577_v51 = vcombine.low %v4213_v57, %v4217_v44  ;;  %v4269_v57 = vld [vmem:[#allocation9 + $0x1d0] sm:$0xff] }
 0x329   : > { %5941 = vmatprep.subr.bf16.mxu0 %v12654_v47  ;;  %5984 = vmatprep.subr.bf16.mxu1 %v12656_v35  ;;  %v12579_v47 = vcombine.low %v4214_v39, %v4218_v22  ;;  %v12586_v35 = vcombine.high %v4221_v48, %v4225_v61  ;;  %v12588_v33 = vcombine.high %v4222_v45, %v4226_v4  ;;  %v4273_v44 = vld [vmem:[#allocation9 + $0x1f0] sm:$0xff]  ;;  %v4270_v39 = vld [vmem:[#allocation9 + $0x1d8] sm:$0xff] }
 0x32a   : > { %v4274_v22 = vld [vmem:[#allocation9 + $0x1f8] sm:$0xff] }
 0x32c   : > { %5942 = vmatpush1.bf16.msra.mxu0 %v12653_v21  ;;  %5985 = vmatpush1.bf16.msra.mxu1 %v12655_v32  ;;  %v4234_v21 = vld [vmem:[#allocation9 + $0xb8] sm:$0xff]  ;;  %v12585_v32 = vcombine.low %v4221_v48, %v4225_v61  ;;  %v4277_v48 = vld [vmem:[#allocation9 + $0x210] sm:$0xff] }
 0x32d   : > { %5943 = vmatprep.subr.bf16.mxu0 %v12662_v31  ;;  %5986 = vmatprep.subr.bf16.mxu1 %v12664_v30  ;;  %v12587_v31 = vcombine.low %v4222_v45, %v4226_v4  ;;  %v12594_v30 = vcombine.high %v4229_v53, %v4233_v0  ;;  %v12596_v5 = vcombine.high %v4230_v13, %v4234_v21  ;;  %v4281_v61 = vld [vmem:[#allocation9 + $0x230] sm:$0xff]  ;;  %v4278_v45 = vld [vmem:[#allocation9 + $0x218] sm:$0xff] }
 0x32e   : > { %v4282_v4 = vld [vmem:[#allocation9 + $0x238] sm:$0xff] }
 0x330   : > { %5944 = vmatpush1.bf16.msra.mxu0 %v12661_v20  ;;  %5987 = vmatpush1.bf16.msra.mxu1 %v12663_v24  ;;  %v4242_v20 = vld [vmem:[#allocation9 + $0xf8] sm:$0xff]  ;;  %v12593_v24 = vcombine.low %v4229_v53, %v4233_v0  ;;  %v4285_v53 = vld [vmem:[#allocation9 + $0x250] sm:$0xff] }
 0x331   : > { %5945 = vmatprep.subr.bf16.mxu0 %v12670_v46  ;;  %5988 = vmatprep.subr.bf16.mxu1 %v12672_v29  ;;  %v12595_v46 = vcombine.low %v4230_v13, %v4234_v21  ;;  %v12602_v29 = vcombine.high %v4237_v27, %v4241_v9  ;;  %v12604_v50 = vcombine.high %v4238_v19, %v4242_v20  ;;  %v4289_v0 = vld [vmem:[#allocation9 + $0x270] sm:$0xff]  ;;  %v4286_v13 = vld [vmem:[#allocation9 + $0x258] sm:$0xff] }
 0x332   : > { %v4290_v21 = vld [vmem:[#allocation9 + $0x278] sm:$0xff] }
 0x334   : > { %5946 = vmatpush1.bf16.msra.mxu0 %v12669_v6  ;;  %5989 = vmatpush1.bf16.msra.mxu1 %v12671_v56  ;;  %v12601_v6 = vcombine.low %v4237_v27, %v4241_v9  ;;  %v12603_v56 = vcombine.low %v4238_v19, %v4242_v20  ;;  %v4293_v27 = vld [vmem:[#allocation9 + $0x290] sm:$0xff]  ;;  %v4294_v19 = vld [vmem:[#allocation9 + $0x298] sm:$0xff] }
 0x335   : > { %5947 = vmatprep.subr.bf16.mxu0 %v12678_v59  ;;  %5990 = vmatprep.subr.bf16.mxu1 %v12680_v63  ;;  %v12610_v59 = vcombine.high %v4245_v38, %v4249_v34  ;;  %v4297_v9 = vld [vmem:[#allocation9 + $0x2b0] sm:$0xff]  ;;  %v4298_v20 = vld [vmem:[#allocation9 + $0x2b8] sm:$0xff] }
 0x338   : > { %5948 = vmatpush1.bf16.msra.mxu0 %v12677_v3  ;;  %5991 = vmatpush1.bf16.msra.mxu1 %v12679_v12  ;;  %v12609_v3 = vcombine.low %v4245_v38, %v4249_v34  ;;  %v4301_v38 = vld [vmem:[#allocation9 + $0x2d0] sm:$0xff] }
 0x339   : > { %5949 = vmatprep.subr.bf16.mxu0 %v12686_v16  ;;  %5992 = vmatprep.subr.bf16.mxu1 %v12688_v17  ;;  %v12618_v16 = vcombine.high %v4253_v11, %v4257_v15  ;;  %v12620_v17 = vcombine.high %v4254_v18, %v4258_v2  ;;  %v4305_v34 = vld [vmem:[#allocation9 + $0x2f0] sm:$0xff] }
 0x33c   : > { %5950 = vmatpush1.bf16.msra.mxu0 %v12685_v49  ;;  %5993 = vmatpush1.bf16.msra.mxu1 %v12687_v60  ;;  %v12617_v49 = vcombine.low %v4253_v11, %v4257_v15  ;;  %v12619_v60 = vcombine.low %v4254_v18, %v4258_v2  ;;  %v4309_v11 = vld [vmem:[#allocation9 + $0x310] sm:$0xff]  ;;  %v4310_v18 = vld [vmem:[#allocation9 + $0x318] sm:$0xff] }
 0x33d   : > { %5951 = vmatprep.subr.bf16.mxu0 %v12694_v1  ;;  %5994 = vmatprep.subr.bf16.mxu1 %v12696_v36  ;;  %v12626_v1 = vcombine.high %v4261_v8, %v4265_v26  ;;  %v12628_v36 = vcombine.high %v4262_v7, %v4266_v25  ;;  %v4313_v15 = vld [vmem:[#allocation9 + $0x330] sm:$0xff]  ;;  %v4314_v2 = vld [vmem:[#allocation9 + $0x338] sm:$0xff] }
 0x340   : > { %5952 = vmatpush1.bf16.msra.mxu0 %v12693_v55  ;;  %5995 = vmatpush1.bf16.msra.mxu1 %v12695_v58  ;;  %v12625_v55 = vcombine.low %v4261_v8, %v4265_v26  ;;  %v12627_v58 = vcombine.low %v4262_v7, %v4266_v25  ;;  %v4317_v8 = vld [vmem:[#allocation9 + $0x350] sm:$0xff]  ;;  %v4318_v7 = vld [vmem:[#allocation9 + $0x358] sm:$0xff] }
 0x341   : > { %6007 = vmatprep.subr.bf16.mxu0 %v12578_v10  ;;  %6050 = vmatprep.subr.bf16.mxu1 %v12580_v28  ;;  %v12634_v10 = vcombine.high %v4269_v57, %v4273_v44  ;;  %v12636_v28 = vcombine.high %v4270_v39, %v4274_v22  ;;  %v4321_v26 = vld [vmem:[#allocation9 + $0x370] sm:$0xff]  ;;  %v4322_v25 = vld [vmem:[#allocation9 + $0x378] sm:$0xff] }
 0x343   : > { %5954 = vmatmul.mubr.bf16.vlgmr.msra.gmra.mrb[12].mxu0 %v15506_v52  ;;  %5997 = vmatmul.mubr.bf16.vlgmr.msra.gmra.mrb[12].mxu1 %v15506_v52 }
 0x344   : > { %6008 = vmatpush1.bf16.msra.mxu0 %v12577_v51  ;;  %6039 = vmatprep.mubr.bf16.mxu0 %v15508_v23  ;;  %v12633_v51 = vcombine.low %v4269_v57, %v4273_v44  ;;  %v4325_v57 = vld [vmem:[#allocation9 + $0x390] sm:$0xff] }
 0x345   : > { %6051 = vmatpush1.bf16.msra.mxu1 %v12579_v47  ;;  %6082 = vmatprep.mubr.bf16.mxu1 %v15508_v23  ;;  %v4246_v23 = vld [vmem:[#allocation9 + $0x118] sm:$0xff]  ;;  %v12635_v47 = vcombine.low %v4270_v39, %v4274_v22  ;;  %v4329_v44 = vld [vmem:[#allocation9 + $0x3b0] sm:$0xff] }
 0x346   : > { %6009 = vmatprep.subr.bf16.mxu0 %v12586_v35  ;;  %6052 = vmatprep.subr.bf16.mxu1 %v12588_v33  ;;  %v12612_v63 = vcombine.high %v4246_v23, %v4250_v42  ;;  %v12611_v12 = vcombine.low %v4246_v23, %v4250_v42  ;;  %v12642_v35 = vcombine.high %v4277_v48, %v4281_v61  ;;  %v4302_v23 = vld [vmem:[#allocation9 + $0x2d8] sm:$0xff] }
 0x347   : > { %v12644_v33 = vcombine.high %v4278_v45, %v4282_v4  ;;  %v4306_v42 = vld [vmem:[#allocation9 + $0x2f8] sm:$0xff] }
 0x348   : > { %6010 = vmatpush1.bf16.msra.mxu0 %v12585_v32  ;;  %v12641_v32 = vcombine.low %v4277_v48, %v4281_v61  ;;  %v4326_v39 = vld [vmem:[#allocation9 + $0x398] sm:$0xff]  ;;  %v4333_v48 = vld [vmem:[#allocation9 + $0x3d0] sm:$0xff] }
 0x349   : > { %6053 = vmatpush1.bf16.msra.mxu1 %v12587_v31  ;;  %6011 = vmatprep.subr.bf16.mxu0 %v12594_v30  ;;  %v12643_v31 = vcombine.low %v4278_v45, %v4282_v4  ;;  %v12650_v30 = vcombine.high %v4285_v53, %v4289_v0  ;;  %v4330_v22 = vld [vmem:[#allocation9 + $0x3b8] sm:$0xff]  ;;  %v4337_v61 = vld [vmem:[#allocation9 + $0x3f0] sm:$0xff] }
 0x34a   : > { %6054 = vmatprep.subr.bf16.mxu1 %v12596_v5  ;;  %v12652_v5 = vcombine.high %v4286_v13, %v4290_v21  ;;  %v4334_v45 = vld [vmem:[#allocation9 + $0x3d8] sm:$0xff] }
 0x34b   : > { %v4338_v4 = vld [vmem:[#allocation9 + $0x3f8] sm:$0xff] }
 0x34c   : > { %6012 = vmatpush1.bf16.msra.mxu0 %v12593_v24  ;;  %v12649_v24 = vcombine.low %v4285_v53, %v4289_v0  ;;  %v12697_v53 = vcombine.low %v4333_v48, %v4337_v61  ;;  %v12699_v0 = vcombine.low %v4334_v45, %v4338_v4 }
 0x34d   : > { %6055 = vmatpush1.bf16.msra.mxu1 %v12595_v46  ;;  %6013 = vmatprep.subr.bf16.mxu0 %v12602_v29  ;;  %v12651_v46 = vcombine.low %v4286_v13, %v4290_v21  ;;  %v12658_v29 = vcombine.high %v4293_v27, %v4297_v9  ;;  %v13644_v13 = vld [vmem:[%s18017_s4 + $0x4] ss:$8 sps:$4 sm:$0xff]   ;;  %v13642_v21 = vld [vmem:[%s18017_s4] ss:$8 sps:$4 sm:$0xff]  }
 0x34e   : > { %6056 = vmatprep.subr.bf16.mxu1 %v12604_v50  ;;  %v12660_v50 = vcombine.high %v4294_v19, %v4298_v20 }
 0x350   : > { %6014 = vmatpush1.bf16.msra.mxu0 %v12601_v6  ;;  %v12657_v6 = vcombine.low %v4293_v27, %v4297_v9  ;;  %v13648_v27 = vld [vmem:[%s18017_s4 + $0x20] ss:$8 sps:$4 sm:$0xff]   ;;  %v13651_v9 = vld [vmem:[%s18017_s4 + $0x30] ss:$8 sps:$4 sm:$0xff]  }
 0x351   : > { %6057 = vmatpush1.bf16.msra.mxu1 %v12603_v56  ;;  %6015 = vmatprep.subr.bf16.mxu0 %v12610_v59  ;;  %v12659_v56 = vcombine.low %v4294_v19, %v4298_v20  ;;  %v12666_v59 = vcombine.high %v4301_v38, %v4305_v34  ;;  %v13654_v19 = vld [vmem:[%s14321_s29 + $0x10] sm:$0xff]   ;;  %v7174_v20 = vld [vmem:[#allocation10] sm:$0xff] }
 0x352   : > { %6058 = vmatprep.subr.bf16.mxu1 %v12612_v63  ;;  %v12668_v63 = vcombine.high %v4302_v23, %v4306_v42 }
 0x354   : > { %6016 = vmatpush1.bf16.msra.mxu0 %v12609_v3  ;;  %v12665_v3 = vcombine.low %v4301_v38, %v4305_v34  ;;  %v7179_v38 = vld [vmem:[#allocation10 + $0x28] sm:$0xff]  ;;  %v7182_v34 = vld [vmem:[#allocation10 + $0x40] sm:$0xff] }
 0x355   : > { %6059 = vmatpush1.bf16.msra.mxu1 %v12611_v12  ;;  %6017 = vmatprep.subr.bf16.mxu0 %v12618_v16  ;;  %v12667_v12 = vcombine.low %v4302_v23, %v4306_v42  ;;  %v12674_v16 = vcombine.high %v4309_v11, %v4313_v15  ;;  %v7186_v23 = vld [vmem:[#allocation10 + $0x60] sm:$0xff] }
 0x356   : > { %6060 = vmatprep.subr.bf16.mxu1 %v12620_v17  ;;  %v12676_v17 = vcombine.high %v4310_v18, %v4314_v2 }
 0x358   : > { %6018 = vmatpush1.bf16.msra.mxu0 %v12617_v49  ;;  %v12673_v49 = vcombine.low %v4309_v11, %v4313_v15  ;;  %v7190_v11 = vld [vmem:[#allocation10 + $0x80] sm:$0xff] }
 0x359   : > { %6061 = vmatpush1.bf16.msra.mxu1 %v12619_v60  ;;  %6019 = vmatprep.subr.bf16.mxu0 %v12626_v1  ;;  %v12675_v60 = vcombine.low %v4310_v18, %v4314_v2  ;;  %v12682_v1 = vcombine.high %v4317_v8, %v4321_v26  ;;  %v7194_v18 = vld [vmem:[#allocation10 + $0xa0] sm:$0xff]  ;;  %v7191_v2 = vld [vmem:[#allocation10 + $0x88] sm:$0xff] }
 0x35a   : > { %6062 = vmatprep.subr.bf16.mxu1 %v12628_v36  ;;  %v12684_v36 = vcombine.high %v4318_v7, %v4322_v25 }
 0x35c   : > { %6020 = vmatpush1.bf16.msra.mxu0 %v12625_v55  ;;  %v12681_v55 = vcombine.low %v4317_v8, %v4321_v26  ;;  %v7198_v26 = vld [vmem:[#allocation10 + $0xc0] sm:$0xff] }
 0x35d   : > { %6063 = vmatpush1.bf16.msra.mxu1 %v12627_v58  ;;  %6021 = vmatprep.subr.bf16.mxu0 %v12634_v10  ;;  %v12683_v58 = vcombine.low %v4318_v7, %v4322_v25  ;;  %v12690_v10 = vcombine.high %v4325_v57, %v4329_v44  ;;  %v7202_v7 = vld [vmem:[#allocation10 + $0xe0] sm:$0xff]  ;;  %v7199_v25 = vld [vmem:[#allocation10 + $0xc8] sm:$0xff] }
 0x35e   : > { %6064 = vmatprep.subr.bf16.mxu1 %v12636_v28  ;;  %v12692_v28 = vcombine.high %v4326_v39, %v4330_v22 }
 0x360   : > { %6022 = vmatpush1.bf16.msra.mxu0 %v12633_v51  ;;  %v12689_v51 = vcombine.low %v4325_v57, %v4329_v44  ;;  %v7206_v44 = vld [vmem:[#allocation10 + $0x100] sm:$0xff] }
 0x361   : > { %6065 = vmatpush1.bf16.msra.mxu1 %v12635_v47  ;;  %6023 = vmatprep.subr.bf16.mxu0 %v12642_v35  ;;  %v12691_v47 = vcombine.low %v4326_v39, %v4330_v22  ;;  %v12698_v35 = vcombine.high %v4333_v48, %v4337_v61  ;;  %v7210_v39 = vld [vmem:[#allocation10 + $0x120] sm:$0xff]  ;;  %v7207_v22 = vld [vmem:[#allocation10 + $0x108] sm:$0xff] }
 0x362   : > { %6066 = vmatprep.subr.bf16.mxu1 %v12644_v33  ;;  %v12700_v33 = vcombine.high %v4334_v45, %v4338_v4  ;;  %v7214_v61 = vld [vmem:[#allocation10 + $0x140] sm:$0xff]  ;;  %v7215_v4 = vld [vmem:[#allocation10 + $0x148] sm:$0xff] }
 0x363   : > { %v7218_v45 = vld [vmem:[#allocation10 + $0x160] sm:$0xff] }
 0x364   : > { %6024 = vmatpush1.bf16.msra.mxu0 %v12641_v32  ;;  %v13647_v32 = vld [vmem:[%s18017_s4 + $0x14] ss:$8 sps:$4 sm:$0xff]  }
 0x365   : > { %6067 = vmatpush1.bf16.msra.mxu1 %v12643_v31  ;;  %6025 = vmatprep.subr.bf16.mxu0 %v12650_v30  ;;  %v13645_v31 = vld [vmem:[%s18017_s4 + $0x10] ss:$8 sps:$4 sm:$0xff]   ;;  %v13650_v30 = vld [vmem:[%s18017_s4 + $0x24] ss:$8 sps:$4 sm:$0xff]  }
 0x366   : > { %6068 = vmatprep.subr.bf16.mxu1 %v12652_v5  ;;  %v18416_v5 = vmov 0  }
 0x368   : > { %6026 = vmatpush1.bf16.msra.mxu0 %v12649_v24  ;;  %v7178_v24 = vld [vmem:[#allocation10 + $0x20] sm:$0xff] }
 0x369   : > { %6069 = vmatpush1.bf16.msra.mxu1 %v12651_v46  ;;  %6027 = vmatprep.subr.bf16.mxu0 %v12658_v29  ;;  %v7175_v46 = vld [vmem:[#allocation10 + $0x8] sm:$0xff]  ;;  %v12723_v29 = vcombine.low %v7174_v20, %v7178_v24 }
 0x36a   : > { %6070 = vmatprep.subr.bf16.mxu1 %v12660_v50  ;;  %v12724_v50 = vcombine.high %v7174_v20, %v7178_v24  ;;  %v12725_v42 = vcombine.low %v7175_v46, %v7179_v38  ;;  %v13498_v20 = vpop.permute.xlu0 %13497  ;;  %v13503_v24 = vpop.permute.xlu1 %13502 }
 0x36c   : > { %6028 = vmatpush1.bf16.msra.mxu0 %v12657_v6  ;;  %v12726_v6 = vcombine.high %v7175_v46, %v7179_v38  ;;  %v15562_v46 = vld [vmem:[%s18020_s7] sm:$0x11]  ;;  %v15568_v38 = vld [vmem:[%s18020_s7] sm:$0x22] }
 0x36d   : > { %6071 = vmatpush1.bf16.msra.mxu1 %v12659_v56  ;;  %6029 = vmatprep.subr.bf16.mxu0 %v12666_v59  ;;  %v12732_v56 = vcombine.high %v7182_v34, %v7186_v23  ;;  %v7183_v59 = vld [vmem:[#allocation10 + $0x48] sm:$0xff] }
 0x36e   : > { %6072 = vmatprep.subr.bf16.mxu1 %v12668_v63  ;;  %v7187_v63 = vld [vmem:[#allocation10 + $0x68] sm:$0xff] }
 0x36f   : > { %v12734_v15 = vcombine.high %v7183_v59, %v7187_v63 }
 0x370   : > { %6030 = vmatpush1.bf16.msra.mxu0 %v12665_v3  ;;  %v7195_v3 = vld [vmem:[#allocation10 + $0xa8] sm:$0xff] }
 0x371   : > { %6073 = vmatpush1.bf16.msra.mxu1 %v12667_v12  ;;  %6031 = vmatprep.subr.bf16.mxu0 %v12674_v16  ;;  %v12731_v12 = vcombine.low %v7182_v34, %v7186_v23  ;;  %v12733_v16 = vcombine.low %v7183_v59, %v7187_v63  ;;  %v12742_v8 = vcombine.high %v7191_v2, %v7195_v3  ;;  %v15570_v34 = vunpack.i.l.bf16 %v13498_v20  ;;  %v15572_v23 = vpop.permute.xlu1 %13512 }
 0x372   : > { %6074 = vmatprep.subr.bf16.mxu1 %v12676_v17  ;;  %v12740_v17 = vcombine.high %v7190_v11, %v7194_v18  ;;  %v3713_v63 = vunpack.c.l.bf16 %v15568_v38 }
 0x373   : > { %18417 = vst [vmem:[#allocation34_spill] sm:$0xff] %v15570_v34 }
 0x374   : > { %6032 = vmatpush1.bf16.msra.mxu0 %v12673_v49  ;;  %v7203_v49 = vld [vmem:[#allocation10 + $0xe8] sm:$0xff] }
 0x375   : > { %6075 = vmatpush1.bf16.msra.mxu1 %v12675_v60  ;;  %6033 = vmatprep.subr.bf16.mxu0 %v12682_v1  ;;  %v12739_v60 = vcombine.low %v7190_v11, %v7194_v18  ;;  %v12741_v1 = vcombine.low %v7191_v2, %v7195_v3  ;;  %v12750_v57 = vcombine.high %v7199_v25, %v7203_v49  ;;  %v15594_v18 = vld [vmem:[%s18020_s7] sm:$0x88] }
 0x376   : > { %6076 = vmatprep.subr.bf16.mxu1 %v12684_v36  ;;  %v12748_v36 = vcombine.high %v7198_v26, %v7202_v7 }
 0x378   : > { %6034 = vmatpush1.bf16.msra.mxu0 %v12681_v55  ;;  %v7211_v55 = vld [vmem:[#allocation10 + $0x128] sm:$0xff] }
 0x379   : > { %6077 = vmatpush1.bf16.msra.mxu1 %v12683_v58  ;;  %6035 = vmatprep.subr.bf16.mxu0 %v12690_v10  ;;  %v12747_v58 = vcombine.low %v7198_v26, %v7202_v7  ;;  %v12749_v10 = vcombine.low %v7199_v25, %v7203_v49  ;;  %v12758_v48 = vcombine.high %v7207_v22, %v7211_v55  ;;  %v15610_v26 = vunpack.i.h.bf16 %v13498_v20  ;;  %v15615_v25 = vpop.permute.xlu1 %13522  ;;  %v15657_v20 = vld [vmem:[%s18020_s7 + $0x8] sm:$0x44] }
 0x37a   : > { %6078 = vmatprep.subr.bf16.mxu1 %v12692_v28  ;;  %v12756_v28 = vcombine.high %v7206_v44, %v7210_v39  ;;  %v15613_v7 = vunpack.i.l.bf16 %v15572_v23  ;;  %v15618_v49 = vrot.slane %v3713_v63, %v14703_v14 }
 0x37c   : > { %6036 = vmatpush1.bf16.msra.mxu0 %v12689_v51  ;;  %v7219_v51 = vld [vmem:[#allocation10 + $0x168] sm:$0xff]  ;;  %18421 = vst [vmem:[#allocation33_spill] sm:$0xff] %v15613_v7 }
 0x37d   : > { %6079 = vmatpush1.bf16.msra.mxu1 %v12691_v47  ;;  %6037 = vmatprep.subr.bf16.mxu0 %v12698_v35  ;;  %v12755_v47 = vcombine.low %v7206_v44, %v7210_v39  ;;  %v12757_v35 = vcombine.low %v7207_v22, %v7211_v55  ;;  %v7230_v44 = vld [vmem:[#allocation10 + $0x1c0] sm:$0xff]  ;;  %v7231_v22 = vld [vmem:[#allocation10 + $0x1c8] sm:$0xff] }
 0x37e   : > { %6080 = vmatprep.subr.bf16.mxu1 %v12700_v33  ;;  %v12764_v33 = vcombine.high %v7214_v61, %v7218_v45  ;;  %v7234_v39 = vld [vmem:[#allocation10 + $0x1e0] sm:$0xff] }
 0x380   : > { %6038 = vmatpush1.bf16.msra.mxu0 %v12697_v53  ;;  %v12766_v53 = vcombine.high %v7215_v4, %v7219_v51 }
 0x381   : > { %6081 = vmatpush1.bf16.msra.mxu1 %v12699_v0  ;;  %6320 = vmatprep.subr.bf16.mxu0 %v13644_v13  ;;  %v7222_v0 = vld [vmem:[#allocation10 + $0x180] sm:$0xff] }
 0x382   : > { %7942 = vmatprep.subr.bf16.mxu1 %v12724_v50  ;;  %v7226_v13 = vld [vmem:[#allocation10 + $0x1a0] sm:$0xff]  ;;  %v3545_v50 = vunpack.c.l.bf16 %v15562_v46 }
 0x383   : > { %6040 = vmatmul.mubr.bf16.vlgmr.msra.gmra.mrb[16].mxu0 %v15506_v52 }
 0x384   : > { %6083 = vmatmul.mubr.bf16.vlgmr.msra.gmra.mrb[16].mxu1 %v15506_v52  ;;  %6321 = vmatpush1.bf16.msra.mxu0 %v13642_v21  ;;  %v13653_v52 = vld [vmem:[%s18017_s4 + $0x34] ss:$8 sps:$4 sm:$0xff]   ;;  %v7223_v21 = vld [vmem:[#allocation10 + $0x188] sm:$0xff]  ;;  %v15585_v59 = vrot.slane %v3545_v50, %v18409_v54 }
 0x385   : > { %6322 = vmatprep.subr.bf16.mxu0 %v13647_v32  ;;  %6352 = vmatprep.mubr.bf16.mxu0 %v18416_v5  ;;  %v7227_v32 = vld [vmem:[#allocation10 + $0x1a8] sm:$0xff] }
 0x386   : > { %7943 = vmatpush1.bf16.msra.mxu1 %v12723_v29  ;;  %v13508_v29 = vpop.permute.xlu0 %13507 }
 0x387   : > { %7944 = vmatprep.subr.bf16.mxu1 %v12732_v56  ;;  %v15582_v56 = vrot.slane %v3545_v50, %v18408_v41  ;;  %v15596_v2 = vunpack.i.l.bf16 %v13508_v29 }
 0x388   : > { %6323 = vmatpush1.bf16.msra.mxu0 %v13645_v31  ;;  %v12763_v31 = vcombine.low %v7214_v61, %v7218_v45  ;;  %v7235_v61 = vld [vmem:[#allocation10 + $0x1e8] sm:$0xff] }
 0x389   : > { %6324 = vmatprep.subr.bf16.mxu0 %v13650_v30  ;;  %v12765_v30 = vcombine.low %v7215_v4, %v7219_v51  ;;  %18419 = vst [vmem:[#allocation66_spill] sm:$0xff] %v15596_v2  ;;  %v3595_v3 = vmul.f32 %v15570_v34, %v15582_v56 }
 0x38a   : > { %7945 = vmatpush1.bf16.msra.mxu1 %v12731_v12  ;;  %v15588_v11 = vpop.permute.xlu0 %13517 }
 0x38b   : > { %7946 = vmatprep.subr.bf16.mxu1 %v12740_v17 }
 0x38c   : > { %6325 = vmatpush1.bf16.msra.mxu0 %v13648_v27  ;;  %v12772_v27 = vcombine.high %v7222_v0, %v7226_v13 }
 0x38d   : > { %6326 = vmatprep.subr.bf16.mxu0 %v13653_v52  ;;  %v12774_v52 = vcombine.high %v7223_v21, %v7227_v32 }
 0x38e   : > { %7947 = vmatpush1.bf16.msra.mxu1 %v12739_v60  ;;  %v15621_v60 = vunpack.i.l.bf16 %v15588_v11  ;;  %v15639_v45 = vpop.permute.xlu0 %13527 }
 0x38f   : > { %7948 = vmatprep.subr.bf16.mxu1 %v12748_v36 }
 0x390   : > { %6327 = vmatpush1.bf16.msra.mxu0 %v13651_v9  ;;  %v12771_v9 = vcombine.low %v7222_v0, %v7226_v13  ;;  %v7239_v0 = vld [vmem:[#allocation10 + $0x208] sm:$0xff]  ;;  %v15643_v13 = vunpack.i.h.bf16 %v13503_v24 }
 0x391   : > { %7985 = vmatprep.subr.bf16.mxu0 %v12726_v6  ;;  %v15579_v6 = vunpack.i.l.bf16 %v13503_v24 }
 0x392   : > { %7949 = vmatpush1.bf16.msra.mxu1 %v12747_v58 }
 0x393   : > { %12720 = vmatmul.mubr.msk.bf16.vlgmr.msra.gmra.mrb[20].mxu0 %vm653_vm0, %v13654_v19  ;;  %7950 = vmatprep.subr.bf16.mxu1 %v12756_v28  ;;  %v12773_v19 = vcombine.low %v7223_v21, %v7227_v32  ;;  %18418 = vst [vmem:[#allocation57_spill] sm:$0xff] %v15579_v6  ;;  %v3673_v12 = vmul.f32 %v15579_v6, %v15585_v59  ;;  %v15646_v21 = vunpack.i.l.bf16 %v15639_v45 }
 0x394   : > { %7986 = vmatpush1.bf16.msra.mxu0 %v12725_v42  ;;  %v15577_v42 = vld [vmem:[%s18020_s7] sm:$0x44]  ;;  %v12779_v28 = vcombine.low %v7230_v44, %v7234_v39  ;;  %v3841_v32 = vmul.f32 %v15613_v7, %v15618_v49 }
 0x395   : > { %7987 = vmatprep.subr.bf16.mxu0 %v12734_v15  ;;  %v3881_v15 = vunpack.c.l.bf16 %v15577_v42  ;;  %v3689_v4 = vadd.f32 %v3673_v12, %v3595_v3  ;;  %18424 = vst [vmem:[#allocation76_spill] sm:$0xff] %v15646_v21  ;;  %v15659_v3 = vunpack.i.h.bf16 %v13508_v29  ;;  %v7258_v29 = vld [vmem:[#allocation10 + $0x2a0] sm:$0xff] }
 0x396   : > { %7951 = vmatpush1.bf16.msra.mxu1 %v12755_v47  ;;  %v12781_v47 = vcombine.low %v7231_v22, %v7235_v61 }
 0x397   : > { %7952 = vmatprep.subr.bf16.mxu1 %v12764_v33  ;;  %v15627_v36 = vrot.slane %v3881_v15, %v14743_v43  ;;  %v15631_v55 = vrot.slane %v3881_v15, %v14749_v62  ;;  %v7238_v33 = vld [vmem:[#allocation10 + $0x200] sm:$0xff]  ;;  %v7251_v15 = vld [vmem:[#allocation10 + $0x268] sm:$0xff] }
 0x398   : > { %7988 = vmatpush1.bf16.msra.mxu0 %v12733_v16  ;;  %v18420_v16 = vld [vmem:[#allocation29_spill] sm:$0xff] }
 0x399   : > { %7989 = vmatprep.subr.bf16.mxu0 %v12742_v8  ;;  %v15603_v17 = vrot.slane %v3713_v63, %v18420_v16  ;;  %v15608_v8 = vld [vmem:[%s18020_s7 + $0x8] sm:$0x11]  ;;  %18422 = vst [vmem:[#allocation42_spill] sm:$0xff] %v15627_v36  ;;  %18423 = vst [vmem:[#allocation58_spill] sm:$0xff] %v15631_v55 }
 0x39a   : > { %7953 = vmatpush1.bf16.msra.mxu1 %v12763_v31  ;;  %v3547_v58 = vunpack.c.l.bf16 %v15608_v8  ;;  %v7247_v63 = vld [vmem:[#allocation10 + $0x248] sm:$0xff] }
 0x39b   : > { %7954 = vmatprep.subr.bf16.mxu1 %v12772_v27  ;;  %v3763_v51 = vmul.f32 %v15596_v2, %v15603_v17  ;;  %v7246_v27 = vld [vmem:[#allocation10 + $0x240] sm:$0xff] }
 0x39c   : > { %7990 = vmatpush1.bf16.msra.mxu0 %v12741_v1  ;;  %v15624_v1 = vunpack.i.l.bf16 %v15615_v25  ;;  %v15662_v12 = vrot.slane %v3547_v58, %v18408_v41 }
 0x39d   : > { %7991 = vmatprep.subr.bf16.mxu0 %v12750_v57  ;;  %v4049_v57 = vunpack.c.l.bf16 %v15594_v18 }
 0x39e   : > { %7955 = vmatpush1.bf16.msra.mxu1 %v12771_v9  ;;  %v3597_v5 = vmul.f32 %v15570_v34, %v15662_v12 }
 0x39f   : > { %v15651_v9 = vrot.slane %v4049_v57, %v18359_v40 }
 0x3a0   : > { %7992 = vmatpush1.bf16.msra.mxu0 %v12749_v10  ;;  %v15637_v10 = vld [vmem:[%s18020_s7 + $0x8] sm:$0x22] }
 0x3a1   : > { %7993 = vmatprep.subr.bf16.mxu0 %v12758_v48  ;;  %v12780_v48 = vcombine.high %v7230_v44, %v7234_v39  ;;  %18425 = vst [vmem:[#allocation63_spill] sm:$0xff] %v15651_v9 }
 0x3a3   : > { %7956 = vmatprep.subr.bf16.mxu1 %v12780_v48  ;;  %v3931_v48 = vmul.f32 %v15621_v60, %v15627_v36 }
 0x3a4   : > { %7994 = vmatpush1.bf16.msra.mxu0 %v12757_v35  ;;  %v12782_v35 = vcombine.high %v7231_v22, %v7235_v61  ;;  %7957 = vmatpush1.bf16.msra.mxu1 %v12779_v28  ;;  %v3779_v22 = vadd.f32 %v3763_v51, %v3689_v4  ;;  %v15668_v28 = vmul.f32 %v15624_v1, %v15631_v55  ;;  %v3546_v4 = vunpack.c.h.bf16 %v15562_v46  ;;  %v7255_v51 = vld [vmem:[#allocation10 + $0x288] sm:$0xff] }
 0x3a5   : > { %7995 = vmatprep.subr.bf16.mxu0 %v12766_v53  ;;  %v7242_v53 = vld [vmem:[#allocation10 + $0x220] sm:$0xff]  ;;  %v12798_v61 = vcombine.high %v7247_v63, %v7251_v15  ;;  %v12797_v46 = vcombine.low %v7247_v63, %v7251_v15 }
 0x3a6   : > { %v12788_v31 = vcombine.high %v7238_v33, %v7242_v53  ;;  %v12787_v24 = vcombine.low %v7238_v33, %v7242_v53  ;;  %18426 = vst [vmem:[#allocation74_spill] sm:$0xff] %v15668_v28  ;;  %v15671_v33 = vrot.slane %v4049_v57, %v18363_v37  ;;  %v3883_v53 = vunpack.c.l.bf16 %v15657_v20 }
 0x3a7   : > { %v3857_v55 = vadd.f32 %v3841_v32, %v3779_v22  ;;  %v15711_v15 = vrot.slane %v3546_v4, %v18409_v54 }
 0x3a8   : > { %7996 = vmatpush1.bf16.msra.mxu0 %v12765_v30  ;;  %v7243_v30 = vld [vmem:[#allocation10 + $0x228] sm:$0xff]  ;;  %7958 = vmatprep.subr.bf16.mxu1 %v12788_v31  ;;  %18427 = vst [vmem:[#allocation56_spill] sm:$0xff] %v15671_v33  ;;  %v15680_v31 = vmul.f32 %v15646_v21, %v15651_v9  ;;  %v15705_v32 = vrot.slane %v3883_v53, %v14743_v43  ;;  %v3882_v21 = vunpack.c.h.bf16 %v15577_v42 }
 0x3a9   : > { %7997 = vmatprep.subr.bf16.mxu0 %v12774_v52  ;;  %v7250_v52 = vld [vmem:[#allocation10 + $0x260] sm:$0xff]  ;;  %v12790_v50 = vcombine.high %v7239_v0, %v7243_v30  ;;  %v12789_v44 = vcombine.low %v7239_v0, %v7243_v30  ;;  %v7259_v0 = vld [vmem:[#allocation10 + $0x2a8] sm:$0xff]  ;;  %7959 = vmatpush1.bf16.msra.mxu1 %v12787_v24  ;;  %18431 = vst [vmem:[#allocation45_spill] sm:$0xff] %v15711_v15 }
 0x3aa   : > { %v12796_v39 = vcombine.high %v7246_v27, %v7250_v52  ;;  %18428 = vst [vmem:[#allocation75_spill] sm:$0xff] %v15680_v31  ;;  %v12795_v57 = vcombine.low %v7246_v27, %v7250_v52  ;;  %v3714_v27 = vunpack.c.h.bf16 %v15568_v38  ;;  %v15700_v52 = vld [vmem:[#allocation10 + $0x2c0] sm:$0xff]  ;;  %18429 = vst [vmem:[#allocation59_spill] sm:$0xff] %v15705_v32  ;;  %v15726_v36 = vadd.f32 %v3931_v48, %v3857_v55 }
 0x3ab   : > { %v7266_v24 = vld [vmem:[#allocation10 + $0x2e0] sm:$0xff]  ;;  %v3674_v48 = vmul.f32 %v15579_v6, %v15711_v15  ;;  %v15758_v15 = vld [vmem:[#allocation10 + $0x10] sm:$0xff] }
 0x3ac   : > { %7998 = vmatpush1.bf16.msra.mxu0 %v12773_v19  ;;  %v3715_v19 = vunpack.c.l.bf16 %v15637_v10  ;;  %7960 = vmatprep.subr.bf16.mxu1 %v12796_v39  ;;  %v7267_v39 = vld [vmem:[#allocation10 + $0x2e8] sm:$0xff]  ;;  %v12812_v37 = vcombine.high %v15700_v52, %v7266_v24  ;;  %18435 = vst [vmem:[#allocation61_spill] sm:$0xff] %v15758_v15 }
 0x3ad   : > { %7999 = vmatprep.subr.bf16.mxu0 %v12782_v35  ;;  %v7254_v35 = vld [vmem:[#allocation10 + $0x280] sm:$0xff]  ;;  %7961 = vmatpush1.bf16.msra.mxu1 %v12795_v57 }
 0x3ae   : > { %v15683_v30 = vrot.slane %v3715_v19, %v18420_v16  ;;  %v12804_v33 = vcombine.high %v7254_v35, %v7258_v29  ;;  %v15692_v9 = vrot.slane %v3715_v19, %v14703_v14  ;;  %v15708_v19 = vrot.slane %v3546_v4, %v18408_v41 }
 0x3af   : > { %v12803_v31 = vcombine.low %v7254_v35, %v7258_v29  ;;  %v12805_v4 = vcombine.low %v7255_v51, %v7259_v0  ;;  %v15735_v29 = vld [vmem:[#allocation10 + $0x300] sm:$0xff] }
 0x3b0   : > { %8000 = vmatpush1.bf16.msra.mxu0 %v12781_v47  ;;  %v15674_v47 = vrot.slane %v3547_v58, %v18409_v54  ;;  %v15687_v58 = vunpack.i.h.bf16 %v15572_v23  ;;  %v12806_v23 = vcombine.high %v7255_v51, %v7259_v0  ;;  %18430 = vst [vmem:[#allocation60_spill] sm:$0xff] %v15708_v19  ;;  %v15715_v38 = vmul.f32 %v15596_v2, %v15683_v30  ;;  %v7271_v51 = vld [vmem:[#allocation10 + $0x308] sm:$0xff] }
 0x3b1   : > { %8001 = vmatprep.subr.bf16.mxu0 %v12790_v50  ;;  %v3548_v50 = vunpack.c.h.bf16 %v15608_v8  ;;  %v15697_v8 = vld [vmem:[%s18020_s7 + $0x8] sm:$0x88]  ;;  %7962 = vmatprep.subr.bf16.mxu1 %v12804_v33  ;;  %v15739_v33 = vmul.f32 %v15621_v60, %v15705_v32  ;;  %v3596_v55 = vmul.f32 %v15570_v34, %v15708_v19  ;;  %v15760_v19 = vld [vmem:[#allocation10 + $0x30] sm:$0xff] }
 0x3b2   : > { %v3675_v63 = vmul.f32 %v15579_v6, %v15674_v47  ;;  %v7275_v0 = vld [vmem:[#allocation10 + $0x328] sm:$0xff]  ;;  %7963 = vmatpush1.bf16.msra.mxu1 %v12803_v31  ;;  %18436 = vst [vmem:[#allocation48_spill] sm:$0xff] %v15760_v19 }
 0x3b3   : > { %v15718_v22 = vrot.slane %v3548_v50, %v18408_v41  ;;  %v15723_v28 = vrot.slane %v3548_v50, %v18409_v54  ;;  %v15730_v41 = vmul.f32 %v15613_v7, %v15692_v9  ;;  %v7274_v50 = vld [vmem:[#allocation10 + $0x320] sm:$0xff]  ;;  %7964 = vmatprep.subr.bf16.mxu1 %v12812_v37  ;;  %v12822_v42 = vcombine.high %v7271_v51, %v7275_v0 }
 0x3b4   : > { %8002 = vmatpush1.bf16.msra.mxu0 %v12789_v44  ;;  %v7263_v44 = vld [vmem:[#allocation10 + $0x2c8] sm:$0xff]  ;;  %v3691_v57 = vadd.f32 %v3675_v63, %v3597_v5  ;;  %v12811_v63 = vcombine.low %v15700_v52, %v7266_v24  ;;  %v15767_v52 = vrot.slane %v3714_v27, %v14703_v14  ;;  %v7278_v24 = vld [vmem:[#allocation10 + $0x340] sm:$0xff]  ;;  %v3681_v37 = vmul.f32 %v15643_v13, %v15585_v59 }
 0x3b5   : > { %8003 = vmatprep.subr.bf16.mxu0 %v12798_v61  ;;  %18432 = vst [vmem:[#allocation69_spill] sm:$0xff] %v15718_v22  ;;  %v3716_v61 = vunpack.c.h.bf16 %v15637_v10  ;;  %18433 = vst [vmem:[#allocation72_spill] sm:$0xff] %v15723_v28  ;;  %v15733_v10 = vrot.slane %v3714_v27, %v18420_v16  ;;  %v12814_v35 = vcombine.high %v7263_v44, %v7267_v39 }
 0x3b6   : > { %v3676_v54 = vmul.f32 %v15579_v6, %v15723_v28  ;;  %v12813_v32 = vcombine.low %v7263_v44, %v7267_v39  ;;  %18438 = vst [vmem:[#allocation67_spill] sm:$0xff] %v15767_v52  ;;  %v15771_v44 = vld [vmem:[#allocation10 + $0x38] sm:$0xff]  ;;  %v3690_v39 = vadd.f32 %v3674_v48, %v3596_v55  ;;  %v3884_v6 = vunpack.c.h.bf16 %v15657_v20  ;;  %v7279_v28 = vld [vmem:[#allocation10 + $0x348] sm:$0xff]  ;;  %7965 = vmatpush1.bf16.msra.mxu1 %v12811_v63 }
 0x3b7   : > { %18434 = vst [vmem:[#allocation44_spill] sm:$0xff] %v15733_v10  ;;  %v15751_v5 = vrot.slane %v3716_v61, %v18420_v16  ;;  %v3764_v31 = vmul.f32 %v15596_v2, %v15733_v10  ;;  %18439 = vst [vmem:[#allocation71_spill] sm:$0xff] %v15771_v44  ;;  %v15774_v16 = vrot.slane %v3716_v61, %v14703_v14  ;;  %v7283_v10 = vld [vmem:[#allocation10 + $0x368] sm:$0xff]  ;;  %v15787_v55 = vunpack.i.h.bf16 %v15588_v11  ;;  %v7286_v11 = vld [vmem:[#allocation10 + $0x380] sm:$0xff] }
 0x3b8   : > { %8004 = vmatpush1.bf16.msra.mxu0 %v12797_v46  ;;  %v15746_v46 = vrot.slane %v3883_v53, %v14749_v62  ;;  %v12820_v53 = vcombine.high %v15735_v29, %v7274_v50  ;;  %v12819_v61 = vcombine.low %v15735_v29, %v7274_v50  ;;  %v12821_v48 = vcombine.low %v7271_v51, %v7275_v0  ;;  %v7290_v50 = vld [vmem:[#allocation10 + $0x3a0] sm:$0xff]  ;;  %v7291_v0 = vld [vmem:[#allocation10 + $0x3a8] sm:$0xff] }
 0x3b9   : > { %8005 = vmatprep.subr.bf16.mxu0 %v12806_v23  ;;  %v3598_v23 = vmul.f32 %v15570_v34, %v15718_v22  ;;  %v15762_v34 = vld [vmem:[#allocation10 + $0x18] sm:$0xff]  ;;  %18440 = vst [vmem:[#allocation55_spill] sm:$0xff] %v15774_v16  ;;  %v3603_v22 = vmul.f32 %v15610_v26, %v15582_v56  ;;  %v3781_v14 = vadd.f32 %v15715_v38, %v3691_v57  ;;  %v18441_v56 = vunpack.c.l.bf16 %v15697_v8  ;;  %v7287_v57 = vld [vmem:[#allocation10 + $0x388] sm:$0xff] }
 0x3ba   : > { %18437 = vst [vmem:[#allocation46_spill] sm:$0xff] %v15762_v34  ;;  %7966 = vmatprep.subr.bf16.mxu1 %v12820_v53  ;;  %v12830_v29 = vcombine.high %v7279_v28, %v7283_v10  ;;  %v15802_v51 = vrot.slane %v3882_v21, %v14743_v43  ;;  %v3844_v38 = vmul.f32 %v15613_v7, %v15774_v16 }
 0x3bb   : > { %v3692_v20 = vadd.f32 %v3676_v54, %v3598_v23  ;;  %v15797_v59 = vrot.slane %v18441_v56, %v18359_v40  ;;  %v3780_v54 = vadd.f32 %v3764_v31, %v3690_v39  ;;  %v15807_v23 = vrot.slane %v3884_v6, %v14743_v43  ;;  %7967 = vmatpush1.bf16.msra.mxu1 %v12819_v61  ;;  %v7298_v61 = vld [vmem:[#allocation10 + $0x3e0] sm:$0xff] }
 0x3bc   : > { %8006 = vmatpush1.bf16.msra.mxu0 %v12805_v4  ;;  %v7282_v4 = vld [vmem:[#allocation10 + $0x360] sm:$0xff]  ;;  %v3697_v63 = vadd.f32 %v3681_v37, %v3603_v22  ;;  %v3771_v53 = vmul.f32 %v15659_v3, %v15603_v17  ;;  %v12829_v56 = vcombine.low %v7279_v28, %v7283_v10  ;;  %v15816_v16 = vrot.slane %v3882_v21, %v14749_v62  ;;  %v7295_v10 = vld [vmem:[#allocation10 + $0x3c8] sm:$0xff] }
 0x3bd   : > { %8007 = vmatprep.subr.bf16.mxu0 %v12814_v35  ;;  %v3766_v35 = vmul.f32 %v15596_v2, %v15751_v5  ;;  %v12828_v27 = vcombine.high %v7278_v24, %v7282_v4  ;;  %v15792_v2 = vmul.f32 %v15624_v1, %v15746_v46  ;;  %v12827_v31 = vcombine.low %v7278_v24, %v7282_v4  ;;  %v7294_v17 = vld [vmem:[#allocation10 + $0x3c0] sm:$0xff] }
 0x3be   : > { %v4050_v22 = vunpack.c.h.bf16 %v15594_v18  ;;  %v12838_v37 = vcombine.high %v7287_v57, %v7291_v0  ;;  %v15822_v4 = vrot.slane %v3884_v6, %v14749_v62  ;;  %v4052_v28 = vunpack.c.h.bf16 %v15697_v8 }
 0x3bf   : > { %v3782_v39 = vadd.f32 %v3766_v35, %v3692_v20  ;;  %7968 = vmatprep.subr.bf16.mxu1 %v12828_v27  ;;  %v3787_v21 = vadd.f32 %v3771_v53, %v3697_v63  ;;  %v3849_v18 = vmul.f32 %v15687_v58, %v15618_v49  ;;  %v12835_v27 = vcombine.low %v7286_v11, %v7290_v50 }
 0x3c0   : > { %8008 = vmatpush1.bf16.msra.mxu0 %v12813_v32  ;;  %v3842_v32 = vmul.f32 %v15613_v7, %v15767_v52  ;;  %v12836_v52 = vcombine.high %v7286_v11, %v7290_v50  ;;  %v3859_v7 = vadd.f32 %v15730_v41, %v3781_v14  ;;  %v7299_v14 = vld [vmem:[#allocation10 + $0x3e8] sm:$0xff]  ;;  %v3934_v41 = vmul.f32 %v15621_v60, %v15807_v23  ;;  %v13533_v50 = vpop.permute.xlu1 %13532 }
 0x3c1   : > { %8009 = vmatprep.subr.bf16.mxu0 %v12822_v42  ;;  %v15812_v42 = vunpack.i.h.bf16 %v15615_v25  ;;  %v3932_v25 = vmul.f32 %v15621_v60, %v15802_v51  ;;  %7969 = vmatpush1.bf16.msra.mxu1 %v12827_v31  ;;  %v15830_v35 = vunpack.i.h.bf16 %v15639_v45  ;;  %v3860_v20 = vadd.f32 %v3844_v38, %v3782_v39  ;;  %v18445_v39 = vld [vmem:[#allocation47_spill] sm:$0xff] }
 0x3c2   : > { %v3858_v24 = vadd.f32 %v3842_v32, %v3780_v54  ;;  %7970 = vmatprep.subr.bf16.mxu1 %v12836_v52  ;;  %v12837_v6 = vcombine.low %v7287_v57, %v7291_v0  ;;  %v3605_v54 = vmul.f32 %v15610_v26, %v15662_v12  ;;  %v3683_v32 = vmul.f32 %v15643_v13, %v15674_v47 }
 0x3c3   : > { %18442 = vst [vmem:[#allocation62_spill] sm:$0xff] %v15812_v42  ;;  %18443 = vst [vmem:[#allocation36_spill] sm:$0xff] %v15830_v35  ;;  %v12846_v49 = vcombine.high %v7295_v10, %v7299_v14  ;;  %v4010_v45 = vmul.f32 %v15624_v1, %v15816_v16  ;;  %v15840_v11 = vrot.slane %v4050_v22, %v18359_v40  ;;  %v15849_v57 = vunpack.i.l.bf16 %v13533_v50 }
 0x3c4   : > { %8010 = vmatpush1.bf16.msra.mxu0 %v12821_v48  ;;  %v12844_v48 = vcombine.high %v7294_v17, %v7298_v61  ;;  %v3948_v63 = vadd.f32 %v3932_v25, %v3858_v24  ;;  %v4012_v52 = vmul.f32 %v15624_v1, %v15822_v4  ;;  %v3865_v12 = vadd.f32 %v3849_v18, %v3787_v21 }
 0x3c5   : > { %8011 = vmatprep.subr.bf16.mxu0 %v12830_v29  ;;  %v3949_v29 = vadd.f32 %v15739_v33, %v3859_v7  ;;  %v15845_v7 = vrot.slane %v4052_v28, %v18359_v40  ;;  %v18444_v33 = vld [vmem:[#allocation42_spill] sm:$0xff]  ;;  %7971 = vmatpush1.bf16.msra.mxu1 %v12835_v27  ;;  %v12843_v38 = vcombine.low %v7294_v17, %v7298_v61 }
 0x3c6   : > { %v3939_v47 = vmul.f32 %v15787_v55, %v18444_v33  ;;  %v3950_v0 = vadd.f32 %v3934_v41, %v3860_v20  ;;  %7972 = vmatprep.subr.bf16.mxu1 %v12844_v48  ;;  %v12845_v53 = vcombine.low %v7295_v10, %v7299_v14  ;;  %v12728_v31 = vcombine.high %v15758_v15, %v15760_v19  ;;  %v18447_v61 = vld [vmem:[#allocation74_spill] sm:$0xff]  ;;  %v18448_v14 = vld [vmem:[#allocation76_spill] sm:$0xff] }
 0x3c7   : > { %v3699_v24 = vadd.f32 %v3683_v32, %v3605_v54  ;;  %v3773_v25 = vmul.f32 %v15659_v3, %v15683_v30  ;;  %v12730_v17 = vcombine.high %v15762_v34, %v15771_v44  ;;  %v4025_v41 = vadd.f32 %v18447_v61, %v15726_v36  ;;  %v18449_v20 = vld [vmem:[#allocation58_spill] sm:$0xff] }
 0x3c8   : > { %8012 = vmatpush1.bf16.msra.mxu0 %v12829_v56  ;;  %v18446_v56 = vunpack.c.l.bf16 %v15697_v8  ;;  %v4027_v10 = vadd.f32 %v15792_v2, %v3949_v29  ;;  %v4101_v21 = vmul.f32 %v18448_v14, %v15797_v59  ;;  %v15868_v8 = vrot.slane %v4050_v22, %v18445_v39 }
 0x3c9   : > { %8013 = vmatprep.subr.bf16.mxu0 %v12838_v37  ;;  %v4026_v18 = vadd.f32 %v4010_v45, %v3948_v63  ;;  %v4100_v27 = vmul.f32 %v18448_v14, %v15840_v11  ;;  %v3955_v30 = vadd.f32 %v3939_v47, %v3865_v12  ;;  %7973 = vmatpush1.bf16.msra.mxu1 %v12843_v38  ;;  %v15879_v22 = vunpack.i.h.bf16 %v13533_v50  ;;  %v18453_v63 = vld [vmem:[#allocation75_spill] sm:$0xff] }
 0x3ca   : > { %v15856_v37 = vrot.slane %v18446_v56, %v18445_v39  ;;  %v4028_v48 = vadd.f32 %v4012_v52, %v3950_v0  ;;  %v4102_v36 = vmul.f32 %v18448_v14, %v15845_v7  ;;  %v15877_v2 = vrot.slane %v4052_v28, %v18445_v39  ;;  %8028 = vmatprep.subr.bf16.mxu1 %v12728_v31  ;;  %v18454_v52 = vld [vmem:[#allocation56_spill] sm:$0xff] }
 0x3cb   : > { %18450 = vst [vmem:[#allocation41_spill] sm:$0xff] %v15879_v22  ;;  %v3789_v32 = vadd.f32 %v3773_v25, %v3699_v24  ;;  %v4115_v45 = vadd.f32 %v18453_v63, %v4025_v41  ;;  %v4177_v12 = vmul.f32 %v15849_v57, %v18454_v52  ;;  %v4117_v28 = vadd.f32 %v4101_v21, %v4027_v10  ;;  %v3543_v25 = vld [vmem:[%s18020_s7 + $0x10] sm:$0x11]  ;;  %v18460_v41 = vld [vmem:[#allocation60_spill] sm:$0xff] }
 0x3cc   : > { %8014 = vmatpush1.bf16.msra.mxu0 %v12837_v6  ;;  %v4017_v6 = vmul.f32 %v15812_v42, %v18449_v20  ;;  %v4179_v33 = vmul.f32 %v15849_v57, %v15856_v37  ;;  %v4116_v38 = vadd.f32 %v4100_v27, %v4026_v18  ;;  %v4178_v0 = vmul.f32 %v15849_v57, %v15868_v8  ;;  %v18461_v21 = vld [vmem:[#allocation45_spill] sm:$0xff] }
 0x3cd   : > { %8015 = vmatprep.subr.bf16.mxu0 %v12846_v49  ;;  %v3851_v49 = vmul.f32 %v15687_v58, %v15692_v9  ;;  %v18457_v9 = vld [vmem:[#allocation63_spill] sm:$0xff]  ;;  %v4180_v61 = vmul.f32 %v15849_v57, %v15877_v2  ;;  %v3604_v10 = vmul.f32 %v15610_v26, %v18460_v41  ;;  %v3682_v18 = vmul.f32 %v15643_v13, %v18461_v21 }
 0x3ce   : > { %v4107_v31 = vmul.f32 %v15830_v35, %v18457_v9  ;;  %v18465_v9 = vld [vmem:[#allocation69_spill] sm:$0xff]  ;;  %v3549_v34 = vunpack.c.l.bf16 %v3543_v25  ;;  %v15923_v19 = vadd.f32 %v4177_v12, %v4115_v45  ;;  %v15925_v41 = vadd.f32 %v4179_v33, %v4117_v28  ;;  %v3544_v12 = vld [vmem:[%s18020_s7 + $0x18] sm:$0x11] }
 0x3cf   : > { %v3867_v20 = vadd.f32 %v3851_v49, %v3789_v32  ;;  %v4185_v15 = vmul.f32 %v15879_v22, %v18454_v52  ;;  %v15932_v32 = vld [vmem:[%s18020_s7 + $0x10] sm:$0x22]  ;;  %v15934_v49 = vadd.f32 %v4178_v0, %v4116_v38  ;;  %v4019_v52 = vmul.f32 %v15812_v42, %v15746_v46 }
 0x3d0   : > { %8016 = vmatpush1.bf16.msra.mxu0 %v12845_v53  ;;  %v4033_v53 = vadd.f32 %v4017_v6, %v3955_v30  ;;  %v18464_v6 = vld [vmem:[#allocation59_spill] sm:$0xff]  ;;  %18467 = vst [vmem:[#allocation77_spill] sm:$0xff] %v15923_v19  ;;  %18468 = vst [vmem:[#allocation40_spill] sm:$0xff] %v15925_v41  ;;  %v4109_v33 = vmul.f32 %v15830_v35, %v15797_v59  ;;  %v3774_v38 = vmul.f32 %v15659_v3, %v15751_v5 }
 0x3d1   : > { %8071 = vmatprep.subr.bf16.mxu0 %v12730_v17  ;;  %v4118_v17 = vadd.f32 %v4102_v36, %v4028_v48  ;;  %v3941_v63 = vmul.f32 %v15787_v55, %v18464_v6  ;;  %v3606_v48 = vmul.f32 %v15610_v26, %v18465_v9  ;;  %v18466_v36 = vld [vmem:[#allocation72_spill] sm:$0xff]  ;;  %18469 = vst [vmem:[#allocation49_spill] sm:$0xff] %v15934_v49 }
 0x3d2   : > { %v3684_v44 = vmul.f32 %v15643_v13, %v18466_v36  ;;  %v4123_v21 = vadd.f32 %v4107_v31, %v4033_v53  ;;  %v3698_v9 = vadd.f32 %v3682_v18, %v3604_v10  ;;  %v18471_v36 = vld [vmem:[#allocation44_spill] sm:$0xff]  ;;  %v18472_v53 = vld [vmem:[#allocation27_spill] sm:$0xff]  ;;  %v3717_v10 = vunpack.c.l.bf16 %v15932_v32 }
 0x3d3   : > { %v15936_v6 = vadd.f32 %v4180_v61, %v4118_v17  ;;  %v3772_v45 = vmul.f32 %v15659_v3, %v18471_v36  ;;  %v3957_v28 = vadd.f32 %v3941_v63, %v3867_v20  ;;  %v15950_v31 = vrot.slane %v3549_v34, %v18472_v53  ;;  %v18473_v17 = vld [vmem:[#allocation28_spill] sm:$0xff]  ;;  %v18475_v20 = vld [vmem:[#allocation67_spill] sm:$0xff] }
 0x3d4   : > { %v3700_v0 = vadd.f32 %v3684_v44, %v3606_v48  ;;  %v15953_v61 = vrot.slane %v3549_v34, %v18473_v17  ;;  %v15956_v18 = vadd.f32 %v4185_v15, %v4123_v21  ;;  %v4187_v46 = vmul.f32 %v15879_v22, %v15856_v37  ;;  %v15969_v34 = vld [vmem:[%s18020_s7 + $0x18] sm:$0x22] }
 0x3d5   : > { %18470 = vst [vmem:[#allocation43_spill] sm:$0xff] %v15936_v6  ;;  %v3850_v59 = vmul.f32 %v15687_v58, %v18475_v20  ;;  %v3551_v63 = vunpack.c.l.bf16 %v3544_v12  ;;  %v3788_v36 = vadd.f32 %v3772_v45, %v3698_v9  ;;  %v3940_v5 = vmul.f32 %v15787_v55, %v15802_v51  ;;  %v18476_v9 = vld [vmem:[#allocation55_spill] sm:$0xff] }
 0x3d6   : > { %18474 = vst [vmem:[#allocation39_spill] sm:$0xff] %v15956_v18  ;;  %v4018_v44 = vmul.f32 %v15812_v42, %v15816_v16  ;;  %v3550_v15 = vunpack.c.h.bf16 %v3543_v25  ;;  %v4035_v48 = vadd.f32 %v4019_v52, %v3957_v28  ;;  %v15973_v37 = vmul.f32 %v15830_v35, %v15840_v11  ;;  %v18477_v16 = vld [vmem:[#allocation34_spill] sm:$0xff]  ;;  %v18479_v25 = vld [vmem:[#allocation29_spill] sm:$0xff] }
 0x3d7   : > { %v15977_v21 = vmul.f32 %v15879_v22, %v15868_v8  ;;  %v3852_v51 = vmul.f32 %v15687_v58, %v18476_v9  ;;  %v3790_v45 = vadd.f32 %v3774_v38, %v3700_v0  ;;  %v3599_v20 = vmul.f32 %v18477_v16, %v15950_v31  ;;  %v15991_v11 = vld [vmem:[%s18020_s7 + $0x10] sm:$0x44] }
 0x3d8   : > { %v15986_v28 = vrot.slane %v3717_v10, %v18479_v25  ;;  %v3942_v8 = vmul.f32 %v15787_v55, %v15807_v23  ;;  %v15996_v52 = vrot.slane %v3551_v63, %v18472_v53  ;;  %v15999_v38 = vrot.slane %v3551_v63, %v18473_v17 }
 0x3d9   : > { %v3719_v0 = vunpack.c.l.bf16 %v15969_v34  ;;  %v3866_v9 = vadd.f32 %v3850_v59, %v3788_v36  ;;  %v16006_v18 = vrot.slane %v3550_v15, %v18473_v17  ;;  %v4020_v23 = vmul.f32 %v15812_v42, %v15822_v4  ;;  %v18481_v36 = vld [vmem:[#allocation32_spill] sm:$0xff]  ;;  %v18482_v42 = vld [vmem:[#allocation33_spill] sm:$0xff] }
 0x3da   : > { %v3885_v49 = vunpack.c.l.bf16 %v15991_v11  ;;  %v3868_v63 = vadd.f32 %v3852_v51, %v3790_v45  ;;  %v16015_v19 = vrot.slane %v3717_v10, %v18481_v36  ;;  %v16042_v51 = vmul.f32 %v15879_v22, %v15877_v2  ;;  %v16059_v2 = vld [vmem:[%s18020_s7 + $0x10] sm:$0x88] }
 0x3dc   : > { %v16054_v41 = vrot.slane %v3885_v49, %v14743_v43 }
 0x416   : > { %v15881_v29 = vpop.f32.mrb[12].mxu0  ;;  %v15883_v54 = vpop.f32.mrb[12].mxu1 }
 0x417   : > { %18451 = vst [vmem:[#allocation53_spill] sm:$0xff] %v15881_v29  ;;  %18452 = vst [vmem:[#allocation64_spill] sm:$0xff] %v15883_v54  ;;  %v15892_v50 = vpop.f32.mrb[13].mxu0  ;;  %v15894_v47 = vpop.f32.mrb[13].mxu1  ;;  %v18480_v29 = vld [vmem:[#allocation66_spill] sm:$0xff]  ;;  %v3845_v54 = vmul.f32 %v18482_v42, %v16015_v19 }
 0x418   : > { %18455 = vst [vmem:[#allocation70_spill] sm:$0xff] %v15892_v50  ;;  %18456 = vst [vmem:[#allocation31_spill] sm:$0xff] %v15894_v47  ;;  %v15900_v56 = vpop.f32.mrb[14].mxu0  ;;  %v15902_v24 = vpop.f32.mrb[14].mxu1  ;;  %v4125_v50 = vadd.f32 %v4109_v33, %v4035_v48  ;;  %v3552_v47 = vunpack.c.h.bf16 %v3544_v12  ;;  %v3767_v59 = vmul.f32 %v18480_v29, %v15986_v28  ;;  %v16026_v12 = vrot.slane %v3719_v0, %v18479_v25  ;;  %v16031_v33 = vld [vmem:[%s18020_s7 + $0x18] sm:$0x44] }
 0x419   : > { %18458 = vst [vmem:[#allocation73_spill] sm:$0xff] %v15900_v56  ;;  %18459 = vst [vmem:[#allocation68_spill] sm:$0xff] %v15902_v24  ;;  %v15913_v27 = vpop.f32.mrb[15].mxu0  ;;  %v15915_v30 = vpop.f32.mrb[15].mxu1  ;;  %v16003_v56 = vrot.slane %v3550_v15, %v18472_v53  ;;  %v3718_v24 = vunpack.c.h.bf16 %v15932_v32  ;;  %v16019_v15 = vmul.f32 %v15830_v35, %v15845_v7  ;;  %v3601_v32 = vmul.f32 %v18477_v16, %v15996_v52 }
 0x41a   : > { %18462 = vst [vmem:[#allocation35_spill] sm:$0xff] %v15913_v27  ;;  %18463 = vst [vmem:[#allocation30_spill] sm:$0xff] %v15915_v30  ;;  %v18478_v27 = vld [vmem:[#allocation57_spill] sm:$0xff]  ;;  %v16048_v45 = vrot.slane %v3552_v47, %v18473_v17  ;;  %v16064_v17 = vrot.slane %v3719_v0, %v18481_v36 }
 0x41b   : > { %v3677_v30 = vmul.f32 %v18478_v27, %v15953_v61  ;;  %v3679_v4 = vmul.f32 %v18478_v27, %v15999_v38  ;;  %v3600_v10 = vmul.f32 %v18477_v16, %v16003_v56  ;;  %v3678_v7 = vmul.f32 %v18478_v27, %v16006_v18 }
 0x41c   : > { %v16038_v48 = vrot.slane %v3718_v24, %v18479_v25  ;;  %v3680_v0 = vmul.f32 %v18478_v27, %v16048_v45 }
 0x41d   : > { %v3693_v6 = vadd.f32 %v3677_v30, %v3599_v20  ;;  %v3956_v30 = vadd.f32 %v3940_v5, %v3866_v9  ;;  %v16045_v5 = vrot.slane %v3552_v47, %v18472_v53  ;;  %v3720_v20 = vunpack.c.h.bf16 %v15969_v34 }
 0x41e   : > { %v3958_v9 = vadd.f32 %v3942_v8, %v3868_v63  ;;  %v3695_v22 = vadd.f32 %v3679_v4, %v3601_v32  ;;  %v3769_v47 = vmul.f32 %v18480_v29, %v16026_v12  ;;  %v3694_v34 = vadd.f32 %v3678_v7, %v3600_v10 }
 0x41f   : > { %v3783_v35 = vadd.f32 %v3767_v59, %v3693_v6  ;;  %v3887_v6 = vunpack.c.l.bf16 %v16031_v33  ;;  %v3768_v8 = vmul.f32 %v18480_v29, %v16038_v48  ;;  %v16070_v63 = vrot.slane %v3718_v24, %v18481_v36 }
 0x420   : > { %v3886_v59 = vunpack.c.h.bf16 %v15991_v11  ;;  %v16073_v53 = vadd.f32 %v4187_v46, %v4125_v50  ;;  %v3602_v32 = vmul.f32 %v18477_v16, %v16045_v5  ;;  %v16080_v4 = vrot.slane %v3720_v20, %v18479_v25 }
 0x421   : > { %18483 = vst [vmem:[#allocation65_spill] sm:$0xff] %v16070_v63  ;;  %v3861_v10 = vadd.f32 %v3845_v54, %v3783_v35  ;;  %v3935_v7 = vmul.f32 %v15621_v60, %v16054_v41  ;;  %v16085_v24 = vrot.slane %v3885_v49, %v14749_v62  ;;  %v4053_v11 = vunpack.c.l.bf16 %v16059_v2  ;;  %v16096_v35 = vld [vmem:[%s18020_s7 + $0x18] sm:$0x88] }
 0x422   : > { %18484 = vst [vmem:[#allocation50_spill] sm:$0xff] %v16073_v53  ;;  %v4034_v50 = vadd.f32 %v4018_v44, %v3956_v30  ;;  %v3785_v46 = vadd.f32 %v3769_v47, %v3695_v22  ;;  %v3847_v16 = vmul.f32 %v18482_v42, %v16064_v17  ;;  %v16091_v53 = vrot.slane %v3887_v6, %v14743_v43 }
 0x423   : > { %v4036_v27 = vadd.f32 %v4020_v23, %v3958_v9  ;;  %v3784_v54 = vadd.f32 %v3768_v8, %v3694_v34  ;;  %v3846_v49 = vmul.f32 %v18482_v42, %v16070_v63  ;;  %v16101_v25 = vrot.slane %v3886_v59, %v14743_v43 }
 0x424   : > { %v3696_v22 = vadd.f32 %v3680_v0, %v3602_v32  ;;  %v3770_v44 = vmul.f32 %v18480_v29, %v16080_v4  ;;  %v16106_v30 = vrot.slane %v3720_v20, %v18481_v36  ;;  %v3888_v23 = vunpack.c.h.bf16 %v16031_v33 }
 0x425   : > { %v3951_v9 = vadd.f32 %v3935_v7, %v3861_v10  ;;  %v4013_v47 = vmul.f32 %v15624_v1, %v16085_v24  ;;  %v16112_v34 = vrot.slane %v4053_v11, %v18359_v40  ;;  %v16115_v8 = vrot.slane %v4053_v11, %v18445_v39 }
 0x426   : > { %v3863_v63 = vadd.f32 %v3847_v16, %v3785_v46  ;;  %v3937_v32 = vmul.f32 %v15621_v60, %v16091_v53  ;;  %v16120_v29 = vrot.slane %v3887_v6, %v14749_v62  ;;  %v4055_v20 = vunpack.c.l.bf16 %v16096_v35 }
 0x427   : > { %v3862_v33 = vadd.f32 %v3846_v49, %v3784_v54  ;;  %v3936_v0 = vmul.f32 %v15621_v60, %v16101_v25  ;;  %v16126_v10 = vrot.slane %v3886_v59, %v14749_v62  ;;  %v4054_v7 = vunpack.c.h.bf16 %v16059_v2 }
 0x428   : > { %v4124_v11 = vadd.f32 %v15973_v37, %v4034_v50  ;;  %v3786_v46 = vadd.f32 %v3770_v44, %v3696_v22  ;;  %v3848_v16 = vmul.f32 %v18482_v42, %v16106_v30  ;;  %v16133_v6 = vrot.slane %v3888_v23, %v14743_v43 }
 0x429   : > { %v4126_v36 = vadd.f32 %v16019_v15, %v4036_v27  ;;  %v4103_v54 = vmul.f32 %v18448_v14, %v16112_v34  ;;  %v3607_v59 = vmul.f32 %v15610_v26, %v15950_v31  ;;  %v3685_v2 = vmul.f32 %v15643_v13, %v15953_v61 }
 0x42a   : > { %v4181_v37 = vmul.f32 %v15849_v57, %v16115_v8  ;;  %v3953_v50 = vadd.f32 %v3937_v32, %v3863_v63  ;;  %v4015_v42 = vmul.f32 %v15624_v1, %v16120_v29  ;;  %v16147_v49 = vrot.slane %v4055_v20, %v18359_v40 }
 0x42b   : > { %v4029_v15 = vadd.f32 %v4013_v47, %v3951_v9  ;;  %v3952_v27 = vadd.f32 %v3936_v0, %v3862_v33  ;;  %v4014_v22 = vmul.f32 %v15624_v1, %v16126_v10  ;;  %v16152_v31 = vrot.slane %v4054_v7, %v18359_v40 }
 0x42c   : > { %v3864_v44 = vadd.f32 %v3848_v16, %v3786_v46  ;;  %v3938_v61 = vmul.f32 %v15621_v60, %v16133_v6  ;;  %v16157_v63 = vrot.slane %v3888_v23, %v14749_v62  ;;  %v4056_v32 = vunpack.c.h.bf16 %v16096_v35 }
 0x42d   : > { %v3701_v43 = vadd.f32 %v3685_v2, %v3607_v59  ;;  %v3775_v9 = vmul.f32 %v15659_v3, %v15986_v28  ;;  %v3609_v47 = vmul.f32 %v15610_v26, %v15996_v52  ;;  %v3687_v33 = vmul.f32 %v15643_v13, %v15999_v38 }
 0x42e   : > { %v4031_v0 = vadd.f32 %v4015_v42, %v3953_v50  ;;  %v4105_v46 = vmul.f32 %v18448_v14, %v16147_v49  ;;  %v16169_v60 = vrot.slane %v4055_v20, %v18445_v39  ;;  %v16172_v23 = vrot.slane %v4054_v7, %v18445_v39 }
 0x42f   : > { %v4030_v35 = vadd.f32 %v4014_v22, %v3952_v27  ;;  %v4104_v28 = vmul.f32 %v18448_v14, %v16152_v31  ;;  %v3610_v52 = vmul.f32 %v15610_v26, %v16045_v5  ;;  %v3688_v38 = vmul.f32 %v15643_v13, %v16048_v45 }
 0x430   : > { %v4119_v16 = vadd.f32 %v4103_v54, %v4029_v15  ;;  %v3954_v59 = vadd.f32 %v3938_v61, %v3864_v44  ;;  %v4016_v2 = vmul.f32 %v15624_v1, %v16157_v63  ;;  %v16183_v20 = vrot.slane %v4056_v32, %v18359_v40 }
 0x431   : > { %v3791_v7 = vadd.f32 %v3775_v9, %v3701_v43  ;;  %v3853_v50 = vmul.f32 %v15687_v58, %v16015_v19  ;;  %v3703_v42 = vadd.f32 %v3687_v33, %v3609_v47  ;;  %v3777_v27 = vmul.f32 %v15659_v3, %v16026_v12 }
 0x432   : > { %v4121_v5 = vadd.f32 %v4105_v46, %v4031_v0  ;;  %v4183_v45 = vmul.f32 %v15849_v57, %v16169_v60  ;;  %v3608_v54 = vmul.f32 %v15610_v26, %v16003_v56  ;;  %v3686_v1 = vmul.f32 %v15643_v13, %v16006_v18  ;;  %v16208_v26 = vld [vmem:[%s18022_s9] sm:$0xff]  ;;  %v18485_v46 = vld [vmem:[#allocation40_spill] sm:$0xff] }
 0x433   : > { %v4120_v15 = vadd.f32 %v4104_v28, %v4030_v35  ;;  %v4182_v43 = vmul.f32 %v15849_v57, %v16172_v23  ;;  %v3704_v22 = vadd.f32 %v3688_v38, %v3610_v52  ;;  %v3778_v19 = vmul.f32 %v15659_v3, %v16080_v4  ;;  %v18486_v35 = vld [vmem:[#allocation64_spill] sm:$0xff] }
 0x434   : > { %v4202_v12 = vadd.f32 %v15977_v21, %v4124_v11  ;;  %v4032_v44 = vadd.f32 %v4016_v2, %v3954_v59  ;;  %v4106_v61 = vmul.f32 %v18448_v14, %v16183_v20  ;;  %v16203_v9 = vrot.slane %v4056_v32, %v18445_v39  ;;  %v18489_v59 = vld [vmem:[#allocation77_spill] sm:$0xff] }
 0x435   : > { %v3869_v13 = vadd.f32 %v3853_v50, %v3791_v7  ;;  %v3943_v56 = vmul.f32 %v15787_v55, %v16054_v41  ;;  %v3793_v18 = vadd.f32 %v3777_v27, %v3703_v42  ;;  %v3855_v21 = vmul.f32 %v15687_v58, %v16064_v17  ;;  %v18487_v17 = vld [vmem:[#allocation29_spill] sm:$0xff]  ;;  %v18491_v7 = vld [vmem:[#allocation27_spill] sm:$0xff] }
 0x436   : > { %v4204_v4 = vadd.f32 %v16042_v51, %v4126_v36  ;;  %v16215_v11 = vadd.f32 %v4181_v37, %v4119_v16  ;;  %v3702_v14 = vadd.f32 %v3686_v1, %v3608_v54  ;;  %v3776_v32 = vmul.f32 %v15659_v3, %v16038_v48  ;;  %v18488_v3 = vld [vmem:[#allocation62_spill] sm:$0xff]  ;;  %v18492_v27 = vld [vmem:[#allocation65_spill] sm:$0xff]  ;;  %v18495_v1 = vld [vmem:[#allocation32_spill] sm:$0xff] }
 0x437   : > { %v16219_v47 = vadd.f32 %v4183_v45, %v4121_v5  ;;  %v16221_v33 = vadd.f32 %v4182_v43, %v4120_v15  ;;  %v3794_v0 = vadd.f32 %v3778_v19, %v3704_v22  ;;  %v3856_v41 = vmul.f32 %v15687_v58, %v16106_v30  ;;  %v18490_v30 = vld [vmem:[#allocation53_spill] sm:$0xff]  ;;  %v18493_v45 = vld [vmem:[#allocation43_spill] sm:$0xff]  ;;  %v18497_v19 = vld [vmem:[#allocation70_spill] sm:$0xff] }
 0x438   : > { %v6095_v28 = vadd.f32 %v18486_v35, %v18485_v46  ;;  %v6122_v36 = vrot.slane %v16208_v26, %v18487_v17  ;;  %v4122_v51 = vadd.f32 %v4106_v61, %v4032_v44  ;;  %v4184_v37 = vmul.f32 %v15849_v57, %v16203_v9  ;;  %v18494_v57 = vld [vmem:[#allocation31_spill] sm:$0xff]  ;;  %v18496_v22 = vld [vmem:[#allocation49_spill] sm:$0xff]  ;;  %v18498_v61 = vld [vmem:[#allocation28_spill] sm:$0xff] }
 0x439   : > { %v3959_v52 = vadd.f32 %v3943_v56, %v3869_v13  ;;  %v4021_v48 = vmul.f32 %v18488_v3, %v16085_v24  ;;  %v3871_v38 = vadd.f32 %v3855_v21, %v3793_v18  ;;  %v3945_v16 = vmul.f32 %v15787_v55, %v16091_v53  ;;  %v18499_v56 = vld [vmem:[#allocation36_spill] sm:$0xff]  ;;  %v18500_v18 = vld [vmem:[#allocation50_spill] sm:$0xff]  ;;  %v18502_v46 = vld [vmem:[#allocation39_spill] sm:$0xff] }
 0x43a   : > { %v6093_v2 = vadd.f32 %v18490_v30, %v18489_v59  ;;  %v6114_v50 = vrot.slane %v16208_v26, %v18491_v7  ;;  %v3792_v42 = vadd.f32 %v3776_v32, %v3702_v14  ;;  %v3854_v5 = vmul.f32 %v15687_v58, %v18492_v27  ;;  %v18501_v21 = vld [vmem:[#allocation68_spill] sm:$0xff]  ;;  %v18503_v35 = vld [vmem:[#allocation73_spill] sm:$0xff] }
 0x43b   : > { %v6096_v54 = vadd.f32 %v18494_v57, %v18493_v45  ;;  %v6126_v24 = vrot.slane %v16208_v26, %v18495_v1  ;;  %v3872_v15 = vadd.f32 %v3856_v41, %v3794_v0  ;;  %v3946_v53 = vmul.f32 %v15787_v55, %v16133_v6  ;;  %v18504_v45 = vld [vmem:[#allocation30_spill] sm:$0xff] }
 0x43c   : > { %v6153_v43 = vadd.f32 %v6122_v36, %v6095_v28  ;;  %v6094_v44 = vadd.f32 %v18497_v19, %v18496_v22  ;;  %v6118_v13 = vrot.slane %v16208_v26, %v18498_v61  ;;  %v4111_v58 = vmul.f32 %v18499_v56, %v16112_v34 }
 0x43d   : > { %v6103_v14 = vadd.f32 %v18501_v21, %v18500_v18  ;;  %v4037_v32 = vadd.f32 %v4021_v48, %v3959_v52  ;;  %v4023_v0 = vmul.f32 %v18488_v3, %v16120_v29  ;;  %v3944_v6 = vmul.f32 %v15787_v55, %v16101_v25  ;;  %v18505_v29 = vld [vmem:[#allocation41_spill] sm:$0xff] }
 0x43e   : > { %v6151_v41 = vadd.f32 %v6114_v50, %v6093_v2  ;;  %v6101_v28 = vadd.f32 %v18503_v35, %v18502_v46  ;;  %v3961_v59 = vadd.f32 %v3945_v16, %v3871_v38  ;;  %v3870_v30 = vadd.f32 %v3854_v5, %v3792_v42  ;;  %v18506_v2 = vld [vmem:[#allocation35_spill] sm:$0xff] }
 0x43f   : > { %v6154_v27 = vadd.f32 %v6126_v24, %v6096_v54  ;;  %v6104_v57 = vadd.f32 %v18504_v45, %v4204_v4  ;;  %v3962_v34 = vadd.f32 %v3946_v53, %v3872_v15  ;;  %v4024_v22 = vmul.f32 %v18488_v3, %v16157_v63 }
 0x440   : > { %v6169_v52 = vmul.f32 0.5, %v6153_v43  ;;  %v6152_v48 = vadd.f32 %v6118_v13, %v6094_v44  ;;  %v4189_v19 = vmul.f32 %v18505_v29, %v16115_v8  ;;  %v4113_v55 = vmul.f32 %v18499_v56, %v16147_v49 }
 0x441   : > { %v6161_v25 = vadd.f32 %v6122_v36, %v6103_v14  ;;  %v6102_v18 = vadd.f32 %v18506_v2, %v4202_v12  ;;  %v4127_v38 = vadd.f32 %v4111_v58, %v4037_v32  ;;  %v4022_v16 = vmul.f32 %v18488_v3, %v16126_v10 }
 0x442   : > { %v6167_v4 = vmul.f32 0.5, %v6151_v41  ;;  %v6159_v42 = vadd.f32 %v6114_v50, %v6101_v28  ;;  %v4039_v5 = vadd.f32 %v4023_v0, %v3961_v59  ;;  %v3960_v54 = vadd.f32 %v3944_v6, %v3870_v30 }
 0x443   : > { %v6170_v63 = vmul.f32 0.5, %v6154_v27  ;;  %v6162_v15 = vadd.f32 %v6126_v24, %v6104_v57  ;;  %v4040_v53 = vadd.f32 %v4024_v22, %v3962_v34  ;;  %v4114_v8 = vmul.f32 %v18499_v56, %v16183_v20 }
 0x444   : > { %13708 = vtanh.f32 %v6169_v52  ;;  %v6168_v43 = vmul.f32 0.5, %v6152_v48  ;;  %v4200_v49 = vadd.f32 %v4184_v37, %v4122_v51  ;;  %v4191_v12 = vmul.f32 %v18505_v29, %v16169_v60  ;;  %v18507_v37 = vld [vmem:[#allocation37_spill] sm:$0xff] }
 0x445   : > { %v6175_v36 = vmul.f32 0.5, %v6161_v25  ;;  %v6160_v44 = vadd.f32 %v6118_v13, %v6102_v18  ;;  %v4205_v58 = vadd.f32 %v4189_v19, %v4127_v38  ;;  %v4112_v10 = vmul.f32 %v18499_v56, %v16152_v31 }
 0x446   : > { %13710 = vtanh.f32 %v6167_v4  ;;  %v6173_v3 = vmul.f32 0.5, %v6159_v42  ;;  %v4129_v50 = vadd.f32 %v4113_v55, %v4039_v5  ;;  %v4038_v24 = vadd.f32 %v4022_v16, %v3960_v54 }
 0x447   : > { %13712 = vtanh.f32 %v6170_v63  ;;  %v6176_v21 = vmul.f32 0.5, %v6162_v15  ;;  %v4130_v14 = vadd.f32 %v4114_v8, %v4040_v53  ;;  %v4192_v20 = vmul.f32 %v18505_v29, %v16203_v9 }
 0x448   : > { %13714 = vtanh.f32 %v6168_v43  ;;  %v6130_v60 = vrot.slane %v16208_v26, %v18507_v37  ;;  %v6138_v13 = vrot.slane %v16208_v26, %v18359_v40  ;;  %v4190_v31 = vmul.f32 %v18505_v29, %v16172_v23 }
 0x449   : > { %13716 = vtanh.f32 %v6175_v36  ;;  %v6174_v56 = vmul.f32 0.5, %v6160_v44  ;;  %v6142_v9 = vrot.slane %v16208_v26, %v18445_v39  ;;  %v4207_v28 = vadd.f32 %v4191_v12, %v4129_v50 }
 0x44a   : > { %13718 = vtanh.f32 %v6173_v3  ;;  %v4128_v59 = vadd.f32 %v4112_v10, %v4038_v24  ;;  %v6134_v23 = vrot.slane %v16208_v26, %v14749_v62 }
 0x44b   : > { %13720 = vtanh.f32 %v6176_v21 }
 0x44c   : > { %13722 = vtanh.f32 %v6174_v56  ;;  %v4206_v25 = vadd.f32 %v4190_v31, %v4128_v59 }
 0x44e   : > { %v13709_v19 = vpop.eup %13708 }
 0x44f   : > { %v6193_v42 = vadd.f32 1.0, %v13709_v19 }
 0x450   : > { %v13711_v18 = vpop.eup %13710 }
 0x451   : > { %v13713_v4 = vpop.eup %13712  ;;  %v6191_v15 = vadd.f32 1.0, %v13711_v18  ;;  %v6205_v36 = vmul.f32 0.5, %v6193_v42 }
 0x452   : > { %v13715_v54 = vpop.eup %13714  ;;  %v6194_v8 = vadd.f32 1.0, %v13713_v4 }
 0x453   : > { %v13717_v63 = vpop.eup %13716  ;;  %v6192_v44 = vadd.f32 1.0, %v13715_v54  ;;  %v6203_v50 = vmul.f32 0.5, %v6191_v15 }
 0x454   : > { %v13719_v53 = vpop.eup %13718 }
 0x455   : > { %v13721_v12 = vpop.eup %13720  ;;  %v6197_v24 = vadd.f32 1.0, %v13719_v53  ;;  %v6204_v56 = vmul.f32 0.5, %v6192_v44 }
 0x456   : > { %v6041_v51 = vpop.f32.mrb[16].mxu0  ;;  %v13723_v3 = vpop.eup %13722 }
 0x457   : > { %v6097_v32 = vadd.f32 %v6041_v51, %v16215_v11  ;;  %v6084_v0 = vpop.f32.mrb[16].mxu1  ;;  %v6043_v6 = vpop.f32.mrb[17].mxu0  ;;  %v4208_v11 = vadd.f32 %v4192_v20, %v4130_v14  ;;  %v6206_v14 = vmul.f32 0.5, %v6194_v8  ;;  %v6200_v20 = vadd.f32 1.0, %v13721_v12 }
 0x458   : > { %v6099_v41 = vadd.f32 %v6084_v0, %v16219_v47  ;;  %v6086_v46 = vpop.f32.mrb[17].mxu1  ;;  %v6045_v35 = vpop.f32.mrb[18].mxu0  ;;  %v6098_v22 = vadd.f32 %v6043_v6, %v16221_v33  ;;  %v6198_v0 = vadd.f32 1.0, %v13723_v3 }
 0x459   : > { %v6100_v30 = vadd.f32 %v6086_v46, %v4200_v49  ;;  %v6088_v27 = vpop.f32.mrb[18].mxu1  ;;  %v6047_v45 = vpop.f32.mrb[19].mxu0  ;;  %v6155_v57 = vadd.f32 %v6130_v60, %v6097_v32  ;;  %v6105_v55 = vadd.f32 %v6045_v35, %v4205_v58  ;;  %v6199_v58 = vadd.f32 1.0, %v13717_v63  ;;  %v13829_v46 = vld [vmem:[%s14330_s25 + $0x8] sm:$0xff] }
 0x45a   : > { %v6157_v34 = vadd.f32 %v6138_v13, %v6099_v41  ;;  %v6107_v52 = vadd.f32 %v6088_v27, %v4207_v28  ;;  %v6090_v48 = vpop.f32.mrb[19].mxu1  ;;  %v6156_v38 = vadd.f32 %v6134_v23, %v6098_v22  ;;  %v6106_v16 = vadd.f32 %v6047_v45, %v4206_v25  ;;  %v13830_v27 = vld [vmem:[%s14330_s25 + $0x10] sm:$0xff] }
 0x45b   : > { %v6158_v47 = vadd.f32 %v6142_v9, %v6100_v30  ;;  %v6108_v29 = vadd.f32 %v6090_v48, %v4208_v11  ;;  %v6171_v26 = vmul.f32 0.5, %v6155_v57  ;;  %v6163_v33 = vadd.f32 %v6130_v60, %v6105_v55  ;;  %v13828_v60 = vld [vmem:[%s14330_s25] sm:$0xff] }
 0x45c   : > { %13724 = vtanh.f32 %v6157_v34  ;;  %v6165_v2 = vadd.f32 %v6138_v13, %v6107_v52  ;;  %v6172_v43 = vmul.f32 0.5, %v6156_v38  ;;  %v6164_v49 = vadd.f32 %v6134_v23, %v6106_v16  ;;  %v13831_v52 = vld [vmem:[%s14330_s25 + $0x18] sm:$0xff] }
 0x45d   : > { %13726 = vtanh.f32 %v6158_v47  ;;  %v6166_v5 = vadd.f32 %v6142_v9, %v6108_v29  ;;  %v6177_v10 = vmul.f32 0.5, %v6163_v33  ;;  %v6219_v13 = vmul.f32 %v13828_v60, %v6205_v36 }
 0x45e   : > { %13728 = vtanh.f32 %v6165_v2  ;;  %v6178_v51 = vmul.f32 0.5, %v6164_v49  ;;  %v6211_v32 = vmul.f32 0.5, %v6199_v58  ;;  %v6209_v9 = vmul.f32 0.5, %v6197_v24 }
 0x45f   : > { %13730 = vtanh.f32 %v6171_v26  ;;  %v6220_v35 = vmul.f32 %v13829_v46, %v6206_v14  ;;  %v6212_v28 = vmul.f32 0.5, %v6200_v20  ;;  %v6210_v11 = vmul.f32 0.5, %v6198_v0  ;;  %v6260_v26 = vld [vmem:[%s18018_s5] sm:$0x3]  ;;  %v7185_v46 = vld [vmem:[#allocation10 + $0x58] sm:$0xff] }
 0x460   : > { %13732 = vtanh.f32 %v6166_v5  ;;  %v6221_v45 = vmul.f32 %v13830_v27, %v6211_v32  ;;  %v6265_v42 = vrot.slane %v6260_v26, %v18491_v7  ;;  %v6269_v5 = vrot.slane %v6260_v26, %v18498_v61  ;;  %v7196_v27 = vld [vmem:[#allocation10 + $0xb0] sm:$0xff]  ;;  %v7201_v26 = vld [vmem:[#allocation10 + $0xd8] sm:$0xff] }
 0x461   : > { %13734 = vtanh.f32 %v6172_v43  ;;  %v6222_v48 = vmul.f32 %v13831_v52, %v6212_v28  ;;  %v18511_v52 = vld [vmem:[#allocation46_spill] sm:$0xff] }
 0x462   : > { %13736 = vtanh.f32 %v6177_v10 }
 0x463   : > { %13738 = vtanh.f32 %v6178_v51 }
 0x466   : > { %v13725_v21 = vpop.eup %13724  ;;  %v6354_v38 = vpop.f32.mrb[20].mxu0 }
 0x467   : > { %v6223_v31 = vmul.f32 %v13725_v21, %v6203_v50  ;;  %v13727_v6 = vpop.eup %13726  ;;  %v6356_v54 = vpop.f32.mrb[21].mxu0  ;;  %v6355_v8 = vadd.f32 %v6354_v38, %v6265_v42  ;;  %v7205_v38 = vld [vmem:[#allocation10 + $0xf8] sm:$0xff] }
 0x468   : > { %v6224_v59 = vmul.f32 %v13727_v6, %v6204_v56  ;;  %v13729_v23 = vpop.eup %13728  ;;  %v6358_v15 = vpop.f32.mrb[22].mxu0  ;;  %v6357_v43 = vadd.f32 %v6356_v54, %v6269_v5  ;;  %v7208_v54 = vld [vmem:[#allocation10 + $0x110] sm:$0xff] }
 0x469   : > { %v6227_v41 = vadd.f32 %v6223_v31, %v6219_v13  ;;  %v13731_v30 = vpop.eup %13730  ;;  %v6225_v34 = vmul.f32 %v13729_v23, %v6209_v9  ;;  %v6359_v49 = vadd.f32 %v6358_v15, %v6265_v42  ;;  %v6360_v44 = vpop.f32.mrb[23].mxu0  ;;  %v6363_v10 = vmax.f32 %v6355_v8, 0.0  ;;  %v7184_v9 = vld [vmem:[#allocation10 + $0x50] sm:$0xff]  ;;  %v7213_v15 = vld [vmem:[#allocation10 + $0x138] sm:$0xff] }
 0x46a   : > { %v6228_v57 = vadd.f32 %v6224_v59, %v6220_v35  ;;  %v13733_v22 = vpop.eup %13732  ;;  %v6195_v55 = vadd.f32 1.0, %v13731_v30  ;;  %v6364_v3 = vmax.f32 %v6357_v43, 0.0  ;;  %v6361_v24 = vadd.f32 %v6360_v44, %v6269_v5  ;;  %v7189_v35 = vld [vmem:[#allocation10 + $0x78] sm:$0xff]  ;;  %v7192_v59 = vld [vmem:[#allocation10 + $0x90] sm:$0xff] }
 0x46b   : > { %12705 = vst [vmem:[%s14330_s25 + $0x20] sm:$0xff] %v6227_v41  ;;  %13740 = vtanh.f32 %v6227_v41  ;;  %v6229_v47 = vadd.f32 %v6225_v34, %v6221_v45  ;;  %v6226_v29 = vmul.f32 %v13733_v22, %v6210_v11  ;;  %v13735_v19 = vpop.eup %13734  ;;  %v6365_v50 = vmax.f32 %v6359_v49, 0.0  ;;  %v7188_v41 = vld [vmem:[#allocation10 + $0x70] sm:$0xff]  ;;  %v7193_v45 = vld [vmem:[#allocation10 + $0x98] sm:$0xff]  ;;  %v18509_v34 = vld [vmem:[#allocation48_spill] sm:$0xff] }
 0x46c   : > { %12706 = vst [vmem:[%s14330_s25 + $0x28] sm:$0xff] %v6228_v57  ;;  %13742 = vtanh.f32 %v6228_v57  ;;  %v13737_v2 = vpop.eup %13736  ;;  %v6196_v18 = vadd.f32 1.0, %v13735_v19  ;;  %v6207_v4 = vmul.f32 0.5, %v6195_v55  ;;  %v6366_v60 = vmax.f32 %v6361_v24, 0.0  ;;  %v7197_v11 = vld [vmem:[#allocation10 + $0xb8] sm:$0xff]  ;;  %v18508_v57 = vld [vmem:[#allocation61_spill] sm:$0xff] }
 0x46d   : > { %12707 = vst [vmem:[%s14330_s25 + $0x30] sm:$0xff] %v6229_v47  ;;  %v6230_v25 = vadd.f32 %v6226_v29, %v6222_v48  ;;  %13744 = vtanh.f32 %v6229_v47  ;;  %v13739_v16 = vpop.eup %13738  ;;  %v6201_v63 = vadd.f32 1.0, %v13737_v2  ;;  %v16306_v51 = vpack.c.bf16 %v6365_v50, %v6363_v10  ;;  %v18512_v48 = vld [vmem:[#allocation71_spill] sm:$0xff]  ;;  %v7200_v2 = vld [vmem:[#allocation10 + $0xd0] sm:$0xff]  ;;  %v7217_v44 = vld [vmem:[#allocation10 + $0x158] sm:$0xff] }
 0x46e   : > { %v6208_v12 = vmul.f32 0.5, %v6196_v18  ;;  %v6202_v36 = vadd.f32 1.0, %v13739_v16  ;;  %v16309_v32 = vpack.c.bf16 %v6366_v60, %v6364_v3  ;;  %v12736_v23 = vcombine.high %v7184_v9, %v7188_v41  ;;  %v7204_v18 = vld [vmem:[#allocation10 + $0xf0] sm:$0xff]  ;;  %v7229_v60 = vld [vmem:[#allocation10 + $0x1b8] sm:$0xff] }
 0x46f   : > { %12708 = vst [vmem:[%s14330_s25 + $0x38] sm:$0xff] %v6230_v25  ;;  %13746 = vtanh.f32 %v6230_v25  ;;  %v6213_v21 = vmul.f32 0.5, %v6201_v63  ;;  %v12738_v30 = vcombine.high %v7185_v46, %v7189_v35  ;;  %v18510_v22 = vcombine.low %v18508_v57, %v18509_v34  ;;  %v7209_v63 = vld [vmem:[#allocation10 + $0x118] sm:$0xff] }
 0x470   : > { %v6214_v13 = vmul.f32 0.5, %v6202_v36  ;;  %v18513_v47 = vcombine.low %v18511_v52, %v18512_v48  ;;  %v12735_v29 = vcombine.low %v7184_v9, %v7188_v41  ;;  %v12737_v19 = vcombine.low %v7185_v46, %v7189_v35  ;;  %v7220_v36 = vld [vmem:[#allocation10 + $0x170] sm:$0xff]  ;;  %v7233_v46 = vld [vmem:[#allocation10 + $0x1d8] sm:$0xff] }
 0x471   : > { %v12744_v55 = vcombine.high %v7192_v59, %v7196_v27  ;;  %v12746_v25 = vcombine.high %v7193_v45, %v7197_v11  ;;  %v12743_v16 = vcombine.low %v7192_v59, %v7196_v27  ;;  %v12752_v42 = vcombine.high %v7200_v2, %v7204_v18  ;;  %v7232_v9 = vld [vmem:[#allocation10 + $0x1d0] sm:$0xff]  ;;  %v7237_v35 = vld [vmem:[#allocation10 + $0x1f8] sm:$0xff] }
 0x472   : > { %v12754_v5 = vcombine.high %v7201_v26, %v7205_v38  ;;  %v12753_v8 = vcombine.low %v7201_v26, %v7205_v38  ;;  %v12762_v49 = vcombine.high %v7209_v63, %v7213_v15  ;;  %v12761_v3 = vcombine.low %v7209_v63, %v7213_v15  ;;  %v7236_v41 = vld [vmem:[#allocation10 + $0x1f0] sm:$0xff]  ;;  %v7245_v57 = vld [vmem:[#allocation10 + $0x238] sm:$0xff] }
 0x473   : > { %v7240_v27 = vld [vmem:[#allocation10 + $0x210] sm:$0xff]  ;;  %v12783_v34 = vcombine.low %v7232_v9, %v7236_v41 }
 0x474   : > { %v7256_v38 = vld [vmem:[#allocation10 + $0x290] sm:$0xff] }
 0x475   : > { %v13741_v33 = vpop.eup %13740  ;;  %v7264_v15 = vld [vmem:[#allocation10 + $0x2d0] sm:$0xff] }
 0x476   : > { %v6235_v53 = vmul.f32 %v13741_v33, %v6207_v4  ;;  %v13743_v58 = vpop.eup %13742  ;;  %v12745_v4 = vcombine.low %v7193_v45, %v7197_v11  ;;  %v7212_v33 = vld [vmem:[#allocation10 + $0x130] sm:$0xff]  ;;  %v7241_v11 = vld [vmem:[#allocation10 + $0x218] sm:$0xff] }
 0x477   : > { %v6236_v14 = vmul.f32 %v13743_v58, %v6208_v12  ;;  %v13745_v20 = vpop.eup %13744  ;;  %v12760_v43 = vcombine.high %v7208_v54, %v7212_v33  ;;  %v7216_v12 = vld [vmem:[#allocation10 + $0x150] sm:$0xff]  ;;  %v7221_v58 = vld [vmem:[#allocation10 + $0x178] sm:$0xff]  ;;  %v12759_v10 = vcombine.low %v7208_v54, %v7212_v33  ;;  %v12794_v48 = vcombine.high %v7241_v11, %v7245_v57 }
 0x478   : > { %12701 = vst [vmem:[%s14328_s23 + $0x20] sm:$0xff] %v6235_v53  ;;  %v6237_v31 = vmul.f32 %v13745_v20, %v6213_v21  ;;  %v12768_v50 = vcombine.high %v7216_v12, %v7220_v36  ;;  %v12770_v24 = vcombine.high %v7217_v44, %v7221_v58  ;;  %v7224_v21 = vld [vmem:[#allocation10 + $0x190] sm:$0xff]  ;;  %v7225_v20 = vld [vmem:[#allocation10 + $0x198] sm:$0xff] }
 0x479   : > { %12702 = vst [vmem:[%s14328_s23 + $0x28] sm:$0xff] %v6236_v14  ;;  %v13747_v56 = vpop.eup %13746  ;;  %v12777_v59 = vcombine.low %v7225_v20, %v7229_v60  ;;  %v7244_v45 = vld [vmem:[#allocation10 + $0x230] sm:$0xff] }
 0x47a   : > { %v6238_v0 = vmul.f32 %v13747_v56, %v6214_v13  ;;  %12703 = vst [vmem:[%s14328_s23 + $0x30] sm:$0xff] %v6237_v31  ;;  %v16312_v6 = vpack.c.bf16 %v6237_v31, %v6235_v53  ;;  %v12751_v53 = vcombine.low %v7200_v2, %v7204_v18  ;;  %v12767_v13 = vcombine.low %v7216_v12, %v7220_v36 }
 0x47b   : > { %v12769_v31 = vcombine.low %v7217_v44, %v7221_v58  ;;  %v12792_v52 = vcombine.high %v7240_v27, %v7244_v45  ;;  %v12793_v2 = vcombine.low %v7241_v11, %v7245_v57  ;;  %v7272_v58 = vld [vmem:[#allocation10 + $0x310] sm:$0xff] }
 0x47c   : > { %12704 = vst [vmem:[%s14328_s23 + $0x38] sm:$0xff] %v6238_v0  ;;  %v7173_v28 = vpack.c.bf16 %v6238_v0, %v6236_v14  ;;  %v7228_v14 = vld [vmem:[#allocation10 + $0x1b0] sm:$0xff]  ;;  %v12778_v0 = vcombine.high %v7225_v20, %v7229_v60 }
 0x47d   : > { %v12776_v56 = vcombine.high %v7224_v21, %v7228_v14  ;;  %v7280_v60 = vld [vmem:[#allocation10 + $0x350] sm:$0xff] }
 0x47e   : > { %7974 = vmatprep.mubr.bf16.mxu1 %v7173_v28  ;;  %8017 = vmatprep.mubr.bf16.mxu0 %v7173_v28  ;;  %v7296_v57 = vld [vmem:[#allocation10 + $0x3d0] sm:$0xff] }
 0x47f   : > { %7975 = vmatmul.mubr.bf16.vlgmr.msra.gmra.mrb[20].mxu1 %v16312_v6  ;;  %8018 = vmatmul.mubr.bf16.vlgmr.msra.gmra.mrb[24].mxu0 %v16312_v6 }
 0x480   : > { %8029 = vmatpush1.bf16.msra.mxu1 %v18510_v22  ;;  %8072 = vmatpush1.bf16.msra.mxu0 %v18513_v47  ;;  %v12785_v22 = vcombine.low %v7233_v46, %v7237_v35  ;;  %v7248_v47 = vld [vmem:[#allocation10 + $0x250] sm:$0xff] }
 0x481   : > { %8060 = vmatprep.mubr.bf16.mxu1 %v7173_v28  ;;  %8103 = vmatprep.mubr.bf16.mxu0 %v7173_v28  ;;  %v12775_v28 = vcombine.low %v7224_v21, %v7228_v14 }
 0x482   : > { %8030 = vmatprep.subr.bf16.mxu1 %v12736_v23  ;;  %8073 = vmatprep.subr.bf16.mxu0 %v12738_v30  ;;  %v12784_v23 = vcombine.high %v7232_v9, %v7236_v41  ;;  %v12786_v30 = vcombine.high %v7233_v46, %v7237_v35  ;;  %v7288_v35 = vld [vmem:[#allocation10 + $0x390] sm:$0xff] }
 0x484   : > { %8031 = vmatpush1.bf16.msra.mxu1 %v12735_v29  ;;  %8074 = vmatpush1.bf16.msra.mxu0 %v12737_v19  ;;  %v7252_v29 = vld [vmem:[#allocation10 + $0x270] sm:$0xff]  ;;  %v7249_v19 = vld [vmem:[#allocation10 + $0x258] sm:$0xff] }
 0x485   : > { %8032 = vmatprep.subr.bf16.mxu1 %v12744_v55  ;;  %8075 = vmatprep.subr.bf16.mxu0 %v12746_v25  ;;  %v7253_v55 = vld [vmem:[#allocation10 + $0x278] sm:$0xff]  ;;  %v12791_v25 = vcombine.low %v7240_v27, %v7244_v45  ;;  %v12800_v18 = vcombine.high %v7248_v47, %v7252_v29 }
 0x486   : > { %v12802_v26 = vcombine.high %v7249_v19, %v7253_v55  ;;  %v12801_v54 = vcombine.low %v7249_v19, %v7253_v55  ;;  %v7044_v55 = vld [vmem:[#allocation9] sm:$0xff] }
 0x488   : > { %8033 = vmatpush1.bf16.msra.mxu1 %v12743_v16  ;;  %8076 = vmatpush1.bf16.msra.mxu0 %v12745_v4  ;;  %v7260_v16 = vld [vmem:[#allocation10 + $0x2b0] sm:$0xff]  ;;  %v7257_v4 = vld [vmem:[#allocation10 + $0x298] sm:$0xff] }
 0x489   : > { %8034 = vmatprep.subr.bf16.mxu1 %v12752_v42  ;;  %8077 = vmatprep.subr.bf16.mxu0 %v12754_v5  ;;  %v7261_v42 = vld [vmem:[#allocation10 + $0x2b8] sm:$0xff]  ;;  %v12799_v5 = vcombine.low %v7248_v47, %v7252_v29  ;;  %v12808_v33 = vcombine.high %v7256_v38, %v7260_v16 }
 0x48a   : > { %v12810_v63 = vcombine.high %v7257_v4, %v7261_v42  ;;  %v12809_v12 = vcombine.low %v7257_v4, %v7261_v42  ;;  %v7052_v42 = vld [vmem:[#allocation9 + $0x40] sm:$0xff] }
 0x48c   : > { %8035 = vmatpush1.bf16.msra.mxu1 %v12751_v53  ;;  %8078 = vmatpush1.bf16.msra.mxu0 %v12753_v8  ;;  %v7268_v53 = vld [vmem:[#allocation10 + $0x2f0] sm:$0xff]  ;;  %v7265_v8 = vld [vmem:[#allocation10 + $0x2d8] sm:$0xff] }
 0x48d   : > { %8036 = vmatprep.subr.bf16.mxu1 %v12760_v43  ;;  %8079 = vmatprep.subr.bf16.mxu0 %v12762_v49  ;;  %v7269_v43 = vld [vmem:[#allocation10 + $0x2f8] sm:$0xff]  ;;  %v12807_v49 = vcombine.low %v7256_v38, %v7260_v16  ;;  %v12816_v36 = vcombine.high %v7264_v15, %v7268_v53 }
 0x48e   : > { %v12818_v44 = vcombine.high %v7265_v8, %v7269_v43  ;;  %v12817_v21 = vcombine.low %v7265_v8, %v7269_v43  ;;  %v7060_v43 = vld [vmem:[#allocation9 + $0x80] sm:$0xff] }
 0x490   : > { %8037 = vmatpush1.bf16.msra.mxu1 %v12759_v10  ;;  %8080 = vmatpush1.bf16.msra.mxu0 %v12761_v3  ;;  %v7276_v10 = vld [vmem:[#allocation10 + $0x330] sm:$0xff]  ;;  %v7273_v3 = vld [vmem:[#allocation10 + $0x318] sm:$0xff] }
 0x491   : > { %8038 = vmatprep.subr.bf16.mxu1 %v12768_v50  ;;  %8081 = vmatprep.subr.bf16.mxu0 %v12770_v24  ;;  %v7277_v50 = vld [vmem:[#allocation10 + $0x338] sm:$0xff]  ;;  %v12815_v24 = vcombine.low %v7264_v15, %v7268_v53  ;;  %v12824_v14 = vcombine.high %v7272_v58, %v7276_v10 }
 0x492   : > { %v12826_v20 = vcombine.high %v7273_v3, %v7277_v50  ;;  %v12825_v9 = vcombine.low %v7273_v3, %v7277_v50  ;;  %v7068_v50 = vld [vmem:[#allocation9 + $0xc0] sm:$0xff] }
 0x494   : > { %8039 = vmatpush1.bf16.msra.mxu1 %v12767_v13  ;;  %8082 = vmatpush1.bf16.msra.mxu0 %v12769_v31  ;;  %v7284_v13 = vld [vmem:[#allocation10 + $0x370] sm:$0xff]  ;;  %v7281_v31 = vld [vmem:[#allocation10 + $0x358] sm:$0xff] }
 0x495   : > { %8040 = vmatprep.subr.bf16.mxu1 %v12776_v56  ;;  %8083 = vmatprep.subr.bf16.mxu0 %v12778_v0  ;;  %v7285_v56 = vld [vmem:[#allocation10 + $0x378] sm:$0xff]  ;;  %v12823_v0 = vcombine.low %v7272_v58, %v7276_v10  ;;  %v12832_v41 = vcombine.high %v7280_v60, %v7284_v13 }
 0x496   : > { %v12834_v46 = vcombine.high %v7281_v31, %v7285_v56  ;;  %v12833_v27 = vcombine.low %v7281_v31, %v7285_v56  ;;  %v7076_v31 = vld [vmem:[#allocation9 + $0x100] sm:$0xff] }
 0x497   : > { %v7080_v56 = vld [vmem:[#allocation9 + $0x120] sm:$0xff] }
 0x498   : > { %8041 = vmatpush1.bf16.msra.mxu1 %v12775_v28  ;;  %8084 = vmatpush1.bf16.msra.mxu0 %v12777_v59  ;;  %v7292_v28 = vld [vmem:[#allocation10 + $0x3b0] sm:$0xff]  ;;  %v7289_v59 = vld [vmem:[#allocation10 + $0x398] sm:$0xff] }
 0x499   : > { %8042 = vmatprep.subr.bf16.mxu1 %v12784_v23  ;;  %8085 = vmatprep.subr.bf16.mxu0 %v12786_v30  ;;  %v7293_v23 = vld [vmem:[#allocation10 + $0x3b8] sm:$0xff]  ;;  %v12831_v30 = vcombine.low %v7280_v60, %v7284_v13  ;;  %v12840_v45 = vcombine.high %v7288_v35, %v7292_v28 }
 0x49a   : > { %v12842_v11 = vcombine.high %v7289_v59, %v7293_v23  ;;  %v12841_v47 = vcombine.low %v7289_v59, %v7293_v23  ;;  %v7084_v59 = vld [vmem:[#allocation9 + $0x140] sm:$0xff] }
 0x49b   : > { %v7088_v23 = vld [vmem:[#allocation9 + $0x160] sm:$0xff] }
 0x49c   : > { %8043 = vmatpush1.bf16.msra.mxu1 %v12783_v34  ;;  %8086 = vmatpush1.bf16.msra.mxu0 %v12785_v22  ;;  %v7300_v34 = vld [vmem:[#allocation10 + $0x3f0] sm:$0xff]  ;;  %v7297_v22 = vld [vmem:[#allocation10 + $0x3d8] sm:$0xff] }
 0x49d   : > { %8044 = vmatprep.subr.bf16.mxu1 %v12792_v52  ;;  %8087 = vmatprep.subr.bf16.mxu0 %v12794_v48  ;;  %v7301_v52 = vld [vmem:[#allocation10 + $0x3f8] sm:$0xff]  ;;  %v12839_v48 = vcombine.low %v7288_v35, %v7292_v28  ;;  %v12848_v29 = vcombine.high %v7296_v57, %v7300_v34  ;;  %v12884_v35 = vcombine.high %v7076_v31, %v7080_v56 }
 0x49e   : > { %v12850_v19 = vcombine.high %v7297_v22, %v7301_v52  ;;  %v12849_v38 = vcombine.low %v7297_v22, %v7301_v52  ;;  %v7092_v22 = vld [vmem:[#allocation9 + $0x180] sm:$0xff] }
 0x49f   : > { %v7096_v52 = vld [vmem:[#allocation9 + $0x1a0] sm:$0xff] }
 0x4a0   : > { %8045 = vmatpush1.bf16.msra.mxu1 %v12791_v25  ;;  %8088 = vmatpush1.bf16.msra.mxu0 %v12793_v2  ;;  %v7048_v25 = vld [vmem:[#allocation9 + $0x20] sm:$0xff]  ;;  %v7045_v2 = vld [vmem:[#allocation9 + $0x8] sm:$0xff] }
 0x4a1   : > { %8046 = vmatprep.subr.bf16.mxu1 %v12800_v18  ;;  %8089 = vmatprep.subr.bf16.mxu0 %v12802_v26  ;;  %v7049_v18 = vld [vmem:[#allocation9 + $0x28] sm:$0xff]  ;;  %v12847_v26 = vcombine.low %v7296_v57, %v7300_v34  ;;  %v12852_v16 = vcombine.high %v7044_v55, %v7048_v25  ;;  %v12892_v57 = vcombine.high %v7084_v59, %v7088_v23 }
 0x4a2   : > { %v12854_v4 = vcombine.high %v7045_v2, %v7049_v18  ;;  %v12853_v15 = vcombine.low %v7045_v2, %v7049_v18  ;;  %v7100_v2 = vld [vmem:[#allocation9 + $0x1c0] sm:$0xff] }
 0x4a3   : > { %v7104_v18 = vld [vmem:[#allocation9 + $0x1e0] sm:$0xff] }
 0x4a4   : > { %8047 = vmatpush1.bf16.msra.mxu1 %v12799_v5  ;;  %8090 = vmatpush1.bf16.msra.mxu0 %v12801_v54  ;;  %v7056_v5 = vld [vmem:[#allocation9 + $0x60] sm:$0xff]  ;;  %v7053_v54 = vld [vmem:[#allocation9 + $0x48] sm:$0xff] }
 0x4a5   : > { %8048 = vmatprep.subr.bf16.mxu1 %v12808_v33  ;;  %8091 = vmatprep.subr.bf16.mxu0 %v12810_v63  ;;  %v7057_v33 = vld [vmem:[#allocation9 + $0x68] sm:$0xff]  ;;  %v12851_v63 = vcombine.low %v7044_v55, %v7048_v25  ;;  %v12860_v53 = vcombine.high %v7052_v42, %v7056_v5  ;;  %v12900_v55 = vcombine.high %v7092_v22, %v7096_v52 }
 0x4a6   : > { %v12862_v8 = vcombine.high %v7053_v54, %v7057_v33  ;;  %v12861_v58 = vcombine.low %v7053_v54, %v7057_v33  ;;  %v7108_v54 = vld [vmem:[#allocation9 + $0x200] sm:$0xff] }
 0x4a7   : > { %v7112_v33 = vld [vmem:[#allocation9 + $0x220] sm:$0xff] }
 0x4a8   : > { %8049 = vmatpush1.bf16.msra.mxu1 %v12807_v49  ;;  %8092 = vmatpush1.bf16.msra.mxu0 %v12809_v12  ;;  %v7064_v49 = vld [vmem:[#allocation9 + $0xa0] sm:$0xff]  ;;  %v7061_v12 = vld [vmem:[#allocation9 + $0x88] sm:$0xff] }
 0x4a9   : > { %8050 = vmatprep.subr.bf16.mxu1 %v12816_v36  ;;  %8093 = vmatprep.subr.bf16.mxu0 %v12818_v44  ;;  %v7065_v36 = vld [vmem:[#allocation9 + $0xa8] sm:$0xff]  ;;  %v12859_v44 = vcombine.low %v7052_v42, %v7056_v5  ;;  %v12868_v10 = vcombine.high %v7060_v43, %v7064_v49  ;;  %v12908_v42 = vcombine.high %v7100_v2, %v7104_v18 }
 0x4aa   : > { %v12870_v3 = vcombine.high %v7061_v12, %v7065_v36 }
 0x4ac   : > { %8051 = vmatpush1.bf16.msra.mxu1 %v12815_v24  ;;  %8094 = vmatpush1.bf16.msra.mxu0 %v12817_v21  ;;  %v7072_v24 = vld [vmem:[#allocation9 + $0xe0] sm:$0xff]  ;;  %v7069_v21 = vld [vmem:[#allocation9 + $0xc8] sm:$0xff] }
 0x4ad   : > { %8052 = vmatprep.subr.bf16.mxu1 %v12824_v14  ;;  %8095 = vmatprep.subr.bf16.mxu0 %v12826_v20  ;;  %v7073_v14 = vld [vmem:[#allocation9 + $0xe8] sm:$0xff]  ;;  %v12867_v20 = vcombine.low %v7060_v43, %v7064_v49  ;;  %v12876_v60 = vcombine.high %v7068_v50, %v7072_v24  ;;  %v12916_v43 = vcombine.high %v7108_v54, %v7112_v33 }
 0x4ae   : > { %v12878_v13 = vcombine.high %v7069_v21, %v7073_v14 }
 0x4b0   : > { %8053 = vmatpush1.bf16.msra.mxu1 %v12823_v0  ;;  %8096 = vmatpush1.bf16.msra.mxu0 %v12825_v9  ;;  %v7077_v0 = vld [vmem:[#allocation9 + $0x108] sm:$0xff] }
 0x4b1   : > { %8054 = vmatprep.subr.bf16.mxu1 %v12832_v41  ;;  %8097 = vmatprep.subr.bf16.mxu0 %v12834_v46  ;;  %v7081_v9 = vld [vmem:[#allocation9 + $0x128] sm:$0xff]  ;;  %v12875_v41 = vcombine.low %v7068_v50, %v7072_v24  ;;  %v12877_v46 = vcombine.low %v7069_v21, %v7073_v14  ;;  %v7124_v21 = vld [vmem:[#allocation9 + $0x280] sm:$0xff] }
 0x4b2   : > { %v12886_v28 = vcombine.high %v7077_v0, %v7081_v9  ;;  %v7128_v14 = vld [vmem:[#allocation9 + $0x2a0] sm:$0xff] }
 0x4b4   : > { %8055 = vmatpush1.bf16.msra.mxu1 %v12831_v30  ;;  %8098 = vmatpush1.bf16.msra.mxu0 %v12833_v27  ;;  %v7085_v30 = vld [vmem:[#allocation9 + $0x148] sm:$0xff] }
 0x4b5   : > { %8056 = vmatprep.subr.bf16.mxu1 %v12840_v45  ;;  %8099 = vmatprep.subr.bf16.mxu0 %v12842_v11  ;;  %v7089_v27 = vld [vmem:[#allocation9 + $0x168] sm:$0xff]  ;;  %v12883_v45 = vcombine.low %v7076_v31, %v7080_v56  ;;  %v12885_v11 = vcombine.low %v7077_v0, %v7081_v9  ;;  %v12932_v31 = vcombine.high %v7124_v21, %v7128_v14  ;;  %v7132_v0 = vld [vmem:[#allocation9 + $0x2c0] sm:$0xff] }
 0x4b6   : > { %v12894_v34 = vcombine.high %v7085_v30, %v7089_v27  ;;  %v7136_v9 = vld [vmem:[#allocation9 + $0x2e0] sm:$0xff] }
 0x4b8   : > { %8057 = vmatpush1.bf16.msra.mxu1 %v12839_v48  ;;  %8100 = vmatpush1.bf16.msra.mxu0 %v12841_v47  ;;  %v7093_v48 = vld [vmem:[#allocation9 + $0x188] sm:$0xff] }
 0x4b9   : > { %8058 = vmatprep.subr.bf16.mxu1 %v12848_v29  ;;  %8101 = vmatprep.subr.bf16.mxu0 %v12850_v19  ;;  %v7097_v47 = vld [vmem:[#allocation9 + $0x1a8] sm:$0xff]  ;;  %v12891_v29 = vcombine.low %v7084_v59, %v7088_v23  ;;  %v12893_v19 = vcombine.low %v7085_v30, %v7089_v27  ;;  %v12940_v59 = vcombine.high %v7132_v0, %v7136_v9  ;;  %v7140_v30 = vld [vmem:[#allocation9 + $0x300] sm:$0xff] }
 0x4ba   : > { %v12902_v25 = vcombine.high %v7093_v48, %v7097_v47  ;;  %v7144_v27 = vld [vmem:[#allocation9 + $0x320] sm:$0xff] }
 0x4bc   : > { %8059 = vmatpush1.bf16.msra.mxu1 %v12847_v26  ;;  %8102 = vmatpush1.bf16.msra.mxu0 %v12849_v38  ;;  %v7101_v26 = vld [vmem:[#allocation9 + $0x1c8] sm:$0xff] }
 0x4bd   : > { %8754 = vmatprep.subr.bf16.mxu1 %v12852_v16  ;;  %8797 = vmatprep.subr.bf16.mxu0 %v12854_v4  ;;  %v7105_v38 = vld [vmem:[#allocation9 + $0x1e8] sm:$0xff]  ;;  %v12899_v16 = vcombine.low %v7092_v22, %v7096_v52  ;;  %v12901_v4 = vcombine.low %v7093_v48, %v7097_v47  ;;  %v12948_v22 = vcombine.high %v7140_v30, %v7144_v27  ;;  %v7148_v48 = vld [vmem:[#allocation9 + $0x340] sm:$0xff] }
 0x4be   : > { %v12910_v5 = vcombine.high %v7101_v26, %v7105_v38  ;;  %v7152_v47 = vld [vmem:[#allocation9 + $0x360] sm:$0xff] }
 0x4bf   : > { %8061 = vmatmul.mubr.bf16.vlgmr.msra.gmra.mrb[24].mxu1 %v16312_v6  ;;  %8104 = vmatmul.mubr.bf16.vlgmr.msra.gmra.mrb[28].mxu0 %v16312_v6  ;;  %v12869_v6 = vcombine.low %v7061_v12, %v7065_v36  ;;  %v7116_v12 = vld [vmem:[#allocation9 + $0x240] sm:$0xff] }
 0x4c0   : > { %8755 = vmatpush1.bf16.msra.mxu1 %v12851_v63  ;;  %8798 = vmatpush1.bf16.msra.mxu0 %v12853_v15  ;;  %v7109_v63 = vld [vmem:[#allocation9 + $0x208] sm:$0xff]  ;;  %v7120_v36 = vld [vmem:[#allocation9 + $0x260] sm:$0xff] }
 0x4c1   : > { %8756 = vmatprep.subr.bf16.mxu1 %v12860_v53  ;;  %8799 = vmatprep.subr.bf16.mxu0 %v12862_v8  ;;  %v7113_v15 = vld [vmem:[#allocation9 + $0x228] sm:$0xff]  ;;  %v12907_v53 = vcombine.low %v7100_v2, %v7104_v18  ;;  %v12909_v8 = vcombine.low %v7101_v26, %v7105_v38  ;;  %v12924_v50 = vcombine.high %v7116_v12, %v7120_v36  ;;  %v7156_v26 = vld [vmem:[#allocation9 + $0x380] sm:$0xff] }
 0x4c2   : > { %8786 = vmatprep.mubr.bf16.mxu1 %v16309_v32  ;;  %8829 = vmatprep.mubr.bf16.mxu0 %v16309_v32  ;;  %v12918_v49 = vcombine.high %v7109_v63, %v7113_v15  ;;  %v12956_v2 = vcombine.high %v7148_v48, %v7152_v47  ;;  %v7160_v38 = vld [vmem:[#allocation9 + $0x3a0] sm:$0xff] }
 0x4c4   : > { %8757 = vmatpush1.bf16.msra.mxu1 %v12859_v44  ;;  %8800 = vmatpush1.bf16.msra.mxu0 %v12861_v58  ;;  %v7117_v44 = vld [vmem:[#allocation9 + $0x248] sm:$0xff] }
 0x4c5   : > { %8758 = vmatprep.subr.bf16.mxu1 %v12868_v10  ;;  %8801 = vmatprep.subr.bf16.mxu0 %v12870_v3  ;;  %v7121_v58 = vld [vmem:[#allocation9 + $0x268] sm:$0xff]  ;;  %v12915_v10 = vcombine.low %v7108_v54, %v7112_v33  ;;  %v12917_v3 = vcombine.low %v7109_v63, %v7113_v15  ;;  %v12964_v54 = vcombine.high %v7156_v26, %v7160_v38  ;;  %v7164_v63 = vld [vmem:[#allocation9 + $0x3c0] sm:$0xff] }
 0x4c6   : > { %v12926_v24 = vcombine.high %v7117_v44, %v7121_v58  ;;  %v7168_v15 = vld [vmem:[#allocation9 + $0x3e0] sm:$0xff] }
 0x4c8   : > { %8759 = vmatpush1.bf16.msra.mxu1 %v12867_v20  ;;  %8802 = vmatpush1.bf16.msra.mxu0 %v12869_v6  ;;  %v7125_v20 = vld [vmem:[#allocation9 + $0x288] sm:$0xff] }
 0x4c9   : > { %8760 = vmatprep.subr.bf16.mxu1 %v12876_v60  ;;  %8803 = vmatprep.subr.bf16.mxu0 %v12878_v13  ;;  %v7129_v6 = vld [vmem:[#allocation9 + $0x2a8] sm:$0xff]  ;;  %v12923_v60 = vcombine.low %v7116_v12, %v7120_v36  ;;  %v12925_v13 = vcombine.low %v7117_v44, %v7121_v58  ;;  %v12972_v12 = vcombine.high %v7164_v63, %v7168_v15  ;;  %v7046_v44 = vld [vmem:[#allocation9 + $0x10] sm:$0xff] }
 0x4ca   : > { %v12934_v56 = vcombine.high %v7125_v20, %v7129_v6  ;;  %v7050_v58 = vld [vmem:[#allocation9 + $0x30] sm:$0xff] }
 0x4cc   : > { %8761 = vmatpush1.bf16.msra.mxu1 %v12875_v41  ;;  %8804 = vmatpush1.bf16.msra.mxu0 %v12877_v46  ;;  %v7133_v41 = vld [vmem:[#allocation9 + $0x2c8] sm:$0xff] }
 0x4cd   : > { %8762 = vmatprep.subr.bf16.mxu1 %v12884_v35  ;;  %8805 = vmatprep.subr.bf16.mxu0 %v12886_v28  ;;  %v7137_v46 = vld [vmem:[#allocation9 + $0x2e8] sm:$0xff]  ;;  %v12931_v35 = vcombine.low %v7124_v21, %v7128_v14  ;;  %v12933_v28 = vcombine.low %v7125_v20, %v7129_v6  ;;  %v12856_v21 = vcombine.high %v7046_v44, %v7050_v58  ;;  %v7054_v20 = vld [vmem:[#allocation9 + $0x50] sm:$0xff] }
 0x4ce   : > { %v12942_v23 = vcombine.high %v7133_v41, %v7137_v46  ;;  %v7058_v6 = vld [vmem:[#allocation9 + $0x70] sm:$0xff] }
 0x4d0   : > { %8763 = vmatpush1.bf16.msra.mxu1 %v12883_v45  ;;  %8806 = vmatpush1.bf16.msra.mxu0 %v12885_v11  ;;  %v7141_v45 = vld [vmem:[#allocation9 + $0x308] sm:$0xff] }
 0x4d1   : > { %8764 = vmatprep.subr.bf16.mxu1 %v12892_v57  ;;  %8807 = vmatprep.subr.bf16.mxu0 %v12894_v34  ;;  %v7145_v11 = vld [vmem:[#allocation9 + $0x328] sm:$0xff]  ;;  %v12939_v57 = vcombine.low %v7132_v0, %v7136_v9  ;;  %v12941_v34 = vcombine.low %v7133_v41, %v7137_v46  ;;  %v12864_v0 = vcombine.high %v7054_v20, %v7058_v6  ;;  %v7062_v41 = vld [vmem:[#allocation9 + $0x90] sm:$0xff] }
 0x4d2   : > { %v12950_v52 = vcombine.high %v7141_v45, %v7145_v11  ;;  %v7066_v46 = vld [vmem:[#allocation9 + $0xb0] sm:$0xff] }
 0x4d4   : > { %8765 = vmatpush1.bf16.msra.mxu1 %v12891_v29  ;;  %8808 = vmatpush1.bf16.msra.mxu0 %v12893_v19  ;;  %v7149_v29 = vld [vmem:[#allocation9 + $0x348] sm:$0xff] }
 0x4d5   : > { %8766 = vmatprep.subr.bf16.mxu1 %v12900_v55  ;;  %8809 = vmatprep.subr.bf16.mxu0 %v12902_v25  ;;  %v7153_v19 = vld [vmem:[#allocation9 + $0x368] sm:$0xff]  ;;  %v12947_v55 = vcombine.low %v7140_v30, %v7144_v27  ;;  %v12949_v25 = vcombine.low %v7141_v45, %v7145_v11  ;;  %v12872_v30 = vcombine.high %v7062_v41, %v7066_v46  ;;  %v7070_v45 = vld [vmem:[#allocation9 + $0xd0] sm:$0xff] }
 0x4d6   : > { %v12958_v18 = vcombine.high %v7149_v29, %v7153_v19  ;;  %v7074_v11 = vld [vmem:[#allocation9 + $0xf0] sm:$0xff] }
 0x4d8   : > { %8767 = vmatpush1.bf16.msra.mxu1 %v12899_v16  ;;  %8810 = vmatpush1.bf16.msra.mxu0 %v12901_v4  ;;  %v7157_v16 = vld [vmem:[#allocation9 + $0x388] sm:$0xff] }
 0x4d9   : > { %8768 = vmatprep.subr.bf16.mxu1 %v12908_v42  ;;  %8811 = vmatprep.subr.bf16.mxu0 %v12910_v5  ;;  %v7161_v4 = vld [vmem:[#allocation9 + $0x3a8] sm:$0xff]  ;;  %v12955_v42 = vcombine.low %v7148_v48, %v7152_v47  ;;  %v12957_v5 = vcombine.low %v7149_v29, %v7153_v19  ;;  %v12880_v48 = vcombine.high %v7070_v45, %v7074_v11  ;;  %v7078_v29 = vld [vmem:[#allocation9 + $0x110] sm:$0xff] }
 0x4da   : > { %v12966_v33 = vcombine.high %v7157_v16, %v7161_v4  ;;  %v7082_v19 = vld [vmem:[#allocation9 + $0x130] sm:$0xff] }
 0x4dc   : > { %8769 = vmatpush1.bf16.msra.mxu1 %v12907_v53  ;;  %8812 = vmatpush1.bf16.msra.mxu0 %v12909_v8  ;;  %v7165_v53 = vld [vmem:[#allocation9 + $0x3c8] sm:$0xff] }
 0x4dd   : > { %8770 = vmatprep.subr.bf16.mxu1 %v12916_v43  ;;  %8813 = vmatprep.subr.bf16.mxu0 %v12918_v49  ;;  %v7169_v8 = vld [vmem:[#allocation9 + $0x3e8] sm:$0xff]  ;;  %v12963_v43 = vcombine.low %v7156_v26, %v7160_v38  ;;  %v12965_v49 = vcombine.low %v7157_v16, %v7161_v4  ;;  %v7086_v38 = vld [vmem:[#allocation9 + $0x150] sm:$0xff]  ;;  %v7087_v4 = vld [vmem:[#allocation9 + $0x158] sm:$0xff] }
 0x4de   : > { %v12974_v36 = vcombine.high %v7165_v53, %v7169_v8  ;;  %v7090_v16 = vld [vmem:[#allocation9 + $0x170] sm:$0xff] }
 0x4e0   : > { %8771 = vmatpush1.bf16.msra.mxu1 %v12915_v10  ;;  %8814 = vmatpush1.bf16.msra.mxu0 %v12917_v3  ;;  %v7047_v10 = vld [vmem:[#allocation9 + $0x18] sm:$0xff] }
 0x4e1   : > { %8772 = vmatprep.subr.bf16.mxu1 %v12924_v50  ;;  %8815 = vmatprep.subr.bf16.mxu0 %v12926_v24  ;;  %v7051_v3 = vld [vmem:[#allocation9 + $0x38] sm:$0xff]  ;;  %v12971_v50 = vcombine.low %v7164_v63, %v7168_v15  ;;  %v12973_v24 = vcombine.low %v7165_v53, %v7169_v8  ;;  %v7094_v15 = vld [vmem:[#allocation9 + $0x190] sm:$0xff] }
 0x4e2   : > { %v12858_v14 = vcombine.high %v7047_v10, %v7051_v3  ;;  %v7098_v53 = vld [vmem:[#allocation9 + $0x1b0] sm:$0xff]  ;;  %v7095_v8 = vld [vmem:[#allocation9 + $0x198] sm:$0xff] }
 0x4e4   : > { %8773 = vmatpush1.bf16.msra.mxu1 %v12923_v60  ;;  %8816 = vmatpush1.bf16.msra.mxu0 %v12925_v13  ;;  %v7055_v60 = vld [vmem:[#allocation9 + $0x58] sm:$0xff] }
 0x4e5   : > { %8774 = vmatprep.subr.bf16.mxu1 %v12932_v31  ;;  %8817 = vmatprep.subr.bf16.mxu0 %v12934_v56  ;;  %v7059_v13 = vld [vmem:[#allocation9 + $0x78] sm:$0xff]  ;;  %v12855_v31 = vcombine.low %v7046_v44, %v7050_v58  ;;  %v12857_v56 = vcombine.low %v7047_v10, %v7051_v3  ;;  %v7102_v58 = vld [vmem:[#allocation9 + $0x1d0] sm:$0xff] }
 0x4e6   : > { %v12866_v9 = vcombine.high %v7055_v60, %v7059_v13  ;;  %v7106_v10 = vld [vmem:[#allocation9 + $0x1f0] sm:$0xff]  ;;  %v7103_v3 = vld [vmem:[#allocation9 + $0x1d8] sm:$0xff] }
 0x4e8   : > { %8775 = vmatpush1.bf16.msra.mxu1 %v12931_v35  ;;  %8818 = vmatpush1.bf16.msra.mxu0 %v12933_v28  ;;  %v7063_v35 = vld [vmem:[#allocation9 + $0x98] sm:$0xff] }
 0x4e9   : > { %8776 = vmatprep.subr.bf16.mxu1 %v12940_v59  ;;  %8819 = vmatprep.subr.bf16.mxu0 %v12942_v23  ;;  %v7067_v28 = vld [vmem:[#allocation9 + $0xb8] sm:$0xff]  ;;  %v12863_v59 = vcombine.low %v7054_v20, %v7058_v6  ;;  %v12865_v23 = vcombine.low %v7055_v60, %v7059_v13  ;;  %v7110_v6 = vld [vmem:[#allocation9 + $0x210] sm:$0xff] }
 0x4ea   : > { %v12874_v27 = vcombine.high %v7063_v35, %v7067_v28  ;;  %v7114_v60 = vld [vmem:[#allocation9 + $0x230] sm:$0xff]  ;;  %v7111_v13 = vld [vmem:[#allocation9 + $0x218] sm:$0xff] }
 0x4ec   : > { %8777 = vmatpush1.bf16.msra.mxu1 %v12939_v57  ;;  %8820 = vmatpush1.bf16.msra.mxu0 %v12941_v34  ;;  %v7071_v57 = vld [vmem:[#allocation9 + $0xd8] sm:$0xff] }
 0x4ed   : > { %8778 = vmatprep.subr.bf16.mxu1 %v12948_v22  ;;  %8821 = vmatprep.subr.bf16.mxu0 %v12950_v52  ;;  %v7075_v34 = vld [vmem:[#allocation9 + $0xf8] sm:$0xff]  ;;  %v12871_v22 = vcombine.low %v7062_v41, %v7066_v46  ;;  %v12873_v52 = vcombine.low %v7063_v35, %v7067_v28  ;;  %v7118_v46 = vld [vmem:[#allocation9 + $0x250] sm:$0xff] }
 0x4ee   : > { %v12882_v47 = vcombine.high %v7071_v57, %v7075_v34  ;;  %v7122_v35 = vld [vmem:[#allocation9 + $0x270] sm:$0xff]  ;;  %v7119_v28 = vld [vmem:[#allocation9 + $0x258] sm:$0xff] }
 0x4f0   : > { %8779 = vmatpush1.bf16.msra.mxu1 %v12947_v55  ;;  %8822 = vmatpush1.bf16.msra.mxu0 %v12949_v25  ;;  %v7083_v55 = vld [vmem:[#allocation9 + $0x138] sm:$0xff]  ;;  %v12879_v25 = vcombine.low %v7070_v45, %v7074_v11  ;;  %v7126_v11 = vld [vmem:[#allocation9 + $0x290] sm:$0xff] }
 0x4f1   : > { %8780 = vmatprep.subr.bf16.mxu1 %v12956_v2  ;;  %8823 = vmatprep.subr.bf16.mxu0 %v12958_v18  ;;  %v12881_v2 = vcombine.low %v7071_v57, %v7075_v34  ;;  %v12888_v18 = vcombine.high %v7078_v29, %v7082_v19  ;;  %v7130_v57 = vld [vmem:[#allocation9 + $0x2b0] sm:$0xff]  ;;  %v7127_v34 = vld [vmem:[#allocation9 + $0x298] sm:$0xff] }
 0x4f4   : > { %8781 = vmatpush1.bf16.msra.mxu1 %v12955_v42  ;;  %8824 = vmatpush1.bf16.msra.mxu0 %v12957_v5  ;;  %v7091_v42 = vld [vmem:[#allocation9 + $0x178] sm:$0xff]  ;;  %v12887_v5 = vcombine.low %v7078_v29, %v7082_v19  ;;  %v7134_v19 = vld [vmem:[#allocation9 + $0x2d0] sm:$0xff] }
 0x4f5   : > { %8782 = vmatprep.subr.bf16.mxu1 %v12964_v54  ;;  %8825 = vmatprep.subr.bf16.mxu0 %v12966_v33  ;;  %v12896_v33 = vcombine.high %v7086_v38, %v7090_v16  ;;  %v12898_v63 = vcombine.high %v7087_v4, %v7091_v42 }
 0x4f8   : > { %8783 = vmatpush1.bf16.msra.mxu1 %v12963_v43  ;;  %8826 = vmatpush1.bf16.msra.mxu0 %v12965_v49  ;;  %v7099_v43 = vld [vmem:[#allocation9 + $0x1b8] sm:$0xff]  ;;  %v12895_v49 = vcombine.low %v7086_v38, %v7090_v16  ;;  %v7142_v16 = vld [vmem:[#allocation9 + $0x310] sm:$0xff] }
 0x4f9   : > { %8784 = vmatprep.subr.bf16.mxu1 %v12972_v12  ;;  %8827 = vmatprep.subr.bf16.mxu0 %v12974_v36  ;;  %v12897_v12 = vcombine.low %v7087_v4, %v7091_v42  ;;  %v12904_v36 = vcombine.high %v7094_v15, %v7098_v53  ;;  %v12906_v44 = vcombine.high %v7095_v8, %v7099_v43  ;;  %v7146_v4 = vld [vmem:[#allocation9 + $0x330] sm:$0xff]  ;;  %v7143_v42 = vld [vmem:[#allocation9 + $0x318] sm:$0xff] }
 0x4fc   : > { %8785 = vmatpush1.bf16.msra.mxu1 %v12971_v50  ;;  %8828 = vmatpush1.bf16.msra.mxu0 %v12973_v24  ;;  %v7107_v50 = vld [vmem:[#allocation9 + $0x1f8] sm:$0xff]  ;;  %v12903_v24 = vcombine.low %v7094_v15, %v7098_v53  ;;  %v7150_v53 = vld [vmem:[#allocation9 + $0x350] sm:$0xff] }
 0x4fd   : > { %8840 = vmatprep.subr.bf16.mxu1 %v12856_v21  ;;  %8883 = vmatprep.subr.bf16.mxu0 %v12858_v14  ;;  %v12905_v21 = vcombine.low %v7095_v8, %v7099_v43  ;;  %v12912_v14 = vcombine.high %v7102_v58, %v7106_v10  ;;  %v12914_v20 = vcombine.high %v7103_v3, %v7107_v50  ;;  %v7154_v8 = vld [vmem:[#allocation9 + $0x370] sm:$0xff]  ;;  %v7151_v43 = vld [vmem:[#allocation9 + $0x358] sm:$0xff] }
 0x4ff   : > { %8787 = vmatmul.mubr.bf16.vlgmr.msra.gmra.mrb[20].mxu1 %v16306_v51  ;;  %8830 = vmatmul.mubr.bf16.vlgmr.msra.gmra.mrb[24].mxu0 %v16306_v51 }
 0x500   : > { %8841 = vmatpush1.bf16.msra.mxu1 %v12855_v31  ;;  %8872 = vmatprep.mubr.bf16.mxu1 %v16309_v32  ;;  %v7115_v31 = vld [vmem:[#allocation9 + $0x238] sm:$0xff] }
 0x501   : > { %8884 = vmatpush1.bf16.msra.mxu0 %v12857_v56  ;;  %8915 = vmatprep.mubr.bf16.mxu0 %v16309_v32  ;;  %v7079_v32 = vld [vmem:[#allocation9 + $0x118] sm:$0xff]  ;;  %v12911_v56 = vcombine.low %v7102_v58, %v7106_v10  ;;  %v12922_v41 = vcombine.high %v7111_v13, %v7115_v31  ;;  %v7158_v10 = vld [vmem:[#allocation9 + $0x390] sm:$0xff] }
 0x502   : > { %8842 = vmatprep.subr.bf16.mxu1 %v12864_v0  ;;  %8885 = vmatprep.subr.bf16.mxu0 %v12866_v9  ;;  %v12890_v26 = vcombine.high %v7079_v32, %v7083_v55  ;;  %v12889_v54 = vcombine.low %v7079_v32, %v7083_v55  ;;  %v12913_v0 = vcombine.low %v7103_v3, %v7107_v50  ;;  %v7138_v32 = vld [vmem:[#allocation9 + $0x2f0] sm:$0xff]  ;;  %v7135_v55 = vld [vmem:[#allocation9 + $0x2d8] sm:$0xff] }
 0x503   : > { %v12920_v9 = vcombine.high %v7110_v6, %v7114_v60  ;;  %v7162_v3 = vld [vmem:[#allocation9 + $0x3b0] sm:$0xff]  ;;  %v7159_v50 = vld [vmem:[#allocation9 + $0x398] sm:$0xff] }
 0x504   : > { %8843 = vmatpush1.bf16.msra.mxu1 %v12863_v59  ;;  %v7123_v59 = vld [vmem:[#allocation9 + $0x278] sm:$0xff] }
 0x505   : > { %8886 = vmatpush1.bf16.msra.mxu0 %v12865_v23  ;;  %8844 = vmatprep.subr.bf16.mxu1 %v12872_v30  ;;  %v12919_v23 = vcombine.low %v7110_v6, %v7114_v60  ;;  %v12921_v30 = vcombine.low %v7111_v13, %v7115_v31  ;;  %v12930_v45 = vcombine.high %v7119_v28, %v7123_v59  ;;  %v7166_v60 = vld [vmem:[#allocation9 + $0x3d0] sm:$0xff]  ;;  %v7167_v31 = vld [vmem:[#allocation9 + $0x3d8] sm:$0xff] }
 0x506   : > { %8887 = vmatprep.subr.bf16.mxu0 %v12874_v27  ;;  %v12928_v27 = vcombine.high %v7118_v46, %v7122_v35  ;;  %v7170_v13 = vld [vmem:[#allocation9 + $0x3f0] sm:$0xff] }
 0x508   : > { %8845 = vmatpush1.bf16.msra.mxu1 %v12871_v22  ;;  %v7131_v22 = vld [vmem:[#allocation9 + $0x2b8] sm:$0xff] }
 0x509   : > { %8888 = vmatpush1.bf16.msra.mxu0 %v12873_v52  ;;  %8846 = vmatprep.subr.bf16.mxu1 %v12880_v48  ;;  %v12927_v52 = vcombine.low %v7118_v46, %v7122_v35  ;;  %v12929_v48 = vcombine.low %v7119_v28, %v7123_v59  ;;  %v12938_v29 = vcombine.high %v7127_v34, %v7131_v22  ;;  %v13657_v59 = vld [vmem:[%s18017_s4 + $0x4] ss:$8 sps:$4 sm:$0xff]  }
 0x50a   : > { %8889 = vmatprep.subr.bf16.mxu0 %v12882_v47  ;;  %v12936_v47 = vcombine.high %v7126_v11, %v7130_v57  ;;  %v12975_v35 = vcombine.low %v7166_v60, %v7170_v13 }
 0x50c   : > { %8847 = vmatpush1.bf16.msra.mxu1 %v12879_v25  ;;  %v7139_v25 = vld [vmem:[#allocation9 + $0x2f8] sm:$0xff] }
 0x50d   : > { %8890 = vmatpush1.bf16.msra.mxu0 %v12881_v2  ;;  %8848 = vmatprep.subr.bf16.mxu1 %v12888_v18  ;;  %v12935_v2 = vcombine.low %v7126_v11, %v7130_v57  ;;  %v12937_v18 = vcombine.low %v7127_v34, %v7131_v22  ;;  %v12946_v38 = vcombine.high %v7135_v55, %v7139_v25  ;;  %v18514_v11 = vmov 0   ;;  %v13661_v57 = vld [vmem:[%s18017_s4 + $0x20] ss:$8 sps:$4 sm:$0xff]   ;;  %v13666_v34 = vld [vmem:[%s18017_s4 + $0x34] ss:$8 sps:$4 sm:$0xff]  }
 0x50e   : > { %8891 = vmatprep.subr.bf16.mxu0 %v12890_v26  ;;  %v12944_v26 = vcombine.high %v7134_v19, %v7138_v32  ;;  %v13667_v22 = vld [vmem:[%s14321_s29 + $0x18] sm:$0xff]   ;;  %s11929_s29 = scalar_lea.sflag [#allocation14], %s14314_s12 }
 0x510   : > { %8849 = vmatpush1.bf16.msra.mxu1 %v12887_v5  ;;  %v7147_v5 = vld [vmem:[#allocation9 + $0x338] sm:$0xff] }
 0x511   : > { %8892 = vmatpush1.bf16.msra.mxu0 %v12889_v54  ;;  %8850 = vmatprep.subr.bf16.mxu1 %v12896_v33  ;;  %v12943_v54 = vcombine.low %v7134_v19, %v7138_v32  ;;  %v12945_v33 = vcombine.low %v7135_v55, %v7139_v25  ;;  %v12954_v15 = vcombine.high %v7143_v42, %v7147_v5  ;;  %v10008_v19 = vld [vmem:[#allocation10 + $0x8] sm:$0xff]  ;;  %v10015_v55 = vld [vmem:[#allocation10 + $0x40] sm:$0xff] }
 0x512   : > { %8893 = vmatprep.subr.bf16.mxu0 %v12898_v63  ;;  %v12952_v63 = vcombine.high %v7142_v16, %v7146_v4  ;;  %v10012_v32 = vld [vmem:[#allocation10 + $0x28] sm:$0xff] }
 0x513   : > { %v13003_v25 = vcombine.low %v10008_v19, %v10012_v32 }
 0x514   : > { %8851 = vmatpush1.bf16.msra.mxu1 %v12895_v49  ;;  %v7155_v49 = vld [vmem:[#allocation9 + $0x378] sm:$0xff] }
 0x515   : > { %8894 = vmatpush1.bf16.msra.mxu0 %v12897_v12  ;;  %8852 = vmatprep.subr.bf16.mxu1 %v12904_v36  ;;  %v12951_v12 = vcombine.low %v7142_v16, %v7146_v4  ;;  %v12953_v36 = vcombine.low %v7143_v42, %v7147_v5  ;;  %v12962_v58 = vcombine.high %v7151_v43, %v7155_v49  ;;  %v10023_v42 = vld [vmem:[#allocation10 + $0x80] sm:$0xff] }
 0x516   : > { %8895 = vmatprep.subr.bf16.mxu0 %v12906_v44  ;;  %v12960_v44 = vcombine.high %v7150_v53, %v7154_v8  ;;  %v10027_v5 = vld [vmem:[#allocation10 + $0xa0] sm:$0xff] }
 0x518   : > { %8853 = vmatpush1.bf16.msra.mxu1 %v12903_v24  ;;  %v7163_v24 = vld [vmem:[#allocation9 + $0x3b8] sm:$0xff] }
 0x519   : > { %8896 = vmatpush1.bf16.msra.mxu0 %v12905_v21  ;;  %8854 = vmatprep.subr.bf16.mxu1 %v12912_v14  ;;  %v12959_v21 = vcombine.low %v7150_v53, %v7154_v8  ;;  %v12961_v14 = vcombine.low %v7151_v43, %v7155_v49  ;;  %v12970_v6 = vcombine.high %v7159_v50, %v7163_v24  ;;  %v10031_v43 = vld [vmem:[#allocation10 + $0xc0] sm:$0xff] }
 0x51a   : > { %8897 = vmatprep.subr.bf16.mxu0 %v12914_v20  ;;  %v12968_v20 = vcombine.high %v7158_v10, %v7162_v3  ;;  %v13018_v53 = vcombine.high %v10023_v42, %v10027_v5  ;;  %v10035_v49 = vld [vmem:[#allocation10 + $0xe0] sm:$0xff] }
 0x51c   : > { %8855 = vmatpush1.bf16.msra.mxu1 %v12911_v56  ;;  %v7171_v56 = vld [vmem:[#allocation9 + $0x3f8] sm:$0xff] }
 0x51d   : > { %8898 = vmatpush1.bf16.msra.mxu0 %v12913_v0  ;;  %8856 = vmatprep.subr.bf16.mxu1 %v12920_v9  ;;  %v12967_v0 = vcombine.low %v7158_v10, %v7162_v3  ;;  %v12969_v9 = vcombine.low %v7159_v50, %v7163_v24  ;;  %v12978_v46 = vcombine.high %v7167_v31, %v7171_v56  ;;  %v10039_v50 = vld [vmem:[#allocation10 + $0x100] sm:$0xff] }
 0x51e   : > { %8899 = vmatprep.subr.bf16.mxu0 %v12922_v41  ;;  %v12976_v41 = vcombine.high %v7166_v60, %v7170_v13  ;;  %v12977_v28 = vcombine.low %v7167_v31, %v7171_v56  ;;  %v13026_v10 = vcombine.high %v10031_v43, %v10035_v49  ;;  %v10043_v24 = vld [vmem:[#allocation10 + $0x120] sm:$0xff] }
 0x51f   : > { %v13034_v60 = vcombine.high %v10039_v50, %v10043_v24  ;;  %v10047_v31 = vld [vmem:[#allocation10 + $0x140] sm:$0xff] }
 0x520   : > { %8857 = vmatpush1.bf16.msra.mxu1 %v12919_v23  ;;  %v13655_v23 = vld [vmem:[%s18017_s4] ss:$8 sps:$4 sm:$0xff]  }
 0x521   : > { %8900 = vmatpush1.bf16.msra.mxu0 %v12921_v30  ;;  %8858 = vmatprep.subr.bf16.mxu1 %v12928_v27  ;;  %v13660_v30 = vld [vmem:[%s18017_s4 + $0x14] ss:$8 sps:$4 sm:$0xff]   ;;  %v13658_v27 = vld [vmem:[%s18017_s4 + $0x10] ss:$8 sps:$4 sm:$0xff]   ;;  %v10051_v56 = vld [vmem:[#allocation10 + $0x160] sm:$0xff] }
 0x522   : > { %8901 = vmatprep.subr.bf16.mxu0 %v12930_v45  ;;  %v13663_v45 = vld [vmem:[%s18017_s4 + $0x24] ss:$8 sps:$4 sm:$0xff]  }
 0x524   : > { %8859 = vmatpush1.bf16.msra.mxu1 %v12927_v52  ;;  %v10007_v52 = vld [vmem:[#allocation10] sm:$0xff] }
 0x525   : > { %8902 = vmatpush1.bf16.msra.mxu0 %v12929_v48  ;;  %8860 = vmatprep.subr.bf16.mxu1 %v12936_v47  ;;  %v10011_v48 = vld [vmem:[#allocation10 + $0x20] sm:$0xff] }
 0x526   : > { %8903 = vmatprep.subr.bf16.mxu0 %v12938_v29  ;;  %v13001_v47 = vcombine.low %v10007_v52, %v10011_v48  ;;  %v13002_v29 = vcombine.high %v10007_v52, %v10011_v48  ;;  %v13538_v52 = vpop.permute.xlu0 %13537  ;;  %v13543_v48 = vpop.permute.xlu1 %13542 }
 0x528   : > { %8861 = vmatpush1.bf16.msra.mxu1 %v12935_v2  ;;  %v13004_v2 = vcombine.high %v10008_v19, %v10012_v32  ;;  %v16369_v19 = vld [vmem:[%s18020_s7] sm:$0x22] }
 0x529   : > { %8904 = vmatpush1.bf16.msra.mxu0 %v12937_v18  ;;  %8862 = vmatprep.subr.bf16.mxu1 %v12944_v26  ;;  %v10019_v18 = vld [vmem:[#allocation10 + $0x60] sm:$0xff]  ;;  %v10016_v26 = vld [vmem:[#allocation10 + $0x48] sm:$0xff] }
 0x52a   : > { %8905 = vmatprep.subr.bf16.mxu0 %v12946_v38  ;;  %v10020_v38 = vld [vmem:[#allocation10 + $0x68] sm:$0xff]  ;;  %v13010_v16 = vcombine.high %v10015_v55, %v10019_v18  ;;  %v13548_v32 = vpop.permute.xlu0 %13547 }
 0x52b   : > { %v13012_v4 = vcombine.high %v10016_v26, %v10020_v38 }
 0x52c   : > { %8863 = vmatpush1.bf16.msra.mxu1 %v12943_v54  ;;  %v10024_v54 = vld [vmem:[#allocation10 + $0x88] sm:$0xff] }
 0x52d   : > { %8906 = vmatpush1.bf16.msra.mxu0 %v12945_v33  ;;  %8864 = vmatprep.subr.bf16.mxu1 %v12952_v63  ;;  %v10028_v33 = vld [vmem:[#allocation10 + $0xa8] sm:$0xff]  ;;  %v13009_v63 = vcombine.low %v10015_v55, %v10019_v18  ;;  %v13553_v55 = vpop.permute.xlu1 %13552 }
 0x52e   : > { %8907 = vmatprep.subr.bf16.mxu0 %v12954_v15  ;;  %v13011_v15 = vcombine.low %v10016_v26, %v10020_v38  ;;  %v13020_v8 = vcombine.high %v10024_v54, %v10028_v33  ;;  %v6546_v38 = vunpack.c.l.bf16 %v16369_v19 }
 0x530   : > { %8865 = vmatpush1.bf16.msra.mxu1 %v12951_v12  ;;  %v10032_v12 = vld [vmem:[#allocation10 + $0xc8] sm:$0xff] }
 0x531   : > { %8908 = vmatpush1.bf16.msra.mxu0 %v12953_v36  ;;  %8866 = vmatprep.subr.bf16.mxu1 %v12960_v44  ;;  %v10036_v36 = vld [vmem:[#allocation10 + $0xe8] sm:$0xff]  ;;  %v13017_v44 = vcombine.low %v10023_v42, %v10027_v5  ;;  %v13563_v42 = vpop.permute.xlu1 %13562 }
 0x532   : > { %8909 = vmatprep.subr.bf16.mxu0 %v12962_v58  ;;  %v13019_v58 = vcombine.low %v10024_v54, %v10028_v33  ;;  %v13028_v3 = vcombine.high %v10032_v12, %v10036_v36  ;;  %v16389_v33 = vrot.slane %v6546_v38, %v18487_v17 }
 0x534   : > { %8867 = vmatpush1.bf16.msra.mxu1 %v12959_v21  ;;  %v10040_v21 = vld [vmem:[#allocation10 + $0x108] sm:$0xff] }
 0x535   : > { %8910 = vmatpush1.bf16.msra.mxu0 %v12961_v14  ;;  %8868 = vmatprep.subr.bf16.mxu1 %v12968_v20  ;;  %v10044_v14 = vld [vmem:[#allocation10 + $0x128] sm:$0xff]  ;;  %v13025_v20 = vcombine.low %v10031_v43, %v10035_v49  ;;  %v10063_v43 = vld [vmem:[#allocation10 + $0x1c0] sm:$0xff] }
 0x536   : > { %8911 = vmatprep.subr.bf16.mxu0 %v12970_v6  ;;  %v13027_v6 = vcombine.low %v10032_v12, %v10036_v36  ;;  %v13036_v13 = vcombine.high %v10040_v21, %v10044_v14  ;;  %v10067_v49 = vld [vmem:[#allocation10 + $0x1e0] sm:$0xff]  ;;  %v10064_v12 = vld [vmem:[#allocation10 + $0x1c8] sm:$0xff]  ;;  %v16402_v36 = vunpack.i.h.bf16 %v13553_v55 }
 0x538   : > { %8869 = vmatpush1.bf16.msra.mxu1 %v12967_v0  ;;  %v10048_v0 = vld [vmem:[#allocation10 + $0x148] sm:$0xff]  ;;  %18521 = vst [vmem:[#allocation58_spill] sm:$0xff] %v16402_v36 }
 0x539   : > { %8912 = vmatpush1.bf16.msra.mxu0 %v12969_v9  ;;  %8870 = vmatprep.subr.bf16.mxu1 %v12976_v41  ;;  %v10052_v9 = vld [vmem:[#allocation10 + $0x168] sm:$0xff]  ;;  %v13033_v41 = vcombine.low %v10039_v50, %v10043_v24  ;;  %v13058_v50 = vcombine.high %v10063_v43, %v10067_v49 }
 0x53a   : > { %8913 = vmatprep.subr.bf16.mxu0 %v12978_v46  ;;  %v13035_v46 = vcombine.low %v10040_v21, %v10044_v14  ;;  %v10068_v24 = vld [vmem:[#allocation10 + $0x1e8] sm:$0xff] }
 0x53c   : > { %8871 = vmatpush1.bf16.msra.mxu1 %v12975_v35  ;;  %v13042_v35 = vcombine.high %v10047_v31, %v10051_v56 }
 0x53d   : > { %8914 = vmatpush1.bf16.msra.mxu0 %v12977_v28  ;;  %9153 = vmatprep.subr.bf16.mxu1 %v13657_v59  ;;  %v13044_v28 = vcombine.high %v10048_v0, %v10052_v9  ;;  %v10055_v59 = vld [vmem:[#allocation10 + $0x180] sm:$0xff] }
 0x53e   : > { %10775 = vmatprep.subr.bf16.mxu0 %v13002_v29 }
 0x53f   : > { %8873 = vmatmul.mubr.bf16.vlgmr.msra.gmra.mrb[24].mxu1 %v16306_v51 }
 0x540   : > { %8916 = vmatmul.mubr.bf16.vlgmr.msra.gmra.mrb[28].mxu0 %v16306_v51  ;;  %9154 = vmatpush1.bf16.msra.mxu1 %v13655_v23  ;;  %v13664_v51 = vld [vmem:[%s18017_s4 + $0x30] ss:$8 sps:$4 sm:$0xff]   ;;  %v10059_v23 = vld [vmem:[#allocation10 + $0x1a0] sm:$0xff] }
 0x541   : > { %9155 = vmatprep.subr.bf16.mxu1 %v13660_v30  ;;  %9185 = vmatprep.mubr.bf16.mxu1 %v18514_v11  ;;  %v10056_v30 = vld [vmem:[#allocation10 + $0x188] sm:$0xff]  ;;  %v13043_v11 = vcombine.low %v10048_v0, %v10052_v9  ;;  %v16422_v9 = vrot.slane %v6546_v38, %v18495_v1 }
 0x542   : > { %10776 = vmatpush1.bf16.msra.mxu0 %v13001_v47  ;;  %v16363_v47 = vld [vmem:[%s18020_s7] sm:$0x11] }
 0x543   : > { %10777 = vmatprep.subr.bf16.mxu0 %v13010_v16  ;;  %v6378_v29 = vunpack.c.l.bf16 %v16363_v47  ;;  %v16382_v16 = vunpack.i.l.bf16 %v13548_v32  ;;  %18524 = vst [vmem:[#allocation63_spill] sm:$0xff] %v16422_v9 }
 0x544   : > { %9156 = vmatpush1.bf16.msra.mxu1 %v13658_v27  ;;  %v10060_v27 = vld [vmem:[#allocation10 + $0x1a8] sm:$0xff] }
 0x545   : > { %9157 = vmatprep.subr.bf16.mxu1 %v13663_v45  ;;  %v13041_v45 = vcombine.low %v10047_v31, %v10051_v56  ;;  %v16376_v18 = vrot.slane %v6378_v29, %v18491_v7  ;;  %v16379_v26 = vrot.slane %v6378_v29, %v18498_v61  ;;  %18517 = vst [vmem:[#allocation54_spill] sm:$0xff] %v16382_v16  ;;  %v10072_v31 = vld [vmem:[#allocation10 + $0x208] sm:$0xff] }
 0x546   : > { %10778 = vmatpush1.bf16.msra.mxu0 %v13009_v63  ;;  %v16394_v63 = vld [vmem:[%s18020_s7] sm:$0x44]  ;;  %v6596_v0 = vmul.f32 %v16382_v16, %v16389_v33 }
 0x547   : > { %10779 = vmatprep.subr.bf16.mxu0 %v13018_v53  ;;  %v16398_v53 = vunpack.i.h.bf16 %v13543_v48  ;;  %v6714_v14 = vunpack.c.l.bf16 %v16394_v63 }
 0x548   : > { %9158 = vmatpush1.bf16.msra.mxu1 %v13661_v57  ;;  %v13050_v57 = vcombine.high %v10055_v59, %v10059_v23 }
 0x549   : > { %9159 = vmatprep.subr.bf16.mxu1 %v13666_v34  ;;  %v13049_v34 = vcombine.low %v10055_v59, %v10059_v23  ;;  %18519 = vst [vmem:[#allocation74_spill] sm:$0xff] %v16398_v53 }
 0x54a   : > { %10780 = vmatpush1.bf16.msra.mxu0 %v13017_v44  ;;  %v16404_v44 = vunpack.i.l.bf16 %v13553_v55 }
 0x54b   : > { %10781 = vmatprep.subr.bf16.mxu0 %v13026_v10  ;;  %v16414_v10 = vld [vmem:[%s18020_s7 + $0x8] sm:$0x22] }
 0x54c   : > { %9160 = vmatpush1.bf16.msra.mxu1 %v13664_v51  ;;  %v13052_v51 = vcombine.high %v10056_v30, %v10060_v27  ;;  %18522 = vst [vmem:[#allocation75_spill] sm:$0xff] %v16404_v44  ;;  %v6548_v38 = vunpack.c.l.bf16 %v16414_v10 }
 0x54d   : > { %10818 = vmatprep.subr.bf16.mxu1 %v13004_v2  ;;  %v16373_v2 = vunpack.i.l.bf16 %v13543_v48 }
 0x54e   : > { %10782 = vmatpush1.bf16.msra.mxu0 %v13025_v20  ;;  %v13059_v20 = vcombine.low %v10064_v12, %v10068_v24 }
 0x54f   : > { %12998 = vmatmul.mubr.msk.bf16.vlgmr.msra.gmra.mrb[28].mxu1 %vm653_vm0, %v13667_v22  ;;  %10783 = vmatprep.subr.bf16.mxu0 %v13034_v60  ;;  %v13051_v22 = vcombine.low %v10056_v30, %v10060_v27  ;;  %18516 = vst [vmem:[#allocation52_spill] sm:$0xff] %v16373_v2  ;;  %v6506_v54 = vmul.f32 %v16373_v2, %v16379_v26  ;;  %v10071_v60 = vld [vmem:[#allocation10 + $0x200] sm:$0xff] }
 0x550   : > { %10819 = vmatpush1.bf16.msra.mxu1 %v13003_v25  ;;  %v16371_v25 = vunpack.i.l.bf16 %v13538_v52 }
 0x551   : > { %10820 = vmatprep.subr.bf16.mxu1 %v13012_v4  ;;  %v13558_v4 = vpop.permute.xlu0 %13557 }
 0x552   : > { %10784 = vmatpush1.bf16.msra.mxu0 %v13033_v41  ;;  %18515 = vst [vmem:[#allocation51_spill] sm:$0xff] %v16371_v25  ;;  %v6428_v5 = vmul.f32 %v16371_v25, %v16376_v18  ;;  %v16416_v21 = vunpack.i.h.bf16 %v13558_v4  ;;  %v16424_v59 = vunpack.i.l.bf16 %v13558_v4  ;;  %v16450_v4 = vld [vmem:[%s18020_s7 + $0x8] sm:$0x44] }
 0x553   : > { %10785 = vmatprep.subr.bf16.mxu0 %v13042_v35  ;;  %v10079_v35 = vld [vmem:[#allocation10 + $0x240] sm:$0xff] }
 0x554   : > { %10821 = vmatpush1.bf16.msra.mxu1 %v13011_v15  ;;  %v16396_v15 = vunpack.i.h.bf16 %v13538_v52  ;;  %18523 = vst [vmem:[#allocation56_spill] sm:$0xff] %v16416_v21  ;;  %v6522_v56 = vadd.f32 %v6506_v54, %v6428_v5  ;;  %v16438_v52 = vld [vmem:[%s18020_s7] sm:$0x88] }
 0x555   : > { %10822 = vmatprep.subr.bf16.mxu1 %v13020_v8  ;;  %v16400_v8 = vunpack.i.h.bf16 %v13548_v32  ;;  %v10087_v5 = vld [vmem:[#allocation10 + $0x280] sm:$0xff] }
 0x556   : > { %10786 = vmatpush1.bf16.msra.mxu0 %v13041_v45  ;;  %18518 = vst [vmem:[#allocation42_spill] sm:$0xff] %v16396_v15  ;;  %v10080_v45 = vld [vmem:[#allocation10 + $0x248] sm:$0xff]  ;;  %v10091_v54 = vld [vmem:[#allocation10 + $0x2a0] sm:$0xff] }
 0x557   : > { %10787 = vmatprep.subr.bf16.mxu0 %v13050_v57  ;;  %18520 = vst [vmem:[#allocation76_spill] sm:$0xff] %v16400_v8  ;;  %v16427_v57 = vunpack.i.h.bf16 %v13563_v42 }
 0x558   : > { %10823 = vmatpush1.bf16.msra.mxu1 %v13019_v58  ;;  %v16409_v58 = vld [vmem:[%s18020_s7 + $0x8] sm:$0x11] }
 0x559   : > { %10824 = vmatprep.subr.bf16.mxu1 %v13028_v3  ;;  %v13057_v3 = vcombine.low %v10063_v43, %v10067_v49  ;;  %v6380_v23 = vunpack.c.l.bf16 %v16409_v58  ;;  %18525 = vst [vmem:[#allocation60_spill] sm:$0xff] %v16427_v57  ;;  %v6612_v43 = vadd.f32 %v6596_v0, %v6522_v56  ;;  %v6674_v49 = vmul.f32 %v16404_v44, %v16422_v9  ;;  %v16533_v9 = vld [vmem:[#allocation10 + $0x30] sm:$0xff] }
 0x55a   : > { %10788 = vmatpush1.bf16.msra.mxu0 %v13049_v34  ;;  %v16431_v34 = vpop.permute.xlu0 %13567  ;;  %v6381_v57 = vunpack.c.h.bf16 %v16409_v58  ;;  %18538 = vst [vmem:[#allocation40_spill] sm:$0xff] %v16533_v9 }
 0x55b   : > { %10789 = vmatprep.subr.bf16.mxu0 %v13058_v50  ;;  %v16441_v32 = vunpack.i.l.bf16 %v16431_v34  ;;  %v16463_v50 = vld [vmem:[%s18020_s7 + $0x8] sm:$0x88]  ;;  %v16471_v56 = vrot.slane %v6380_v23, %v18498_v61 }
 0x55c   : > { %10825 = vmatpush1.bf16.msra.mxu1 %v13027_v6  ;;  %v13060_v6 = vcombine.high %v10064_v12, %v10068_v24  ;;  %v16455_v12 = vrot.slane %v6714_v14, %v18507_v37  ;;  %v10088_v24 = vld [vmem:[#allocation10 + $0x288] sm:$0xff] }
 0x55d   : > { %10826 = vmatprep.subr.bf16.mxu1 %v13036_v13  ;;  %v10075_v13 = vld [vmem:[#allocation10 + $0x220] sm:$0xff]  ;;  %18529 = vst [vmem:[#allocation72_spill] sm:$0xff] %v16471_v56 }
 0x55e   : > { %v13066_v41 = vcombine.high %v10071_v60, %v10075_v13  ;;  %10790 = vmatpush1.bf16.msra.mxu0 %v13057_v3  ;;  %v13065_v30 = vcombine.low %v10071_v60, %v10075_v13  ;;  %18526 = vst [vmem:[#allocation45_spill] sm:$0xff] %v16455_v12  ;;  %v16458_v3 = vrot.slane %v6714_v14, %v14749_v62  ;;  %v6379_v13 = vunpack.c.h.bf16 %v16363_v47  ;;  %v16477_v47 = vld [vmem:[#allocation10 + $0x2c0] sm:$0xff] }
 0x55f   : > { %v16467_v60 = vrot.slane %v6380_v23, %v18491_v7  ;;  %v6764_v23 = vmul.f32 %v16424_v59, %v16455_v12 }
 0x560   : > { %10827 = vmatpush1.bf16.msra.mxu1 %v13035_v46  ;;  %v10076_v46 = vld [vmem:[#allocation10 + $0x228] sm:$0xff]  ;;  %10791 = vmatprep.subr.bf16.mxu0 %v13066_v41  ;;  %18527 = vst [vmem:[#allocation59_spill] sm:$0xff] %v16458_v3  ;;  %v13082_v41 = vcombine.high %v10087_v5, %v10091_v54 }
 0x561   : > { %10828 = vmatprep.subr.bf16.mxu1 %v13044_v28  ;;  %v10083_v28 = vld [vmem:[#allocation10 + $0x260] sm:$0xff]  ;;  %v13068_v27 = vcombine.high %v10072_v31, %v10076_v46  ;;  %v13067_v48 = vcombine.low %v10072_v31, %v10076_v46  ;;  %18528 = vst [vmem:[#allocation69_spill] sm:$0xff] %v16467_v60  ;;  %v6430_v58 = vmul.f32 %v16371_v25, %v16467_v60 }
 0x562   : > { %v13074_v29 = vcombine.high %v10079_v35, %v10083_v28  ;;  %10792 = vmatpush1.bf16.msra.mxu0 %v13065_v30  ;;  %v13073_v31 = vcombine.low %v10079_v35, %v10083_v28  ;;  %v10099_v35 = vld [vmem:[#allocation10 + $0x2e0] sm:$0xff]  ;;  %v6690_v28 = vadd.f32 %v6674_v49, %v6612_v43  ;;  %v13081_v43 = vcombine.low %v10087_v5, %v10091_v54 }
 0x563   : > { %v6508_v49 = vmul.f32 %v16373_v2, %v16471_v56  ;;  %v16509_v54 = vld [vmem:[#allocation10 + $0x300] sm:$0xff] }
 0x564   : > { %10829 = vmatpush1.bf16.msra.mxu1 %v13043_v11  ;;  %v10084_v11 = vld [vmem:[#allocation10 + $0x268] sm:$0xff]  ;;  %10793 = vmatprep.subr.bf16.mxu0 %v13074_v29  ;;  %v16491_v29 = vrot.slane %v6379_v13, %v18491_v7  ;;  %v6780_v46 = vadd.f32 %v6764_v23, %v6690_v28  ;;  %v18536_v28 = vunpack.c.h.bf16 %v16369_v19  ;;  %v10123_v56 = vld [vmem:[#allocation10 + $0x3a0] sm:$0xff] }
 0x565   : > { %10830 = vmatprep.subr.bf16.mxu1 %v13052_v51  ;;  %v16429_v51 = vunpack.i.l.bf16 %v13563_v42  ;;  %v13076_v42 = vcombine.high %v10080_v45, %v10084_v11  ;;  %v13075_v0 = vcombine.low %v10080_v45, %v10084_v11  ;;  %v16486_v45 = vrot.slane %v6548_v38, %v18487_v17  ;;  %v10096_v11 = vld [vmem:[#allocation10 + $0x2c8] sm:$0xff] }
 0x566   : > { %18531 = vst [vmem:[#allocation67_spill] sm:$0xff] %v16491_v29  ;;  %10794 = vmatpush1.bf16.msra.mxu0 %v13073_v31  ;;  %v10107_v31 = vld [vmem:[#allocation10 + $0x320] sm:$0xff]  ;;  %v16526_v23 = vrot.slane %v18536_v28, %v18487_v17 }
 0x567   : > { %v16483_v30 = vmul.f32 %v16429_v51, %v16458_v3  ;;  %18530 = vst [vmem:[#allocation44_spill] sm:$0xff] %v16486_v45  ;;  %10795 = vmatprep.subr.bf16.mxu0 %v13082_v41  ;;  %v10108_v41 = vld [vmem:[#allocation10 + $0x328] sm:$0xff]  ;;  %v13098_v36 = vcombine.high %v16509_v54, %v10107_v31 }
 0x568   : > { %10831 = vmatpush1.bf16.msra.mxu1 %v13051_v22  ;;  %v16433_v22 = vpop.permute.xlu1 %13572 }
 0x569   : > { %10832 = vmatprep.subr.bf16.mxu1 %v13060_v6  ;;  %v16444_v55 = vunpack.i.l.bf16 %v16433_v22  ;;  %v6882_v6 = vunpack.c.l.bf16 %v16438_v52 }
 0x56a   : > { %10796 = vmatpush1.bf16.msra.mxu0 %v13081_v43 }
 0x56b   : > { %v16501_v3 = vrot.slane %v6882_v6, %v18359_v40  ;;  %v16504_v12 = vrot.slane %v6882_v6, %v18445_v39  ;;  %v10104_v6 = vld [vmem:[#allocation10 + $0x308] sm:$0xff] }
 0x56c   : > { %10833 = vmatpush1.bf16.msra.mxu1 %v13059_v20  ;;  %v10092_v20 = vld [vmem:[#allocation10 + $0x2a8] sm:$0xff] }
 0x56d   : > { %10834 = vmatprep.subr.bf16.mxu1 %v13068_v27  ;;  %v13084_v21 = vcombine.high %v10088_v24, %v10092_v20  ;;  %v13083_v14 = vcombine.low %v10088_v24, %v10092_v20  ;;  %v13090_v27 = vcombine.high %v16477_v47, %v10099_v35  ;;  %v6598_v24 = vmul.f32 %v16382_v16, %v16486_v45 }
 0x56e   : > { %v16514_v20 = vrot.slane %v6381_v57, %v18491_v7  ;;  %v13089_v7 = vcombine.low %v16477_v47, %v10099_v35  ;;  %v6524_v45 = vadd.f32 %v6508_v49, %v6430_v58  ;;  %v18540_v47 = vunpack.c.l.bf16 %v16450_v4  ;;  %v16546_v58 = vld [vmem:[#allocation10 + $0x38] sm:$0xff] }
 0x56f   : > { %10797 = vmatprep.subr.bf16.mxu0 %v13090_v27  ;;  %v10111_v27 = vld [vmem:[#allocation10 + $0x340] sm:$0xff]  ;;  %18541 = vst [vmem:[#allocation62_spill] sm:$0xff] %v16546_v58 }
 0x570   : > { %10835 = vmatpush1.bf16.msra.mxu1 %v13067_v48  ;;  %v10100_v48 = vld [vmem:[#allocation10 + $0x2e8] sm:$0xff]  ;;  %18534 = vst [vmem:[#allocation57_spill] sm:$0xff] %v16514_v20  ;;  %v16542_v35 = vrot.slane %v18540_v47, %v18507_v37  ;;  %v6431_v43 = vmul.f32 %v16371_v25, %v16514_v20  ;;  %10798 = vmatpush1.bf16.msra.mxu0 %v13089_v7  ;;  %v10119_v7 = vld [vmem:[#allocation10 + $0x380] sm:$0xff] }
 0x571   : > { %10836 = vmatprep.subr.bf16.mxu1 %v13076_v42  ;;  %v16494_v42 = vrot.slane %v6379_v13, %v18498_v61  ;;  %v16507_v13 = vrot.slane %v6548_v38, %v18495_v1  ;;  %v13092_v5 = vcombine.high %v10096_v11, %v10100_v48  ;;  %v6429_v38 = vmul.f32 %v16371_v25, %v16491_v29  ;;  %v16531_v29 = vld [vmem:[#allocation10 + $0x10] sm:$0xff] }
 0x572   : > { %18537 = vst [vmem:[#allocation33_spill] sm:$0xff] %v16531_v29  ;;  %v18543_v25 = vunpack.c.h.bf16 %v16369_v19  ;;  %10799 = vmatprep.subr.bf16.mxu0 %v13098_v36  ;;  %v6766_v19 = vmul.f32 %v16424_v59, %v16542_v35 }
 0x573   : > { %18532 = vst [vmem:[#allocation55_spill] sm:$0xff] %v16494_v42  ;;  %18533 = vst [vmem:[#allocation34_spill] sm:$0xff] %v16507_v13  ;;  %v6676_v28 = vmul.f32 %v16404_v44, %v16507_v13  ;;  %v10116_v13 = vld [vmem:[#allocation10 + $0x368] sm:$0xff] }
 0x574   : > { %10837 = vmatpush1.bf16.msra.mxu1 %v13075_v0  ;;  %v16517_v0 = vrot.slane %v6381_v57, %v18498_v61  ;;  %v13091_v61 = vcombine.low %v10096_v11, %v10100_v48  ;;  %v10115_v11 = vld [vmem:[#allocation10 + $0x360] sm:$0xff]  ;;  %v18542_v57 = vunpack.c.h.bf16 %v16414_v10  ;;  %v6597_v48 = vmul.f32 %v16382_v16, %v16526_v23 }
 0x575   : > { %10838 = vmatprep.subr.bf16.mxu1 %v13084_v21  ;;  %v6507_v21 = vmul.f32 %v16373_v2, %v16494_v42  ;;  %v16535_v42 = vld [vmem:[#allocation10 + $0x18] sm:$0xff]  ;;  %v16564_v20 = vrot.slane %v18543_v25, %v18495_v1  ;;  %v13106_v8 = vcombine.high %v10111_v27, %v10115_v11 }
 0x576   : > { %18535 = vst [vmem:[#allocation66_spill] sm:$0xff] %v16517_v0  ;;  %18539 = vst [vmem:[#allocation64_spill] sm:$0xff] %v16535_v42  ;;  %v6509_v49 = vmul.f32 %v16373_v2, %v16517_v0  ;;  %v16555_v47 = vrot.slane %v18542_v57, %v18487_v17  ;;  %v13097_v2 = vcombine.low %v16509_v54, %v10107_v31  ;;  %v6717_v57 = vunpack.c.h.bf16 %v16450_v4  ;;  %v10120_v31 = vld [vmem:[#allocation10 + $0x388] sm:$0xff] }
 0x577   : > { %v6523_v60 = vadd.f32 %v6507_v21, %v6429_v38  ;;  %v6614_v0 = vadd.f32 %v6598_v24, %v6524_v45  ;;  %v13099_v17 = vcombine.low %v10104_v6, %v10108_v41  ;;  %v6858_v38 = vadd.f32 %v16483_v30, %v6780_v46  ;;  %v10124_v24 = vld [vmem:[#allocation10 + $0x3a8] sm:$0xff] }
 0x578   : > { %10839 = vmatpush1.bf16.msra.mxu1 %v13083_v14  ;;  %v13100_v14 = vcombine.high %v10104_v6, %v10108_v41  ;;  %v6932_v21 = vmul.f32 %v16441_v32, %v16501_v3  ;;  %v18544_v45 = vunpack.c.l.bf16 %v16450_v4  ;;  %v6599_v36 = vmul.f32 %v16382_v16, %v16555_v47  ;;  %10800 = vmatpush1.bf16.msra.mxu0 %v13097_v2  ;;  %v10127_v2 = vld [vmem:[#allocation10 + $0x3c0] sm:$0xff] }
 0x579   : > { %10840 = vmatprep.subr.bf16.mxu1 %v13092_v5  ;;  %v10112_v5 = vld [vmem:[#allocation10 + $0x348] sm:$0xff]  ;;  %v18545_v46 = vunpack.c.h.bf16 %v16414_v10  ;;  %v6613_v6 = vadd.f32 %v6597_v48, %v6523_v60  ;;  %v6675_v41 = vmul.f32 %v16404_v44, %v16564_v20  ;;  %v18546_v4 = vunpack.c.h.bf16 %v16394_v63  ;;  %10801 = vmatprep.subr.bf16.mxu0 %v13106_v8 }
 0x57a   : > { %v13108_v25 = vcombine.high %v10112_v5, %v10116_v13  ;;  %v16576_v54 = vrot.slane %v18544_v45, %v14749_v62  ;;  %v13107_v10 = vcombine.low %v10112_v5, %v10116_v13  ;;  %v7010_v60 = vmul.f32 %v16444_v55, %v16504_v12 }
 0x57b   : > { %v16583_v30 = vrot.slane %v18545_v46, %v18495_v1  ;;  %v13114_v46 = vcombine.high %v10119_v7, %v10123_v56  ;;  %v6948_v1 = vadd.f32 %v6932_v21, %v6858_v38  ;;  %v18547_v48 = vunpack.c.l.bf16 %v16463_v50 }
 0x57c   : > { %10841 = vmatpush1.bf16.msra.mxu1 %v13091_v61  ;;  %v6525_v61 = vadd.f32 %v6509_v49, %v6431_v43  ;;  %v13105_v43 = vcombine.low %v10111_v27, %v10115_v11  ;;  %v6692_v49 = vadd.f32 %v6676_v28, %v6614_v0  ;;  %v10131_v27 = vld [vmem:[#allocation10 + $0x3e0] sm:$0xff]  ;;  %v6844_v0 = vmul.f32 %v16429_v51, %v16576_v54  ;;  %v10128_v28 = vld [vmem:[#allocation10 + $0x3c8] sm:$0xff] }
 0x57d   : > { %10842 = vmatprep.subr.bf16.mxu1 %v13100_v14  ;;  %v16590_v14 = vrot.slane %v18546_v4, %v18507_v37  ;;  %v16598_v16 = vrot.slane %v18547_v48, %v18359_v40  ;;  %v13116_v4 = vcombine.high %v10120_v31, %v10124_v24  ;;  %v6677_v8 = vmul.f32 %v16404_v44, %v16583_v30  ;;  %v10132_v11 = vld [vmem:[#allocation10 + $0x3e8] sm:$0xff] }
 0x57e   : > { %v16605_v13 = vrot.slane %v6717_v57, %v18507_v37  ;;  %v6691_v5 = vadd.f32 %v6675_v41, %v6613_v6  ;;  %v18548_v21 = vunpack.c.h.bf16 %v16394_v63  ;;  %10802 = vmatpush1.bf16.msra.mxu0 %v13105_v43  ;;  %v13113_v48 = vcombine.low %v10119_v7, %v10123_v56 }
 0x57f   : > { %v6765_v38 = vmul.f32 %v16424_v59, %v16590_v14  ;;  %10803 = vmatprep.subr.bf16.mxu0 %v13114_v46  ;;  %v13115_v45 = vcombine.low %v10120_v31, %v10124_v24  ;;  %v13122_v37 = vcombine.high %v10127_v2, %v10131_v27  ;;  %v6934_v6 = vmul.f32 %v16441_v32, %v16598_v16 }
 0x580   : > { %10843 = vmatpush1.bf16.msra.mxu1 %v13099_v17  ;;  %v6615_v17 = vadd.f32 %v6599_v36, %v6525_v61  ;;  %v6782_v61 = vadd.f32 %v6766_v19, %v6692_v49  ;;  %v6885_v36 = vunpack.c.h.bf16 %v16463_v50  ;;  %v18549_v41 = vunpack.c.l.bf16 %v16463_v50  ;;  %v16634_v50 = vld [vmem:[%s18020_s7 + $0x10] sm:$0x11] }
 0x581   : > { %10844 = vmatprep.subr.bf16.mxu1 %v13108_v25  ;;  %v16612_v25 = vrot.slane %v18548_v21, %v14749_v62  ;;  %v16623_v63 = vrot.slane %v6717_v57, %v14749_v62  ;;  %v13124_v56 = vcombine.high %v10128_v28, %v10132_v11  ;;  %v6767_v7 = vmul.f32 %v16424_v59, %v16605_v13 }
 0x582   : > { %v16620_v44 = vrot.slane %v18549_v41, %v18445_v39  ;;  %v6693_v19 = vadd.f32 %v6677_v8, %v6615_v17  ;;  %v6436_v31 = vmul.f32 %v16396_v15, %v16376_v18  ;;  %v6514_v24 = vmul.f32 %v16398_v53, %v16379_v26  ;;  %10804 = vmatpush1.bf16.msra.mxu0 %v13113_v48 }
 0x583   : > { %v6781_v43 = vadd.f32 %v6765_v38, %v6691_v5  ;;  %v6843_v57 = vmul.f32 %v16429_v51, %v16612_v25  ;;  %v18550_v49 = vunpack.c.h.bf16 %v16438_v52  ;;  %v13121_v46 = vcombine.low %v10127_v2, %v10131_v27  ;;  %10805 = vmatprep.subr.bf16.mxu0 %v13122_v37  ;;  %v16662_v27 = vld [vmem:[%s18020_s7 + $0x10] sm:$0x44]  ;;  %v16674_v38 = vld [vmem:[%s18020_s7 + $0x10] sm:$0x88]  ;;  %v16697_v52 = vld [vmem:[%s18020_s7 + $0x18] sm:$0x22] }
 0x584   : > { %10845 = vmatpush1.bf16.msra.mxu1 %v13107_v10  ;;  %v16644_v18 = vunpack.i.h.bf16 %v16431_v34  ;;  %v6860_v26 = vadd.f32 %v6844_v0, %v6782_v61  ;;  %v13123_v17 = vcombine.low %v10128_v28, %v10132_v11  ;;  %v13006_v8 = vcombine.high %v16531_v29, %v16533_v9  ;;  %v18551_v28 = vld [vmem:[#allocation76_spill] sm:$0xff] }
 0x585   : > { %10846 = vmatprep.subr.bf16.mxu1 %v13116_v4  ;;  %v16641_v10 = vrot.slane %v18550_v49, %v18359_v40  ;;  %v16649_v4 = vld [vmem:[%s18020_s7 + $0x10] sm:$0x22]  ;;  %v16654_v5 = vunpack.i.h.bf16 %v16433_v22  ;;  %v6845_v2 = vmul.f32 %v16429_v51, %v16623_v63  ;;  %v13008_v37 = vcombine.high %v16535_v42, %v16546_v58 }
 0x586   : > { %v16667_v0 = vrot.slane %v6885_v36, %v18359_v40  ;;  %v6530_v22 = vadd.f32 %v6514_v24, %v6436_v31  ;;  %v6604_v11 = vmul.f32 %v18551_v28, %v16389_v33  ;;  %v6859_v21 = vadd.f32 %v6843_v57, %v6781_v43  ;;  %10806 = vmatpush1.bf16.msra.mxu0 %v13121_v46  ;;  %v16692_v24 = vld [vmem:[%s18020_s7 + $0x18] sm:$0x11]  ;;  %v18556_v43 = vld [vmem:[#allocation69_spill] sm:$0xff]  ;;  %v18560_v31 = vld [vmem:[#allocation63_spill] sm:$0xff] }
 0x587   : > { %v6933_v48 = vmul.f32 %v16441_v32, %v16641_v10  ;;  %v18552_v61 = vmov %v18550_v49  ;;  %v6950_v33 = vadd.f32 %v6934_v6, %v6860_v26  ;;  %10861 = vmatprep.subr.bf16.mxu0 %v13006_v8  ;;  %v16704_v6 = vrot.slane %v6885_v36, %v18445_v39  ;;  %v18557_v49 = vld [vmem:[#allocation72_spill] sm:$0xff]  ;;  %v16719_v8 = vld [vmem:[%s18020_s7 + $0x18] sm:$0x88] }
 0x588   : > { %10847 = vmatpush1.bf16.msra.mxu1 %v13115_v45  ;;  %v6783_v45 = vadd.f32 %v6767_v7, %v6693_v19  ;;  %v16681_v41 = vrot.slane %v18552_v61, %v18445_v39  ;;  %v16684_v19 = vadd.f32 %v7010_v60, %v6948_v1  ;;  %v7012_v7 = vmul.f32 %v16444_v55, %v16620_v44 }
 0x589   : > { %10848 = vmatprep.subr.bf16.mxu1 %v13124_v56  ;;  %v6438_v57 = vmul.f32 %v16396_v15, %v18556_v43  ;;  %v6516_v46 = vmul.f32 %v16398_v53, %v18557_v49  ;;  %v6935_v43 = vmul.f32 %v16441_v32, %v16667_v0  ;;  %v6620_v26 = vadd.f32 %v6604_v11, %v6530_v22  ;;  %v18561_v56 = vld [vmem:[#allocation58_spill] sm:$0xff] }
 0x58a   : > { %18553 = vst [vmem:[#allocation77_spill] sm:$0xff] %v16684_v19  ;;  %v6861_v61 = vadd.f32 %v6845_v2, %v6783_v45  ;;  %v6682_v34 = vmul.f32 %v18561_v56, %v18560_v31  ;;  %v6949_v58 = vadd.f32 %v6933_v48, %v6859_v21  ;;  %v7011_v42 = vmul.f32 %v16444_v55, %v16681_v41  ;;  %v18571_v21 = vld [vmem:[#allocation67_spill] sm:$0xff]  ;;  %v18574_v2 = vld [vmem:[#allocation60_spill] sm:$0xff] }
 0x58b   : > { %v16737_v45 = vadd.f32 %v7012_v7, %v6950_v33  ;;  %v6383_v48 = vunpack.c.h.bf16 %v16634_v50  ;;  %v6532_v31 = vadd.f32 %v6516_v46, %v6438_v57  ;;  %v7013_v7 = vmul.f32 %v16444_v55, %v16704_v6  ;;  %v18572_v46 = vld [vmem:[#allocation55_spill] sm:$0xff] }
 0x58c   : > { %10849 = vmatpush1.bf16.msra.mxu1 %v13123_v17  ;;  %v16714_v17 = vld [vmem:[%s18020_s7 + $0x18] sm:$0x44]  ;;  %v6951_v33 = vadd.f32 %v6935_v43, %v6861_v61  ;;  %v16754_v19 = vadd.f32 %v7011_v42, %v6949_v58  ;;  %v6437_v57 = vmul.f32 %v16396_v15, %v18571_v21  ;;  %v6940_v42 = vmul.f32 %v16644_v18, %v16501_v3  ;;  %v18577_v3 = vld [vmem:[#allocation27_spill] sm:$0xff] }
 0x58d   : > { %10904 = vmatprep.subr.bf16.mxu1 %v13008_v37  ;;  %v6384_v37 = vunpack.c.l.bf16 %v16692_v24  ;;  %18564 = vst [vmem:[#allocation36_spill] sm:$0xff] %v16737_v45  ;;  %v7018_v58 = vmul.f32 %v16654_v5, %v16504_v12  ;;  %v18575_v21 = vld [vmem:[#allocation34_spill] sm:$0xff]  ;;  %v18578_v45 = vunpack.c.l.bf16 %v16634_v50  ;;  %v18585_v50 = vld [vmem:[#allocation57_spill] sm:$0xff] }
 0x58e   : > { %18570 = vst [vmem:[#allocation39_spill] sm:$0xff] %v16754_v19 }
 0x58f   : > { %v16782_v12 = vrot.slane %v18578_v45, %v18577_v3 }
 0x591   : > { %18579 = vst [vmem:[#allocation30_spill] sm:$0xff] %v16782_v12 }
 0x5d2   : > { %v16699_v1 = vpop.f32.mrb[20].mxu1  ;;  %v16701_v60 = vpop.f32.mrb[24].mxu0 }
 0x5d3   : > { %18554 = vst [vmem:[#allocation53_spill] sm:$0xff] %v16699_v1  ;;  %18555 = vst [vmem:[#allocation65_spill] sm:$0xff] %v16701_v60  ;;  %v16721_v36 = vpop.f32.mrb[21].mxu1  ;;  %v16725_v49 = vpop.f32.mrb[25].mxu0  ;;  %v18569_v1 = vld [vmem:[#allocation56_spill] sm:$0xff]  ;;  %v18573_v60 = vld [vmem:[#allocation59_spill] sm:$0xff] }
 0x5d4   : > { %18558 = vst [vmem:[#allocation43_spill] sm:$0xff] %v16721_v36  ;;  %18559 = vst [vmem:[#allocation31_spill] sm:$0xff] %v16725_v49  ;;  %v16731_v9 = vpop.f32.mrb[22].mxu1  ;;  %v16733_v29 = vpop.f32.mrb[26].mxu0  ;;  %v6850_v61 = vmul.f32 %v18574_v2, %v18573_v60  ;;  %v16772_v49 = vadd.f32 %v7013_v7, %v6951_v33  ;;  %v6774_v60 = vmul.f32 %v18569_v1, %v16542_v35 }
 0x5d5   : > { %18562 = vst [vmem:[#allocation49_spill] sm:$0xff] %v16731_v9  ;;  %18563 = vst [vmem:[#allocation70_spill] sm:$0xff] %v16733_v29  ;;  %v16739_v36 = vpop.f32.mrb[23].mxu1  ;;  %v16741_v22 = vpop.f32.mrb[27].mxu0  ;;  %v18567_v9 = vld [vmem:[#allocation44_spill] sm:$0xff]  ;;  %v6942_v35 = vmul.f32 %v16644_v18, %v16598_v16  ;;  %v6683_v16 = vmul.f32 %v18561_v56, %v16564_v20  ;;  %v6773_v20 = vmul.f32 %v18569_v1, %v16590_v14 }
 0x5d6   : > { %18565 = vst [vmem:[#allocation50_spill] sm:$0xff] %v16739_v36  ;;  %18566 = vst [vmem:[#allocation68_spill] sm:$0xff] %v16741_v22  ;;  %v6606_v29 = vmul.f32 %v18551_v28, %v18567_v9  ;;  %v6698_v36 = vadd.f32 %v6682_v34, %v6620_v26  ;;  %v18568_v22 = vld [vmem:[#allocation45_spill] sm:$0xff]  ;;  %v6515_v9 = vmul.f32 %v16398_v53, %v18572_v46  ;;  %v18590_v34 = vld [vmem:[#allocation52_spill] sm:$0xff] }
 0x5d7   : > { %v6772_v11 = vmul.f32 %v18569_v1, %v18568_v22  ;;  %v6684_v46 = vmul.f32 %v18561_v56, %v18575_v21  ;;  %18576 = vst [vmem:[#allocation73_spill] sm:$0xff] %v16772_v49  ;;  %v6605_v26 = vmul.f32 %v18551_v28, %v16526_v23  ;;  %v18591_v49 = vld [vmem:[#allocation29_spill] sm:$0xff] }
 0x5d8   : > { %v6622_v22 = vadd.f32 %v6606_v29, %v6532_v31  ;;  %v6531_v43 = vadd.f32 %v6515_v9, %v6437_v57  ;;  %v18580_v29 = vld [vmem:[#allocation28_spill] sm:$0xff]  ;;  %v18581_v31 = vmov %v18578_v45  ;;  %v16801_v45 = vmul.f32 %v16654_v5, %v16620_v44  ;;  %v18586_v9 = vld [vmem:[#allocation66_spill] sm:$0xff]  ;;  %v18589_v44 = vld [vmem:[#allocation51_spill] sm:$0xff] }
 0x5d9   : > { %v6788_v19 = vadd.f32 %v6772_v11, %v6698_v36  ;;  %v16787_v33 = vrot.slane %v18581_v31, %v18580_v29  ;;  %v6852_v36 = vmul.f32 %v18574_v2, %v16576_v54  ;;  %v16794_v11 = vrot.slane %v6384_v37, %v18577_v3 }
 0x5da   : > { %v16797_v23 = vrot.slane %v6384_v37, %v18580_v29  ;;  %v6700_v7 = vadd.f32 %v6684_v46, %v6622_v22  ;;  %v6439_v57 = vmul.f32 %v16396_v15, %v18585_v50  ;;  %v6517_v54 = vmul.f32 %v16398_v53, %v18586_v9 }
 0x5db   : > { %18582 = vst [vmem:[#allocation41_spill] sm:$0xff] %v16787_v33  ;;  %18583 = vst [vmem:[#allocation35_spill] sm:$0xff] %v16794_v11  ;;  %v6866_v21 = vadd.f32 %v6850_v61, %v6788_v19  ;;  %v16810_v31 = vrot.slane %v6383_v48, %v18577_v3  ;;  %v16813_v37 = vrot.slane %v6383_v48, %v18580_v29  ;;  %v18592_v9 = vunpack.c.l.bf16 %v16649_v4 }
 0x5dc   : > { %18584 = vst [vmem:[#allocation61_spill] sm:$0xff] %v16797_v23  ;;  %v6621_v22 = vadd.f32 %v6605_v26, %v6531_v43  ;;  %v6432_v46 = vmul.f32 %v18589_v44, %v16782_v12  ;;  %v6510_v50 = vmul.f32 %v18590_v34, %v16787_v33  ;;  %v6434_v61 = vmul.f32 %v18589_v44, %v16794_v11 }
 0x5dd   : > { %18587 = vst [vmem:[#allocation48_spill] sm:$0xff] %v16810_v31  ;;  %18588 = vst [vmem:[#allocation46_spill] sm:$0xff] %v16813_v37  ;;  %v16822_v19 = vrot.slane %v18592_v9, %v18591_v49  ;;  %v6512_v48 = vmul.f32 %v18590_v34, %v16797_v23  ;;  %v18593_v43 = vunpack.c.l.bf16 %v16697_v52  ;;  %v6790_v53 = vadd.f32 %v6774_v60, %v6700_v7 }
 0x5de   : > { %v6851_v33 = vmul.f32 %v18574_v2, %v16612_v25  ;;  %v6533_v9 = vadd.f32 %v6517_v54, %v6439_v57  ;;  %v6607_v15 = vmul.f32 %v18551_v28, %v16555_v47  ;;  %v6956_v14 = vadd.f32 %v6940_v42, %v6866_v21  ;;  %v18596_v25 = vld [vmem:[#allocation54_spill] sm:$0xff]  ;;  %v18597_v54 = vld [vmem:[#allocation32_spill] sm:$0xff] }
 0x5df   : > { %v16833_v26 = vrot.slane %v18593_v43, %v18591_v49  ;;  %v6433_v11 = vmul.f32 %v18589_v44, %v16810_v31  ;;  %v6511_v23 = vmul.f32 %v18590_v34, %v16813_v37  ;;  %v18595_v12 = vunpack.c.h.bf16 %v16649_v4 }
 0x5e0   : > { %v6699_v60 = vadd.f32 %v6683_v16, %v6621_v22  ;;  %v6526_v7 = vadd.f32 %v6510_v50, %v6432_v46  ;;  %v6600_v57 = vmul.f32 %v18596_v25, %v16822_v19  ;;  %v18598_v47 = vunpack.c.l.bf16 %v16649_v4 }
 0x5e1   : > { %18594 = vst [vmem:[#allocation71_spill] sm:$0xff] %v16833_v26  ;;  %v16846_v43 = vrot.slane %v18595_v12, %v18591_v49  ;;  %v6941_v21 = vmul.f32 %v16644_v18, %v16641_v10  ;;  %v6528_v31 = vadd.f32 %v6512_v48, %v6434_v61  ;;  %v6602_v37 = vmul.f32 %v18596_v25, %v16833_v26 }
 0x5e2   : > { %v16853_v42 = vrot.slane %v18598_v47, %v18597_v54  ;;  %v18599_v12 = vunpack.c.l.bf16 %v16697_v52  ;;  %v6868_v22 = vadd.f32 %v6852_v36, %v6790_v53  ;;  %v7019_v46 = vmul.f32 %v16654_v5, %v16681_v41  ;;  %v18602_v36 = vld [vmem:[#allocation75_spill] sm:$0xff] }
 0x5e3   : > { %v6623_v50 = vadd.f32 %v6607_v15, %v6533_v9  ;;  %v6685_v47 = vmul.f32 %v18561_v56, %v16583_v30  ;;  %v16868_v28 = vadd.f32 %v7018_v58, %v6956_v14  ;;  %v6527_v10 = vadd.f32 %v6511_v23, %v6433_v11  ;;  %v18603_v15 = vld [vmem:[#allocation37_spill] sm:$0xff] }
 0x5e4   : > { %v16862_v16 = vrot.slane %v18599_v12, %v18597_v54  ;;  %v6601_v61 = vmul.f32 %v18596_v25, %v16846_v43  ;;  %v18601_v48 = vunpack.c.h.bf16 %v16649_v4  ;;  %v6789_v12 = vadd.f32 %v6773_v20, %v6699_v60 }
 0x5e5   : > { %18600 = vst [vmem:[#allocation69_spill] sm:$0xff] %v16868_v28  ;;  %v6616_v53 = vadd.f32 %v6600_v57, %v6526_v7  ;;  %v6678_v41 = vmul.f32 %v18602_v36, %v16853_v42  ;;  %v18604_v9 = vunpack.c.l.bf16 %v16662_v27  ;;  %v6775_v58 = vmul.f32 %v18569_v1, %v16605_v13 }
 0x5e6   : > { %v16875_v26 = vrot.slane %v18601_v48, %v18597_v54  ;;  %v6618_v11 = vadd.f32 %v6602_v37, %v6528_v31  ;;  %v6680_v23 = vmul.f32 %v18602_v36, %v16862_v16  ;;  %v18605_v4 = vunpack.c.l.bf16 %v16714_v17 }
 0x5e7   : > { %v16882_v30 = vrot.slane %v18604_v9, %v18603_v15  ;;  %v6958_v14 = vadd.f32 %v6942_v35, %v6868_v22  ;;  %v6701_v60 = vadd.f32 %v6685_v47, %v6623_v50  ;;  %v6853_v7 = vmul.f32 %v18574_v2, %v16623_v63 }
 0x5e8   : > { %v16891_v20 = vrot.slane %v18605_v4, %v18603_v15  ;;  %v18606_v57 = vunpack.c.h.bf16 %v16662_v27  ;;  %v6617_v13 = vadd.f32 %v6601_v61, %v6527_v10  ;;  %v6679_v31 = vmul.f32 %v18602_v36, %v16875_v26 }
 0x5e9   : > { %v18608_v37 = vunpack.c.h.bf16 %v16692_v24  ;;  %v6867_v50 = vadd.f32 %v6851_v33, %v6789_v12  ;;  %v6694_v47 = vadd.f32 %v6678_v41, %v6616_v53  ;;  %v6768_v63 = vmul.f32 %v16424_v59, %v16882_v30 }
 0x5ea   : > { %v16898_v48 = vrot.slane %v18606_v57, %v18603_v15  ;;  %v18610_v4 = vunpack.c.l.bf16 %v16662_v27  ;;  %v6943_v61 = vmul.f32 %v16644_v18, %v16667_v0  ;;  %v6696_v57 = vadd.f32 %v6680_v23, %v6618_v11 }
 0x5eb   : > { %v6427_v9 = vrot.slane %v18608_v37, %v18577_v3  ;;  %v18609_v35 = vmov %v18608_v37  ;;  %v6770_v37 = vmul.f32 %v16424_v59, %v16891_v20  ;;  %v18611_v24 = vunpack.c.l.bf16 %v16714_v17 }
 0x5ec   : > { %18607 = vst [vmem:[#allocation72_spill] sm:$0xff] %v16898_v48  ;;  %v6505_v22 = vrot.slane %v18609_v35, %v18580_v29  ;;  %v16913_v10 = vrot.slane %v18610_v4, %v14749_v62  ;;  %v6791_v12 = vadd.f32 %v6775_v58, %v6701_v60  ;;  %v7021_v53 = vmul.f32 %v16654_v5, %v16704_v6 }
 0x5ed   : > { %v16922_v33 = vrot.slane %v18611_v24, %v14749_v62  ;;  %v6769_v41 = vmul.f32 %v16424_v59, %v16898_v48  ;;  %v18613_v35 = vunpack.c.h.bf16 %v16662_v27  ;;  %v6695_v11 = vadd.f32 %v6679_v31, %v6617_v13 }
 0x5ee   : > { %v6435_v23 = vmul.f32 %v18589_v44, %v6427_v9  ;;  %v6513_v4 = vmul.f32 %v18590_v34, %v6505_v22  ;;  %v18615_v24 = vunpack.c.h.bf16 %v16697_v52  ;;  %v6957_v60 = vadd.f32 %v6941_v21, %v6867_v50 }
 0x5ef   : > { %18612 = vst [vmem:[#allocation63_spill] sm:$0xff] %v16922_v33  ;;  %v16931_v0 = vrot.slane %v18613_v35, %v14749_v62  ;;  %v6784_v28 = vadd.f32 %v6768_v63, %v6694_v47  ;;  %v6846_v6 = vmul.f32 %v16429_v51, %v16913_v10  ;;  %v18616_v48 = vunpack.c.l.bf16 %v16674_v38 }
 0x5f0   : > { %v6595_v58 = vrot.slane %v18615_v24, %v18591_v49  ;;  %v6786_v34 = vadd.f32 %v6770_v37, %v6696_v57  ;;  %v6848_v31 = vmul.f32 %v16429_v51, %v16922_v33  ;;  %v18618_v21 = vunpack.c.l.bf16 %v16719_v8 }
 0x5f1   : > { %18614 = vst [vmem:[#allocation58_spill] sm:$0xff] %v16931_v0  ;;  %v16943_v27 = vrot.slane %v18616_v48, %v18359_v40  ;;  %v18617_v13 = vmov %v18616_v48  ;;  %v16958_v47 = vadd.f32 %v16801_v45, %v6958_v14  ;;  %v6869_v63 = vadd.f32 %v6853_v7, %v6791_v12 }
 0x5f2   : > { %v16948_v44 = vrot.slane %v18617_v13, %v18445_v39  ;;  %v16955_v50 = vrot.slane %v18618_v21, %v18359_v40  ;;  %v6847_v48 = vmul.f32 %v16429_v51, %v16931_v0  ;;  %v18620_v35 = vunpack.c.h.bf16 %v16674_v38 }
 0x5f3   : > { %v6785_v57 = vadd.f32 %v6769_v41, %v6695_v11  ;;  %v6529_v37 = vadd.f32 %v6513_v4, %v6435_v23  ;;  %v6603_v13 = vmul.f32 %v18596_v25, %v6595_v58  ;;  %v18621_v21 = vunpack.c.h.bf16 %v16697_v52 }
 0x5f4   : > { %18619 = vst [vmem:[#allocation44_spill] sm:$0xff] %v16955_v50  ;;  %v16965_v24 = vrot.slane %v18620_v35, %v18359_v40  ;;  %v16971_v29 = vadd.f32 %v7019_v46, %v6957_v60  ;;  %v6862_v45 = vadd.f32 %v6846_v6, %v6784_v28  ;;  %v6936_v14 = vmul.f32 %v16441_v32, %v16943_v27  ;;  %v18627_v60 = vld [vmem:[#allocation30_spill] sm:$0xff] }
 0x5f5   : > { %v6673_v33 = vrot.slane %v18621_v21, %v18597_v54  ;;  %v18623_v7 = vunpack.c.l.bf16 %v16719_v8  ;;  %v7014_v41 = vmul.f32 %v16444_v55, %v16948_v44  ;;  %v6864_v11 = vadd.f32 %v6848_v31, %v6786_v34  ;;  %v18628_v6 = vld [vmem:[#allocation42_spill] sm:$0xff]  ;;  %v18629_v21 = vld [vmem:[#allocation41_spill] sm:$0xff] }
 0x5f6   : > { %18622 = vst [vmem:[#allocation45_spill] sm:$0xff] %v16971_v29  ;;  %v6938_v25 = vmul.f32 %v16441_v32, %v16955_v50  ;;  %v18624_v52 = vmov %v18620_v35  ;;  %v6959_v28 = vadd.f32 %v6943_v61, %v6869_v63  ;;  %v18626_v23 = vunpack.c.h.bf16 %v16714_v17  ;;  %v18631_v63 = vld [vmem:[#allocation35_spill] sm:$0xff] }
 0x5f7   : > { %v16978_v12 = vrot.slane %v18623_v7, %v18445_v39  ;;  %v16987_v46 = vrot.slane %v18624_v52, %v18445_v39  ;;  %v6440_v35 = vmul.f32 %v18628_v6, %v18627_v60  ;;  %v18630_v7 = vld [vmem:[#allocation74_spill] sm:$0xff]  ;;  %v6863_v31 = vadd.f32 %v6847_v48, %v6785_v57 }
 0x5f8   : > { %v16992_v4 = vrot.slane %v18626_v23, %v18603_v15  ;;  %v6518_v34 = vmul.f32 %v18630_v7, %v18629_v21  ;;  %v6937_v0 = vmul.f32 %v16441_v32, %v16965_v24  ;;  %v6619_v29 = vadd.f32 %v6603_v13, %v6529_v37  ;;  %v18632_v15 = vld [vmem:[#allocation61_spill] sm:$0xff]  ;;  %v18634_v21 = vld [vmem:[#allocation76_spill] sm:$0xff] }
 0x5f9   : > { %18625 = vst [vmem:[#allocation56_spill] sm:$0xff] %v16987_v46  ;;  %v6681_v38 = vmul.f32 %v18602_v36, %v6673_v33  ;;  %v6952_v52 = vadd.f32 %v6936_v14, %v6862_v45  ;;  %v7016_v61 = vmul.f32 %v16444_v55, %v16978_v12  ;;  %v6442_v23 = vmul.f32 %v18628_v6, %v18631_v63 }
 0x5fa   : > { %v6520_v60 = vmul.f32 %v18630_v7, %v18632_v15  ;;  %v6954_v50 = vadd.f32 %v6938_v25, %v6864_v11  ;;  %v7015_v48 = vmul.f32 %v16444_v55, %v16987_v46  ;;  %v6443_v57 = vmul.f32 %v18628_v6, %v6427_v9 }
 0x5fb   : > { %v6521_v37 = vmul.f32 %v18630_v7, %v6505_v22  ;;  %v6771_v36 = vmul.f32 %v16424_v59, %v16992_v4  ;;  %v18633_v13 = vunpack.c.h.bf16 %v16714_v17  ;;  %v6534_v14 = vadd.f32 %v6518_v34, %v6440_v35  ;;  %v18637_v17 = vld [vmem:[#allocation71_spill] sm:$0xff]  ;;  %v18638_v35 = vld [vmem:[#allocation48_spill] sm:$0xff] }
 0x5fc   : > { %v6608_v15 = vmul.f32 %v18634_v21, %v16822_v19  ;;  %v6953_v11 = vadd.f32 %v6937_v0, %v6863_v31  ;;  %v6697_v25 = vadd.f32 %v6681_v38, %v6619_v29  ;;  %v18635_v63 = vunpack.c.h.bf16 %v16719_v8  ;;  %v18639_v19 = vld [vmem:[#allocation46_spill] sm:$0xff] }
 0x5fd   : > { %v17016_v45 = vrot.slane %v18633_v13, %v14749_v62  ;;  %v6536_v46 = vadd.f32 %v6520_v60, %v6442_v23  ;;  %v6610_v13 = vmul.f32 %v18634_v21, %v18637_v17  ;;  %v6441_v34 = vmul.f32 %v18628_v6, %v18638_v35  ;;  %v17048_v6 = vld [vmem:[%s18022_s9] sm:$0xff] }
 0x5fe   : > { %v17023_v9 = vrot.slane %v18635_v63, %v18359_v40  ;;  %v18636_v22 = vmov %v18635_v63  ;;  %v6519_v29 = vmul.f32 %v18630_v7, %v18639_v19  ;;  %v7037_v0 = vadd.f32 %v7021_v53, %v6959_v28  ;;  %v18645_v17 = vld [vmem:[#allocation31_spill] sm:$0xff] }
 0x5ff   : > { %v17028_v59 = vrot.slane %v18636_v22, %v18445_v39  ;;  %v17036_v31 = vadd.f32 %v7014_v41, %v6952_v52  ;;  %v6537_v38 = vadd.f32 %v6521_v37, %v6443_v57  ;;  %v6611_v63 = vmul.f32 %v18634_v21, %v6595_v58  ;;  %v18640_v57 = vld [vmem:[#allocation36_spill] sm:$0xff]  ;;  %v18641_v37 = vld [vmem:[#allocation65_spill] sm:$0xff] }
 0x600   : > { %v17039_v62 = vadd.f32 %v7016_v61, %v6954_v50  ;;  %v6849_v8 = vmul.f32 %v16429_v51, %v17016_v45  ;;  %v6624_v23 = vadd.f32 %v6608_v15, %v6534_v14  ;;  %v6686_v60 = vmul.f32 %v18561_v56, %v16853_v42  ;;  %v18642_v14 = vld [vmem:[#allocation77_spill] sm:$0xff] }
 0x601   : > { %v17050_v53 = vadd.f32 %v7015_v48, %v6953_v11  ;;  %v6787_v41 = vadd.f32 %v6771_v36, %v6697_v25  ;;  %v6939_v58 = vmul.f32 %v16441_v32, %v17023_v9  ;;  %v7017_v50 = vmul.f32 %v16444_v55, %v17028_v59 }
 0x602   : > { %v6626_v28 = vadd.f32 %v6610_v13, %v6536_v46  ;;  %v6688_v51 = vmul.f32 %v18561_v56, %v16862_v16  ;;  %v6535_v7 = vadd.f32 %v6519_v29, %v6441_v34  ;;  %v6609_v42 = vmul.f32 %v18634_v21, %v16846_v43  ;;  %v18643_v21 = vld [vmem:[#allocation53_spill] sm:$0xff]  ;;  %v18648_v29 = vld [vmem:[#allocation28_spill] sm:$0xff] }
 0x603   : > { %v6776_v52 = vmul.f32 %v18569_v1, %v16882_v30  ;;  %v6854_v61 = vmul.f32 %v18574_v2, %v16913_v10  ;;  %v6627_v48 = vadd.f32 %v6611_v63, %v6537_v38  ;;  %v6689_v32 = vmul.f32 %v18561_v56, %v6673_v33 }
 0x604   : > { %v8928_v55 = vadd.f32 %v18641_v37, %v18640_v57  ;;  %v8955_v46 = vrot.slane %v17048_v6, %v18591_v49  ;;  %v6702_v16 = vadd.f32 %v6686_v60, %v6624_v23  ;;  %v6944_v36 = vmul.f32 %v16644_v18, %v16943_v27  ;;  %v18644_v27 = vld [vmem:[#allocation73_spill] sm:$0xff]  ;;  %v18650_v60 = vld [vmem:[#allocation63_spill] sm:$0xff] }
 0x605   : > { %v6865_v43 = vadd.f32 %v6849_v8, %v6787_v41  ;;  %v17073_v30 = vmul.f32 %v16654_v5, %v16948_v44  ;;  %v6778_v10 = vmul.f32 %v18569_v1, %v16891_v20  ;;  %v6687_v33 = vmul.f32 %v18561_v56, %v16875_v26  ;;  %v18646_v56 = vld [vmem:[#allocation39_spill] sm:$0xff]  ;;  %v18649_v8 = vld [vmem:[#allocation70_spill] sm:$0xff] }
 0x606   : > { %v8926_v15 = vadd.f32 %v18643_v21, %v18642_v14  ;;  %v8947_v11 = vrot.slane %v17048_v6, %v18577_v3  ;;  %v6704_v25 = vadd.f32 %v6688_v51, %v6626_v28  ;;  %v6625_v22 = vadd.f32 %v6609_v42, %v6535_v7  ;;  %v18647_v26 = vld [vmem:[#allocation43_spill] sm:$0xff]  ;;  %v18651_v28 = vld [vmem:[#allocation44_spill] sm:$0xff] }
 0x607   : > { %v8929_v13 = vadd.f32 %v18645_v17, %v18644_v27  ;;  %v8959_v44 = vrot.slane %v17048_v6, %v18597_v54  ;;  %v6705_v35 = vadd.f32 %v6689_v32, %v6627_v48  ;;  %v6779_v20 = vmul.f32 %v18569_v1, %v16992_v4  ;;  %v18652_v7 = vld [vmem:[#allocation72_spill] sm:$0xff]  ;;  %v18653_v48 = vld [vmem:[#allocation69_spill] sm:$0xff] }
 0x608   : > { %v8986_v34 = vadd.f32 %v8955_v46, %v8928_v55  ;;  %v8927_v19 = vadd.f32 %v18647_v26, %v18646_v56  ;;  %v8951_v38 = vrot.slane %v17048_v6, %v18648_v29  ;;  %v6792_v63 = vadd.f32 %v6776_v52, %v6702_v16  ;;  %v18654_v32 = vld [vmem:[#allocation49_spill] sm:$0xff]  ;;  %v18655_v52 = vld [vmem:[#allocation68_spill] sm:$0xff] }
 0x609   : > { %v8936_v23 = vadd.f32 %v18649_v8, %v16958_v47  ;;  %v6856_v41 = vmul.f32 %v18574_v2, %v18650_v60  ;;  %v6946_v51 = vmul.f32 %v16644_v18, %v18651_v28  ;;  %v6777_v4 = vmul.f32 %v18569_v1, %v18652_v7  ;;  %v18656_v60 = vld [vmem:[#allocation45_spill] sm:$0xff]  ;;  %v18657_v1 = vld [vmem:[#allocation50_spill] sm:$0xff] }
 0x60a   : > { %v8984_v42 = vadd.f32 %v8947_v11, %v8926_v15  ;;  %v8934_v57 = vadd.f32 %v18654_v32, %v18653_v48  ;;  %v6794_v37 = vadd.f32 %v6778_v10, %v6704_v25  ;;  %v6703_v55 = vadd.f32 %v6687_v33, %v6625_v22  ;;  %v18658_v10 = vld [vmem:[#allocation58_spill] sm:$0xff] }
 0x60b   : > { %v8987_v14 = vadd.f32 %v8959_v44, %v8929_v13  ;;  %v8937_v16 = vadd.f32 %v18655_v52, %v7037_v0  ;;  %v6795_v21 = vadd.f32 %v6779_v20, %v6705_v35  ;;  %v6857_v47 = vmul.f32 %v18574_v2, %v17016_v45 }
 0x60c   : > { %v9002_v27 = vmul.f32 0.5, %v8986_v34  ;;  %v8985_v17 = vadd.f32 %v8951_v38, %v8927_v19  ;;  %v6955_v56 = vadd.f32 %v6939_v58, %v6865_v43  ;;  %v6870_v26 = vadd.f32 %v6854_v61, %v6792_v63 }
 0x60d   : > { %v8994_v8 = vadd.f32 %v8955_v46, %v8936_v23  ;;  %v8935_v15 = vadd.f32 %v18657_v1, %v18656_v60  ;;  %v7024_v28 = vmul.f32 %v16654_v5, %v16978_v12  ;;  %v6855_v33 = vmul.f32 %v18574_v2, %v18658_v10  ;;  %v18659_v2 = vld [vmem:[#allocation56_spill] sm:$0xff] }
 0x60e   : > { %v9000_v25 = vmul.f32 0.5, %v8984_v42  ;;  %v8992_v0 = vadd.f32 %v8947_v11, %v8934_v57  ;;  %v6872_v22 = vadd.f32 %v6856_v41, %v6794_v37  ;;  %v6793_v13 = vadd.f32 %v6777_v4, %v6703_v55 }
 0x60f   : > { %v9003_v35 = vmul.f32 0.5, %v8987_v14  ;;  %v8995_v45 = vadd.f32 %v8959_v44, %v8937_v16  ;;  %v6873_v20 = vadd.f32 %v6857_v47, %v6795_v21  ;;  %v6947_v58 = vmul.f32 %v16644_v18, %v17023_v9  ;;  %v18661_v14 = vld [vmem:[#allocation38_spill] sm:$0xff] }
 0x610   : > { %13748 = vtanh.f32 %v9002_v27  ;;  %v9001_v61 = vmul.f32 0.5, %v8985_v17  ;;  %v7033_v46 = vadd.f32 %v7017_v50, %v6955_v56  ;;  %v6960_v43 = vadd.f32 %v6944_v36, %v6870_v26  ;;  %v18660_v36 = vld [vmem:[#allocation37_spill] sm:$0xff] }
 0x611   : > { %v9008_v34 = vmul.f32 0.5, %v8994_v8  ;;  %v8993_v19 = vadd.f32 %v8951_v38, %v8935_v15  ;;  %v6945_v12 = vmul.f32 %v16644_v18, %v16965_v24  ;;  %v7023_v11 = vmul.f32 %v16654_v5, %v18659_v2 }
 0x612   : > { %13750 = vtanh.f32 %v9000_v25  ;;  %v9006_v63 = vmul.f32 0.5, %v8992_v0  ;;  %v6962_v23 = vadd.f32 %v6946_v51, %v6872_v22  ;;  %v6871_v44 = vadd.f32 %v6855_v33, %v6793_v13  ;;  %v8874_v50 = vpop.f32.mrb[24].mxu1 }
 0x613   : > { %13752 = vtanh.f32 %v9003_v35  ;;  %v9009_v41 = vmul.f32 0.5, %v8995_v45  ;;  %v6963_v7 = vadd.f32 %v6947_v58, %v6873_v20  ;;  %v7025_v9 = vmul.f32 %v16654_v5, %v17028_v59  ;;  %v8917_v42 = vpop.f32.mrb[28].mxu0  ;;  %v8876_v48 = vpop.f32.mrb[25].mxu1 }
 0x614   : > { %13754 = vtanh.f32 %v9001_v61  ;;  %v8963_v38 = vrot.slane %v17048_v6, %v18660_v36  ;;  %v8971_v18 = vrot.slane %v17048_v6, %v18359_v40  ;;  %v7038_v24 = vadd.f32 %v17073_v30, %v6960_v43  ;;  %v8919_v59 = vpop.f32.mrb[29].mxu0  ;;  %v8878_v57 = vpop.f32.mrb[26].mxu1 }
 0x615   : > { %13756 = vtanh.f32 %v9008_v34  ;;  %v9007_v4 = vmul.f32 0.5, %v8993_v19  ;;  %v8930_v51 = vadd.f32 %v8874_v50, %v17036_v31  ;;  %v8975_v32 = vrot.slane %v17048_v6, %v18445_v39  ;;  %v8921_v16 = vpop.f32.mrb[30].mxu0  ;;  %v8880_v21 = vpop.f32.mrb[27].mxu1 }
 0x616   : > { %13758 = vtanh.f32 %v9006_v63  ;;  %v8932_v5 = vadd.f32 %v8917_v42, %v17039_v62  ;;  %v7040_v37 = vadd.f32 %v7024_v28, %v6962_v23  ;;  %v6961_v55 = vadd.f32 %v6945_v12, %v6871_v44  ;;  %v8923_v26 = vpop.f32.mrb[31].mxu0 }
 0x617   : > { %13760 = vtanh.f32 %v9009_v41  ;;  %v8967_v30 = vrot.slane %v17048_v6, %v18661_v14  ;;  %v8933_v52 = vadd.f32 %v8919_v59, %v7033_v46  ;;  %v7041_v31 = vadd.f32 %v7025_v9, %v6963_v7  ;;  %v13833_v59 = vld [vmem:[%s14330_s25 + $0x28] sm:$0xff] }
 0x618   : > { %v8988_v47 = vadd.f32 %v8963_v38, %v8930_v51  ;;  %v8990_v27 = vadd.f32 %v8971_v18, %v8932_v5  ;;  %v8931_v17 = vadd.f32 %v8876_v48, %v17050_v53  ;;  %v8940_v56 = vadd.f32 %v8921_v16, %v7040_v37  ;;  %v13834_v16 = vld [vmem:[%s14330_s25 + $0x30] sm:$0xff] }
 0x619   : > { %13762 = vtanh.f32 %v9007_v4  ;;  %v8991_v62 = vadd.f32 %v8975_v32, %v8933_v52  ;;  %v8941_v8 = vadd.f32 %v8923_v26, %v7041_v31  ;;  %v8938_v1 = vadd.f32 %v8878_v57, %v7038_v24 }
 0x61a   : > { %v13749_v60 = vpop.eup %13748  ;;  %13764 = vtanh.f32 %v8990_v27  ;;  %v7039_v15 = vadd.f32 %v7023_v11, %v6961_v55  ;;  %v8998_v28 = vadd.f32 %v8971_v18, %v8940_v56  ;;  %v9004_v6 = vmul.f32 0.5, %v8988_v47  ;;  %v13835_v56 = vld [vmem:[%s14330_s25 + $0x38] sm:$0xff] }
 0x61b   : > { %v8989_v33 = vadd.f32 %v8967_v30, %v8931_v17  ;;  %v9026_v22 = vadd.f32 1.0, %v13749_v60  ;;  %13766 = vtanh.f32 %v8991_v62  ;;  %v8999_v13 = vadd.f32 %v8975_v32, %v8941_v8 }
 0x61c   : > { %v13751_v10 = vpop.eup %13750  ;;  %v8939_v25 = vadd.f32 %v8880_v21, %v7039_v15  ;;  %v8996_v53 = vadd.f32 %v8963_v38, %v8938_v1  ;;  %13768 = vtanh.f32 %v8998_v28  ;;  %v13832_v38 = vld [vmem:[%s14330_s25 + $0x20] sm:$0xff] }
 0x61d   : > { %v13753_v0 = vpop.eup %13752  ;;  %v9024_v20 = vadd.f32 1.0, %v13751_v10  ;;  %13770 = vtanh.f32 %v9004_v6  ;;  %v9005_v46 = vmul.f32 0.5, %v8989_v33  ;;  %v9038_v19 = vmul.f32 0.5, %v9026_v22 }
 0x61e   : > { %v13755_v35 = vpop.eup %13754  ;;  %v9027_v61 = vadd.f32 1.0, %v13753_v0  ;;  %v8997_v43 = vadd.f32 %v8967_v30, %v8939_v25  ;;  %13772 = vtanh.f32 %v8999_v13  ;;  %v9010_v11 = vmul.f32 0.5, %v8996_v53 }
 0x61f   : > { %v13757_v45 = vpop.eup %13756  ;;  %v9025_v12 = vadd.f32 1.0, %v13755_v35  ;;  %v9036_v23 = vmul.f32 0.5, %v9024_v20  ;;  %13774 = vtanh.f32 %v9005_v46  ;;  %v9052_v18 = vmul.f32 %v13832_v38, %v9038_v19  ;;  %v10030_v38 = vld [vmem:[#allocation10 + $0xb8] sm:$0xff] }
 0x620   : > { %v13759_v58 = vpop.eup %13758  ;;  %v9032_v2 = vadd.f32 1.0, %v13757_v45  ;;  %v9039_v7 = vmul.f32 0.5, %v9027_v61  ;;  %v9011_v50 = vmul.f32 0.5, %v8997_v43  ;;  %13776 = vtanh.f32 %v9010_v11  ;;  %v10018_v11 = vld [vmem:[#allocation10 + $0x58] sm:$0xff] }
 0x621   : > { %v13761_v34 = vpop.eup %13760  ;;  %v9030_v44 = vadd.f32 1.0, %v13759_v58  ;;  %v9037_v4 = vmul.f32 0.5, %v9025_v12  ;;  %v10017_v12 = vld [vmem:[#allocation10 + $0x50] sm:$0xff] }
 0x622   : > { %v9033_v9 = vadd.f32 1.0, %v13761_v34  ;;  %v9044_v51 = vmul.f32 0.5, %v9032_v2  ;;  %v9053_v57 = vmul.f32 %v13833_v59, %v9039_v7  ;;  %13778 = vtanh.f32 %v9011_v50  ;;  %v10021_v2 = vld [vmem:[#allocation10 + $0x70] sm:$0xff]  ;;  %v10026_v50 = vld [vmem:[#allocation10 + $0x98] sm:$0xff] }
 0x623   : > { %v13763_v63 = vpop.eup %13762  ;;  %v9042_v32 = vmul.f32 0.5, %v9030_v44  ;;  %v10025_v44 = vld [vmem:[#allocation10 + $0x90] sm:$0xff] }
 0x624   : > { %v13765_v41 = vpop.eup %13764  ;;  %v9031_v42 = vadd.f32 1.0, %v13763_v63  ;;  %v9045_v37 = vmul.f32 0.5, %v9033_v9  ;;  %v9054_v21 = vmul.f32 %v13834_v16, %v9044_v51  ;;  %v10022_v63 = vld [vmem:[#allocation10 + $0x78] sm:$0xff]  ;;  %v10029_v9 = vld [vmem:[#allocation10 + $0xb0] sm:$0xff]  ;;  %v18665_v51 = vld [vmem:[#allocation64_spill] sm:$0xff] }
 0x625   : > { %v9056_v24 = vmul.f32 %v13765_v41, %v9036_v23  ;;  %v13767_v48 = vpop.eup %13766  ;;  %v13014_v41 = vcombine.high %v10017_v12, %v10021_v2  ;;  %v13016_v7 = vcombine.high %v10018_v11, %v10022_v63  ;;  %v13022_v59 = vcombine.high %v10025_v44, %v10029_v9  ;;  %v10038_v16 = vld [vmem:[#allocation10 + $0xf8] sm:$0xff] }
 0x626   : > { %v9057_v55 = vmul.f32 %v13767_v48, %v9037_v4  ;;  %v13769_v30 = vpop.eup %13768  ;;  %v9043_v31 = vmul.f32 0.5, %v9031_v42  ;;  %v9055_v26 = vmul.f32 %v13835_v56, %v9045_v37  ;;  %v18666_v42 = vld [vmem:[#allocation62_spill] sm:$0xff]  ;;  %v10033_v37 = vld [vmem:[#allocation10 + $0xd0] sm:$0xff] }
 0x627   : > { %v9060_v5 = vadd.f32 %v9056_v24, %v9052_v18  ;;  %v13771_v52 = vpop.eup %13770  ;;  %v9058_v27 = vmul.f32 %v13769_v30, %v9042_v32  ;;  %v18662_v18 = vld [vmem:[#allocation33_spill] sm:$0xff]  ;;  %v18663_v24 = vld [vmem:[#allocation40_spill] sm:$0xff]  ;;  %v18667_v48 = vcombine.low %v18665_v51, %v18666_v42  ;;  %v13013_v32 = vcombine.low %v10017_v12, %v10021_v2 }
 0x628   : > { %v9061_v47 = vadd.f32 %v9057_v55, %v9053_v57  ;;  %v13773_v17 = vpop.eup %13772  ;;  %v9028_v1 = vadd.f32 1.0, %v13771_v52  ;;  %v18664_v4 = vcombine.low %v18662_v18, %v18663_v24  ;;  %v13024_v57 = vcombine.high %v10026_v50, %v10030_v38  ;;  %v9093_v55 = vld [vmem:[%s18018_s5] sm:$0x3]  ;;  %v10037_v30 = vld [vmem:[#allocation10 + $0xf0] sm:$0xff]  ;;  %v10034_v52 = vld [vmem:[#allocation10 + $0xd8] sm:$0xff] }
 0x629   : > { %12983 = vst [vmem:[%s14330_s25 + $0x40] sm:$0xff] %v9060_v5  ;;  %13780 = vtanh.f32 %v9060_v5  ;;  %v9062_v62 = vadd.f32 %v9058_v27, %v9054_v21  ;;  %v9059_v8 = vmul.f32 %v13773_v17, %v9043_v31  ;;  %v13775_v60 = vpop.eup %13774  ;;  %v13015_v5 = vcombine.low %v10018_v11, %v10022_v63  ;;  %v10041_v56 = vld [vmem:[#allocation10 + $0x110] sm:$0xff] }
 0x62a   : > { %12984 = vst [vmem:[%s14330_s25 + $0x48] sm:$0xff] %v9061_v47  ;;  %13782 = vtanh.f32 %v9061_v47  ;;  %v13777_v28 = vpop.eup %13776  ;;  %v9029_v10 = vadd.f32 1.0, %v13775_v60  ;;  %v9040_v33 = vmul.f32 0.5, %v9028_v1  ;;  %v13021_v21 = vcombine.low %v10025_v44, %v10029_v9  ;;  %v10046_v60 = vld [vmem:[#allocation10 + $0x138] sm:$0xff]  ;;  %v9187_v1 = vpop.f32.mrb[28].mxu1  ;;  %v10065_v42 = vld [vmem:[#allocation10 + $0x1d0] sm:$0xff] }
 0x62b   : > { %12985 = vst [vmem:[%s14330_s25 + $0x50] sm:$0xff] %v9062_v62  ;;  %v9063_v15 = vadd.f32 %v9059_v8, %v9055_v26  ;;  %13784 = vtanh.f32 %v9062_v62  ;;  %v9034_v0 = vadd.f32 1.0, %v13777_v28  ;;  %v13023_v31 = vcombine.low %v10026_v50, %v10030_v38  ;;  %v10045_v62 = vld [vmem:[#allocation10 + $0x130] sm:$0xff]  ;;  %v10042_v8 = vld [vmem:[#allocation10 + $0x118] sm:$0xff] }
 0x62c   : > { %v13779_v6 = vpop.eup %13778  ;;  %v9041_v13 = vmul.f32 0.5, %v9029_v10  ;;  %v9098_v47 = vrot.slane %v9093_v55, %v18577_v3  ;;  %v13030_v27 = vcombine.high %v10033_v37, %v10037_v30  ;;  %v13032_v17 = vcombine.high %v10034_v52, %v10038_v16  ;;  %v10062_v9 = vld [vmem:[#allocation10 + $0x1b8] sm:$0xff] }
 0x62d   : > { %12986 = vst [vmem:[%s14330_s25 + $0x58] sm:$0xff] %v9063_v15  ;;  %13786 = vtanh.f32 %v9063_v15  ;;  %v9035_v35 = vadd.f32 1.0, %v13779_v6  ;;  %v9046_v45 = vmul.f32 0.5, %v9034_v0  ;;  %v9102_v26 = vrot.slane %v9093_v55, %v18648_v29  ;;  %v9189_v6 = vpop.f32.mrb[29].mxu1  ;;  %v10049_v0 = vld [vmem:[#allocation10 + $0x150] sm:$0xff] }
 0x62e   : > { %v13029_v15 = vcombine.low %v10033_v37, %v10037_v30  ;;  %v13031_v28 = vcombine.low %v10034_v52, %v10038_v16  ;;  %v9188_v10 = vadd.f32 %v9187_v1, %v9098_v47  ;;  %v13039_v12 = vcombine.low %v10042_v8, %v10046_v60  ;;  %v10073_v30 = vld [vmem:[#allocation10 + $0x210] sm:$0xff]  ;;  %v10074_v16 = vld [vmem:[#allocation10 + $0x218] sm:$0xff] }
 0x62f   : > { %v9047_v61 = vmul.f32 0.5, %v9035_v35  ;;  %v10053_v35 = vld [vmem:[#allocation10 + $0x170] sm:$0xff] }
 0x630   : > { %v13046_v11 = vcombine.high %v10049_v0, %v10053_v35  ;;  %v13045_v18 = vcombine.low %v10049_v0, %v10053_v35  ;;  %v10077_v52 = vld [vmem:[#allocation10 + $0x230] sm:$0xff] }
 0x633   : > { %v13781_v25 = vpop.eup %13780 }
 0x634   : > { %v9068_v22 = vmul.f32 %v13781_v25, %v9040_v33  ;;  %v13783_v53 = vpop.eup %13782  ;;  %v13038_v33 = vcombine.high %v10041_v56, %v10045_v62  ;;  %v13040_v25 = vcombine.high %v10042_v8, %v10046_v60  ;;  %v10086_v8 = vld [vmem:[#allocation10 + $0x278] sm:$0xff]  ;;  %v13069_v60 = vcombine.low %v10073_v30, %v10077_v52 }
 0x635   : > { %v9069_v20 = vmul.f32 %v13783_v53, %v9041_v13  ;;  %v13785_v58 = vpop.eup %13784  ;;  %v9191_v13 = vpop.f32.mrb[30].mxu1  ;;  %v10050_v53 = vld [vmem:[#allocation10 + $0x158] sm:$0xff] }
 0x636   : > { %12979 = vst [vmem:[%s14328_s23 + $0x40] sm:$0xff] %v9068_v22  ;;  %v9070_v46 = vmul.f32 %v13785_v58, %v9046_v45  ;;  %v10054_v45 = vld [vmem:[#allocation10 + $0x178] sm:$0xff]  ;;  %v9192_v58 = vadd.f32 %v9191_v13, %v9098_v47 }
 0x637   : > { %12980 = vst [vmem:[%s14328_s23 + $0x48] sm:$0xff] %v9069_v20  ;;  %v13787_v43 = vpop.eup %13786  ;;  %v13048_v63 = vcombine.high %v10050_v53, %v10054_v45  ;;  %v13047_v24 = vcombine.low %v10050_v53, %v10054_v45  ;;  %v10097_v53 = vld [vmem:[#allocation10 + $0x2d0] sm:$0xff] }
 0x638   : > { %v9071_v34 = vmul.f32 %v13787_v43, %v9047_v61  ;;  %12981 = vst [vmem:[%s14328_s23 + $0x50] sm:$0xff] %v9070_v46  ;;  %v17143_v19 = vpack.c.bf16 %v9070_v46, %v9068_v22  ;;  %v9190_v22 = vadd.f32 %v9189_v6, %v9102_v26  ;;  %v9193_v61 = vpop.f32.mrb[31].mxu1  ;;  %v9198_v2 = vmax.f32 %v9192_v58, 0.0  ;;  %v10093_v6 = vld [vmem:[#allocation10 + $0x2b0] sm:$0xff]  ;;  %v10102_v58 = vld [vmem:[#allocation10 + $0x2f8] sm:$0xff] }
 0x639   : > { %v9194_v43 = vadd.f32 %v9193_v61, %v9102_v26  ;;  %v10085_v26 = vld [vmem:[#allocation10 + $0x270] sm:$0xff] }
 0x63a   : > { %12982 = vst [vmem:[%s14328_s23 + $0x58] sm:$0xff] %v9071_v34  ;;  %v10006_v23 = vpack.c.bf16 %v9071_v34, %v9069_v20  ;;  %v9196_v20 = vmax.f32 %v9188_v10, 0.0  ;;  %v9197_v46 = vmax.f32 %v9190_v22, 0.0  ;;  %v13037_v34 = vcombine.low %v10041_v56, %v10045_v62  ;;  %v10081_v56 = vld [vmem:[#allocation10 + $0x250] sm:$0xff]  ;;  %v10082_v62 = vld [vmem:[#allocation10 + $0x258] sm:$0xff] }
 0x63b   : > { %v9199_v44 = vmax.f32 %v9194_v43, 0.0  ;;  %v10089_v10 = vld [vmem:[#allocation10 + $0x290] sm:$0xff]  ;;  %v13077_v0 = vcombine.low %v10081_v56, %v10085_v26  ;;  %v13079_v22 = vcombine.low %v10082_v62, %v10086_v8 }
 0x63c   : > { %10807 = vmatprep.mubr.bf16.mxu0 %v10006_v23  ;;  %10850 = vmatprep.mubr.bf16.mxu1 %v10006_v23  ;;  %v17159_v50 = vpack.c.bf16 %v9198_v2, %v9196_v20  ;;  %v13086_v13 = vcombine.high %v10089_v10, %v10093_v6  ;;  %v10101_v45 = vld [vmem:[#allocation10 + $0x2f0] sm:$0xff]  ;;  %v10098_v20 = vld [vmem:[#allocation10 + $0x2d8] sm:$0xff]  ;;  %v13085_v61 = vcombine.low %v10089_v10, %v10093_v6 }
 0x63d   : > { %10808 = vmatmul.mubr.bf16.vlgmr.msra.gmra.mrb[32].mxu0 %v17143_v19  ;;  %10851 = vmatmul.mubr.bf16.vlgmr.msra.gmra.mrb[32].mxu1 %v17143_v19  ;;  %v17161_v38 = vpack.c.bf16 %v9199_v44, %v9197_v46  ;;  %v13094_v43 = vcombine.high %v10097_v53, %v10101_v45  ;;  %v10109_v2 = vld [vmem:[#allocation10 + $0x330] sm:$0xff]  ;;  %v13095_v44 = vcombine.low %v10098_v20, %v10102_v58 }
 0x63e   : > { %10862 = vmatpush1.bf16.msra.mxu0 %v18664_v4  ;;  %10905 = vmatpush1.bf16.msra.mxu1 %v18667_v48  ;;  %v10069_v48 = vld [vmem:[#allocation10 + $0x1f0] sm:$0xff] }
 0x63f   : > { %10893 = vmatprep.mubr.bf16.mxu0 %v10006_v23  ;;  %10936 = vmatprep.mubr.bf16.mxu1 %v10006_v23  ;;  %v10057_v23 = vld [vmem:[#allocation10 + $0x190] sm:$0xff]  ;;  %v13062_v37 = vcombine.high %v10065_v42, %v10069_v48 }
 0x640   : > { %10863 = vmatprep.subr.bf16.mxu0 %v13014_v41  ;;  %10906 = vmatprep.subr.bf16.mxu1 %v13016_v7  ;;  %v10061_v41 = vld [vmem:[#allocation10 + $0x1b0] sm:$0xff]  ;;  %v10058_v7 = vld [vmem:[#allocation10 + $0x198] sm:$0xff] }
 0x641   : > { %v13054_v4 = vcombine.high %v10057_v23, %v10061_v41  ;;  %v13056_v51 = vcombine.high %v10058_v7, %v10062_v9 }
 0x642   : > { %10864 = vmatpush1.bf16.msra.mxu0 %v13013_v32  ;;  %10907 = vmatpush1.bf16.msra.mxu1 %v13015_v5  ;;  %v10066_v32 = vld [vmem:[#allocation10 + $0x1d8] sm:$0xff] }
 0x643   : > { %10865 = vmatprep.subr.bf16.mxu0 %v13022_v59  ;;  %10908 = vmatprep.subr.bf16.mxu1 %v13024_v57  ;;  %v10070_v5 = vld [vmem:[#allocation10 + $0x1f8] sm:$0xff]  ;;  %v13053_v59 = vcombine.low %v10057_v23, %v10061_v41  ;;  %v13055_v57 = vcombine.low %v10058_v7, %v10062_v9  ;;  %v13093_v23 = vcombine.low %v10097_v53, %v10101_v45  ;;  %v10113_v9 = vld [vmem:[#allocation10 + $0x350] sm:$0xff] }
 0x644   : > { %v13064_v55 = vcombine.high %v10066_v32, %v10070_v5  ;;  %v13063_v47 = vcombine.low %v10066_v32, %v10070_v5  ;;  %v10121_v5 = vld [vmem:[#allocation10 + $0x390] sm:$0xff] }
 0x646   : > { %10866 = vmatpush1.bf16.msra.mxu0 %v13021_v21  ;;  %10909 = vmatpush1.bf16.msra.mxu1 %v13023_v31  ;;  %v10078_v21 = vld [vmem:[#allocation10 + $0x238] sm:$0xff]  ;;  %v13061_v31 = vcombine.low %v10065_v42, %v10069_v48 }
 0x647   : > { %10867 = vmatprep.subr.bf16.mxu0 %v13030_v27  ;;  %10910 = vmatprep.subr.bf16.mxu1 %v13032_v17  ;;  %v13070_v27 = vcombine.high %v10073_v30, %v10077_v52  ;;  %v13072_v17 = vcombine.high %v10074_v16, %v10078_v21  ;;  %v13071_v1 = vcombine.low %v10074_v16, %v10078_v21  ;;  %v10129_v21 = vld [vmem:[#allocation10 + $0x3d0] sm:$0xff] }
 0x64a   : > { %10868 = vmatpush1.bf16.msra.mxu0 %v13029_v15  ;;  %10911 = vmatpush1.bf16.msra.mxu1 %v13031_v28  ;;  %v13078_v15 = vcombine.high %v10081_v56, %v10085_v26  ;;  %v13080_v28 = vcombine.high %v10082_v62, %v10086_v8  ;;  %v9877_v8 = vld [vmem:[#allocation9] sm:$0xff] }
 0x64b   : > { %10869 = vmatprep.subr.bf16.mxu0 %v13038_v33  ;;  %10912 = vmatprep.subr.bf16.mxu1 %v13040_v25  ;;  %v10090_v33 = vld [vmem:[#allocation10 + $0x298] sm:$0xff] }
 0x64c   : > { %v10094_v25 = vld [vmem:[#allocation10 + $0x2b8] sm:$0xff] }
 0x64d   : > { %v13088_v35 = vcombine.high %v10090_v33, %v10094_v25  ;;  %v13087_v46 = vcombine.low %v10090_v33, %v10094_v25  ;;  %v9885_v25 = vld [vmem:[#allocation9 + $0x40] sm:$0xff] }
 0x64e   : > { %10870 = vmatpush1.bf16.msra.mxu0 %v13037_v34  ;;  %10913 = vmatpush1.bf16.msra.mxu1 %v13039_v12  ;;  %v13096_v34 = vcombine.high %v10098_v20, %v10102_v58  ;;  %v10105_v12 = vld [vmem:[#allocation10 + $0x310] sm:$0xff]  ;;  %v9893_v58 = vld [vmem:[#allocation9 + $0x80] sm:$0xff] }
 0x64f   : > { %10871 = vmatprep.subr.bf16.mxu0 %v13046_v11  ;;  %10914 = vmatprep.subr.bf16.mxu1 %v13048_v63  ;;  %v10106_v11 = vld [vmem:[#allocation10 + $0x318] sm:$0xff]  ;;  %v13102_v41 = vcombine.high %v10105_v12, %v10109_v2 }
 0x650   : > { %v10110_v63 = vld [vmem:[#allocation10 + $0x338] sm:$0xff] }
 0x651   : > { %v13104_v7 = vcombine.high %v10106_v11, %v10110_v63  ;;  %v13103_v42 = vcombine.low %v10106_v11, %v10110_v63  ;;  %v9901_v63 = vld [vmem:[#allocation9 + $0xc0] sm:$0xff] }
 0x652   : > { %10872 = vmatpush1.bf16.msra.mxu0 %v13045_v18  ;;  %10915 = vmatpush1.bf16.msra.mxu1 %v13047_v24  ;;  %v10117_v18 = vld [vmem:[#allocation10 + $0x370] sm:$0xff]  ;;  %v10114_v24 = vld [vmem:[#allocation10 + $0x358] sm:$0xff] }
 0x653   : > { %10873 = vmatprep.subr.bf16.mxu0 %v13054_v4  ;;  %10916 = vmatprep.subr.bf16.mxu1 %v13056_v51  ;;  %v10118_v4 = vld [vmem:[#allocation10 + $0x378] sm:$0xff]  ;;  %v13101_v51 = vcombine.low %v10105_v12, %v10109_v2  ;;  %v13110_v48 = vcombine.high %v10113_v9, %v10117_v18 }
 0x654   : > { %v13112_v32 = vcombine.high %v10114_v24, %v10118_v4  ;;  %v13111_v30 = vcombine.low %v10114_v24, %v10118_v4  ;;  %v9909_v24 = vld [vmem:[#allocation9 + $0x100] sm:$0xff] }
 0x655   : > { %v9913_v4 = vld [vmem:[#allocation9 + $0x120] sm:$0xff] }
 0x656   : > { %10874 = vmatpush1.bf16.msra.mxu0 %v13053_v59  ;;  %10917 = vmatpush1.bf16.msra.mxu1 %v13055_v57  ;;  %v10125_v59 = vld [vmem:[#allocation10 + $0x3b0] sm:$0xff]  ;;  %v10122_v57 = vld [vmem:[#allocation10 + $0x398] sm:$0xff] }
 0x657   : > { %10875 = vmatprep.subr.bf16.mxu0 %v13062_v37  ;;  %10918 = vmatprep.subr.bf16.mxu1 %v13064_v55  ;;  %v10126_v37 = vld [vmem:[#allocation10 + $0x3b8] sm:$0xff]  ;;  %v13109_v55 = vcombine.low %v10113_v9, %v10117_v18  ;;  %v13118_v52 = vcombine.high %v10121_v5, %v10125_v59 }
 0x658   : > { %v13120_v16 = vcombine.high %v10122_v57, %v10126_v37  ;;  %v13119_v56 = vcombine.low %v10122_v57, %v10126_v37  ;;  %v9917_v57 = vld [vmem:[#allocation9 + $0x140] sm:$0xff] }
 0x659   : > { %v9921_v37 = vld [vmem:[#allocation9 + $0x160] sm:$0xff] }
 0x65a   : > { %10876 = vmatpush1.bf16.msra.mxu0 %v13061_v31  ;;  %10919 = vmatpush1.bf16.msra.mxu1 %v13063_v47  ;;  %v10133_v31 = vld [vmem:[#allocation10 + $0x3f0] sm:$0xff]  ;;  %v10130_v47 = vld [vmem:[#allocation10 + $0x3d8] sm:$0xff] }
 0x65b   : > { %10877 = vmatprep.subr.bf16.mxu0 %v13070_v27  ;;  %10920 = vmatprep.subr.bf16.mxu1 %v13072_v17  ;;  %v10134_v27 = vld [vmem:[#allocation10 + $0x3f8] sm:$0xff]  ;;  %v13117_v17 = vcombine.low %v10121_v5, %v10125_v59  ;;  %v13126_v26 = vcombine.high %v10129_v21, %v10133_v31  ;;  %v13162_v5 = vcombine.high %v9909_v24, %v9913_v4 }
 0x65c   : > { %v13128_v62 = vcombine.high %v10130_v47, %v10134_v27  ;;  %v13127_v10 = vcombine.low %v10130_v47, %v10134_v27  ;;  %v9925_v47 = vld [vmem:[#allocation9 + $0x180] sm:$0xff] }
 0x65d   : > { %v9929_v27 = vld [vmem:[#allocation9 + $0x1a0] sm:$0xff] }
 0x65e   : > { %10878 = vmatpush1.bf16.msra.mxu0 %v13069_v60  ;;  %10921 = vmatpush1.bf16.msra.mxu1 %v13071_v1  ;;  %v9881_v60 = vld [vmem:[#allocation9 + $0x20] sm:$0xff]  ;;  %v9878_v1 = vld [vmem:[#allocation9 + $0x8] sm:$0xff] }
 0x65f   : > { %10879 = vmatprep.subr.bf16.mxu0 %v13078_v15  ;;  %10922 = vmatprep.subr.bf16.mxu1 %v13080_v28  ;;  %v9882_v15 = vld [vmem:[#allocation9 + $0x28] sm:$0xff]  ;;  %v13125_v28 = vcombine.low %v10129_v21, %v10133_v31  ;;  %v13130_v6 = vcombine.high %v9877_v8, %v9881_v60  ;;  %v13170_v21 = vcombine.high %v9917_v57, %v9921_v37 }
 0x660   : > { %v13132_v33 = vcombine.high %v9878_v1, %v9882_v15  ;;  %v13131_v53 = vcombine.low %v9878_v1, %v9882_v15  ;;  %v9933_v1 = vld [vmem:[#allocation9 + $0x1c0] sm:$0xff] }
 0x661   : > { %v9937_v15 = vld [vmem:[#allocation9 + $0x1e0] sm:$0xff] }
 0x662   : > { %10880 = vmatpush1.bf16.msra.mxu0 %v13077_v0  ;;  %10923 = vmatpush1.bf16.msra.mxu1 %v13079_v22  ;;  %v9889_v0 = vld [vmem:[#allocation9 + $0x60] sm:$0xff]  ;;  %v9886_v22 = vld [vmem:[#allocation9 + $0x48] sm:$0xff] }
 0x663   : > { %10881 = vmatprep.subr.bf16.mxu0 %v13086_v13  ;;  %10924 = vmatprep.subr.bf16.mxu1 %v13088_v35  ;;  %v9890_v13 = vld [vmem:[#allocation9 + $0x68] sm:$0xff]  ;;  %v13129_v35 = vcombine.low %v9877_v8, %v9881_v60  ;;  %v13138_v45 = vcombine.high %v9885_v25, %v9889_v0  ;;  %v13178_v8 = vcombine.high %v9925_v47, %v9929_v27 }
 0x664   : > { %v13140_v20 = vcombine.high %v9886_v22, %v9890_v13  ;;  %v13139_v12 = vcombine.low %v9886_v22, %v9890_v13  ;;  %v9941_v22 = vld [vmem:[#allocation9 + $0x200] sm:$0xff] }
 0x665   : > { %v9945_v13 = vld [vmem:[#allocation9 + $0x220] sm:$0xff] }
 0x666   : > { %10882 = vmatpush1.bf16.msra.mxu0 %v13085_v61  ;;  %10925 = vmatpush1.bf16.msra.mxu1 %v13087_v46  ;;  %v9897_v61 = vld [vmem:[#allocation9 + $0xa0] sm:$0xff]  ;;  %v9894_v46 = vld [vmem:[#allocation9 + $0x88] sm:$0xff] }
 0x667   : > { %10883 = vmatprep.subr.bf16.mxu0 %v13094_v43  ;;  %10926 = vmatprep.subr.bf16.mxu1 %v13096_v34  ;;  %v9898_v43 = vld [vmem:[#allocation9 + $0xa8] sm:$0xff]  ;;  %v13137_v34 = vcombine.low %v9885_v25, %v9889_v0  ;;  %v13146_v2 = vcombine.high %v9893_v58, %v9897_v61  ;;  %v13186_v25 = vcombine.high %v9933_v1, %v9937_v15 }
 0x668   : > { %v13148_v11 = vcombine.high %v9894_v46, %v9898_v43 }
 0x66a   : > { %10884 = vmatpush1.bf16.msra.mxu0 %v13093_v23  ;;  %10927 = vmatpush1.bf16.msra.mxu1 %v13095_v44  ;;  %v9905_v23 = vld [vmem:[#allocation9 + $0xe0] sm:$0xff]  ;;  %v9902_v44 = vld [vmem:[#allocation9 + $0xc8] sm:$0xff] }
 0x66b   : > { %10885 = vmatprep.subr.bf16.mxu0 %v13102_v41  ;;  %10928 = vmatprep.subr.bf16.mxu1 %v13104_v7  ;;  %v9906_v41 = vld [vmem:[#allocation9 + $0xe8] sm:$0xff]  ;;  %v13145_v7 = vcombine.low %v9893_v58, %v9897_v61  ;;  %v13154_v9 = vcombine.high %v9901_v63, %v9905_v23  ;;  %v13194_v58 = vcombine.high %v9941_v22, %v9945_v13 }
 0x66c   : > { %v13156_v18 = vcombine.high %v9902_v44, %v9906_v41 }
 0x66e   : > { %10886 = vmatpush1.bf16.msra.mxu0 %v13101_v51  ;;  %10929 = vmatpush1.bf16.msra.mxu1 %v13103_v42  ;;  %v9910_v51 = vld [vmem:[#allocation9 + $0x108] sm:$0xff] }
 0x66f   : > { %10887 = vmatprep.subr.bf16.mxu0 %v13110_v48  ;;  %10930 = vmatprep.subr.bf16.mxu1 %v13112_v32  ;;  %v9914_v42 = vld [vmem:[#allocation9 + $0x128] sm:$0xff]  ;;  %v13153_v48 = vcombine.low %v9901_v63, %v9905_v23  ;;  %v13155_v32 = vcombine.low %v9902_v44, %v9906_v41  ;;  %v9957_v44 = vld [vmem:[#allocation9 + $0x280] sm:$0xff] }
 0x670   : > { %v13164_v59 = vcombine.high %v9910_v51, %v9914_v42  ;;  %v9961_v41 = vld [vmem:[#allocation9 + $0x2a0] sm:$0xff] }
 0x672   : > { %10888 = vmatpush1.bf16.msra.mxu0 %v13109_v55  ;;  %10931 = vmatpush1.bf16.msra.mxu1 %v13111_v30  ;;  %v9918_v55 = vld [vmem:[#allocation9 + $0x148] sm:$0xff] }
 0x673   : > { %10889 = vmatprep.subr.bf16.mxu0 %v13118_v52  ;;  %10932 = vmatprep.subr.bf16.mxu1 %v13120_v16  ;;  %v9922_v30 = vld [vmem:[#allocation9 + $0x168] sm:$0xff]  ;;  %v13161_v52 = vcombine.low %v9909_v24, %v9913_v4  ;;  %v13163_v16 = vcombine.low %v9910_v51, %v9914_v42  ;;  %v13210_v24 = vcombine.high %v9957_v44, %v9961_v41  ;;  %v9965_v51 = vld [vmem:[#allocation9 + $0x2c0] sm:$0xff] }
 0x674   : > { %v13172_v31 = vcombine.high %v9918_v55, %v9922_v30  ;;  %v9969_v42 = vld [vmem:[#allocation9 + $0x2e0] sm:$0xff] }
 0x676   : > { %10890 = vmatpush1.bf16.msra.mxu0 %v13117_v17  ;;  %10933 = vmatpush1.bf16.msra.mxu1 %v13119_v56  ;;  %v9926_v17 = vld [vmem:[#allocation9 + $0x188] sm:$0xff] }
 0x677   : > { %10891 = vmatprep.subr.bf16.mxu0 %v13126_v26  ;;  %10934 = vmatprep.subr.bf16.mxu1 %v13128_v62  ;;  %v9930_v56 = vld [vmem:[#allocation9 + $0x1a8] sm:$0xff]  ;;  %v13169_v26 = vcombine.low %v9917_v57, %v9921_v37  ;;  %v13171_v62 = vcombine.low %v9918_v55, %v9922_v30  ;;  %v13218_v57 = vcombine.high %v9965_v51, %v9969_v42  ;;  %v9973_v55 = vld [vmem:[#allocation9 + $0x300] sm:$0xff] }
 0x678   : > { %v13180_v60 = vcombine.high %v9926_v17, %v9930_v56  ;;  %v9977_v30 = vld [vmem:[#allocation9 + $0x320] sm:$0xff] }
 0x67a   : > { %10892 = vmatpush1.bf16.msra.mxu0 %v13125_v28  ;;  %10935 = vmatpush1.bf16.msra.mxu1 %v13127_v10  ;;  %v9934_v28 = vld [vmem:[#allocation9 + $0x1c8] sm:$0xff] }
 0x67b   : > { %11587 = vmatprep.subr.bf16.mxu0 %v13130_v6  ;;  %11630 = vmatprep.subr.bf16.mxu1 %v13132_v33  ;;  %v9938_v10 = vld [vmem:[#allocation9 + $0x1e8] sm:$0xff]  ;;  %v13177_v6 = vcombine.low %v9925_v47, %v9929_v27  ;;  %v13179_v33 = vcombine.low %v9926_v17, %v9930_v56  ;;  %v13226_v47 = vcombine.high %v9973_v55, %v9977_v30  ;;  %v9981_v17 = vld [vmem:[#allocation9 + $0x340] sm:$0xff] }
 0x67c   : > { %v13188_v0 = vcombine.high %v9934_v28, %v9938_v10  ;;  %v9985_v56 = vld [vmem:[#allocation9 + $0x360] sm:$0xff] }
 0x67d   : > { %10894 = vmatmul.mubr.bf16.vlgmr.msra.gmra.mrb[36].mxu0 %v17143_v19  ;;  %10937 = vmatmul.mubr.bf16.vlgmr.msra.gmra.mrb[36].mxu1 %v17143_v19  ;;  %v13147_v19 = vcombine.low %v9894_v46, %v9898_v43  ;;  %v9949_v46 = vld [vmem:[#allocation9 + $0x240] sm:$0xff] }
 0x67e   : > { %11588 = vmatpush1.bf16.msra.mxu0 %v13129_v35  ;;  %11631 = vmatpush1.bf16.msra.mxu1 %v13131_v53  ;;  %v9942_v35 = vld [vmem:[#allocation9 + $0x208] sm:$0xff]  ;;  %v9953_v43 = vld [vmem:[#allocation9 + $0x260] sm:$0xff] }
 0x67f   : > { %11589 = vmatprep.subr.bf16.mxu0 %v13138_v45  ;;  %11632 = vmatprep.subr.bf16.mxu1 %v13140_v20  ;;  %v9946_v53 = vld [vmem:[#allocation9 + $0x228] sm:$0xff]  ;;  %v13185_v45 = vcombine.low %v9933_v1, %v9937_v15  ;;  %v13187_v20 = vcombine.low %v9934_v28, %v9938_v10  ;;  %v13202_v63 = vcombine.high %v9949_v46, %v9953_v43  ;;  %v9989_v28 = vld [vmem:[#allocation9 + $0x380] sm:$0xff] }
 0x680   : > { %11619 = vmatprep.mubr.bf16.mxu0 %v17161_v38  ;;  %11662 = vmatprep.mubr.bf16.mxu1 %v17161_v38  ;;  %v13196_v61 = vcombine.high %v9942_v35, %v9946_v53  ;;  %v13234_v1 = vcombine.high %v9981_v17, %v9985_v56  ;;  %v9993_v10 = vld [vmem:[#allocation9 + $0x3a0] sm:$0xff] }
 0x682   : > { %11590 = vmatpush1.bf16.msra.mxu0 %v13137_v34  ;;  %11633 = vmatpush1.bf16.msra.mxu1 %v13139_v12  ;;  %v9950_v34 = vld [vmem:[#allocation9 + $0x248] sm:$0xff] }
 0x683   : > { %11591 = vmatprep.subr.bf16.mxu0 %v13146_v2  ;;  %11634 = vmatprep.subr.bf16.mxu1 %v13148_v11  ;;  %v9954_v12 = vld [vmem:[#allocation9 + $0x268] sm:$0xff]  ;;  %v13193_v2 = vcombine.low %v9941_v22, %v9945_v13  ;;  %v13195_v11 = vcombine.low %v9942_v35, %v9946_v53  ;;  %v13242_v22 = vcombine.high %v9989_v28, %v9993_v10  ;;  %v9997_v35 = vld [vmem:[#allocation9 + $0x3c0] sm:$0xff] }
 0x684   : > { %v13204_v23 = vcombine.high %v9950_v34, %v9954_v12  ;;  %v10001_v53 = vld [vmem:[#allocation9 + $0x3e0] sm:$0xff] }
 0x686   : > { %11592 = vmatpush1.bf16.msra.mxu0 %v13145_v7  ;;  %11635 = vmatpush1.bf16.msra.mxu1 %v13147_v19  ;;  %v9958_v7 = vld [vmem:[#allocation9 + $0x288] sm:$0xff] }
 0x687   : > { %11593 = vmatprep.subr.bf16.mxu0 %v13154_v9  ;;  %11636 = vmatprep.subr.bf16.mxu1 %v13156_v18  ;;  %v9962_v19 = vld [vmem:[#allocation9 + $0x2a8] sm:$0xff]  ;;  %v13201_v9 = vcombine.low %v9949_v46, %v9953_v43  ;;  %v13203_v18 = vcombine.low %v9950_v34, %v9954_v12  ;;  %v13250_v46 = vcombine.high %v9997_v35, %v10001_v53  ;;  %v9879_v34 = vld [vmem:[#allocation9 + $0x10] sm:$0xff] }
 0x688   : > { %v13212_v4 = vcombine.high %v9958_v7, %v9962_v19  ;;  %v9883_v12 = vld [vmem:[#allocation9 + $0x30] sm:$0xff] }
 0x68a   : > { %11594 = vmatpush1.bf16.msra.mxu0 %v13153_v48  ;;  %11637 = vmatpush1.bf16.msra.mxu1 %v13155_v32  ;;  %v9966_v48 = vld [vmem:[#allocation9 + $0x2c8] sm:$0xff] }
 0x68b   : > { %11595 = vmatprep.subr.bf16.mxu0 %v13162_v5  ;;  %11638 = vmatprep.subr.bf16.mxu1 %v13164_v59  ;;  %v9970_v32 = vld [vmem:[#allocation9 + $0x2e8] sm:$0xff]  ;;  %v13209_v5 = vcombine.low %v9957_v44, %v9961_v41  ;;  %v13211_v59 = vcombine.low %v9958_v7, %v9962_v19  ;;  %v13134_v44 = vcombine.high %v9879_v34, %v9883_v12  ;;  %v9887_v7 = vld [vmem:[#allocation9 + $0x50] sm:$0xff] }
 0x68c   : > { %v13220_v37 = vcombine.high %v9966_v48, %v9970_v32  ;;  %v9891_v19 = vld [vmem:[#allocation9 + $0x70] sm:$0xff] }
 0x68e   : > { %11596 = vmatpush1.bf16.msra.mxu0 %v13161_v52  ;;  %11639 = vmatpush1.bf16.msra.mxu1 %v13163_v16  ;;  %v9974_v52 = vld [vmem:[#allocation9 + $0x308] sm:$0xff] }
 0x68f   : > { %11597 = vmatprep.subr.bf16.mxu0 %v13170_v21  ;;  %11640 = vmatprep.subr.bf16.mxu1 %v13172_v31  ;;  %v9978_v16 = vld [vmem:[#allocation9 + $0x328] sm:$0xff]  ;;  %v13217_v21 = vcombine.low %v9965_v51, %v9969_v42  ;;  %v13219_v31 = vcombine.low %v9966_v48, %v9970_v32  ;;  %v13142_v51 = vcombine.high %v9887_v7, %v9891_v19  ;;  %v9895_v48 = vld [vmem:[#allocation9 + $0x90] sm:$0xff] }
 0x690   : > { %v13228_v27 = vcombine.high %v9974_v52, %v9978_v16  ;;  %v9899_v32 = vld [vmem:[#allocation9 + $0xb0] sm:$0xff] }
 0x692   : > { %11598 = vmatpush1.bf16.msra.mxu0 %v13169_v26  ;;  %11641 = vmatpush1.bf16.msra.mxu1 %v13171_v62  ;;  %v9982_v26 = vld [vmem:[#allocation9 + $0x348] sm:$0xff] }
 0x693   : > { %11599 = vmatprep.subr.bf16.mxu0 %v13178_v8  ;;  %11642 = vmatprep.subr.bf16.mxu1 %v13180_v60  ;;  %v9986_v62 = vld [vmem:[#allocation9 + $0x368] sm:$0xff]  ;;  %v13225_v8 = vcombine.low %v9973_v55, %v9977_v30  ;;  %v13227_v60 = vcombine.low %v9974_v52, %v9978_v16  ;;  %v13150_v55 = vcombine.high %v9895_v48, %v9899_v32  ;;  %v9903_v52 = vld [vmem:[#allocation9 + $0xd0] sm:$0xff] }
 0x694   : > { %v13236_v15 = vcombine.high %v9982_v26, %v9986_v62  ;;  %v9907_v16 = vld [vmem:[#allocation9 + $0xf0] sm:$0xff] }
 0x696   : > { %11600 = vmatpush1.bf16.msra.mxu0 %v13177_v6  ;;  %11643 = vmatpush1.bf16.msra.mxu1 %v13179_v33  ;;  %v9990_v6 = vld [vmem:[#allocation9 + $0x388] sm:$0xff] }
 0x697   : > { %11601 = vmatprep.subr.bf16.mxu0 %v13186_v25  ;;  %11644 = vmatprep.subr.bf16.mxu1 %v13188_v0  ;;  %v9994_v33 = vld [vmem:[#allocation9 + $0x3a8] sm:$0xff]  ;;  %v13233_v25 = vcombine.low %v9981_v17, %v9985_v56  ;;  %v13235_v0 = vcombine.low %v9982_v26, %v9986_v62  ;;  %v13158_v17 = vcombine.high %v9903_v52, %v9907_v16  ;;  %v9911_v26 = vld [vmem:[#allocation9 + $0x110] sm:$0xff] }
 0x698   : > { %v13244_v13 = vcombine.high %v9990_v6, %v9994_v33  ;;  %v9915_v62 = vld [vmem:[#allocation9 + $0x130] sm:$0xff] }
 0x69a   : > { %11602 = vmatpush1.bf16.msra.mxu0 %v13185_v45  ;;  %11645 = vmatpush1.bf16.msra.mxu1 %v13187_v20  ;;  %v9998_v45 = vld [vmem:[#allocation9 + $0x3c8] sm:$0xff] }
 0x69b   : > { %11603 = vmatprep.subr.bf16.mxu0 %v13194_v58  ;;  %11646 = vmatprep.subr.bf16.mxu1 %v13196_v61  ;;  %v10002_v20 = vld [vmem:[#allocation9 + $0x3e8] sm:$0xff]  ;;  %v13241_v58 = vcombine.low %v9989_v28, %v9993_v10  ;;  %v13243_v61 = vcombine.low %v9990_v6, %v9994_v33  ;;  %v9919_v10 = vld [vmem:[#allocation9 + $0x150] sm:$0xff]  ;;  %v9920_v33 = vld [vmem:[#allocation9 + $0x158] sm:$0xff] }
 0x69c   : > { %v13252_v43 = vcombine.high %v9998_v45, %v10002_v20  ;;  %v9923_v6 = vld [vmem:[#allocation9 + $0x170] sm:$0xff] }
 0x69e   : > { %11604 = vmatpush1.bf16.msra.mxu0 %v13193_v2  ;;  %11647 = vmatpush1.bf16.msra.mxu1 %v13195_v11  ;;  %v9880_v2 = vld [vmem:[#allocation9 + $0x18] sm:$0xff] }
 0x69f   : > { %11605 = vmatprep.subr.bf16.mxu0 %v13202_v63  ;;  %11648 = vmatprep.subr.bf16.mxu1 %v13204_v23  ;;  %v9884_v11 = vld [vmem:[#allocation9 + $0x38] sm:$0xff]  ;;  %v13249_v63 = vcombine.low %v9997_v35, %v10001_v53  ;;  %v13251_v23 = vcombine.low %v9998_v45, %v10002_v20  ;;  %v9927_v53 = vld [vmem:[#allocation9 + $0x190] sm:$0xff] }
 0x6a0   : > { %v13136_v41 = vcombine.high %v9880_v2, %v9884_v11  ;;  %v9931_v45 = vld [vmem:[#allocation9 + $0x1b0] sm:$0xff]  ;;  %v9928_v20 = vld [vmem:[#allocation9 + $0x198] sm:$0xff] }
 0x6a2   : > { %11606 = vmatpush1.bf16.msra.mxu0 %v13201_v9  ;;  %11649 = vmatpush1.bf16.msra.mxu1 %v13203_v18  ;;  %v9888_v9 = vld [vmem:[#allocation9 + $0x58] sm:$0xff] }
 0x6a3   : > { %11607 = vmatprep.subr.bf16.mxu0 %v13210_v24  ;;  %11650 = vmatprep.subr.bf16.mxu1 %v13212_v4  ;;  %v9892_v18 = vld [vmem:[#allocation9 + $0x78] sm:$0xff]  ;;  %v13133_v24 = vcombine.low %v9879_v34, %v9883_v12  ;;  %v13135_v4 = vcombine.low %v9880_v2, %v9884_v11  ;;  %v9935_v12 = vld [vmem:[#allocation9 + $0x1d0] sm:$0xff] }
 0x6a4   : > { %v13144_v42 = vcombine.high %v9888_v9, %v9892_v18  ;;  %v9939_v2 = vld [vmem:[#allocation9 + $0x1f0] sm:$0xff]  ;;  %v9936_v11 = vld [vmem:[#allocation9 + $0x1d8] sm:$0xff] }
 0x6a6   : > { %11608 = vmatpush1.bf16.msra.mxu0 %v13209_v5  ;;  %11651 = vmatpush1.bf16.msra.mxu1 %v13211_v59  ;;  %v9896_v5 = vld [vmem:[#allocation9 + $0x98] sm:$0xff] }
 0x6a7   : > { %11609 = vmatprep.subr.bf16.mxu0 %v13218_v57  ;;  %11652 = vmatprep.subr.bf16.mxu1 %v13220_v37  ;;  %v9900_v59 = vld [vmem:[#allocation9 + $0xb8] sm:$0xff]  ;;  %v13141_v57 = vcombine.low %v9887_v7, %v9891_v19  ;;  %v13143_v37 = vcombine.low %v9888_v9, %v9892_v18  ;;  %v9943_v19 = vld [vmem:[#allocation9 + $0x210] sm:$0xff] }
 0x6a8   : > { %v13152_v30 = vcombine.high %v9896_v5, %v9900_v59  ;;  %v9947_v9 = vld [vmem:[#allocation9 + $0x230] sm:$0xff]  ;;  %v9944_v18 = vld [vmem:[#allocation9 + $0x218] sm:$0xff] }
 0x6aa   : > { %11610 = vmatpush1.bf16.msra.mxu0 %v13217_v21  ;;  %11653 = vmatpush1.bf16.msra.mxu1 %v13219_v31  ;;  %v9904_v21 = vld [vmem:[#allocation9 + $0xd8] sm:$0xff] }
 0x6ab   : > { %11611 = vmatprep.subr.bf16.mxu0 %v13226_v47  ;;  %11654 = vmatprep.subr.bf16.mxu1 %v13228_v27  ;;  %v9908_v31 = vld [vmem:[#allocation9 + $0xf8] sm:$0xff]  ;;  %v13149_v47 = vcombine.low %v9895_v48, %v9899_v32  ;;  %v13151_v27 = vcombine.low %v9896_v5, %v9900_v59  ;;  %v9951_v32 = vld [vmem:[#allocation9 + $0x250] sm:$0xff] }
 0x6ac   : > { %v13160_v56 = vcombine.high %v9904_v21, %v9908_v31  ;;  %v9955_v5 = vld [vmem:[#allocation9 + $0x270] sm:$0xff]  ;;  %v9952_v59 = vld [vmem:[#allocation9 + $0x258] sm:$0xff] }
 0x6ae   : > { %11612 = vmatpush1.bf16.msra.mxu0 %v13225_v8  ;;  %11655 = vmatpush1.bf16.msra.mxu1 %v13227_v60  ;;  %v9916_v8 = vld [vmem:[#allocation9 + $0x138] sm:$0xff]  ;;  %v13157_v60 = vcombine.low %v9903_v52, %v9907_v16  ;;  %v9959_v16 = vld [vmem:[#allocation9 + $0x290] sm:$0xff] }
 0x6af   : > { %11613 = vmatprep.subr.bf16.mxu0 %v13234_v1  ;;  %11656 = vmatprep.subr.bf16.mxu1 %v13236_v15  ;;  %v13159_v1 = vcombine.low %v9904_v21, %v9908_v31  ;;  %v13166_v15 = vcombine.high %v9911_v26, %v9915_v62  ;;  %v9963_v21 = vld [vmem:[#allocation9 + $0x2b0] sm:$0xff]  ;;  %v9960_v31 = vld [vmem:[#allocation9 + $0x298] sm:$0xff] }
 0x6b2   : > { %11614 = vmatpush1.bf16.msra.mxu0 %v13233_v25  ;;  %11657 = vmatpush1.bf16.msra.mxu1 %v13235_v0  ;;  %v9924_v25 = vld [vmem:[#allocation9 + $0x178] sm:$0xff]  ;;  %v13165_v0 = vcombine.low %v9911_v26, %v9915_v62  ;;  %v9967_v62 = vld [vmem:[#allocation9 + $0x2d0] sm:$0xff] }
 0x6b3   : > { %11615 = vmatprep.subr.bf16.mxu0 %v13242_v22  ;;  %11658 = vmatprep.subr.bf16.mxu1 %v13244_v13  ;;  %v13174_v13 = vcombine.high %v9919_v10, %v9923_v6  ;;  %v13176_v35 = vcombine.high %v9920_v33, %v9924_v25 }
 0x6b6   : > { %11616 = vmatpush1.bf16.msra.mxu0 %v13241_v58  ;;  %11659 = vmatpush1.bf16.msra.mxu1 %v13243_v61  ;;  %v9932_v58 = vld [vmem:[#allocation9 + $0x1b8] sm:$0xff]  ;;  %v13173_v61 = vcombine.low %v9919_v10, %v9923_v6  ;;  %v9975_v6 = vld [vmem:[#allocation9 + $0x310] sm:$0xff] }
 0x6b7   : > { %11617 = vmatprep.subr.bf16.mxu0 %v13250_v46  ;;  %11660 = vmatprep.subr.bf16.mxu1 %v13252_v43  ;;  %v13175_v46 = vcombine.low %v9920_v33, %v9924_v25  ;;  %v13182_v43 = vcombine.high %v9927_v53, %v9931_v45  ;;  %v13184_v34 = vcombine.high %v9928_v20, %v9932_v58  ;;  %v9979_v33 = vld [vmem:[#allocation9 + $0x330] sm:$0xff]  ;;  %v9976_v25 = vld [vmem:[#allocation9 + $0x318] sm:$0xff] }
 0x6ba   : > { %11618 = vmatpush1.bf16.msra.mxu0 %v13249_v63  ;;  %11661 = vmatpush1.bf16.msra.mxu1 %v13251_v23  ;;  %v9940_v63 = vld [vmem:[#allocation9 + $0x1f8] sm:$0xff]  ;;  %v13181_v23 = vcombine.low %v9927_v53, %v9931_v45  ;;  %v9983_v45 = vld [vmem:[#allocation9 + $0x350] sm:$0xff] }
 0x6bb   : > { %11673 = vmatprep.subr.bf16.mxu0 %v13134_v44  ;;  %11716 = vmatprep.subr.bf16.mxu1 %v13136_v41  ;;  %v13183_v44 = vcombine.low %v9928_v20, %v9932_v58  ;;  %v13190_v41 = vcombine.high %v9935_v12, %v9939_v2  ;;  %v13192_v7 = vcombine.high %v9936_v11, %v9940_v63  ;;  %v9987_v20 = vld [vmem:[#allocation9 + $0x370] sm:$0xff]  ;;  %v9984_v58 = vld [vmem:[#allocation9 + $0x358] sm:$0xff] }
 0x6bd   : > { %11620 = vmatmul.mubr.bf16.vlgmr.msra.gmra.mrb[32].mxu0 %v17159_v50  ;;  %11663 = vmatmul.mubr.bf16.vlgmr.msra.gmra.mrb[32].mxu1 %v17159_v50 }
 0x6be   : > { %11674 = vmatpush1.bf16.msra.mxu0 %v13133_v24  ;;  %11705 = vmatprep.mubr.bf16.mxu0 %v17161_v38  ;;  %v9948_v24 = vld [vmem:[#allocation9 + $0x238] sm:$0xff] }
 0x6bf   : > { %11717 = vmatpush1.bf16.msra.mxu1 %v13135_v4  ;;  %11748 = vmatprep.mubr.bf16.mxu1 %v17161_v38  ;;  %v9912_v38 = vld [vmem:[#allocation9 + $0x118] sm:$0xff]  ;;  %v13189_v4 = vcombine.low %v9935_v12, %v9939_v2  ;;  %v13200_v48 = vcombine.high %v9944_v18, %v9948_v24  ;;  %v9991_v2 = vld [vmem:[#allocation9 + $0x390] sm:$0xff] }
 0x6c0   : > { %11675 = vmatprep.subr.bf16.mxu0 %v13142_v51  ;;  %11718 = vmatprep.subr.bf16.mxu1 %v13144_v42  ;;  %v13168_v28 = vcombine.high %v9912_v38, %v9916_v8  ;;  %v13167_v22 = vcombine.low %v9912_v38, %v9916_v8  ;;  %v13191_v51 = vcombine.low %v9936_v11, %v9940_v63  ;;  %v9971_v38 = vld [vmem:[#allocation9 + $0x2f0] sm:$0xff]  ;;  %v9968_v8 = vld [vmem:[#allocation9 + $0x2d8] sm:$0xff] }
 0x6c1   : > { %v13198_v42 = vcombine.high %v9943_v19, %v9947_v9  ;;  %v9995_v11 = vld [vmem:[#allocation9 + $0x3b0] sm:$0xff]  ;;  %v9992_v63 = vld [vmem:[#allocation9 + $0x398] sm:$0xff] }
 0x6c2   : > { %11676 = vmatpush1.bf16.msra.mxu0 %v13141_v57  ;;  %v9956_v57 = vld [vmem:[#allocation9 + $0x278] sm:$0xff] }
 0x6c3   : > { %11719 = vmatpush1.bf16.msra.mxu1 %v13143_v37  ;;  %11677 = vmatprep.subr.bf16.mxu0 %v13150_v55  ;;  %v13197_v37 = vcombine.low %v9943_v19, %v9947_v9  ;;  %v13199_v55 = vcombine.low %v9944_v18, %v9948_v24  ;;  %v13208_v52 = vcombine.high %v9952_v59, %v9956_v57  ;;  %v9999_v9 = vld [vmem:[#allocation9 + $0x3d0] sm:$0xff]  ;;  %v10000_v24 = vld [vmem:[#allocation9 + $0x3d8] sm:$0xff] }
 0x6c4   : > { %11720 = vmatprep.subr.bf16.mxu1 %v13152_v30  ;;  %v13206_v30 = vcombine.high %v9951_v32, %v9955_v5  ;;  %v10003_v18 = vld [vmem:[#allocation9 + $0x3f0] sm:$0xff] }
 0x6c6   : > { %11678 = vmatpush1.bf16.msra.mxu0 %v13149_v47  ;;  %v9964_v47 = vld [vmem:[#allocation9 + $0x2b8] sm:$0xff] }
 0x6c7   : > { %11721 = vmatpush1.bf16.msra.mxu1 %v13151_v27  ;;  %11679 = vmatprep.subr.bf16.mxu0 %v13158_v17  ;;  %v13205_v27 = vcombine.low %v9951_v32, %v9955_v5  ;;  %v13207_v17 = vcombine.low %v9952_v59, %v9956_v57  ;;  %v13216_v26 = vcombine.high %v9960_v31, %v9964_v47  ;;  %v13578_v57 = vpop.permute.xlu0 %13577 }
 0x6c8   : > { %11722 = vmatprep.subr.bf16.mxu1 %v13160_v56  ;;  %v13214_v56 = vcombine.high %v9959_v16, %v9963_v21  ;;  %v13253_v5 = vcombine.low %v9999_v9, %v10003_v18 }
 0x6ca   : > { %11680 = vmatpush1.bf16.msra.mxu0 %v13157_v60  ;;  %v9972_v60 = vld [vmem:[#allocation9 + $0x2f8] sm:$0xff] }
 0x6cb   : > { %11723 = vmatpush1.bf16.msra.mxu1 %v13159_v1  ;;  %11681 = vmatprep.subr.bf16.mxu0 %v13166_v15  ;;  %v13213_v1 = vcombine.low %v9959_v16, %v9963_v21  ;;  %v13215_v15 = vcombine.low %v9960_v31, %v9964_v47  ;;  %v13224_v10 = vcombine.high %v9968_v8, %v9972_v60  ;;  %v17184_v31 = vld [vmem:[%s18020_s7] sm:$0x22]  ;;  %v17190_v47 = vld [vmem:[%s18020_s7 + $0x8] sm:$0x22] }
 0x6cc   : > { %11724 = vmatprep.subr.bf16.mxu1 %v13168_v28  ;;  %v13222_v28 = vcombine.high %v9967_v62, %v9971_v38 }
 0x6ce   : > { %11682 = vmatpush1.bf16.msra.mxu0 %v13165_v0  ;;  %v9980_v0 = vld [vmem:[#allocation9 + $0x338] sm:$0xff] }
 0x6cf   : > { %11725 = vmatpush1.bf16.msra.mxu1 %v13167_v22  ;;  %11683 = vmatprep.subr.bf16.mxu0 %v13174_v13  ;;  %v13221_v22 = vcombine.low %v9967_v62, %v9971_v38  ;;  %v13223_v13 = vcombine.low %v9968_v8, %v9972_v60  ;;  %v13232_v53 = vcombine.high %v9976_v25, %v9980_v0 }
 0x6d0   : > { %11726 = vmatprep.subr.bf16.mxu1 %v13176_v35  ;;  %v13230_v35 = vcombine.high %v9975_v6, %v9979_v33 }
 0x6d2   : > { %11684 = vmatpush1.bf16.msra.mxu0 %v13173_v61  ;;  %v9988_v61 = vld [vmem:[#allocation9 + $0x378] sm:$0xff] }
 0x6d3   : > { %11727 = vmatpush1.bf16.msra.mxu1 %v13175_v46  ;;  %11685 = vmatprep.subr.bf16.mxu0 %v13182_v43  ;;  %v13229_v46 = vcombine.low %v9975_v6, %v9979_v33  ;;  %v13231_v43 = vcombine.low %v9976_v25, %v9980_v0  ;;  %v13240_v12 = vcombine.high %v9984_v58, %v9988_v61 }
 0x6d4   : > { %11728 = vmatprep.subr.bf16.mxu1 %v13184_v34  ;;  %v13238_v34 = vcombine.high %v9983_v45, %v9987_v20 }
 0x6d6   : > { %11686 = vmatpush1.bf16.msra.mxu0 %v13181_v23  ;;  %v9996_v23 = vld [vmem:[#allocation9 + $0x3b8] sm:$0xff] }
 0x6d7   : > { %11729 = vmatpush1.bf16.msra.mxu1 %v13183_v44  ;;  %11687 = vmatprep.subr.bf16.mxu0 %v13190_v41  ;;  %v13237_v44 = vcombine.low %v9983_v45, %v9987_v20  ;;  %v13239_v41 = vcombine.low %v9984_v58, %v9988_v61  ;;  %v13248_v19 = vcombine.high %v9992_v63, %v9996_v23  ;;  %v17240_v58 = vld [vmem:[%s18020_s7 + $0x8] sm:$0x44] }
 0x6d8   : > { %11730 = vmatprep.subr.bf16.mxu1 %v13192_v7  ;;  %v13246_v7 = vcombine.high %v9991_v2, %v9995_v11 }
 0x6da   : > { %11688 = vmatpush1.bf16.msra.mxu0 %v13189_v4  ;;  %v10004_v4 = vld [vmem:[#allocation9 + $0x3f8] sm:$0xff] }
 0x6db   : > { %11731 = vmatpush1.bf16.msra.mxu1 %v13191_v51  ;;  %11689 = vmatprep.subr.bf16.mxu0 %v13198_v42  ;;  %v13245_v51 = vcombine.low %v9991_v2, %v9995_v11  ;;  %v13247_v42 = vcombine.low %v9992_v63, %v9996_v23  ;;  %v13256_v32 = vcombine.high %v10000_v24, %v10004_v4 }
 0x6dc   : > { %11732 = vmatprep.subr.bf16.mxu1 %v13200_v48  ;;  %v13254_v48 = vcombine.high %v9999_v9, %v10003_v18  ;;  %v13255_v59 = vcombine.low %v10000_v24, %v10004_v4  ;;  %v9549_v9 = vunpack.c.l.bf16 %v17240_v58  ;;  %v17269_v24 = vld [vmem:[%s18020_s7] sm:$0x88] }
 0x6de   : > { %11690 = vmatpush1.bf16.msra.mxu0 %v13197_v37  ;;  %v13583_v37 = vpop.permute.xlu1 %13582 }
 0x6df   : > { %11733 = vmatpush1.bf16.msra.mxu1 %v13199_v55  ;;  %11691 = vmatprep.subr.bf16.mxu0 %v13206_v30  ;;  %v9207_v55 = vld [vmem:[%s18020_s7] sm:$0x11]  ;;  %v17179_v30 = vld [vmem:[%s18020_s7 + $0x8] sm:$0x11] }
 0x6e0   : > { %11734 = vmatprep.subr.bf16.mxu1 %v13208_v52  ;;  %v13588_v52 = vpop.permute.xlu0 %13587  ;;  %v9211_v21 = vunpack.c.l.bf16 %v9207_v55  ;;  %v9212_v6 = vunpack.c.h.bf16 %v9207_v55 }
 0x6e1   : > { %v17214_v33 = vunpack.i.h.bf16 %v13588_v52  ;;  %v17216_v25 = vunpack.i.l.bf16 %v13588_v52 }
 0x6e2   : > { %11692 = vmatpush1.bf16.msra.mxu0 %v13205_v27  ;;  %v13593_v16 = vpop.permute.xlu1 %13592  ;;  %v17192_v27 = vunpack.i.l.bf16 %v13578_v57  ;;  %v17201_v8 = vrot.slane %v9211_v21, %v18648_v29  ;;  %v17253_v63 = vrot.slane %v9212_v6, %v18577_v3  ;;  %v17256_v23 = vrot.slane %v9212_v6, %v18648_v29 }
 0x6e3   : > { %11735 = vmatpush1.bf16.msra.mxu1 %v13207_v17  ;;  %11693 = vmatprep.subr.bf16.mxu0 %v13214_v56  ;;  %v17194_v17 = vunpack.i.l.bf16 %v13583_v37  ;;  %v17197_v56 = vrot.slane %v9211_v21, %v18577_v3  ;;  %18670 = vst [vmem:[#allocation59_spill] sm:$0xff] %v17214_v33  ;;  %v17242_v61 = vunpack.i.h.bf16 %v13593_v16  ;;  %v17308_v6 = vrot.slane %v9549_v9, %v18660_v36 }
 0x6e4   : > { %11736 = vmatprep.subr.bf16.mxu1 %v13216_v26  ;;  %v9379_v26 = vunpack.c.l.bf16 %v17184_v31  ;;  %v13598_v62 = vpop.permute.xlu0 %13597  ;;  %18673 = vst [vmem:[#allocation57_spill] sm:$0xff] %v17253_v63  ;;  %18674 = vst [vmem:[#allocation66_spill] sm:$0xff] %v17256_v23  ;;  %v9262_v55 = vmul.f32 %v17192_v27, %v17253_v63 }
 0x6e5   : > { %v9261_v0 = vmul.f32 %v17192_v27, %v17197_v56  ;;  %18671 = vst [vmem:[#allocation60_spill] sm:$0xff] %v17242_v61  ;;  %v9340_v52 = vmul.f32 %v17194_v17, %v17256_v23  ;;  %18681 = vst [vmem:[#allocation42_spill] sm:$0xff] %v17308_v6 }
 0x6e6   : > { %11694 = vmatpush1.bf16.msra.mxu0 %v13213_v1  ;;  %v13603_v38 = vpop.permute.xlu1 %13602 }
 0x6e7   : > { %11737 = vmatpush1.bf16.msra.mxu1 %v13215_v15  ;;  %11695 = vmatprep.subr.bf16.mxu0 %v13222_v28  ;;  %v9381_v15 = vunpack.c.l.bf16 %v17190_v47  ;;  %v17210_v28 = vunpack.i.h.bf16 %v13578_v57 }
 0x6e8   : > { %11738 = vmatprep.subr.bf16.mxu1 %v13224_v10  ;;  %v17212_v10 = vunpack.i.h.bf16 %v13583_v37  ;;  %v13608_v2 = vpop.permute.xlu0 %13607 }
 0x6e9   : > { %18668 = vst [vmem:[#allocation67_spill] sm:$0xff] %v17210_v28  ;;  %v17235_v20 = vrot.slane %v9381_v15, %v18591_v49  ;;  %v9269_v23 = vmul.f32 %v17210_v28, %v17197_v56 }
 0x6ea   : > { %11696 = vmatpush1.bf16.msra.mxu0 %v13221_v22  ;;  %18669 = vst [vmem:[#allocation55_spill] sm:$0xff] %v17212_v10  ;;  %v17221_v22 = vrot.slane %v9379_v26, %v18591_v49  ;;  %v13613_v11 = vpop.permute.xlu1 %13612 }
 0x6eb   : > { %11739 = vmatpush1.bf16.msra.mxu1 %v13223_v13  ;;  %11697 = vmatprep.subr.bf16.mxu0 %v13230_v35  ;;  %v9339_v13 = vmul.f32 %v17194_v17, %v17201_v8  ;;  %v17228_v35 = vld [vmem:[%s18020_s7] sm:$0x44]  ;;  %v17287_v57 = vunpack.i.h.bf16 %v13613_v11  ;;  %v17289_v37 = vunpack.i.l.bf16 %v13613_v11  ;;  %v9356_v11 = vadd.f32 %v9340_v52, %v9262_v55 }
 0x6ec   : > { %11740 = vmatprep.subr.bf16.mxu1 %v13232_v53 }
 0x6ed   : > { %v9355_v18 = vadd.f32 %v9339_v13, %v9261_v0  ;;  %18678 = vst [vmem:[#allocation32_spill] sm:$0xff] %v17287_v57  ;;  %18679 = vst [vmem:[#allocation75_spill] sm:$0xff] %v17289_v37  ;;  %v17313_v0 = vld [vmem:[%s18020_s7 + $0x10] sm:$0x11]  ;;  %v9548_v13 = vunpack.c.h.bf16 %v17228_v35  ;;  %v17355_v57 = vld [vmem:[%s18020_s7 + $0x18] sm:$0x11] }
 0x6ee   : > { %11698 = vmatpush1.bf16.msra.mxu0 %v13229_v46  ;;  %v17244_v46 = vunpack.i.l.bf16 %v13593_v16 }
 0x6ef   : > { %11741 = vmatpush1.bf16.msra.mxu1 %v13231_v43  ;;  %11699 = vmatprep.subr.bf16.mxu0 %v13238_v34  ;;  %v17246_v43 = vunpack.i.h.bf16 %v13598_v62  ;;  %v17248_v34 = vunpack.i.l.bf16 %v13598_v62  ;;  %v17363_v52 = vrot.slane %v9548_v13, %v18660_v36 }
 0x6f0   : > { %11742 = vmatprep.subr.bf16.mxu1 %v13240_v12  ;;  %v17250_v12 = vunpack.i.h.bf16 %v13603_v38 }
 0x6f1   : > { %18686 = vst [vmem:[#allocation76_spill] sm:$0xff] %v17363_v52 }
 0x6f2   : > { %11700 = vmatpush1.bf16.msra.mxu0 %v13237_v44  ;;  %18672 = vst [vmem:[#allocation34_spill] sm:$0xff] %v17250_v12  ;;  %v9380_v44 = vunpack.c.h.bf16 %v17184_v31 }
 0x6f3   : > { %11743 = vmatpush1.bf16.msra.mxu1 %v13239_v41  ;;  %11701 = vmatprep.subr.bf16.mxu0 %v13246_v7  ;;  %v9429_v41 = vmul.f32 %v17216_v25, %v17221_v22  ;;  %v17262_v7 = vrot.slane %v9379_v26, %v18597_v54 }
 0x6f4   : > { %11744 = vmatprep.subr.bf16.mxu1 %v13248_v19  ;;  %v9547_v19 = vunpack.c.l.bf16 %v17228_v35  ;;  %v17296_v16 = vrot.slane %v9380_v44, %v18591_v49 }
 0x6f5   : > { %v9507_v21 = vmul.f32 %v17244_v46, %v17262_v7  ;;  %v9445_v62 = vadd.f32 %v9429_v41, %v9355_v18  ;;  %v17322_v18 = vrot.slane %v9380_v44, %v18597_v54 }
 0x6f6   : > { %11702 = vmatpush1.bf16.msra.mxu0 %v13245_v51  ;;  %v9431_v51 = vmul.f32 %v17216_v25, %v17235_v20  ;;  %18680 = vst [vmem:[#allocation30_spill] sm:$0xff] %v17296_v16  ;;  %v17301_v31 = vrot.slane %v9547_v19, %v18660_v36  ;;  %v9430_v41 = vmul.f32 %v17216_v25, %v17296_v16 }
 0x6f7   : > { %11745 = vmatpush1.bf16.msra.mxu1 %v13247_v42  ;;  %11703 = vmatprep.subr.bf16.mxu0 %v13254_v48  ;;  %v17274_v42 = vrot.slane %v9381_v15, %v18597_v54  ;;  %v17279_v48 = vld [vmem:[%s18020_s7 + $0x8] sm:$0x88]  ;;  %18682 = vst [vmem:[#allocation41_spill] sm:$0xff] %v17322_v18  ;;  %v17343_v44 = vrot.slane %v9547_v19, %v18661_v14  ;;  %v17360_v19 = vld [vmem:[%s18020_s7 + $0x18] sm:$0x22] }
 0x6f8   : > { %11746 = vmatprep.subr.bf16.mxu1 %v13256_v32  ;;  %v17281_v32 = vunpack.i.l.bf16 %v13603_v38  ;;  %v9717_v26 = vunpack.c.l.bf16 %v17279_v48  ;;  %v9597_v35 = vmul.f32 %v17248_v34, %v17301_v31  ;;  %v9599_v16 = vmul.f32 %v17248_v34, %v17308_v6 }
 0x6f9   : > { %18675 = vst [vmem:[#allocation51_spill] sm:$0xff] %v17274_v42  ;;  %v9509_v15 = vmul.f32 %v17244_v46, %v17274_v42  ;;  %18684 = vst [vmem:[#allocation35_spill] sm:$0xff] %v17343_v44  ;;  %v17350_v42 = vrot.slane %v9549_v9, %v18661_v14 }
 0x6fa   : > { %11704 = vmatpush1.bf16.msra.mxu0 %v13253_v5  ;;  %v17283_v5 = vunpack.i.h.bf16 %v13608_v2 }
 0x6fb   : > { %11747 = vmatpush1.bf16.msra.mxu1 %v13255_v59  ;;  %v17285_v59 = vunpack.i.l.bf16 %v13608_v2  ;;  %v9382_v2 = vunpack.c.h.bf16 %v17190_v47  ;;  %v17338_v47 = vld [vmem:[%s18020_s7 + $0x10] sm:$0x88]  ;;  %18685 = vst [vmem:[#allocation61_spill] sm:$0xff] %v17350_v42  ;;  %v9677_v12 = vmul.f32 %v17281_v32, %v17350_v42 }
 0x6fc   : > { %18676 = vst [vmem:[#allocation52_spill] sm:$0xff] %v17283_v5  ;;  %v17379_v5 = vld [vmem:[%s18020_s7 + $0x18] sm:$0x44] }
 0x6fd   : > { %11706 = vmatmul.mubr.bf16.vlgmr.msra.gmra.mrb[36].mxu0 %v17159_v50  ;;  %18677 = vst [vmem:[#allocation54_spill] sm:$0xff] %v17285_v59 }
 0x6fe   : > { %11749 = vmatmul.mubr.bf16.vlgmr.msra.gmra.mrb[36].mxu1 %v17159_v50  ;;  %v9213_v50 = vunpack.c.l.bf16 %v17179_v30 }
 0x700   : > { %v17204_v60 = vrot.slane %v9213_v50, %v18577_v3  ;;  %v17207_v1 = vrot.slane %v9213_v50, %v18648_v29  ;;  %v9715_v50 = vunpack.c.l.bf16 %v17269_v24 }
 0x702   : > { %v9263_v53 = vmul.f32 %v17192_v27, %v17204_v60  ;;  %v9341_v45 = vmul.f32 %v17194_v17, %v17207_v1 }
 0x704   : > { %v9357_v4 = vadd.f32 %v9341_v45, %v9263_v53  ;;  %v9214_v45 = vunpack.c.h.bf16 %v17179_v30  ;;  %v17333_v30 = vld [vmem:[%s18020_s7 + $0x10] sm:$0x44] }
 0x706   : > { %v9447_v38 = vadd.f32 %v9431_v51, %v9357_v4  ;;  %v17328_v51 = vld [vmem:[%s18020_s7 + $0x10] sm:$0x22]  ;;  %v9523_v4 = vadd.f32 %v9507_v21, %v9445_v62  ;;  %v17371_v55 = vrot.slane %v9214_v45, %v18577_v3  ;;  %v17374_v6 = vrot.slane %v9214_v45, %v18648_v29  ;;  %v17384_v62 = vld [vmem:[%s18020_s7 + $0x18] sm:$0x88] }
 0x707   : > { %18683 = vst [vmem:[#allocation74_spill] sm:$0xff] %v17328_v51  ;;  %18687 = vst [vmem:[#allocation71_spill] sm:$0xff] %v17384_v62  ;;  %v17396_v29 = vrot.slane %v9717_v26, %v18359_v40  ;;  %v9598_v3 = vmul.f32 %v17248_v34, %v17363_v52  ;;  %v17422_v52 = vrot.slane %v9717_v26, %v18445_v39  ;;  %v18717_v62 = vld [vmem:[#allocation35_spill] sm:$0xff] }
 0x708   : > { %v9525_v53 = vadd.f32 %v9509_v15, %v9447_v38  ;;  %v9446_v38 = vadd.f32 %v9430_v41, %v9356_v11  ;;  %v9508_v15 = vmul.f32 %v17244_v46, %v17322_v18  ;;  %v9675_v11 = vmul.f32 %v17281_v32, %v17343_v44 }
 0x709   : > { %v17389_v41 = vrot.slane %v9715_v50, %v18359_v40  ;;  %v9613_v21 = vadd.f32 %v9597_v35, %v9523_v4  ;;  %18688 = vst [vmem:[#allocation48_spill] sm:$0xff] %v17396_v29  ;;  %v17401_v44 = vrot.slane %v9548_v13, %v18661_v14  ;;  %v17410_v4 = vrot.slane %v9382_v2, %v18591_v49 }
 0x70a   : > { %v9615_v18 = vadd.f32 %v9599_v16, %v9525_v53  ;;  %v9524_v63 = vadd.f32 %v9508_v15, %v9446_v38  ;;  %v9264_v16 = vmul.f32 %v17192_v27, %v17371_v55  ;;  %v9342_v53 = vmul.f32 %v17194_v17, %v17374_v6 }
 0x70b   : > { %18689 = vst [vmem:[#allocation46_spill] sm:$0xff] %v17401_v44  ;;  %v9765_v35 = vmul.f32 %v17285_v59, %v17389_v41  ;;  %v17415_v13 = vrot.slane %v9715_v50, %v18445_v39  ;;  %v9691_v38 = vadd.f32 %v9675_v11, %v9613_v21  ;;  %v9767_v45 = vmul.f32 %v17285_v59, %v17396_v29 }
 0x70c   : > { %v9693_v15 = vadd.f32 %v9677_v12, %v9615_v18  ;;  %v9676_v42 = vmul.f32 %v17281_v32, %v17401_v44  ;;  %v18690_v49 = vunpack.c.h.bf16 %v17269_v24  ;;  %v9347_v12 = vmul.f32 %v17212_v10, %v17201_v8 }
 0x70d   : > { %v9614_v18 = vadd.f32 %v9598_v3, %v9524_v63  ;;  %v9358_v21 = vadd.f32 %v9342_v53, %v9264_v16  ;;  %v9432_v26 = vmul.f32 %v17216_v25, %v17410_v4  ;;  %v17438_v11 = vrot.slane %v9382_v2, %v18597_v54 }
 0x70e   : > { %v17429_v50 = vrot.slane %v18690_v49, %v18359_v40  ;;  %v9843_v9 = vmul.f32 %v17289_v37, %v17415_v13  ;;  %v9781_v29 = vadd.f32 %v9765_v35, %v9691_v38  ;;  %v9783_v51 = vadd.f32 %v9767_v45, %v9693_v15 }
 0x70f   : > { %v9845_v3 = vmul.f32 %v17289_v37, %v17422_v52  ;;  %v18691_v8 = vmov %v18690_v49  ;;  %v18692_v16 = vunpack.c.h.bf16 %v17240_v58  ;;  %v9363_v44 = vadd.f32 %v9347_v12, %v9269_v23 }
 0x710   : > { %v17450_v63 = vrot.slane %v18691_v8, %v18445_v39  ;;  %v9766_v2 = vmul.f32 %v17285_v59, %v17429_v50  ;;  %v9437_v45 = vmul.f32 %v17214_v33, %v17221_v22  ;;  %v9692_v15 = vadd.f32 %v9676_v42, %v9614_v18 }
 0x711   : > { %v17457_v53 = vrot.slane %v18692_v16, %v18660_v36  ;;  %v9448_v24 = vadd.f32 %v9432_v26, %v9358_v21  ;;  %v9510_v8 = vmul.f32 %v17244_v46, %v17438_v11  ;;  %v18695_v49 = vmov %v18692_v16 }
 0x712   : > { %v17470_v56 = vrot.slane %v18695_v49, %v18661_v14  ;;  %v18697_v23 = vunpack.c.h.bf16 %v17279_v48  ;;  %v17488_v26 = vadd.f32 %v9843_v9, %v9781_v29  ;;  %v17490_v49 = vadd.f32 %v9845_v3, %v9783_v51  ;;  %v18710_v48 = vld [vmem:[#allocation27_spill] sm:$0xff] }
 0x713   : > { %v9271_v58 = vmul.f32 %v17210_v28, %v17204_v60  ;;  %v9349_v29 = vmul.f32 %v17212_v10, %v17207_v1  ;;  %v9782_v3 = vadd.f32 %v9766_v2, %v9692_v15  ;;  %v9526_v21 = vadd.f32 %v9510_v8, %v9448_v24  ;;  %v18709_v24 = vld [vmem:[#allocation66_spill] sm:$0xff] }
 0x714   : > { %v17477_v22 = vrot.slane %v18697_v23, %v18359_v40  ;;  %v18699_v12 = vmov %v18697_v23  ;;  %18702 = vst [vmem:[#allocation39_spill] sm:$0xff] %v17488_v26  ;;  %18703 = vst [vmem:[#allocation43_spill] sm:$0xff] %v17490_v49  ;;  %v9605_v1 = vmul.f32 %v17246_v43, %v17301_v31  ;;  %v9439_v2 = vmul.f32 %v17214_v33, %v17235_v20 }
 0x715   : > { %v17482_v42 = vrot.slane %v18699_v12, %v18445_v39  ;;  %v9453_v12 = vadd.f32 %v9437_v45, %v9363_v44  ;;  %v9678_v44 = vmul.f32 %v17281_v32, %v17470_v56  ;;  %v18708_v45 = vld [vmem:[#allocation57_spill] sm:$0xff]  ;;  %v9348_v8 = vmul.f32 %v17212_v10, %v18709_v24  ;;  %v18719_v39 = vld [vmem:[#allocation52_spill] sm:$0xff] }
 0x716   : > { %18698 = vst [vmem:[#allocation53_spill] sm:$0xff] %v17477_v22  ;;  %v9270_v15 = vmul.f32 %v17210_v28, %v18708_v45  ;;  %v9365_v49 = vadd.f32 %v9349_v29, %v9271_v58  ;;  %v9272_v20 = vmul.f32 %v17210_v28, %v17371_v55  ;;  %v9350_v45 = vmul.f32 %v17212_v10, %v17374_v6  ;;  %v18723_v29 = vld [vmem:[#allocation30_spill] sm:$0xff] }
 0x717   : > { %18700 = vst [vmem:[#allocation73_spill] sm:$0xff] %v17482_v42  ;;  %v17517_v60 = vmul.f32 %v17289_v37, %v17482_v42  ;;  %v18718_v42 = vld [vmem:[#allocation34_spill] sm:$0xff]  ;;  %v9438_v6 = vmul.f32 %v17214_v33, %v18723_v29  ;;  %v18727_v29 = vld [vmem:[#allocation61_spill] sm:$0xff] }
 0x718   : > { %v9366_v10 = vadd.f32 %v9350_v45, %v9272_v20 }
 0x790   : > { %v17461_v35 = vpop.f32.mrb[32].mxu0  ;;  %v17463_v38 = vpop.f32.mrb[32].mxu1 }
 0x791   : > { %18693 = vst [vmem:[#allocation36_spill] sm:$0xff] %v17461_v35  ;;  %18694 = vst [vmem:[#allocation65_spill] sm:$0xff] %v17463_v38  ;;  %v17472_v16 = vpop.f32.mrb[33].mxu0  ;;  %v17484_v18 = vpop.f32.mrb[33].mxu1 }
 0x792   : > { %18696 = vst [vmem:[#allocation77_spill] sm:$0xff] %v17472_v16  ;;  %18701 = vst [vmem:[#allocation31_spill] sm:$0xff] %v17484_v18  ;;  %v9844_v16 = vmul.f32 %v17289_v37, %v17450_v63  ;;  %v17494_v23 = vpop.f32.mrb[34].mxu0  ;;  %v17496_v35 = vpop.f32.mrb[34].mxu1  ;;  %v9515_v18 = vmul.f32 %v17242_v61, %v17262_v7  ;;  %v9768_v7 = vmul.f32 %v17285_v59, %v17477_v22 }
 0x793   : > { %18704 = vst [vmem:[#allocation70_spill] sm:$0xff] %v17494_v23  ;;  %18705 = vst [vmem:[#allocation63_spill] sm:$0xff] %v17496_v35  ;;  %v17505_v51 = vpop.f32.mrb[35].mxu0  ;;  %v17507_v9 = vpop.f32.mrb[35].mxu1  ;;  %v9600_v23 = vmul.f32 %v17248_v34, %v17457_v53  ;;  %v18713_v35 = vld [vmem:[#allocation28_spill] sm:$0xff]  ;;  %v9773_v59 = vmul.f32 %v18719_v39, %v17389_v41  ;;  %v18724_v41 = vld [vmem:[#allocation29_spill] sm:$0xff] }
 0x794   : > { %18706 = vst [vmem:[#allocation44_spill] sm:$0xff] %v17505_v51  ;;  %18707 = vst [vmem:[#allocation72_spill] sm:$0xff] %v17507_v9  ;;  %v18711_v51 = vunpack.c.l.bf16 %v17313_v0  ;;  %v9531_v31 = vadd.f32 %v9515_v18, %v9453_v12  ;;  %v17541_v37 = vadd.f32 %v9844_v16, %v9782_v3  ;;  %v18721_v18 = vld [vmem:[#allocation51_spill] sm:$0xff]  ;;  %v18722_v12 = vld [vmem:[#allocation42_spill] sm:$0xff]  ;;  %v9364_v16 = vadd.f32 %v9348_v8, %v9270_v15 }
 0x795   : > { %v9616_v24 = vadd.f32 %v9600_v23, %v9526_v21  ;;  %v9517_v58 = vmul.f32 %v17242_v61, %v18721_v18  ;;  %v9607_v55 = vmul.f32 %v17246_v43, %v18722_v12  ;;  %v18725_v23 = vld [vmem:[#allocation74_spill] sm:$0xff]  ;;  %v9455_v18 = vadd.f32 %v9439_v2, %v9365_v49 }
 0x796   : > { %v17530_v9 = vrot.slane %v18711_v51, %v18710_v48  ;;  %v18714_v26 = vmov %v18711_v51  ;;  %18716 = vst [vmem:[#allocation68_spill] sm:$0xff] %v17541_v37  ;;  %v9683_v51 = vmul.f32 %v18718_v42, %v18717_v62  ;;  %v18726_v3 = vunpack.c.l.bf16 %v18725_v23 }
 0x797   : > { %v17535_v38 = vrot.slane %v18714_v26, %v18713_v35  ;;  %v18720_v26 = vld [vmem:[#allocation32_spill] sm:$0xff]  ;;  %v9621_v37 = vadd.f32 %v9605_v1, %v9531_v31  ;;  %v9440_v12 = vmul.f32 %v17214_v33, %v17410_v4  ;;  %v9694_v28 = vadd.f32 %v9678_v44, %v9616_v24  ;;  %v18732_v44 = vld [vmem:[#allocation41_spill] sm:$0xff] }
 0x798   : > { %18712 = vst [vmem:[#allocation69_spill] sm:$0xff] %v17530_v9  ;;  %v9851_v22 = vmul.f32 %v18720_v26, %v17415_v13  ;;  %v9265_v21 = vmul.f32 %v17192_v27, %v17530_v9  ;;  %v17562_v13 = vrot.slane %v18726_v3, %v18724_v41  ;;  %v9685_v15 = vmul.f32 %v18718_v42, %v18727_v29  ;;  %v18730_v1 = vld [vmem:[#allocation48_spill] sm:$0xff] }
 0x799   : > { %18715 = vst [vmem:[#allocation49_spill] sm:$0xff] %v17535_v38  ;;  %v9343_v62 = vmul.f32 %v17194_v17, %v17535_v38  ;;  %v18728_v8 = vunpack.c.l.bf16 %v17355_v57  ;;  %v9775_v49 = vmul.f32 %v18719_v39, %v18730_v1  ;;  %v17582_v4 = vmul.f32 %v18720_v26, %v17422_v52  ;;  %v18733_v31 = vld [vmem:[#allocation76_spill] sm:$0xff] }
 0x79a   : > { %v9516_v2 = vmul.f32 %v17242_v61, %v18732_v44  ;;  %v9606_v20 = vmul.f32 %v17246_v43, %v18733_v31  ;;  %v9454_v45 = vadd.f32 %v9438_v6, %v9364_v16  ;;  %v9433_v29 = vmul.f32 %v17216_v25, %v17562_v13 }
 0x79b   : > { %v17571_v9 = vrot.slane %v18728_v8, %v18710_v48  ;;  %v18729_v38 = vmov %v18728_v8  ;;  %18731 = vst [vmem:[#allocation45_spill] sm:$0xff] %v17582_v4  ;;  %v9359_v24 = vadd.f32 %v9343_v62, %v9265_v21  ;;  %v9699_v1 = vadd.f32 %v9683_v51, %v9621_v37  ;;  %v18736_v62 = vld [vmem:[#allocation46_spill] sm:$0xff] }
 0x79c   : > { %v17576_v3 = vrot.slane %v18729_v38, %v18713_v35  ;;  %v18734_v38 = vunpack.c.l.bf16 %v18725_v23  ;;  %v9533_v33 = vadd.f32 %v9517_v58, %v9455_v18  ;;  %v9456_v52 = vadd.f32 %v9440_v12, %v9366_v10 }
 0x79d   : > { %v9518_v4 = vmul.f32 %v17242_v61, %v17438_v11  ;;  %v9784_v44 = vadd.f32 %v9768_v7, %v9694_v28  ;;  %v9267_v31 = vmul.f32 %v17192_v27, %v17571_v9  ;;  %v18735_v16 = vunpack.c.l.bf16 %v17360_v19 }
 0x79e   : > { %v17593_v8 = vrot.slane %v18734_v38, %v18597_v54  ;;  %v9345_v6 = vmul.f32 %v17194_v17, %v17576_v3  ;;  %v9684_v37 = vmul.f32 %v18718_v42, %v18736_v62  ;;  %v9774_v10 = vmul.f32 %v18719_v39, %v17429_v50 }
 0x79f   : > { %v17604_v21 = vrot.slane %v18735_v16, %v18724_v41  ;;  %v18737_v28 = vunpack.c.h.bf16 %v17313_v0  ;;  %v9532_v58 = vadd.f32 %v9516_v2, %v9454_v45  ;;  %v9449_v18 = vadd.f32 %v9433_v29, %v9359_v24 }
 0x7a0   : > { %v9511_v12 = vmul.f32 %v17244_v46, %v17593_v8  ;;  %v18739_v38 = vunpack.c.l.bf16 %v17333_v30  ;;  %v9789_v50 = vadd.f32 %v9773_v59, %v9699_v1  ;;  %v9623_v62 = vadd.f32 %v9607_v55, %v9533_v33 }
 0x7a1   : > { %v17613_v11 = vrot.slane %v18737_v28, %v18710_v48  ;;  %v18738_v7 = vmov %v18737_v28  ;;  %v9534_v61 = vadd.f32 %v9518_v4, %v9456_v52  ;;  %v9608_v28 = vmul.f32 %v17246_v43, %v17457_v53 }
 0x7a2   : > { %v17618_v51 = vrot.slane %v18738_v7, %v18713_v35  ;;  %v17625_v16 = vrot.slane %v18739_v38, %v18660_v36  ;;  %v9852_v0 = vmul.f32 %v18720_v26, %v17450_v63  ;;  %v9361_v7 = vadd.f32 %v9345_v6, %v9267_v31 }
 0x7a3   : > { %v9435_v2 = vmul.f32 %v17216_v25, %v17604_v21  ;;  %v18740_v45 = vunpack.c.l.bf16 %v17360_v19  ;;  %v17639_v29 = vadd.f32 %v17517_v60, %v9784_v44  ;;  %v9266_v33 = vmul.f32 %v17192_v27, %v17613_v11 }
 0x7a4   : > { %v9344_v59 = vmul.f32 %v17194_v17, %v17618_v51  ;;  %v18742_v63 = vunpack.c.h.bf16 %v18725_v23  ;;  %v9622_v55 = vadd.f32 %v9606_v20, %v9532_v58  ;;  %v9527_v4 = vadd.f32 %v9511_v12, %v9449_v18 }
 0x7a5   : > { %v17636_v24 = vrot.slane %v18740_v45, %v18597_v54  ;;  %18741 = vst [vmem:[#allocation50_spill] sm:$0xff] %v17639_v29  ;;  %v9601_v1 = vmul.f32 %v17248_v34, %v17625_v16  ;;  %v18743_v60 = vmov %v18739_v38  ;;  %v17657_v44 = vadd.f32 %v9851_v22, %v9789_v50 }
 0x7a6   : > { %v17648_v53 = vrot.slane %v18742_v63, %v18724_v41  ;;  %v17655_v52 = vrot.slane %v18743_v60, %v18661_v14  ;;  %v9701_v31 = vadd.f32 %v9685_v15, %v9623_v62  ;;  %v9624_v6 = vadd.f32 %v9608_v28, %v9534_v61 }
 0x7a7   : > { %18744 = vst [vmem:[#allocation58_spill] sm:$0xff] %v17657_v44  ;;  %v9686_v38 = vmul.f32 %v18718_v42, %v17470_v56  ;;  %v9451_v45 = vadd.f32 %v9435_v2, %v9361_v7  ;;  %v9513_v20 = vmul.f32 %v17244_v46, %v17636_v24  ;;  %v18745_v58 = vunpack.c.l.bf16 %v17379_v5  ;;  %v18759_v44 = vld [vmem:[#allocation47_spill] sm:$0xff] }
 0x7a8   : > { %v18747_v12 = vmov %v18742_v63  ;;  %v9360_v22 = vadd.f32 %v9344_v59, %v9266_v33  ;;  %v9434_v61 = vmul.f32 %v17216_v25, %v17648_v53  ;;  %v18749_v56 = vunpack.c.h.bf16 %v17355_v57 }
 0x7a9   : > { %v17666_v18 = vrot.slane %v18745_v58, %v18660_v36  ;;  %v17671_v63 = vrot.slane %v18747_v12, %v18597_v54  ;;  %v9700_v28 = vadd.f32 %v9684_v37, %v9622_v55  ;;  %v9617_v7 = vadd.f32 %v9601_v1, %v9527_v4  ;;  %v18752_v58 = vld [vmem:[#allocation53_spill] sm:$0xff] }
 0x7aa   : > { %v9260_v15 = vrot.slane %v18749_v56, %v18710_v48  ;;  %v18750_v50 = vmov %v18749_v56  ;;  %v9679_v2 = vmul.f32 %v17281_v32, %v17655_v52  ;;  %v18751_v23 = vunpack.c.l.bf16 %v17338_v47 }
 0x7ab   : > { %18746 = vst [vmem:[#allocation56_spill] sm:$0xff] %v17666_v18  ;;  %18748 = vst [vmem:[#allocation37_spill] sm:$0xff] %v17671_v63  ;;  %v9338_v62 = vrot.slane %v18750_v50, %v18713_v35  ;;  %v9791_v59 = vadd.f32 %v9775_v49, %v9701_v31  ;;  %v9702_v60 = vadd.f32 %v9686_v38, %v9624_v6  ;;  %v18753_v56 = vunpack.c.l.bf16 %v17379_v5 }
 0x7ac   : > { %v17686_v33 = vrot.slane %v18751_v23, %v18359_v40  ;;  %v9776_v12 = vmul.f32 %v18719_v39, %v18752_v58  ;;  %v9529_v37 = vadd.f32 %v9513_v20, %v9451_v45  ;;  %v9603_v55 = vmul.f32 %v17248_v34, %v17666_v18  ;;  %v18758_v58 = vld [vmem:[#allocation54_spill] sm:$0xff] }
 0x7ad   : > { %v17693_v57 = vrot.slane %v18753_v56, %v18661_v14  ;;  %v9512_v4 = vmul.f32 %v17244_v46, %v17671_v63  ;;  %v18755_v1 = vunpack.c.h.bf16 %v17333_v30  ;;  %v9450_v31 = vadd.f32 %v9434_v61, %v9360_v22  ;;  %v18761_v22 = vld [vmem:[#allocation73_spill] sm:$0xff] }
 0x7ae   : > { %v9268_v6 = vmul.f32 %v17192_v27, %v9260_v15  ;;  %v9346_v38 = vmul.f32 %v17194_v17, %v9338_v62  ;;  %v18757_v50 = vunpack.c.h.bf16 %v17360_v19  ;;  %v9790_v20 = vadd.f32 %v9774_v10, %v9700_v28  ;;  %v18762_v17 = vld [vmem:[#allocation71_spill] sm:$0xff] }
 0x7af   : > { %18754 = vst [vmem:[#allocation38_spill] sm:$0xff] %v17693_v57  ;;  %v17702_v49 = vrot.slane %v18755_v1, %v18660_v36  ;;  %v9695_v23 = vadd.f32 %v9679_v2, %v9617_v7  ;;  %v9769_v56 = vmul.f32 %v18758_v58, %v17686_v33  ;;  %v18760_v35 = vunpack.c.l.bf16 %v17338_v47 }
 0x7b0   : > { %v9428_v45 = vrot.slane %v18757_v50, %v18724_v41  ;;  %v9792_v1 = vadd.f32 %v9776_v12, %v9702_v60  ;;  %v9854_v27 = vmul.f32 %v18720_v26, %v18761_v22  ;;  %v18763_v61 = vunpack.c.l.bf16 %v18762_v17 }
 0x7b1   : > { %18756 = vst [vmem:[#allocation33_spill] sm:$0xff] %v17702_v49  ;;  %v17714_v29 = vrot.slane %v18760_v35, %v18759_v44  ;;  %v9619_v7 = vadd.f32 %v9603_v55, %v9529_v37  ;;  %v9681_v2 = vmul.f32 %v17281_v32, %v17693_v57  ;;  %v9602_v35 = vmul.f32 %v17248_v34, %v17702_v49  ;;  %v18768_v37 = vld [vmem:[#allocation45_spill] sm:$0xff]  ;;  %v18769_v49 = vld [vmem:[#allocation75_spill] sm:$0xff] }
 0x7b2   : > { %v17721_v48 = vrot.slane %v18763_v61, %v18359_v40  ;;  %v18764_v10 = vmov %v18763_v61  ;;  %v18766_v60 = vunpack.c.h.bf16 %v17333_v30  ;;  %v9528_v50 = vadd.f32 %v9512_v4, %v9450_v31 }
 0x7b3   : > { %v17726_v28 = vrot.slane %v18764_v10, %v18759_v44  ;;  %v9362_v22 = vadd.f32 %v9346_v38, %v9268_v6  ;;  %v9436_v61 = vmul.f32 %v17216_v25, %v9428_v45  ;;  %v18767_v10 = vunpack.c.h.bf16 %v17360_v19  ;;  %v18771_v6 = vld [vmem:[#allocation69_spill] sm:$0xff]  ;;  %v18772_v38 = vld [vmem:[#allocation67_spill] sm:$0xff] }
 0x7b4   : > { %v17735_v12 = vrot.slane %v18766_v60, %v18661_v14  ;;  %v17742_v55 = vadd.f32 %v18768_v37, %v9791_v59  ;;  %v17744_v57 = vadd.f32 %v9852_v0, %v9790_v20  ;;  %v9785_v18 = vadd.f32 %v9769_v56, %v9695_v23  ;;  %v18773_v23 = vld [vmem:[#allocation49_spill] sm:$0xff]  ;;  %v18774_v56 = vld [vmem:[#allocation55_spill] sm:$0xff] }
 0x7b5   : > { %18765 = vst [vmem:[#allocation40_spill] sm:$0xff] %v17726_v28  ;;  %v9506_v63 = vrot.slane %v18767_v10, %v18597_v54  ;;  %v9847_v26 = vmul.f32 %v18769_v49, %v17714_v29  ;;  %v17748_v30 = vadd.f32 %v9854_v27, %v9792_v1  ;;  %v9771_v4 = vmul.f32 %v18758_v58, %v17721_v48 }
 0x7b6   : > { %v9849_v25 = vmul.f32 %v18769_v49, %v17726_v28  ;;  %v18770_v19 = vunpack.c.h.bf16 %v17338_v47  ;;  %v9697_v59 = vadd.f32 %v9681_v2, %v9619_v7  ;;  %v9680_v0 = vmul.f32 %v17281_v32, %v17735_v12 }
 0x7b7   : > { %v9273_v20 = vmul.f32 %v18772_v38, %v18771_v6  ;;  %v9351_v1 = vmul.f32 %v18774_v56, %v18773_v23  ;;  %v9618_v27 = vadd.f32 %v9602_v35, %v9528_v50  ;;  %v9452_v60 = vadd.f32 %v9436_v61, %v9362_v22 }
 0x7b8   : > { %v17757_v31 = vrot.slane %v18770_v19, %v18359_v40  ;;  %v9514_v10 = vmul.f32 %v17244_v46, %v9506_v63  ;;  %v18775_v37 = vunpack.c.h.bf16 %v17379_v5  ;;  %v17769_v19 = vadd.f32 %v9847_v26, %v9785_v18 }
 0x7b9   : > { %v18777_v7 = vunpack.c.h.bf16 %v17338_v47  ;;  %v9275_v6 = vmul.f32 %v18772_v38, %v17571_v9  ;;  %v9353_v35 = vmul.f32 %v18774_v56, %v17576_v3  ;;  %v9276_v26 = vmul.f32 %v18772_v38, %v9260_v15  ;;  %v18780_v3 = vld [vmem:[#allocation59_spill] sm:$0xff] }
 0x7ba   : > { %v9596_v28 = vrot.slane %v18775_v37, %v18660_v36  ;;  %18776 = vst [vmem:[#allocation64_spill] sm:$0xff] %v17769_v19  ;;  %v9770_v46 = vmul.f32 %v18758_v58, %v17757_v31  ;;  %v18778_v50 = vmov %v18775_v37  ;;  %v9354_v47 = vmul.f32 %v18774_v56, %v9338_v62 }
 0x7bb   : > { %v17774_v2 = vrot.slane %v18777_v7, %v18759_v44  ;;  %v17785_v22 = vrot.slane %v18778_v50, %v18661_v14  ;;  %v9787_v18 = vadd.f32 %v9771_v4, %v9697_v59  ;;  %v18779_v61 = vunpack.c.h.bf16 %v18762_v17 }
 0x7bc   : > { %v9367_v23 = vadd.f32 %v9351_v1, %v9273_v20  ;;  %v9441_v37 = vmul.f32 %v18780_v3, %v17562_v13  ;;  %v9696_v7 = vadd.f32 %v9680_v0, %v9618_v27  ;;  %v9530_v19 = vadd.f32 %v9514_v10, %v9452_v60 }
 0x7bd   : > { %v17792_v9 = vrot.slane %v18779_v61, %v18359_v40  ;;  %v9604_v5 = vmul.f32 %v17248_v34, %v9596_v28  ;;  %v18781_v50 = vmov %v18779_v61  ;;  %v9369_v62 = vadd.f32 %v9353_v35, %v9275_v6 }
 0x7be   : > { %v17800_v15 = vrot.slane %v18781_v50, %v18759_v44  ;;  %v9443_v4 = vmul.f32 %v18780_v3, %v17604_v21  ;;  %v9274_v59 = vmul.f32 %v18772_v38, %v17613_v11  ;;  %v9352_v20 = vmul.f32 %v18774_v56, %v17618_v51  ;;  %v18782_v11 = vld [vmem:[#allocation60_spill] sm:$0xff]  ;;  %v17822_v51 = vld [vmem:[%s18022_s9] sm:$0xff] }
 0x7bf   : > { %v9848_v13 = vmul.f32 %v18769_v49, %v17774_v2  ;;  %v9682_v34 = vmul.f32 %v17281_v32, %v17785_v22  ;;  %v9370_v0 = vadd.f32 %v9354_v47, %v9276_v26  ;;  %v9444_v17 = vmul.f32 %v18780_v3, %v9428_v45  ;;  %v18784_v26 = vld [vmem:[#allocation65_spill] sm:$0xff]  ;;  %v18790_v50 = vld [vmem:[#allocation27_spill] sm:$0xff] }
 0x7c0   : > { %v17813_v1 = vadd.f32 %v9849_v25, %v9787_v18  ;;  %v9772_v21 = vmul.f32 %v18758_v58, %v17792_v9  ;;  %v9457_v27 = vadd.f32 %v9441_v37, %v9367_v23  ;;  %v9519_v38 = vmul.f32 %v18782_v11, %v17593_v8  ;;  %v18785_v18 = vld [vmem:[#allocation32_spill] sm:$0xff]  ;;  %v18788_v37 = vld [vmem:[#allocation39_spill] sm:$0xff] }
 0x7c1   : > { %v9786_v56 = vadd.f32 %v9770_v46, %v9696_v7  ;;  %v9620_v60 = vadd.f32 %v9604_v5, %v9530_v19  ;;  %v9850_v32 = vmul.f32 %v18769_v49, %v17800_v15  ;;  %v9609_v45 = vmul.f32 %v17246_v43, %v17625_v16  ;;  %v18783_v46 = vld [vmem:[#allocation43_spill] sm:$0xff]  ;;  %v18786_v23 = vld [vmem:[#allocation56_spill] sm:$0xff] }
 0x7c2   : > { %v9459_v25 = vadd.f32 %v9443_v4, %v9369_v62  ;;  %v9521_v58 = vmul.f32 %v18782_v11, %v17636_v24  ;;  %v9368_v10 = vadd.f32 %v9352_v20, %v9274_v59  ;;  %v9442_v8 = vmul.f32 %v18780_v3, %v17648_v53  ;;  %v18787_v3 = vld [vmem:[#allocation37_spill] sm:$0xff]  ;;  %v18789_v7 = vld [vmem:[#allocation36_spill] sm:$0xff]  ;;  %v18791_v59 = vld [vmem:[#allocation50_spill] sm:$0xff] }
 0x7c3   : > { %v9687_v6 = vmul.f32 %v18718_v42, %v17655_v52  ;;  %v9777_v19 = vmul.f32 %v18719_v39, %v17686_v33  ;;  %v9460_v35 = vadd.f32 %v9444_v17, %v9370_v0  ;;  %v9522_v49 = vmul.f32 %v18782_v11, %v9506_v63 }
 0x7c4   : > { %v11761_v16 = vadd.f32 %v18784_v26, %v18783_v46  ;;  %v11788_v47 = vrot.slane %v17822_v51, %v18724_v41  ;;  %v9535_v24 = vadd.f32 %v9519_v38, %v9457_v27  ;;  %v17843_v61 = vmul.f32 %v18785_v18, %v17714_v29  ;;  %v18792_v29 = vld [vmem:[#allocation31_spill] sm:$0xff]  ;;  %v18793_v27 = vld [vmem:[#allocation68_spill] sm:$0xff]  ;;  %v18799_v26 = vld [vmem:[#allocation58_spill] sm:$0xff] }
 0x7c5   : > { %v17845_v53 = vadd.f32 %v9848_v13, %v9786_v56  ;;  %v9698_v52 = vadd.f32 %v9682_v34, %v9620_v60  ;;  %v9611_v33 = vmul.f32 %v17246_v43, %v18786_v23  ;;  %v9520_v63 = vmul.f32 %v18782_v11, %v18787_v3  ;;  %v18794_v11 = vld [vmem:[#allocation77_spill] sm:$0xff]  ;;  %v18795_v56 = vld [vmem:[#allocation28_spill] sm:$0xff] }
 0x7c6   : > { %v11759_v5 = vadd.f32 %v18789_v7, %v18788_v37  ;;  %v11780_v41 = vrot.slane %v17822_v51, %v18790_v50  ;;  %v9537_v62 = vadd.f32 %v9521_v58, %v9459_v25  ;;  %v9458_v4 = vadd.f32 %v9442_v8, %v9368_v10  ;;  %v18796_v25 = vld [vmem:[#allocation63_spill] sm:$0xff]  ;;  %v18797_v10 = vld [vmem:[#allocation38_spill] sm:$0xff] }
 0x7c7   : > { %v11762_v20 = vadd.f32 %v18792_v29, %v18791_v59  ;;  %v11792_v13 = vrot.slane %v17822_v51, %v18597_v54  ;;  %v9538_v34 = vadd.f32 %v9522_v49, %v9460_v35  ;;  %v9612_v0 = vmul.f32 %v17246_v43, %v9596_v28  ;;  %v18798_v35 = vld [vmem:[#allocation33_spill] sm:$0xff] }
 0x7c8   : > { %v11819_v17 = vadd.f32 %v11788_v47, %v11761_v16  ;;  %v11760_v38 = vadd.f32 %v18794_v11, %v18793_v27  ;;  %v11784_v60 = vrot.slane %v17822_v51, %v18795_v56  ;;  %v9625_v46 = vadd.f32 %v9609_v45, %v9535_v24  ;;  %v18800_v16 = vld [vmem:[#allocation70_spill] sm:$0xff]  ;;  %v18801_v45 = vld [vmem:[#allocation72_spill] sm:$0xff] }
 0x7c9   : > { %v11769_v58 = vadd.f32 %v18796_v25, %v17742_v55  ;;  %v9689_v8 = vmul.f32 %v18718_v42, %v18797_v10  ;;  %v9779_v54 = vmul.f32 %v18719_v39, %v17721_v48  ;;  %v9610_v28 = vmul.f32 %v17246_v43, %v18798_v35  ;;  %v18802_v43 = vld [vmem:[#allocation44_spill] sm:$0xff] }
 0x7ca   : > { %v11817_v49 = vadd.f32 %v11780_v41, %v11759_v5  ;;  %v11767_v23 = vadd.f32 %v18800_v16, %v18799_v26  ;;  %v9627_v3 = vadd.f32 %v9611_v33, %v9537_v62  ;;  %v9536_v37 = vadd.f32 %v9520_v63, %v9458_v4  ;;  %v18803_v56 = vld [vmem:[#allocation40_spill] sm:$0xff] }
 0x7cb   : > { %v11820_v7 = vadd.f32 %v11792_v13, %v11762_v20  ;;  %v11770_v24 = vadd.f32 %v18801_v45, %v17748_v30  ;;  %v9628_v55 = vadd.f32 %v9612_v0, %v9538_v34  ;;  %v9690_v50 = vmul.f32 %v18718_v42, %v17785_v22 }
 0x7cc   : > { %v11835_v59 = vmul.f32 0.5, %v11819_v17  ;;  %v11818_v29 = vadd.f32 %v11784_v60, %v11760_v38  ;;  %v9788_v48 = vadd.f32 %v9772_v21, %v9698_v52  ;;  %v9703_v27 = vadd.f32 %v9687_v6, %v9625_v46 }
 0x7cd   : > { %v11827_v11 = vadd.f32 %v11788_v47, %v11769_v58  ;;  %v11768_v5 = vadd.f32 %v18802_v43, %v17744_v57  ;;  %v9857_v33 = vmul.f32 %v18785_v18, %v18803_v56  ;;  %v9688_v63 = vmul.f32 %v18718_v42, %v17735_v12 }
 0x7ce   : > { %v11833_v62 = vmul.f32 0.5, %v11817_v49  ;;  %v11825_v30 = vadd.f32 %v11780_v41, %v11767_v23  ;;  %v9705_v4 = vadd.f32 %v9689_v8, %v9627_v3  ;;  %v9626_v20 = vadd.f32 %v9610_v28, %v9536_v37 }
 0x7cf   : > { %v11836_v34 = vmul.f32 0.5, %v11820_v7  ;;  %v11828_v22 = vadd.f32 %v11792_v13, %v11770_v24  ;;  %v9706_v0 = vadd.f32 %v9690_v50, %v9628_v55  ;;  %v9780_v21 = vmul.f32 %v18719_v39, %v17792_v9 }
 0x7d0   : > { %13788 = vtanh.f32 %v11835_v59  ;;  %v11834_v6 = vmul.f32 0.5, %v11818_v29  ;;  %v9866_v47 = vadd.f32 %v9850_v32, %v9788_v48  ;;  %v9793_v57 = vadd.f32 %v9777_v19, %v9703_v27  ;;  %v11707_v32 = vpop.f32.mrb[36].mxu0 }
 0x7d1   : > { %v11841_v52 = vmul.f32 0.5, %v11827_v11  ;;  %v11826_v17 = vadd.f32 %v11784_v60, %v11768_v5  ;;  %v9778_v38 = vmul.f32 %v18719_v39, %v17757_v31  ;;  %v9856_v42 = vmul.f32 %v18785_v18, %v17774_v2  ;;  %v18804_v60 = vld [vmem:[#allocation64_spill] sm:$0xff]  ;;  %v11750_v10 = vpop.f32.mrb[36].mxu1  ;;  %v11709_v8 = vpop.f32.mrb[37].mxu0 }
 0x7d2   : > { %13790 = vtanh.f32 %v11833_v62  ;;  %v11839_v12 = vmul.f32 0.5, %v11825_v30  ;;  %v9795_v41 = vadd.f32 %v9779_v54, %v9705_v4  ;;  %v9704_v13 = vadd.f32 %v9688_v63, %v9626_v20  ;;  %v11711_v35 = vpop.f32.mrb[38].mxu0 }
 0x7d3   : > { %13792 = vtanh.f32 %v11836_v34  ;;  %v11842_v46 = vmul.f32 0.5, %v11828_v22  ;;  %v9796_v25 = vadd.f32 %v9780_v21, %v9706_v0  ;;  %v9858_v9 = vmul.f32 %v18785_v18, %v17800_v15  ;;  %v11752_v18 = vpop.f32.mrb[37].mxu1  ;;  %v11713_v26 = vpop.f32.mrb[39].mxu0 }
 0x7d4   : > { %13794 = vtanh.f32 %v11834_v6  ;;  %v11796_v19 = vrot.slane %v17822_v51, %v18660_v36  ;;  %v11804_v39 = vrot.slane %v17822_v51, %v18359_v40  ;;  %v9871_v31 = vadd.f32 %v17843_v61, %v9793_v57  ;;  %v11754_v49 = vpop.f32.mrb[38].mxu1 }
 0x7d5   : > { %13796 = vtanh.f32 %v11841_v52  ;;  %v11840_v2 = vmul.f32 0.5, %v11826_v17  ;;  %v11763_v58 = vadd.f32 %v11707_v32, %v18804_v60  ;;  %v11808_v54 = vrot.slane %v17822_v51, %v18759_v44  ;;  %v11756_v7 = vpop.f32.mrb[39].mxu1 }
 0x7d6   : > { %13798 = vtanh.f32 %v11839_v12  ;;  %v11765_v15 = vadd.f32 %v11750_v10, %v17813_v1  ;;  %v9873_v36 = vadd.f32 %v9857_v33, %v9795_v41  ;;  %v9794_v28 = vadd.f32 %v9778_v38, %v9704_v13  ;;  %v13836_v12 = vld [vmem:[%s14330_s25 + $0x40] sm:$0xff] }
 0x7d7   : > { %13800 = vtanh.f32 %v11842_v46  ;;  %v11800_v40 = vrot.slane %v17822_v51, %v18661_v14  ;;  %v11766_v61 = vadd.f32 %v11752_v18, %v9866_v47  ;;  %v9874_v16 = vadd.f32 %v9858_v9, %v9796_v25 }
 0x7d8   : > { %v11821_v23 = vadd.f32 %v11796_v19, %v11763_v58  ;;  %v11823_v3 = vadd.f32 %v11804_v39, %v11765_v15  ;;  %v11764_v37 = vadd.f32 %v11709_v8, %v17845_v53  ;;  %v11773_v44 = vadd.f32 %v11754_v49, %v9873_v36 }
 0x7d9   : > { %13802 = vtanh.f32 %v11840_v2  ;;  %v11824_v1 = vadd.f32 %v11808_v54, %v11766_v61  ;;  %v11774_v45 = vadd.f32 %v11756_v7, %v9874_v16  ;;  %v11771_v55 = vadd.f32 %v11711_v35, %v9871_v31  ;;  %v13837_v31 = vld [vmem:[%s14330_s25 + $0x48] sm:$0xff] }
 0x7da   : > { %v13789_v24 = vpop.eup %13788  ;;  %13804 = vtanh.f32 %v11823_v3  ;;  %v9872_v50 = vadd.f32 %v9856_v42, %v9794_v28  ;;  %v11831_v59 = vadd.f32 %v11804_v39, %v11773_v44  ;;  %v11837_v14 = vmul.f32 0.5, %v11821_v23 }
 0x7db   : > { %v11822_v51 = vadd.f32 %v11800_v40, %v11764_v37  ;;  %v11859_v11 = vadd.f32 1.0, %v13789_v24  ;;  %13806 = vtanh.f32 %v11824_v1  ;;  %v11832_v43 = vadd.f32 %v11808_v54, %v11774_v45  ;;  %v13838_v54 = vld [vmem:[%s14330_s25 + $0x50] sm:$0xff] }
 0x7dc   : > { %v13791_v29 = vpop.eup %13790  ;;  %v11772_v48 = vadd.f32 %v11713_v26, %v9872_v50  ;;  %v11829_v53 = vadd.f32 %v11796_v19, %v11771_v55  ;;  %13808 = vtanh.f32 %v11831_v59 }
 0x7dd   : > { %v13793_v27 = vpop.eup %13792  ;;  %v11857_v33 = vadd.f32 1.0, %v13791_v29  ;;  %13810 = vtanh.f32 %v11837_v14  ;;  %v11838_v30 = vmul.f32 0.5, %v11822_v51  ;;  %v11871_v34 = vmul.f32 0.5, %v11859_v11 }
 0x7de   : > { %v13795_v5 = vpop.eup %13794  ;;  %v11860_v62 = vadd.f32 1.0, %v13793_v27  ;;  %v11830_v4 = vadd.f32 %v11800_v40, %v11772_v48  ;;  %13812 = vtanh.f32 %v11832_v43  ;;  %v11843_v21 = vmul.f32 0.5, %v11829_v53  ;;  %v13839_v40 = vld [vmem:[%s14330_s25 + $0x58] sm:$0xff] }
 0x7df   : > { %v13797_v56 = vpop.eup %13796  ;;  %v11858_v22 = vadd.f32 1.0, %v13795_v5  ;;  %v11869_v47 = vmul.f32 0.5, %v11857_v33  ;;  %13814 = vtanh.f32 %v11838_v30  ;;  %v11885_v41 = vmul.f32 %v13836_v12, %v11871_v34 }
 0x7e0   : > { %v13799_v63 = vpop.eup %13798  ;;  %v11865_v0 = vadd.f32 1.0, %v13797_v56  ;;  %v11872_v17 = vmul.f32 0.5, %v11860_v62  ;;  %v11844_v42 = vmul.f32 0.5, %v11830_v4  ;;  %13816 = vtanh.f32 %v11843_v21 }
 0x7e1   : > { %v13801_v20 = vpop.eup %13800  ;;  %v11863_v57 = vadd.f32 1.0, %v13799_v63  ;;  %v11870_v46 = vmul.f32 0.5, %v11858_v22 }
 0x7e2   : > { %v11866_v38 = vadd.f32 1.0, %v13801_v20  ;;  %v11877_v25 = vmul.f32 0.5, %v11865_v0  ;;  %v11886_v2 = vmul.f32 %v13837_v31, %v11872_v17  ;;  %13818 = vtanh.f32 %v11844_v42 }
 0x7e3   : > { %v13803_v6 = vpop.eup %13802  ;;  %v11875_v19 = vmul.f32 0.5, %v11863_v57 }
 0x7e4   : > { %v13805_v52 = vpop.eup %13804  ;;  %v11864_v9 = vadd.f32 1.0, %v13803_v6  ;;  %v11878_v60 = vmul.f32 0.5, %v11866_v38  ;;  %v11887_v15 = vmul.f32 %v13838_v54, %v11877_v25 }
 0x7e5   : > { %v11889_v13 = vmul.f32 %v13805_v52, %v11869_v47  ;;  %v13807_v32 = vpop.eup %13806 }
 0x7e6   : > { %v11890_v58 = vmul.f32 %v13807_v32, %v11870_v46  ;;  %v13809_v10 = vpop.eup %13808  ;;  %v11876_v18 = vmul.f32 0.5, %v11864_v9  ;;  %v11888_v61 = vmul.f32 %v13839_v40, %v11878_v60 }
 0x7e7   : > { %v11893_v39 = vadd.f32 %v11889_v13, %v11885_v41  ;;  %v13811_v8 = vpop.eup %13810  ;;  %v11891_v36 = vmul.f32 %v13809_v10, %v11875_v19 }
 0x7e8   : > { %v11894_v35 = vadd.f32 %v11890_v58, %v11886_v2  ;;  %v13813_v28 = vpop.eup %13812  ;;  %v11861_v23 = vadd.f32 1.0, %v13811_v8 }
 0x7e9   : > { %13820 = vtanh.f32 %v11893_v39  ;;  %13261 = vst [vmem:[%s14330_s25 + $0x60] sm:$0xff] %v11893_v39  ;;  %11919 = vst [vmem:[#allocation3] sm:$0xff] %v11893_v39  ;;  %v11895_v49 = vadd.f32 %v11891_v36, %v11887_v15  ;;  %v11892_v26 = vmul.f32 %v13813_v28, %v11876_v18  ;;  %v13815_v16 = vpop.eup %13814 }
 0x7ea   : > { %13822 = vtanh.f32 %v11894_v35  ;;  %13262 = vst [vmem:[%s14330_s25 + $0x68] sm:$0xff] %v11894_v35  ;;  %11920 = vst [vmem:[#allocation3 + $0x8] sm:$0xff] %v11894_v35  ;;  %v13817_v37 = vpop.eup %13816  ;;  %v11862_v44 = vadd.f32 1.0, %v13815_v16 }
 0x7eb   : > { %13824 = vtanh.f32 %v11895_v49  ;;  %13263 = vst [vmem:[%s14330_s25 + $0x70] sm:$0xff] %v11895_v49  ;;  %11921 = vst [vmem:[#allocation3 + $0x10] sm:$0xff] %v11895_v49  ;;  %v11896_v3 = vadd.f32 %v11892_v26, %v11888_v61 }
 0x7ed   : > { %13826 = vtanh.f32 %v11896_v3  ;;  %13264 = vst [vmem:[%s14330_s25 + $0x78] sm:$0xff] %v11896_v3  ;;  %11922 = vst [vmem:[#allocation3 + $0x18] sm:$0xff] %v11896_v3 }
 0x7ee   : > { %13965 = shalt.err (!%p13962_p7)
}
 0x7ef   : > { %s13966_s25 = scalar_lea.hbm %s17918_s24, 2048  ;;  %s13970_s17 = scalar_lea.hbm %s18024_s11, 4096 }
 0x7f0   : > { %p13967_p9 = scmp.ne.s32.totalorder %s17918_s24, %s13966_s25  ;;  %p13971_p8 = scmp.lt.u32.totalorder %s17918_s24, %s18024_s11 }
 0x7f1   : > { %p13972_p13 = scmp.lt.u32.totalorder %s13970_s17, %s13966_s25  ;;  %p13974_p10 = scmp.lt.u32.totalorder %s13966_s25, %s17918_s24 }
 0x7f2   : > { %p13968_p12 = pnand %p13967_p9, %p18805_p11 }
 0x7f3   : > { %p13973_p1 = por %p13972_p13, %p13971_p8 }
 0x7f4   : > { %p13969_p4 = pneg %p13968_p12 }
 0x7f5   : > { %p13975_p0 = por %p13974_p10, %p13973_p1 }
 0x7f7   : > { %p13976_p2 = pnand %p13975_p0, %p13969_p4 }
 0x7f9   : > { %13979 = shalt.err (!%p13976_p2)
}
 0x7fa   : > { %s14087_s22 = smov 256   ;;  %s14088_s10 = smov 16   ;;  %v13819_v7 = vpop.eup %13818  ;;  %v11873_v1 = vmul.f32 0.5, %v11861_v23  ;;  %v11867_v24 = vadd.f32 1.0, %v13817_v37  ;;  %v11874_v50 = vmul.f32 0.5, %v11862_v44 }
 0x7fb   : > { %13362 = dma.vmem_to_hbm [thread:$0]  (%p18805_p11), %s17920_s30, 2048, %s17918_s24, %s11929_s29, %s14087_s22, %s14087_s22, %s14088_s10   ;;  %v13821_v45 = vpop.eup %13820  ;;  %v11868_v59 = vadd.f32 1.0, %v13819_v7 }
 0x7fc   : > { %v11901_v55 = vmul.f32 %v13821_v45, %v11873_v1  ;;  %v13823_v29 = vpop.eup %13822  ;;  %v11879_v51 = vmul.f32 0.5, %v11867_v24  ;;  %s11946_s28 = sshll.u32 %s14328_s23, 4  ;;  %s18806_s29 = sld [smem:[#allocation79_spill]]  ;;  %s17961_s28 = int_to_ptr.vmem [resolvable:$true] %s11946_s28 }
 0x7fd   : > { %v11902_v14 = vmul.f32 %v13823_v29, %v11874_v50  ;;  %v13825_v48 = vpop.eup %13824  ;;  %v11880_v11 = vmul.f32 0.5, %v11868_v59  ;;  %s11924_s26 = scalar_lea.sflag [#allocation6], %s14314_s12  ;;  %s13980_s15 = scalar_lea.vmem %s17961_s28, 2048 }
 0x7fe   : > { %13257 = vst [vmem:[%s14328_s23 + $0x60] sm:$0xff] %v11901_v55  ;;  %11915 = vst [vmem:[#allocation2] sm:$0xff] %v11901_v55  ;;  %v11903_v27 = vmul.f32 %v13825_v48, %v11879_v51  ;;  %v13827_v43 = vpop.eup %13826  ;;  %p13981_p3 = scmp.ne.s32.totalorder %s17961_s28, %s13980_s15  ;;  %s14089_s25 = smov [#allocation12]  }
 0x7ff   : > { %13258 = vst [vmem:[%s14328_s23 + $0x68] sm:$0xff] %v11902_v14  ;;  %11916 = vst [vmem:[#allocation2 + $0x8] sm:$0xff] %v11902_v14  ;;  %v11904_v5 = vmul.f32 %v13827_v43, %v11880_v11  ;;  %s13984_s20 = sshll.u32 %s14089_s25, 4  ;;  %s13985_s20 = int_to_ptr.vmem [resolvable:$false] %s13984_s20 }
 0x800   : > { %13259 = vst [vmem:[%s14328_s23 + $0x70] sm:$0xff] %v11903_v27  ;;  %11917 = vst [vmem:[#allocation2 + $0x10] sm:$0xff] %v11903_v27  ;;  %p13982_p5 = pnand %p13981_p3, %p18805_p11  ;;  %s13986_s13 = scalar_lea.vmem %s13985_s20, 4096 }
 0x801   : > { %13260 = vst [vmem:[%s14328_s23 + $0x78] sm:$0xff] %v11904_v5  ;;  %11918 = vst [vmem:[#allocation2 + $0x18] sm:$0xff] %v11904_v5  ;;  %p13987_p7 = scmp.lt.s32.totalorder %s17961_s28, %s13985_s20  ;;  %p13988_p9 = scmp.lt.s32.totalorder %s13986_s13, %s13980_s15 }
 0x802   : > { %s17959_s19 = scalar_lea.hbm %s18806_s29, %s13278_s21  ;;  %p13983_p6 = pneg %p13982_p5 }
 0x803   : > { %p13989_p12 = por %p13988_p9, %p13987_p7 }
 0x805   : > { %p13990_p4 = pnand %p13989_p12, %p13983_p6 }
 0x807   : > { %13993 = shalt.err (!%p13990_p4)
}
 0x808   : > { %s13994_s23 = scalar_lea.hbm %s17959_s19, 2048  ;;  %s13998_s17 = scalar_lea.hbm %s18806_s29, 4096 }
 0x809   : > { %p13995_p8 = scmp.ne.s32.totalorder %s17959_s19, %s13994_s23  ;;  %p13999_p10 = scmp.lt.u32.totalorder %s17959_s19, %s18806_s29 }
 0x80a   : > { %p14000_p0 = scmp.lt.u32.totalorder %s13998_s17, %s13994_s23  ;;  %p14002_p3 = scmp.lt.u32.totalorder %s13994_s23, %s17959_s19 }
 0x80b   : > { %p13996_p13 = pnand %p13995_p8, %p18805_p11 }
 0x80c   : > { %p14001_p2 = por %p14000_p0, %p13999_p10 }
 0x80d   : > { %p13997_p1 = pneg %p13996_p13 }
 0x80e   : > { %p14003_p5 = por %p14002_p3, %p14001_p2 }
 0x810   : > { %p14004_p6 = pnand %p14003_p5, %p13997_p1 }
 0x812   : > { %14007 = shalt.err (!%p14004_p6)
}
 0x813   : > { %13361 = dma.vmem_to_hbm [thread:$0]  (%p18805_p11), %s17961_s28, 2048, %s17959_s19, %s11924_s26, %s14087_s22, %s14087_s22, %s14088_s10  }
 0x814 PF: > { %s18807_s30 = sld [smem:[#allocation23_spill]]  ;;  %s18808_s24 = sld [smem:[#allocation20_spill]] }
 0x815   : > { %s18809_s15 = sld [smem:[#allocation25_spill]] }
 0x81a   : > { %p13393_p7 = scmp.ge.s32.totalorder %s18807_s30, 2  ;;  %s11981_s25 = sand.u32 1, %s18808_s24  }
 0x81b   : > { %p18810_p9 = scmp.ne.s32.totalorder %s18809_s15, 0  ;;  %s11982_s20 = scalar_lea.sflag [#allocation6], %s11981_s25 }
 0x81d   : > { %p13379_p12 = pnand %p13393_p7, %p18810_p9 }
 0x81f   : > { %14045 = dma.done.wait (!%p13379_p12), %s11982_s20, 2048  }
 0x820   : > { %14047 = vsyncadd (!%p13379_p12), %s11982_s20, 4294965248  ;;  %s11991_s27 = scalar_lea.sflag [#allocation14], %s11981_s25 }
 0x821   : > { %14049 = dma.done.wait (!%p13379_p12), %s11991_s27, 2048  }
 0x822   : > { %14051 = vsyncadd (!%p13379_p12), %s11991_s27, 4294965248  ;;  %s31_s22 = sadd.s32 1, %s18807_s30   ;;  %s18811_s12 = sld [smem:[#allocation21_spill]] }
 0x823   : > { %p28_p4 = scmp.ge.s32.totalorder %s31_s22, 4   ;;  %s18812_s19 = sld [smem:[#allocation26_spill]] }
 0x824   : > { %s18813_s20 = sld [smem:[#allocation22_spill]]  ;;  %s18814_s21 = sld [smem:[#allocation24_spill]] }
 0x825   : > { %s18815_s17 = smov %s14058_s18  ;;  %30 = sbr.rel (!%p28_p4) target bundleno = 12 (0xc), region = 150 }
 0x828   : > { %s18816_s18 = smov %s18811_s12 }
 0x82c   :  { %11996 = vsyncpa [#allocation5], 1 }
 0x82d   :  { %11998 = vsyncpa [#allocation5 + $0x1], 1 }
 0x82e   :  { %11999 = vsyncpa [#allocation8], 1 }
 0x82f   :  { %12000 = vsyncpa [#allocation11], 1 }
 0x830   :  { %12001 = vsyncpa [#allocation6], 1 }
 0x831   :  { %12003 = vsyncpa [#allocation6 + $0x1], 1 }
 0x832   :  { %12004 = vsyncpa [#allocation14], 1 }
 0x833   :  { %12006 = vsyncpa [#allocation14 + $0x1], 1 }

</bundles_post_ra>
